<compile_context>
chip_gen: v6e
topology: v6e:2x2x1
jax: 0.10.0
libtpu: 0.0.40
codegen_flags: <defaults>
</compile_context>

<pallas_src>
import math

import jax
import jax.numpy as jnp
from jax import lax
from jax.experimental import pallas as pl
from jax.experimental.pallas import tpu as pltpu

# ----------------------- small synthetic config -----------------------
B, T, S = 2, 8, 8          # batch, decoder seq len, context seq len
D, H, FF = 256, 2, 512     # embeddings_size, heads, ffn hidden (all 128-multiples, lane-dense)
DH = D // H                # 128: one full lane tile per head -> tile-aligned per-head slices
V = 256                    # len(vocab)  (128-multiple -> lane-dense logits tiles)
L = 2                      # transformer layers
MAXLEN = 64                # positional table
N_SEG = 4                  # segment-id table
PAD_ID = 0                 # vocab.pad_token_id
NEG = -1e9
SCALE = 1.0 / math.sqrt(DH)
LN_EPS = 1e-5

# row layout of the packed per-layer (1, D) parameter slab `pvec`
(PV_BO, PV_LN1G, PV_LN1B, PV_CBQ, PV_CBO,
 PV_LN2G, PV_LN2B, PV_B2, PV_LN3G, PV_LN3B) = range(10)
N_PV = 10


# ----------------------------- kernels --------------------------------

def _make_stack_kernel(n_ctx, ctx_lens, b, t):
    """Fused kernel for the WHOLE L-layer transformer stack (grid axis = layer)."""
    bt = b * t

    def _ln(v, g, beta):
        mu = jnp.mean(v, axis=-1, keepdims=True)
        var = jnp.mean(jnp.square(v - mu), axis=-1, keepdims=True)
        return (v - mu) * lax.rsqrt(var + LN_EPS) * g + beta

    def _mha(q2, k2, v2, bias, tq, tk):
        # q2: (b*tq, D) f32, k2/v2: (b*tk, D) f32, bias broadcastable to (b, tq, tk).
        # One bf16 cast per operand; per-head slices are 128-wide at 128-aligned lane offsets
        # (DH = 128) so no XLU relayout, and the output concat is tile-aligned.
        q3 = q2.reshape(b, tq, D).astype(jnp.bfloat16)
        k3 = k2.reshape(b, tk, D).astype(jnp.bfloat16)
        v3 = v2.reshape(b, tk, D).astype(jnp.bfloat16)
        outs = []
        for hh in range(H):                                   # static unroll over heads
            lo = hh * DH
            s = jnp.einsum('bqd,bkd->bqk', q3[:, :, lo:lo + DH], k3[:, :, lo:lo + DH],
                           preferred_element_type=jnp.float32) * SCALE + bias
            s = s - jnp.max(s, axis=-1, keepdims=True)
            p = jnp.exp(s)
            # After max-subtraction the denom is >= 1 even for fully-masked rows (NEG is
            # finite); clamp anyway so the approx reciprocal can never see 0 -> inf/NaN.
            denom = jnp.maximum(jnp.sum(p, axis=-1, keepdims=True), 1e-20)
            p = p * pl.reciprocal(denom, approx=True)
            outs.append(jnp.einsum('bqk,bkd->bqd', p.astype(jnp.bfloat16),
                                   v3[:, :, lo:lo + DH],
                                   preferred_element_type=jnp.float32))
        return jnp.concatenate(outs, axis=-1).reshape(b * tq, D)

    def kernel(*refs):
        refs = list(refs)
        x_ref, xpad_ref = refs.pop(0), refs.pop(0)
        ctx_refs = [(refs.pop(0), refs.pop(0)) for _ in range(n_ctx)]
        wqkv, wo = refs.pop(0), refs.pop(0)
        if n_ctx:
            cwq, cwkv, cwo = refs.pop(0), refs.pop(0), refs.pop(0)
        w1, w2 = refs.pop(0), refs.pop(0)
        pvec, bqkv = refs.pop(0), refs.pop(0)
        cbkv = refs.pop(0) if n_ctx else None
        b1 = refs.pop(0)
        o_ref = refs.pop(0)
        h_scr = refs.pop(0)                                   # (B*T, D) f32, resident across L

        layer = pl.program_id(0)

        @pl.when(layer == 0)
        def _():
            h_scr[...] = x_ref[...].astype(jnp.float32).reshape(bt, D)

        x2 = h_scr[...]
        pv = pvec[0]                                          # (N_PV, D) packed bias/LN slab

        # ---- in-kernel causal + padding additive mask (never materialized in HBM) ----
        row = lax.broadcasted_iota(jnp.int32, (t, t), 0)
        col = lax.broadcasted_iota(jnp.int32, (t, t), 1)
        xpad = xpad_ref[...] > 0.5                            # (b, t) bool
        self_bias = jnp.where((col > row)[None, :, :] | xpad[:, None, :], NEG, 0.0)

        # ---- masked multi-head self-attention (fused QKV, all heads in-block) ----
        qkv = jnp.dot(x2.astype(jnp.bfloat16), wqkv[0],
                      preferred_element_type=jnp.float32) + bqkv[0]
        a = _mha(qkv[:, :D], qkv[:, D:2 * D], qkv[:, 2 * D:], self_bias, t, t)
        a = jnp.dot(a.astype(jnp.bfloat16), wo[0],
                    preferred_element_type=jnp.float32) + pv[PV_BO:PV_BO + 1]
        x2 = _ln(x2 + a, pv[PV_LN1G:PV_LN1G + 1], pv[PV_LN1B:PV_LN1B + 1])

        # ---- cross-attention over each encoded context (fused KV proj) ----
        if n_ctx:
            # Q projection hoisted out of the context loop (context-independent).
            q2 = jnp.dot(x2.astype(jnp.bfloat16), cwq[0],
                         preferred_element_type=jnp.float32) + pv[PV_CBQ:PV_CBQ + 1]
            acc = jnp.zeros_like(x2)
            for (c_ref, cpad_ref), s_len in zip(ctx_refs, ctx_lens):
                cf = c_ref[...].reshape(b * s_len, D).astype(jnp.bfloat16)
                # keep (b, 1, s); the score add broadcasts (no broadcast_to materialization)
                cbias = jnp.where(cpad_ref[...][:, None, :] > 0.5, NEG, 0.0)
                kv = jnp.dot(cf, cwkv[0], preferred_element_type=jnp.float32) + cbkv[0]
                ca = _mha(q2, kv[:, :D], kv[:, D:], cbias, t, s_len)
                acc = acc + (jnp.dot(ca.astype(jnp.bfloat16), cwo[0],
                                     preferred_element_type=jnp.float32)
                             + pv[PV_CBO:PV_CBO + 1])
            x2 = _ln(x2 + acc, pv[PV_LN2G:PV_LN2G + 1], pv[PV_LN2B:PV_LN2B + 1])

        # ---- GELU feed-forward ----
        hdd = jnp.dot(x2.astype(jnp.bfloat16), w1[0],
                      preferred_element_type=jnp.float32) + b1[0]
        hdd = jax.nn.gelu(hdd, approximate=True)   # TODO(synk): PyTorch nn.GELU default is erf
        f = jnp.dot(hdd.astype(jnp.bfloat16), w2[0],
                    preferred_element_type=jnp.float32) + pv[PV_B2:PV_B2 + 1]
        x2 = _ln(x2 + f, pv[PV_LN3G:PV_LN3G + 1], pv[PV_LN3B:PV_LN3B + 1])

        h_scr[...] = x2                                       # carry to next layer (VMEM resident)

        @pl.when(layer == pl.num_programs(0) - 1)
        def _():
            o_ref[...] = x2.reshape(b, t, D).astype(o_ref.dtype)

    return kernel


def fused_transformer(x, xpad_f, ctx_data, sp, n_ctx, ctx_lens):
    """One pallas_call for all L layers; weights streamed per-layer, activations VMEM-resident."""
    b, t, _ = x.shape
    kernel = _make_stack_kernel(n_ctx, ctx_lens, b, t)

    args = [x, xpad_f]
    in_specs = [pl.BlockSpec((b, t, D), lambda l: (0, 0, 0)),
                pl.BlockSpec((b, t), lambda l: (0, 0))]
    for (c, cpf) in ctx_data:
        s_len = c.shape[1]
        args += [c, cpf]
        in_specs += [pl.BlockSpec((b, s_len, D), lambda l: (0, 0, 0)),
                     pl.BlockSpec((b, s_len), lambda l: (0, 0))]

    def wspec(arr):  # stacked (L, ...) param -> stream layer l's slice, 3-D blocks
        return pl.BlockSpec((1,) + arr.shape[1:], lambda l: (l, 0, 0))

    names = (['wqkv', 'wo'] + (['cwq', 'cwkv', 'cwo'] if n_ctx else [])
             + ['w1', 'w2', 'pvec', 'bqkv'] + (['cbkv'] if n_ctx else []) + ['b1'])
    for nm in names:
        arr = sp[nm]
        args.append(arr)
        in_specs.append(wspec(arr))

    # advisory cost estimate so XLA can overlap glue (embedding gathers) with this call
    bt = b * t
    fl = 2 * bt * D * 3 * D + 4 * b * t * t * D + 2 * bt * D * D + 4 * bt * D * FF
    tr = b * H * t * t + bt * FF
    for s_len in ctx_lens:
        fl += 2 * bt * D * D + 2 * (b * s_len) * D * 2 * D + 4 * b * t * s_len * D + 2 * bt * D * D
        tr += b * H * t * s_len
    bytes_acc = sum(int(a.size) * a.dtype.itemsize for a in args) + bt * D * 4
    ce = pl.CostEstimate(flops=L * fl, transcendentals=L * tr, bytes_accessed=int(bytes_acc))

    return pl.pallas_call(
        kernel,
        out_shape=jax.ShapeDtypeStruct((b, t, D), jnp.float32),
        grid_spec=pltpu.PrefetchScalarGridSpec(
            num_scalar_prefetch=0,
            grid=(L,),                                        # layer axis: sequential dependence
            in_specs=in_specs,
            out_specs=pl.BlockSpec((b, t, D), lambda l: (0, 0, 0)),
            scratch_shapes=[pltpu.VMEM((b * t, D), jnp.float32)]),
        compiler_params=pltpu.CompilerParams(
            dimension_semantics=("arbitrary",),
            vmem_limit_bytes=32 * 1024 * 1024),
        cost_estimate=ce,
    )(*args)


def _logits_kernel(h_ref, embT_ref, o_ref):
    # logits tile = h_tile @ embT_tile (tied weights, no bias); emb pre-transposed in glue.
    o_ref[...] = jnp.dot(h_ref[...].astype(jnp.bfloat16), embT_ref[...],
                         preferred_element_type=jnp.float32).astype(o_ref.dtype)


def pallas_logits(h2, embT, tm=8, tn=128):
    n, d = h2.shape
    v = embT.shape[1]
    ce = pl.CostEstimate(flops=2 * n * d * v, transcendentals=0,
                         bytes_accessed=int(n * d * 4 + d * v * 2 + n * v * 4))
    return pl.pallas_call(
        _logits_kernel,
        out_shape=jax.ShapeDtypeStruct((n, v), jnp.float32),
        grid_spec=pltpu.PrefetchScalarGridSpec(
            num_scalar_prefetch=0,
            grid=(pl.cdiv(n, tm), pl.cdiv(v, tn)),
            in_specs=[pl.BlockSpec((tm, d), lambda i, j: (i, 0)),
                      pl.BlockSpec((d, tn), lambda i, j: (0, j))],
            out_specs=pl.BlockSpec((tm, tn), lambda i, j: (i, j))),
        compiler_params=pltpu.CompilerParams(
            dimension_semantics=("parallel", "parallel"),
            vmem_limit_bytes=32 * 1024 * 1024),
        cost_estimate=ce,
    )(h2, embT)


# --------------------------- model (glue) ------------------------------

def transformer_module(params, tokens, enc_contexts=(), x_seg_id=None):
    """Shared GPT-style transformer used by both encode() and decode().

    Returns (hidden_states (B,T,D), padding_mask (B,T) bool) like the PyTorch
    TransformerModule.  Self-attention is causal + pad-masked; cross-attention
    attends to each encoded context with its padding mask.
    """
    b, t = tokens.shape
    pad_mask = (tokens == PAD_ID)
    x = jnp.take(params['emb'], tokens, axis=0) + params['pos'][:t][None]   # embedding gather (glue)
    if x_seg_id is not None:
        x = x + jnp.take(params['seg'], x_seg_id, axis=0)
    x = x.astype(jnp.float32)
    xpad_f = pad_mask.astype(jnp.float32)

    ctx_data = [(c, cp.astype(jnp.float32)) for (c, cp) in enc_contexts]
    n_ctx = len(ctx_data)
    ctx_lens = tuple(c.shape[1] for (c, _) in ctx_data)

    h = fused_transformer(x, xpad_f, ctx_data, params['stack'], n_ctx, ctx_lens)
    return h, pad_mask


def multi_input_forward(params, x, contexts=()):
    """MultiInputModel.forward: encode contexts -> decode x -> tied-weight logits."""
    enc_contexts = [transformer_module(params, c, x_seg_id=seg) for (c, seg) in contexts]
    h, _ = transformer_module(params, x, enc_contexts)
    b, t, d = h.shape
    # tied weights: pre-transpose emb once in glue so the logits kernel is a direct MXU matmul
    embT = params['emb'].T.astype(jnp.bfloat16)
    logits = pallas_logits(h.reshape(b * t, d), embT)
    return logits.reshape(b, t, V)


# ------------------------ deterministic init ---------------------------

def init_params(key):
    keys = iter(jax.random.split(key, 256))
    BF = jnp.bfloat16

    def nrm(shape, dtype=jnp.float32):
        return (jax.random.normal(next(keys), shape, jnp.float32) * 0.02).astype(dtype)

    # per-layer weights stacked along a leading L axis (streamed by the layer grid);
    # matmul weights stored bf16 (MXU operands), biases / LN params f32.
    stack = {
        'wqkv': nrm((L, D, 3 * D), BF),     # fused Q|K|V
        'wo':   nrm((L, D, D), BF),
        'cwq':  nrm((L, D, D), BF),         # cross-attn Q proj
        'cwkv': nrm((L, D, 2 * D), BF),     # fused cross K|V
        'cwo':  nrm((L, D, D), BF),
        'w1':   nrm((L, D, FF), BF),
        'w2':   nrm((L, FF, D), BF),
        # packed (1,D)-wide params: rows = [bo, ln1_g, ln1_b, cbq, cbo, ln2_g, ln2_b,
        #                                   b2, ln3_g, ln3_b]  (biases 0, LN gains 1)
        'pvec': jnp.tile(jnp.array([0., 1., 0., 0., 0., 1., 0., 0., 1., 0.],
                                   jnp.float32)[None, :, None], (L, 1, D)),
        'bqkv': jnp.zeros((L, 1, 3 * D), jnp.float32),
        'cbkv': jnp.zeros((L, 1, 2 * D), jnp.float32),
        'b1':   jnp.zeros((L, 1, FF), jnp.float32),
    }
    return {'emb': nrm((V, D)), 'pos': nrm((MAXLEN, D)), 'seg': nrm((N_SEG, D)),
            'stack': stack}


# ------------------------------- main -----------------------------------

if __name__ == "__main__":
    root = jax.random.PRNGKey(0)
    kp, kx, kc = jax.random.split(root, 3)

    params = init_params(kp)

    # decoder input tokens and one context (with trailing padding), as in forward(x, contexts)
    x_tok = jax.random.randint(kx, (B, T), 1, V, dtype=jnp.int32)
    c_tok = jax.random.randint(kc, (B, S), 1, V, dtype=jnp.int32)
    c_tok = c_tok.at[:, -2:].set(PAD_ID)
    c_seg = jnp.ones((B, S), jnp.int32)

    fwd = jax.jit(multi_input_forward)
    logits = fwd(params, x_tok, [(c_tok, c_seg)])
    logits = jax.block_until_ready(logits)

    assert logits.shape == (B, T, V), logits.shape
    assert bool(jnp.all(jnp.isfinite(logits)))
    print("KERNEL_OK")
</pallas_src>

<mosaic_0001>
module attributes {stable_mosaic.version = 11 : i64} {
  func.func @_logits_kernel(%arg0: i32, %arg1: i32, %arg2: memref<8x256xf32, #tpu.memory_space<vmem>>, %arg3: memref<256x128xbf16, #tpu.memory_space<vmem>>, %arg4: memref<8x128xf32, #tpu.memory_space<vmem>>) attributes {dimension_semantics = [#tpu.dimension_semantics<parallel>, #tpu.dimension_semantics<parallel>], iteration_bounds = array<i64: 2, 2>, scalar_prefetch = 0 : i64, scratch_operands = 0 : i64, tpu.core_type = #tpu.core_type<tc>, window_params = [{transform_indices = @transform_0, window_bounds = array<i64: 8, 256>}, {transform_indices = @transform_1, window_bounds = array<i64: 256, 128>}, {transform_indices = @transform_2, window_bounds = array<i64: 8, 128>}]} {
    %c0 = arith.constant 0 : index
    %c0_0 = arith.constant 0 : index
    %0 = vector.load %arg2[%c0, %c0_0] : memref<8x256xf32, #tpu.memory_space<vmem>>, vector<8x256xf32>
    %1 = arith.truncf %0 : vector<8x256xf32> to vector<8x256xbf16>
    %c0_1 = arith.constant 0 : index
    %c0_2 = arith.constant 0 : index
    %2 = vector.load %arg3[%c0_1, %c0_2] : memref<256x128xbf16, #tpu.memory_space<vmem>>, vector<256x128xbf16>
    %cst = arith.constant dense<0.000000e+00> : vector<8x128xf32>
    %3 = tpu.matmul %1, %2, %cst {dimension_numbers = #tpu.dot_dimension_numbers<[1], [0], [0], [1], [0, 0, 1, 1], [], []>} : vector<8x256xbf16>, vector<256x128xbf16>, vector<8x128xf32> -> vector<8x128xf32>
    %c0_3 = arith.constant 0 : index
    %c0_4 = arith.constant 0 : index
    %4 = vector.load %arg4[%c0_3, %c0_4] : memref<8x128xf32, #tpu.memory_space<vmem>>, vector<8x128xf32>
    tpu.vector_store %arg4[%c0_3, %c0_4], %3 {strides = array<i32>} : memref<8x128xf32, #tpu.memory_space<vmem>>, vector<8x128xf32>,
    return
  }
  func.func @transform_0(%arg0: i32, %arg1: i32) -> (i32, i32) {
    %c0_i32 = arith.constant 0 : i32
    %c0_i32_0 = arith.constant 0 : i32
    return %arg0, %c0_i32 : i32, i32
  }
  func.func @transform_1(%arg0: i32, %arg1: i32) -> (i32, i32) {
    %c0_i32 = arith.constant 0 : i32
    %c0_i32_0 = arith.constant 0 : i32
    return %c0_i32, %arg1 : i32, i32
  }
  func.func @transform_2(%arg0: i32, %arg1: i32) -> (i32, i32) {
    %c0_i32 = arith.constant 0 : i32
    return %arg0, %arg1 : i32, i32
  }
}

module attributes {stable_mosaic.version = 11 : i64} {
  func.func @kernel(%arg0: i32, %arg1: memref<2x8x256xf32, #tpu.memory_space<vmem>>, %arg2: memref<2x8xf32, #tpu.memory_space<vmem>>, %arg3: memref<1x256x768xbf16, #tpu.memory_space<vmem>>, %arg4: memref<1x256x256xbf16, #tpu.memory_space<vmem>>, %arg5: memref<1x256x512xbf16, #tpu.memory_space<vmem>>, %arg6: memref<1x512x256xbf16, #tpu.memory_space<vmem>>, %arg7: memref<1x10x256xf32, #tpu.memory_space<vmem>>, %arg8: memref<1x1x768xf32, #tpu.memory_space<vmem>>, %arg9: memref<1x1x512xf32, #tpu.memory_space<vmem>>, %arg10: memref<2x8x256xf32, #tpu.memory_space<vmem>>, %arg11: memref<16x256xf32, #tpu.memory_space<vmem>>) attributes {dimension_semantics = [#tpu.dimension_semantics<arbitrary>], iteration_bounds = array<i64: 2>, scalar_prefetch = 0 : i64, scratch_operands = 1 : i64, tpu.core_type = #tpu.core_type<tc>, window_params = [{pipeline_mode = #tpu.pipeline_mode<synchronous>, transform_indices = @transform_0, window_bounds = array<i64: 2, 8, 256>}, {pipeline_mode = #tpu.pipeline_mode<synchronous>, transform_indices = @transform_1, window_bounds = array<i64: 2, 8>}, {transform_indices = @transform_2, window_bounds = array<i64: 1, 256, 768>}, {transform_indices = @transform_3, window_bounds = array<i64: 1, 256, 256>}, {transform_indices = @transform_4, window_bounds = array<i64: 1, 256, 512>}, {transform_indices = @transform_5, window_bounds = array<i64: 1, 512, 256>}, {transform_indices = @transform_6, window_bounds = array<i64: 1, 10, 256>}, {transform_indices = @transform_7, window_bounds = array<i64: 1, 1, 768>}, {transform_indices = @transform_8, window_bounds = array<i64: 1, 1, 512>}, {pipeline_mode = #tpu.pipeline_mode<synchronous>, transform_indices = @transform_9, window_bounds = array<i64: 2, 8, 256>}]} {
    %c0_i32 = arith.constant 0 : i32
    %0 = arith.cmpi eq, %arg0, %c0_i32 : i32
    %1 = arith.extui %0 : i1 to i32
    %c0_i32_0 = arith.constant 0 : i32
    %2 = arith.cmpi ne, %1, %c0_i32_0 : i32
    scf.if %2 {
      %c0_60 = arith.constant 0 : index
      %c0_61 = arith.constant 0 : index
      %c0_62 = arith.constant 0 : index
      %170 = vector.load %arg1[%c0_60, %c0_61, %c0_62] : memref<2x8x256xf32, #tpu.memory_space<vmem>>, vector<2x8x256xf32>
      %171 = vector.shape_cast %170 : vector<2x8x256xf32> to vector<16x256xf32>
      %c0_63 = arith.constant 0 : index
      %c0_64 = arith.constant 0 : index
      %172 = vector.load %arg11[%c0_63, %c0_64] : memref<16x256xf32, #tpu.memory_space<vmem>>, vector<16x256xf32>
      tpu.vector_store %arg11[%c0_63, %c0_64], %171 {strides = array<i32>} : memref<16x256xf32, #tpu.memory_space<vmem>>, vector<16x256xf32>,
    } else {
    }
    %c0 = arith.constant 0 : index
    %c0_1 = arith.constant 0 : index
    %3 = vector.load %arg11[%c0, %c0_1] : memref<16x256xf32, #tpu.memory_space<vmem>>, vector<16x256xf32>
    %c0_2 = arith.constant 0 : index
    %c0_3 = arith.constant 0 : index
    %c0_4 = arith.constant 0 : index
    %4 = vector.load %arg7[%c0_2, %c0_3, %c0_4] : memref<1x10x256xf32, #tpu.memory_space<vmem>>, vector<1x10x256xf32>
    %5 = vector.shape_cast %4 : vector<1x10x256xf32> to vector<10x256xf32>
    %6 = tpu.iota {dimensions = array<i32: 0>} : vector<8x8xi32>
    %7 = tpu.iota {dimensions = array<i32: 1>} : vector<8x8xi32>
    %c0_5 = arith.constant 0 : index
    %c0_6 = arith.constant 0 : index
    %8 = vector.load %arg2[%c0_5, %c0_6] : memref<2x8xf32, #tpu.memory_space<vmem>>, vector<2x8xf32>
    %cst = arith.constant 5.000000e-01 : f32
    %9 = vector.broadcast %cst : f32 to vector<2x8xf32>
    %10 = arith.cmpf ogt, %8, %9 : vector<2x8xf32>
    %11 = arith.cmpi sgt, %7, %6 : vector<8x8xi32>
    %12 = vector.shape_cast %11 : vector<8x8xi1> to vector<1x8x8xi1>
    %13 = vector.shape_cast %10 : vector<2x8xi1> to vector<2x1x8xi1>
    %14 = vector.broadcast %12 : vector<1x8x8xi1> to vector<2x8x8xi1>
    %15 = vector.broadcast %13 : vector<2x1x8xi1> to vector<2x8x8xi1>
    %16 = arith.ori %14, %15 : vector<2x8x8xi1>
    %cst_7 = arith.constant -1.000000e+09 : f32
    %cst_8 = arith.constant 0.000000e+00 : f32
    %17 = vector.broadcast %cst_7 : f32 to vector<2x8x8xf32>
    %18 = vector.broadcast %cst_8 : f32 to vector<2x8x8xf32>
    %19 = arith.select %16, %17, %18 : vector<2x8x8xi1>, vector<2x8x8xf32>
    %20 = arith.truncf %3 : vector<16x256xf32> to vector<16x256xbf16>
    %c0_9 = arith.constant 0 : index
    %c0_10 = arith.constant 0 : index
    %c0_11 = arith.constant 0 : index
    %21 = vector.load %arg3[%c0_9, %c0_10, %c0_11] : memref<1x256x768xbf16, #tpu.memory_space<vmem>>, vector<1x256x768xbf16>
    %22 = vector.shape_cast %21 : vector<1x256x768xbf16> to vector<256x768xbf16>
    %cst_12 = arith.constant dense<0.000000e+00> : vector<16x768xf32>
    %23 = tpu.matmul %20, %22, %cst_12 {dimension_numbers = #tpu.dot_dimension_numbers<[1], [0], [0], [1], [0, 0, 1, 1], [], []>} : vector<16x256xbf16>, vector<256x768xbf16>, vector<16x768xf32> -> vector<16x768xf32>
    %c0_13 = arith.constant 0 : index
    %c0_14 = arith.constant 0 : index
    %c0_15 = arith.constant 0 : index
    %24 = vector.load %arg8[%c0_13, %c0_14, %c0_15] : memref<1x1x768xf32, #tpu.memory_space<vmem>>, vector<1x1x768xf32>
    %25 = vector.shape_cast %24 : vector<1x1x768xf32> to vector<1x768xf32>
    %26 = vector.broadcast %25 : vector<1x768xf32> to vector<16x768xf32>
    %27 = arith.addf %23, %26 : vector<16x768xf32>
    %28 = vector.extract_strided_slice %27 {offsets = [0, 0], sizes = [16, 256], strides = [1, 1]} : vector<16x768xf32> to vector<16x256xf32>
    %29 = vector.extract_strided_slice %27 {offsets = [0, 256], sizes = [16, 256], strides = [1, 1]} : vector<16x768xf32> to vector<16x256xf32>
    %30 = vector.extract_strided_slice %27 {offsets = [0, 512], sizes = [16, 256], strides = [1, 1]} : vector<16x768xf32> to vector<16x256xf32>
    %31 = vector.shape_cast %28 : vector<16x256xf32> to vector<2x8x256xf32>
    %32 = arith.truncf %31 : vector<2x8x256xf32> to vector<2x8x256xbf16>
    %33 = vector.shape_cast %29 : vector<16x256xf32> to vector<2x8x256xf32>
    %34 = arith.truncf %33 : vector<2x8x256xf32> to vector<2x8x256xbf16>
    %35 = vector.shape_cast %30 : vector<16x256xf32> to vector<2x8x256xf32>
    %36 = arith.truncf %35 : vector<2x8x256xf32> to vector<2x8x256xbf16>
    %37 = vector.extract_strided_slice %32 {offsets = [0, 0, 0], sizes = [2, 8, 128], strides = [1, 1, 1]} : vector<2x8x256xbf16> to vector<2x8x128xbf16>
    %38 = vector.extract_strided_slice %34 {offsets = [0, 0, 0], sizes = [2, 8, 128], strides = [1, 1, 1]} : vector<2x8x256xbf16> to vector<2x8x128xbf16>
    "tpu.trace_start"() <{level = 10 : i32, message = "bqd,bkd->bqk"}> : () -> ()
    %cst_16 = arith.constant dense<0.000000e+00> : vector<2x8x8xf32>
    %39 = tpu.matmul %37, %38, %cst_16 {dimension_numbers = #tpu.dot_dimension_numbers<[2], [2], [1], [1], [0, 0, 0, 1, 1, 1], [0], [0]>} : vector<2x8x128xbf16>, vector<2x8x128xbf16>, vector<2x8x8xf32> -> vector<2x8x8xf32>
    "tpu.trace_stop"() : () -> ()
    %cst_17 = arith.constant 0.0883883461 : f32
    %40 = vector.broadcast %cst_17 : f32 to vector<2x8x8xf32>
    %41 = arith.mulf %39, %40 : vector<2x8x8xf32>
    %42 = arith.addf %41, %19 : vector<2x8x8xf32>
    %cst_18 = arith.constant dense<0xFF800000> : vector<2x8xf32>
    %43 = vector.multi_reduction <maximumf>, %42, %cst_18 [2] : vector<2x8x8xf32> to vector<2x8xf32>
    %44 = vector.shape_cast %43 : vector<2x8xf32> to vector<2x8x1xf32>
    %45 = vector.broadcast %44 : vector<2x8x1xf32> to vector<2x8x8xf32>
    %46 = arith.subf %42, %45 : vector<2x8x8xf32>
    %47 = math.exp %46 : vector<2x8x8xf32>
    %cst_19 = arith.constant dense<0.000000e+00> : vector<2x8xf32>
    %48 = vector.multi_reduction <add>, %47, %cst_19 [2] : vector<2x8x8xf32> to vector<2x8xf32>
    %49 = vector.shape_cast %48 : vector<2x8xf32> to vector<2x8x1xf32>
    %cst_20 = arith.constant 9.99999968E-21 : f32
    %50 = vector.broadcast %cst_20 : f32 to vector<2x8x1xf32>
    %51 = arith.maximumf %49, %50 : vector<2x8x1xf32>
    %52 = tpu.reciprocal %51 {approx = true} : vector<2x8x1xf32> -> vector<2x8x1xf32>
    %53 = vector.broadcast %52 : vector<2x8x1xf32> to vector<2x8x8xf32>
    %54 = arith.mulf %47, %53 : vector<2x8x8xf32>
    %55 = arith.truncf %54 : vector<2x8x8xf32> to vector<2x8x8xbf16>
    %56 = vector.extract_strided_slice %36 {offsets = [0, 0, 0], sizes = [2, 8, 128], strides = [1, 1, 1]} : vector<2x8x256xbf16> to vector<2x8x128xbf16>
    "tpu.trace_start"() <{level = 10 : i32, message = "bqk,bkd->bqd"}> : () -> ()
    %cst_21 = arith.constant dense<0.000000e+00> : vector<2x8x128xf32>
    %57 = tpu.matmul %55, %56, %cst_21 {dimension_numbers = #tpu.dot_dimension_numbers<[2], [1], [1], [2], [0, 0, 0, 1, 1, 2], [0], [0]>} : vector<2x8x8xbf16>, vector<2x8x128xbf16>, vector<2x8x128xf32> -> vector<2x8x128xf32>
    "tpu.trace_stop"() : () -> ()
    %58 = vector.extract_strided_slice %32 {offsets = [0, 0, 128], sizes = [2, 8, 128], strides = [1, 1, 1]} : vector<2x8x256xbf16> to vector<2x8x128xbf16>
    %59 = vector.extract_strided_slice %34 {offsets = [0, 0, 128], sizes = [2, 8, 128], strides = [1, 1, 1]} : vector<2x8x256xbf16> to vector<2x8x128xbf16>
    "tpu.trace_start"() <{level = 10 : i32, message = "bqd,bkd->bqk"}> : () -> ()
    %cst_22 = arith.constant dense<0.000000e+00> : vector<2x8x8xf32>
    %60 = tpu.matmul %58, %59, %cst_22 {dimension_numbers = #tpu.dot_dimension_numbers<[2], [2], [1], [1], [0, 0, 0, 1, 1, 1], [0], [0]>} : vector<2x8x128xbf16>, vector<2x8x128xbf16>, vector<2x8x8xf32> -> vector<2x8x8xf32>
    "tpu.trace_stop"() : () -> ()
    %cst_23 = arith.constant 0.0883883461 : f32
    %61 = vector.broadcast %cst_23 : f32 to vector<2x8x8xf32>
    %62 = arith.mulf %60, %61 : vector<2x8x8xf32>
    %63 = arith.addf %62, %19 : vector<2x8x8xf32>
    %cst_24 = arith.constant dense<0xFF800000> : vector<2x8xf32>
    %64 = vector.multi_reduction <maximumf>, %63, %cst_24 [2] : vector<2x8x8xf32> to vector<2x8xf32>
    %65 = vector.shape_cast %64 : vector<2x8xf32> to vector<2x8x1xf32>
    %66 = vector.broadcast %65 : vector<2x8x1xf32> to vector<2x8x8xf32>
    %67 = arith.subf %63, %66 : vector<2x8x8xf32>
    %68 = math.exp %67 : vector<2x8x8xf32>
    %cst_25 = arith.constant dense<0.000000e+00> : vector<2x8xf32>
    %69 = vector.multi_reduction <add>, %68, %cst_25 [2] : vector<2x8x8xf32> to vector<2x8xf32>
    %70 = vector.shape_cast %69 : vector<2x8xf32> to vector<2x8x1xf32>
    %cst_26 = arith.constant 9.99999968E-21 : f32
    %71 = vector.broadcast %cst_26 : f32 to vector<2x8x1xf32>
    %72 = arith.maximumf %70, %71 : vector<2x8x1xf32>
    %73 = tpu.reciprocal %72 {approx = true} : vector<2x8x1xf32> -> vector<2x8x1xf32>
    %74 = vector.broadcast %73 : vector<2x8x1xf32> to vector<2x8x8xf32>
    %75 = arith.mulf %68, %74 : vector<2x8x8xf32>
    %76 = arith.truncf %75 : vector<2x8x8xf32> to vector<2x8x8xbf16>
    %77 = vector.extract_strided_slice %36 {offsets = [0, 0, 128], sizes = [2, 8, 128], strides = [1, 1, 1]} : vector<2x8x256xbf16> to vector<2x8x128xbf16>
    "tpu.trace_start"() <{level = 10 : i32, message = "bqk,bkd->bqd"}> : () -> ()
    %cst_27 = arith.constant dense<0.000000e+00> : vector<2x8x128xf32>
    %78 = tpu.matmul %76, %77, %cst_27 {dimension_numbers = #tpu.dot_dimension_numbers<[2], [1], [1], [2], [0, 0, 0, 1, 1, 2], [0], [0]>} : vector<2x8x8xbf16>, vector<2x8x128xbf16>, vector<2x8x128xf32> -> vector<2x8x128xf32>
    "tpu.trace_stop"() : () -> ()
    %79 = tpu.concatenate %57, %78 in 2 : vector<2x8x128xf32>, vector<2x8x128xf32> -> vector<2x8x256xf32>
    %80 = vector.shape_cast %79 : vector<2x8x256xf32> to vector<16x256xf32>
    %81 = arith.truncf %80 : vector<16x256xf32> to vector<16x256xbf16>
    %c0_28 = arith.constant 0 : index
    %c0_29 = arith.constant 0 : index
    %c0_30 = arith.constant 0 : index
    %82 = vector.load %arg4[%c0_28, %c0_29, %c0_30] : memref<1x256x256xbf16, #tpu.memory_space<vmem>>, vector<1x256x256xbf16>
    %83 = vector.shape_cast %82 : vector<1x256x256xbf16> to vector<256x256xbf16>
    %cst_31 = arith.constant dense<0.000000e+00> : vector<16x256xf32>
    %84 = tpu.matmul %81, %83, %cst_31 {dimension_numbers = #tpu.dot_dimension_numbers<[1], [0], [0], [1], [0, 0, 1, 1], [], []>} : vector<16x256xbf16>, vector<256x256xbf16>, vector<16x256xf32> -> vector<16x256xf32>
    %85 = vector.extract_strided_slice %5 {offsets = [0, 0], sizes = [1, 256], strides = [1, 1]} : vector<10x256xf32> to vector<1x256xf32>
    %86 = vector.broadcast %85 : vector<1x256xf32> to vector<16x256xf32>
    %87 = arith.addf %84, %86 : vector<16x256xf32>
    %88 = arith.addf %3, %87 : vector<16x256xf32>
    %89 = vector.extract_strided_slice %5 {offsets = [1, 0], sizes = [1, 256], strides = [1, 1]} : vector<10x256xf32> to vector<1x256xf32>
    %90 = vector.extract_strided_slice %5 {offsets = [2, 0], sizes = [1, 256], strides = [1, 1]} : vector<10x256xf32> to vector<1x256xf32>
    %cst_32 = arith.constant dense<0.000000e+00> : vector<16xf32>
    %91 = vector.multi_reduction <add>, %88, %cst_32 [1] : vector<16x256xf32> to vector<16xf32>
    %92 = vector.shape_cast %91 : vector<16xf32> to vector<16x1xf32>
    %cst_33 = arith.constant 2.560000e+02 : f32
    %93 = vector.broadcast %cst_33 : f32 to vector<16x1xf32>
    %94 = arith.divf %92, %93 : vector<16x1xf32>
    %95 = vector.broadcast %94 : vector<16x1xf32> to vector<16x256xf32>
    %96 = arith.subf %88, %95 : vector<16x256xf32>
    %97 = arith.mulf %96, %96 : vector<16x256xf32>
    %cst_34 = arith.constant dense<0.000000e+00> : vector<16xf32>
    %98 = vector.multi_reduction <add>, %97, %cst_34 [1] : vector<16x256xf32> to vector<16xf32>
    %99 = vector.shape_cast %98 : vector<16xf32> to vector<16x1xf32>
    %cst_35 = arith.constant 2.560000e+02 : f32
    %100 = vector.broadcast %cst_35 : f32 to vector<16x1xf32>
    %101 = arith.divf %99, %100 : vector<16x1xf32>
    %102 = vector.broadcast %94 : vector<16x1xf32> to vector<16x256xf32>
    %103 = arith.subf %88, %102 : vector<16x256xf32>
    %cst_36 = arith.constant 9.99999974E-6 : f32
    %104 = vector.broadcast %cst_36 : f32 to vector<16x1xf32>
    %105 = arith.addf %101, %104 : vector<16x1xf32>
    %106 = math.rsqrt %105 : vector<16x1xf32>
    %107 = vector.broadcast %106 : vector<16x1xf32> to vector<16x256xf32>
    %108 = arith.mulf %103, %107 : vector<16x256xf32>
    %109 = vector.broadcast %89 : vector<1x256xf32> to vector<16x256xf32>
    %110 = arith.mulf %108, %109 : vector<16x256xf32>
    %111 = vector.broadcast %90 : vector<1x256xf32> to vector<16x256xf32>
    %112 = arith.addf %110, %111 : vector<16x256xf32>
    %113 = arith.truncf %112 : vector<16x256xf32> to vector<16x256xbf16>
    %c0_37 = arith.constant 0 : index
    %c0_38 = arith.constant 0 : index
    %c0_39 = arith.constant 0 : index
    %114 = vector.load %arg5[%c0_37, %c0_38, %c0_39] : memref<1x256x512xbf16, #tpu.memory_space<vmem>>, vector<1x256x512xbf16>
    %115 = vector.shape_cast %114 : vector<1x256x512xbf16> to vector<256x512xbf16>
    %cst_40 = arith.constant dense<0.000000e+00> : vector<16x512xf32>
    %116 = tpu.matmul %113, %115, %cst_40 {dimension_numbers = #tpu.dot_dimension_numbers<[1], [0], [0], [1], [0, 0, 1, 1], [], []>} : vector<16x256xbf16>, vector<256x512xbf16>, vector<16x512xf32> -> vector<16x512xf32>
    %c0_41 = arith.constant 0 : index
    %c0_42 = arith.constant 0 : index
    %c0_43 = arith.constant 0 : index
    %117 = vector.load %arg9[%c0_41, %c0_42, %c0_43] : memref<1x1x512xf32, #tpu.memory_space<vmem>>, vector<1x1x512xf32>
    %118 = vector.shape_cast %117 : vector<1x1x512xf32> to vector<1x512xf32>
    %119 = vector.broadcast %118 : vector<1x512xf32> to vector<16x512xf32>
    %120 = arith.addf %116, %119 : vector<16x512xf32>
    %121 = arith.mulf %120, %120 : vector<16x512xf32>
    %122 = arith.mulf %120, %121 : vector<16x512xf32>
    %cst_44 = arith.constant 4.471500e-02 : f32
    %123 = vector.broadcast %cst_44 : f32 to vector<16x512xf32>
    %124 = arith.mulf %123, %122 : vector<16x512xf32>
    %125 = arith.addf %120, %124 : vector<16x512xf32>
    %cst_45 = arith.constant 0.797884583 : f32
    %126 = vector.broadcast %cst_45 : f32 to vector<16x512xf32>
    %127 = arith.mulf %126, %125 : vector<16x512xf32>
    %128 = math.tanh %127 : vector<16x512xf32>
    %cst_46 = arith.constant 1.000000e+00 : f32
    %129 = vector.broadcast %cst_46 : f32 to vector<16x512xf32>
    %130 = arith.addf %129, %128 : vector<16x512xf32>
    %cst_47 = arith.constant 5.000000e-01 : f32
    %131 = vector.broadcast %cst_47 : f32 to vector<16x512xf32>
    %132 = arith.mulf %131, %130 : vector<16x512xf32>
    %133 = arith.mulf %120, %132 : vector<16x512xf32>
    %134 = arith.truncf %133 : vector<16x512xf32> to vector<16x512xbf16>
    %c0_48 = arith.constant 0 : index
    %c0_49 = arith.constant 0 : index
    %c0_50 = arith.constant 0 : index
    %135 = vector.load %arg6[%c0_48, %c0_49, %c0_50] : memref<1x512x256xbf16, #tpu.memory_space<vmem>>, vector<1x512x256xbf16>
    %136 = vector.shape_cast %135 : vector<1x512x256xbf16> to vector<512x256xbf16>
    %cst_51 = arith.constant dense<0.000000e+00> : vector<16x256xf32>
    %137 = tpu.matmul %134, %136, %cst_51 {dimension_numbers = #tpu.dot_dimension_numbers<[1], [0], [0], [1], [0, 0, 1, 1], [], []>} : vector<16x512xbf16>, vector<512x256xbf16>, vector<16x256xf32> -> vector<16x256xf32>
    %138 = vector.extract_strided_slice %5 {offsets = [7, 0], sizes = [1, 256], strides = [1, 1]} : vector<10x256xf32> to vector<1x256xf32>
    %139 = vector.broadcast %138 : vector<1x256xf32> to vector<16x256xf32>
    %140 = arith.addf %137, %139 : vector<16x256xf32>
    %141 = arith.addf %112, %140 : vector<16x256xf32>
    %142 = vector.extract_strided_slice %5 {offsets = [8, 0], sizes = [1, 256], strides = [1, 1]} : vector<10x256xf32> to vector<1x256xf32>
    %143 = vector.extract_strided_slice %5 {offsets = [9, 0], sizes = [1, 256], strides = [1, 1]} : vector<10x256xf32> to vector<1x256xf32>
    %cst_52 = arith.constant dense<0.000000e+00> : vector<16xf32>
    %144 = vector.multi_reduction <add>, %141, %cst_52 [1] : vector<16x256xf32> to vector<16xf32>
    %145 = vector.shape_cast %144 : vector<16xf32> to vector<16x1xf32>
    %cst_53 = arith.constant 2.560000e+02 : f32
    %146 = vector.broadcast %cst_53 : f32 to vector<16x1xf32>
    %147 = arith.divf %145, %146 : vector<16x1xf32>
    %148 = vector.broadcast %147 : vector<16x1xf32> to vector<16x256xf32>
    %149 = arith.subf %141, %148 : vector<16x256xf32>
    %150 = arith.mulf %149, %149 : vector<16x256xf32>
    %cst_54 = arith.constant dense<0.000000e+00> : vector<16xf32>
    %151 = vector.multi_reduction <add>, %150, %cst_54 [1] : vector<16x256xf32> to vector<16xf32>
    %152 = vector.shape_cast %151 : vector<16xf32> to vector<16x1xf32>
    %cst_55 = arith.constant 2.560000e+02 : f32
    %153 = vector.broadcast %cst_55 : f32 to vector<16x1xf32>
    %154 = arith.divf %152, %153 : vector<16x1xf32>
    %155 = vector.broadcast %147 : vector<16x1xf32> to vector<16x256xf32>
    %156 = arith.subf %141, %155 : vector<16x256xf32>
    %cst_56 = arith.constant 9.99999974E-6 : f32
    %157 = vector.broadcast %cst_56 : f32 to vector<16x1xf32>
    %158 = arith.addf %154, %157 : vector<16x1xf32>
    %159 = math.rsqrt %158 : vector<16x1xf32>
    %160 = vector.broadcast %159 : vector<16x1xf32> to vector<16x256xf32>
    %161 = arith.mulf %156, %160 : vector<16x256xf32>
    %162 = vector.broadcast %142 : vector<1x256xf32> to vector<16x256xf32>
    %163 = arith.mulf %161, %162 : vector<16x256xf32>
    %164 = vector.broadcast %143 : vector<1x256xf32> to vector<16x256xf32>
    %165 = arith.addf %163, %164 : vector<16x256xf32>
    %c0_57 = arith.constant 0 : index
    %c0_58 = arith.constant 0 : index
    %166 = vector.load %arg11[%c0_57, %c0_58] : memref<16x256xf32, #tpu.memory_space<vmem>>, vector<16x256xf32>
    tpu.vector_store %arg11[%c0_57, %c0_58], %165 {strides = array<i32>} : memref<16x256xf32, #tpu.memory_space<vmem>>, vector<16x256xf32>,
    %c1_i32 = arith.constant 1 : i32
    %167 = arith.cmpi eq, %arg0, %c1_i32 : i32
    %168 = arith.extui %167 : i1 to i32
    %c0_i32_59 = arith.constant 0 : i32
    %169 = arith.cmpi ne, %168, %c0_i32_59 : i32
    scf.if %169 {
      %170 = vector.shape_cast %165 : vector<16x256xf32> to vector<2x8x256xf32>
      %c0_60 = arith.constant 0 : index
      %c0_61 = arith.constant 0 : index
      %c0_62 = arith.constant 0 : index
      %171 = vector.load %arg10[%c0_60, %c0_61, %c0_62] : memref<2x8x256xf32, #tpu.memory_space<vmem>>, vector<2x8x256xf32>
      tpu.vector_store %arg10[%c0_60, %c0_61, %c0_62], %170 {strides = array<i32>} : memref<2x8x256xf32, #tpu.memory_space<vmem>>, vector<2x8x256xf32>,
    } else {
    }
    return
  }
  func.func @transform_0(%arg0: i32) -> (i32, i32, i32) {
    %c0_i32 = arith.constant 0 : i32
    %c0_i32_0 = arith.constant 0 : i32
    %c0_i32_1 = arith.constant 0 : i32
    %c0_i32_2 = arith.constant 0 : i32
    return %c0_i32, %c0_i32_0, %c0_i32_1 : i32, i32, i32
  }
  func.func @transform_1(%arg0: i32) -> (i32, i32) {
    %c0_i32 = arith.constant 0 : i32
    %c0_i32_0 = arith.constant 0 : i32
    %c0_i32_1 = arith.constant 0 : i32
    return %c0_i32, %c0_i32_0 : i32, i32
  }
  func.func @transform_2(%arg0: i32) -> (i32, i32, i32) {
    %c0_i32 = arith.constant 0 : i32
    %c0_i32_0 = arith.constant 0 : i32
    %c0_i32_1 = arith.constant 0 : i32
    return %arg0, %c0_i32, %c0_i32_0 : i32, i32, i32
  }
  func.func @transform_3(%arg0: i32) -> (i32, i32, i32) {
    %c0_i32 = arith.constant 0 : i32
    %c0_i32_0 = arith.constant 0 : i32
    %c0_i32_1 = arith.constant 0 : i32
    return %arg0, %c0_i32, %c0_i32_0 : i32, i32, i32
  }
  func.func @transform_4(%arg0: i32) -> (i32, i32, i32) {
    %c0_i32 = arith.constant 0 : i32
    %c0_i32_0 = arith.constant 0 : i32
    %c0_i32_1 = arith.constant 0 : i32
    return %arg0, %c0_i32, %c0_i32_0 : i32, i32, i32
  }
  func.func @transform_5(%arg0: i32) -> (i32, i32, i32) {
    %c0_i32 = arith.constant 0 : i32
    %c0_i32_0 = arith.constant 0 : i32
    %c0_i32_1 = arith.constant 0 : i32
    return %arg0, %c0_i32, %c0_i32_0 : i32, i32, i32
  }
  func.func @transform_6(%arg0: i32) -> (i32, i32, i32) {
    %c0_i32 = arith.constant 0 : i32
    %c0_i32_0 = arith.constant 0 : i32
    %c0_i32_1 = arith.constant 0 : i32
    return %arg0, %c0_i32, %c0_i32_0 : i32, i32, i32
  }
  func.func @transform_7(%arg0: i32) -> (i32, i32, i32) {
    %c0_i32 = arith.constant 0 : i32
    %c0_i32_0 = arith.constant 0 : i32
    %c0_i32_1 = arith.constant 0 : i32
    return %arg0, %c0_i32, %c0_i32_0 : i32, i32, i32
  }
  func.func @transform_8(%arg0: i32) -> (i32, i32, i32) {
    %c0_i32 = arith.constant 0 : i32
    %c0_i32_0 = arith.constant 0 : i32
    %c0_i32_1 = arith.constant 0 : i32
    return %arg0, %c0_i32, %c0_i32_0 : i32, i32, i32
  }
  func.func @transform_9(%arg0: i32) -> (i32, i32, i32) {
    %c0_i32 = arith.constant 0 : i32
    %c0_i32_0 = arith.constant 0 : i32
    %c0_i32_1 = arith.constant 0 : i32
    %c0_i32_2 = arith.constant 0 : i32
    return %c0_i32, %c0_i32_0, %c0_i32_1 : i32, i32, i32
  }
}

module attributes {stable_mosaic.version = 11 : i64} {
  func.func @kernel(%arg0: i32, %arg1: memref<2x8x256xf32, #tpu.memory_space<vmem>>, %arg2: memref<2x8xf32, #tpu.memory_space<vmem>>, %arg3: memref<2x8x256xf32, #tpu.memory_space<vmem>>, %arg4: memref<2x8xf32, #tpu.memory_space<vmem>>, %arg5: memref<1x256x768xbf16, #tpu.memory_space<vmem>>, %arg6: memref<1x256x256xbf16, #tpu.memory_space<vmem>>, %arg7: memref<1x256x256xbf16, #tpu.memory_space<vmem>>, %arg8: memref<1x256x512xbf16, #tpu.memory_space<vmem>>, %arg9: memref<1x256x256xbf16, #tpu.memory_space<vmem>>, %arg10: memref<1x256x512xbf16, #tpu.memory_space<vmem>>, %arg11: memref<1x512x256xbf16, #tpu.memory_space<vmem>>, %arg12: memref<1x10x256xf32, #tpu.memory_space<vmem>>, %arg13: memref<1x1x768xf32, #tpu.memory_space<vmem>>, %arg14: memref<1x1x512xf32, #tpu.memory_space<vmem>>, %arg15: memref<1x1x512xf32, #tpu.memory_space<vmem>>, %arg16: memref<2x8x256xf32, #tpu.memory_space<vmem>>, %arg17: memref<16x256xf32, #tpu.memory_space<vmem>>) attributes {dimension_semantics = [#tpu.dimension_semantics<arbitrary>], iteration_bounds = array<i64: 2>, scalar_prefetch = 0 : i64, scratch_operands = 1 : i64, tpu.core_type = #tpu.core_type<tc>, window_params = [{pipeline_mode = #tpu.pipeline_mode<synchronous>, transform_indices = @transform_0, window_bounds = array<i64: 2, 8, 256>}, {pipeline_mode = #tpu.pipeline_mode<synchronous>, transform_indices = @transform_1, window_bounds = array<i64: 2, 8>}, {pipeline_mode = #tpu.pipeline_mode<synchronous>, transform_indices = @transform_2, window_bounds = array<i64: 2, 8, 256>}, {pipeline_mode = #tpu.pipeline_mode<synchronous>, transform_indices = @transform_3, window_bounds = array<i64: 2, 8>}, {transform_indices = @transform_4, window_bounds = array<i64: 1, 256, 768>}, {transform_indices = @transform_5, window_bounds = array<i64: 1, 256, 256>}, {transform_indices = @transform_6, window_bounds = array<i64: 1, 256, 256>}, {transform_indices = @transform_7, window_bounds = array<i64: 1, 256, 512>}, {transform_indices = @transform_8, window_bounds = array<i64: 1, 256, 256>}, {transform_indices = @transform_9, window_bounds = array<i64: 1, 256, 512>}, {transform_indices = @transform_10, window_bounds = array<i64: 1, 512, 256>}, {transform_indices = @transform_11, window_bounds = array<i64: 1, 10, 256>}, {transform_indices = @transform_12, window_bounds = array<i64: 1, 1, 768>}, {transform_indices = @transform_13, window_bounds = array<i64: 1, 1, 512>}, {transform_indices = @transform_14, window_bounds = array<i64: 1, 1, 512>}, {pipeline_mode = #tpu.pipeline_mode<synchronous>, transform_indices = @transform_15, window_bounds = array<i64: 2, 8, 256>}]} {
    %c0_i32 = arith.constant 0 : i32
    %0 = arith.cmpi eq, %arg0, %c0_i32 : i32
    %1 = arith.extui %0 : i1 to i32
    %c0_i32_0 = arith.constant 0 : i32
    %2 = arith.cmpi ne, %1, %c0_i32_0 : i32
    scf.if %2 {
      %c0_101 = arith.constant 0 : index
      %c0_102 = arith.constant 0 : index
      %c0_103 = arith.constant 0 : index
      %282 = vector.load %arg1[%c0_101, %c0_102, %c0_103] : memref<2x8x256xf32, #tpu.memory_space<vmem>>, vector<2x8x256xf32>
      %283 = vector.shape_cast %282 : vector<2x8x256xf32> to vector<16x256xf32>
      %c0_104 = arith.constant 0 : index
      %c0_105 = arith.constant 0 : index
      %284 = vector.load %arg17[%c0_104, %c0_105] : memref<16x256xf32, #tpu.memory_space<vmem>>, vector<16x256xf32>
      tpu.vector_store %arg17[%c0_104, %c0_105], %283 {strides = array<i32>} : memref<16x256xf32, #tpu.memory_space<vmem>>, vector<16x256xf32>,
    } else {
    }
    %c0 = arith.constant 0 : index
    %c0_1 = arith.constant 0 : index
    %3 = vector.load %arg17[%c0, %c0_1] : memref<16x256xf32, #tpu.memory_space<vmem>>, vector<16x256xf32>
    %c0_2 = arith.constant 0 : index
    %c0_3 = arith.constant 0 : index
    %c0_4 = arith.constant 0 : index
    %4 = vector.load %arg12[%c0_2, %c0_3, %c0_4] : memref<1x10x256xf32, #tpu.memory_space<vmem>>, vector<1x10x256xf32>
    %5 = vector.shape_cast %4 : vector<1x10x256xf32> to vector<10x256xf32>
    %6 = tpu.iota {dimensions = array<i32: 0>} : vector<8x8xi32>
    %7 = tpu.iota {dimensions = array<i32: 1>} : vector<8x8xi32>
    %c0_5 = arith.constant 0 : index
    %c0_6 = arith.constant 0 : index
    %8 = vector.load %arg2[%c0_5, %c0_6] : memref<2x8xf32, #tpu.memory_space<vmem>>, vector<2x8xf32>
    %cst = arith.constant 5.000000e-01 : f32
    %9 = vector.broadcast %cst : f32 to vector<2x8xf32>
    %10 = arith.cmpf ogt, %8, %9 : vector<2x8xf32>
    %11 = arith.cmpi sgt, %7, %6 : vector<8x8xi32>
    %12 = vector.shape_cast %11 : vector<8x8xi1> to vector<1x8x8xi1>
    %13 = vector.shape_cast %10 : vector<2x8xi1> to vector<2x1x8xi1>
    %14 = vector.broadcast %12 : vector<1x8x8xi1> to vector<2x8x8xi1>
    %15 = vector.broadcast %13 : vector<2x1x8xi1> to vector<2x8x8xi1>
    %16 = arith.ori %14, %15 : vector<2x8x8xi1>
    %cst_7 = arith.constant -1.000000e+09 : f32
    %cst_8 = arith.constant 0.000000e+00 : f32
    %17 = vector.broadcast %cst_7 : f32 to vector<2x8x8xf32>
    %18 = vector.broadcast %cst_8 : f32 to vector<2x8x8xf32>
    %19 = arith.select %16, %17, %18 : vector<2x8x8xi1>, vector<2x8x8xf32>
    %20 = arith.truncf %3 : vector<16x256xf32> to vector<16x256xbf16>
    %c0_9 = arith.constant 0 : index
    %c0_10 = arith.constant 0 : index
    %c0_11 = arith.constant 0 : index
    %21 = vector.load %arg5[%c0_9, %c0_10, %c0_11] : memref<1x256x768xbf16, #tpu.memory_space<vmem>>, vector<1x256x768xbf16>
    %22 = vector.shape_cast %21 : vector<1x256x768xbf16> to vector<256x768xbf16>
    %cst_12 = arith.constant dense<0.000000e+00> : vector<16x768xf32>
    %23 = tpu.matmul %20, %22, %cst_12 {dimension_numbers = #tpu.dot_dimension_numbers<[1], [0], [0], [1], [0, 0, 1, 1], [], []>} : vector<16x256xbf16>, vector<256x768xbf16>, vector<16x768xf32> -> vector<16x768xf32>
    %c0_13 = arith.constant 0 : index
    %c0_14 = arith.constant 0 : index
    %c0_15 = arith.constant 0 : index
    %24 = vector.load %arg13[%c0_13, %c0_14, %c0_15] : memref<1x1x768xf32, #tpu.memory_space<vmem>>, vector<1x1x768xf32>
    %25 = vector.shape_cast %24 : vector<1x1x768xf32> to vector<1x768xf32>
    %26 = vector.broadcast %25 : vector<1x768xf32> to vector<16x768xf32>
    %27 = arith.addf %23, %26 : vector<16x768xf32>
    %28 = vector.extract_strided_slice %27 {offsets = [0, 0], sizes = [16, 256], strides = [1, 1]} : vector<16x768xf32> to vector<16x256xf32>
    %29 = vector.extract_strided_slice %27 {offsets = [0, 256], sizes = [16, 256], strides = [1, 1]} : vector<16x768xf32> to vector<16x256xf32>
    %30 = vector.extract_strided_slice %27 {offsets = [0, 512], sizes = [16, 256], strides = [1, 1]} : vector<16x768xf32> to vector<16x256xf32>
    %31 = vector.shape_cast %28 : vector<16x256xf32> to vector<2x8x256xf32>
    %32 = arith.truncf %31 : vector<2x8x256xf32> to vector<2x8x256xbf16>
    %33 = vector.shape_cast %29 : vector<16x256xf32> to vector<2x8x256xf32>
    %34 = arith.truncf %33 : vector<2x8x256xf32> to vector<2x8x256xbf16>
    %35 = vector.shape_cast %30 : vector<16x256xf32> to vector<2x8x256xf32>
    %36 = arith.truncf %35 : vector<2x8x256xf32> to vector<2x8x256xbf16>
    %37 = vector.extract_strided_slice %32 {offsets = [0, 0, 0], sizes = [2, 8, 128], strides = [1, 1, 1]} : vector<2x8x256xbf16> to vector<2x8x128xbf16>
    %38 = vector.extract_strided_slice %34 {offsets = [0, 0, 0], sizes = [2, 8, 128], strides = [1, 1, 1]} : vector<2x8x256xbf16> to vector<2x8x128xbf16>
    "tpu.trace_start"() <{level = 10 : i32, message = "bqd,bkd->bqk"}> : () -> ()
    %cst_16 = arith.constant dense<0.000000e+00> : vector<2x8x8xf32>
    %39 = tpu.matmul %37, %38, %cst_16 {dimension_numbers = #tpu.dot_dimension_numbers<[2], [2], [1], [1], [0, 0, 0, 1, 1, 1], [0], [0]>} : vector<2x8x128xbf16>, vector<2x8x128xbf16>, vector<2x8x8xf32> -> vector<2x8x8xf32>
    "tpu.trace_stop"() : () -> ()
    %cst_17 = arith.constant 0.0883883461 : f32
    %40 = vector.broadcast %cst_17 : f32 to vector<2x8x8xf32>
    %41 = arith.mulf %39, %40 : vector<2x8x8xf32>
    %42 = arith.addf %41, %19 : vector<2x8x8xf32>
    %cst_18 = arith.constant dense<0xFF800000> : vector<2x8xf32>
    %43 = vector.multi_reduction <maximumf>, %42, %cst_18 [2] : vector<2x8x8xf32> to vector<2x8xf32>
    %44 = vector.shape_cast %43 : vector<2x8xf32> to vector<2x8x1xf32>
    %45 = vector.broadcast %44 : vector<2x8x1xf32> to vector<2x8x8xf32>
    %46 = arith.subf %42, %45 : vector<2x8x8xf32>
    %47 = math.exp %46 : vector<2x8x8xf32>
    %cst_19 = arith.constant dense<0.000000e+00> : vector<2x8xf32>
    %48 = vector.multi_reduction <add>, %47, %cst_19 [2] : vector<2x8x8xf32> to vector<2x8xf32>
    %49 = vector.shape_cast %48 : vector<2x8xf32> to vector<2x8x1xf32>
    %cst_20 = arith.constant 9.99999968E-21 : f32
    %50 = vector.broadcast %cst_20 : f32 to vector<2x8x1xf32>
    %51 = arith.maximumf %49, %50 : vector<2x8x1xf32>
    %52 = tpu.reciprocal %51 {approx = true} : vector<2x8x1xf32> -> vector<2x8x1xf32>
    %53 = vector.broadcast %52 : vector<2x8x1xf32> to vector<2x8x8xf32>
    %54 = arith.mulf %47, %53 : vector<2x8x8xf32>
    %55 = arith.truncf %54 : vector<2x8x8xf32> to vector<2x8x8xbf16>
    %56 = vector.extract_strided_slice %36 {offsets = [0, 0, 0], sizes = [2, 8, 128], strides = [1, 1, 1]} : vector<2x8x256xbf16> to vector<2x8x128xbf16>
    "tpu.trace_start"() <{level = 10 : i32, message = "bqk,bkd->bqd"}> : () -> ()
    %cst_21 = arith.constant dense<0.000000e+00> : vector<2x8x128xf32>
    %57 = tpu.matmul %55, %56, %cst_21 {dimension_numbers = #tpu.dot_dimension_numbers<[2], [1], [1], [2], [0, 0, 0, 1, 1, 2], [0], [0]>} : vector<2x8x8xbf16>, vector<2x8x128xbf16>, vector<2x8x128xf32> -> vector<2x8x128xf32>
    "tpu.trace_stop"() : () -> ()
    %58 = vector.extract_strided_slice %32 {offsets = [0, 0, 128], sizes = [2, 8, 128], strides = [1, 1, 1]} : vector<2x8x256xbf16> to vector<2x8x128xbf16>
    %59 = vector.extract_strided_slice %34 {offsets = [0, 0, 128], sizes = [2, 8, 128], strides = [1, 1, 1]} : vector<2x8x256xbf16> to vector<2x8x128xbf16>
    "tpu.trace_start"() <{level = 10 : i32, message = "bqd,bkd->bqk"}> : () -> ()
    %cst_22 = arith.constant dense<0.000000e+00> : vector<2x8x8xf32>
    %60 = tpu.matmul %58, %59, %cst_22 {dimension_numbers = #tpu.dot_dimension_numbers<[2], [2], [1], [1], [0, 0, 0, 1, 1, 1], [0], [0]>} : vector<2x8x128xbf16>, vector<2x8x128xbf16>, vector<2x8x8xf32> -> vector<2x8x8xf32>
    "tpu.trace_stop"() : () -> ()
    %cst_23 = arith.constant 0.0883883461 : f32
    %61 = vector.broadcast %cst_23 : f32 to vector<2x8x8xf32>
    %62 = arith.mulf %60, %61 : vector<2x8x8xf32>
    %63 = arith.addf %62, %19 : vector<2x8x8xf32>
    %cst_24 = arith.constant dense<0xFF800000> : vector<2x8xf32>
    %64 = vector.multi_reduction <maximumf>, %63, %cst_24 [2] : vector<2x8x8xf32> to vector<2x8xf32>
    %65 = vector.shape_cast %64 : vector<2x8xf32> to vector<2x8x1xf32>
    %66 = vector.broadcast %65 : vector<2x8x1xf32> to vector<2x8x8xf32>
    %67 = arith.subf %63, %66 : vector<2x8x8xf32>
    %68 = math.exp %67 : vector<2x8x8xf32>
    %cst_25 = arith.constant dense<0.000000e+00> : vector<2x8xf32>
    %69 = vector.multi_reduction <add>, %68, %cst_25 [2] : vector<2x8x8xf32> to vector<2x8xf32>
    %70 = vector.shape_cast %69 : vector<2x8xf32> to vector<2x8x1xf32>
    %cst_26 = arith.constant 9.99999968E-21 : f32
    %71 = vector.broadcast %cst_26 : f32 to vector<2x8x1xf32>
    %72 = arith.maximumf %70, %71 : vector<2x8x1xf32>
    %73 = tpu.reciprocal %72 {approx = true} : vector<2x8x1xf32> -> vector<2x8x1xf32>
    %74 = vector.broadcast %73 : vector<2x8x1xf32> to vector<2x8x8xf32>
    %75 = arith.mulf %68, %74 : vector<2x8x8xf32>
    %76 = arith.truncf %75 : vector<2x8x8xf32> to vector<2x8x8xbf16>
    %77 = vector.extract_strided_slice %36 {offsets = [0, 0, 128], sizes = [2, 8, 128], strides = [1, 1, 1]} : vector<2x8x256xbf16> to vector<2x8x128xbf16>
    "tpu.trace_start"() <{level = 10 : i32, message = "bqk,bkd->bqd"}> : () -> ()
    %cst_27 = arith.constant dense<0.000000e+00> : vector<2x8x128xf32>
    %78 = tpu.matmul %76, %77, %cst_27 {dimension_numbers = #tpu.dot_dimension_numbers<[2], [1], [1], [2], [0, 0, 0, 1, 1, 2], [0], [0]>} : vector<2x8x8xbf16>, vector<2x8x128xbf16>, vector<2x8x128xf32> -> vector<2x8x128xf32>
    "tpu.trace_stop"() : () -> ()
    %79 = tpu.concatenate %57, %78 in 2 : vector<2x8x128xf32>, vector<2x8x128xf32> -> vector<2x8x256xf32>
    %80 = vector.shape_cast %79 : vector<2x8x256xf32> to vector<16x256xf32>
    %81 = arith.truncf %80 : vector<16x256xf32> to vector<16x256xbf16>
    %c0_28 = arith.constant 0 : index
    %c0_29 = arith.constant 0 : index
    %c0_30 = arith.constant 0 : index
    %82 = vector.load %arg6[%c0_28, %c0_29, %c0_30] : memref<1x256x256xbf16, #tpu.memory_space<vmem>>, vector<1x256x256xbf16>
    %83 = vector.shape_cast %82 : vector<1x256x256xbf16> to vector<256x256xbf16>
    %cst_31 = arith.constant dense<0.000000e+00> : vector<16x256xf32>
    %84 = tpu.matmul %81, %83, %cst_31 {dimension_numbers = #tpu.dot_dimension_numbers<[1], [0], [0], [1], [0, 0, 1, 1], [], []>} : vector<16x256xbf16>, vector<256x256xbf16>, vector<16x256xf32> -> vector<16x256xf32>
    %85 = vector.extract_strided_slice %5 {offsets = [0, 0], sizes = [1, 256], strides = [1, 1]} : vector<10x256xf32> to vector<1x256xf32>
    %86 = vector.broadcast %85 : vector<1x256xf32> to vector<16x256xf32>
    %87 = arith.addf %84, %86 : vector<16x256xf32>
    %88 = arith.addf %3, %87 : vector<16x256xf32>
    %89 = vector.extract_strided_slice %5 {offsets = [1, 0], sizes = [1, 256], strides = [1, 1]} : vector<10x256xf32> to vector<1x256xf32>
    %90 = vector.extract_strided_slice %5 {offsets = [2, 0], sizes = [1, 256], strides = [1, 1]} : vector<10x256xf32> to vector<1x256xf32>
    %cst_32 = arith.constant dense<0.000000e+00> : vector<16xf32>
    %91 = vector.multi_reduction <add>, %88, %cst_32 [1] : vector<16x256xf32> to vector<16xf32>
    %92 = vector.shape_cast %91 : vector<16xf32> to vector<16x1xf32>
    %cst_33 = arith.constant 2.560000e+02 : f32
    %93 = vector.broadcast %cst_33 : f32 to vector<16x1xf32>
    %94 = arith.divf %92, %93 : vector<16x1xf32>
    %95 = vector.broadcast %94 : vector<16x1xf32> to vector<16x256xf32>
    %96 = arith.subf %88, %95 : vector<16x256xf32>
    %97 = arith.mulf %96, %96 : vector<16x256xf32>
    %cst_34 = arith.constant dense<0.000000e+00> : vector<16xf32>
    %98 = vector.multi_reduction <add>, %97, %cst_34 [1] : vector<16x256xf32> to vector<16xf32>
    %99 = vector.shape_cast %98 : vector<16xf32> to vector<16x1xf32>
    %cst_35 = arith.constant 2.560000e+02 : f32
    %100 = vector.broadcast %cst_35 : f32 to vector<16x1xf32>
    %101 = arith.divf %99, %100 : vector<16x1xf32>
    %102 = vector.broadcast %94 : vector<16x1xf32> to vector<16x256xf32>
    %103 = arith.subf %88, %102 : vector<16x256xf32>
    %cst_36 = arith.constant 9.99999974E-6 : f32
    %104 = vector.broadcast %cst_36 : f32 to vector<16x1xf32>
    %105 = arith.addf %101, %104 : vector<16x1xf32>
    %106 = math.rsqrt %105 : vector<16x1xf32>
    %107 = vector.broadcast %106 : vector<16x1xf32> to vector<16x256xf32>
    %108 = arith.mulf %103, %107 : vector<16x256xf32>
    %109 = vector.broadcast %89 : vector<1x256xf32> to vector<16x256xf32>
    %110 = arith.mulf %108, %109 : vector<16x256xf32>
    %111 = vector.broadcast %90 : vector<1x256xf32> to vector<16x256xf32>
    %112 = arith.addf %110, %111 : vector<16x256xf32>
    %113 = arith.truncf %112 : vector<16x256xf32> to vector<16x256xbf16>
    %c0_37 = arith.constant 0 : index
    %c0_38 = arith.constant 0 : index
    %c0_39 = arith.constant 0 : index
    %114 = vector.load %arg7[%c0_37, %c0_38, %c0_39] : memref<1x256x256xbf16, #tpu.memory_space<vmem>>, vector<1x256x256xbf16>
    %115 = vector.shape_cast %114 : vector<1x256x256xbf16> to vector<256x256xbf16>
    %cst_40 = arith.constant dense<0.000000e+00> : vector<16x256xf32>
    %116 = tpu.matmul %113, %115, %cst_40 {dimension_numbers = #tpu.dot_dimension_numbers<[1], [0], [0], [1], [0, 0, 1, 1], [], []>} : vector<16x256xbf16>, vector<256x256xbf16>, vector<16x256xf32> -> vector<16x256xf32>
    %117 = vector.extract_strided_slice %5 {offsets = [3, 0], sizes = [1, 256], strides = [1, 1]} : vector<10x256xf32> to vector<1x256xf32>
    %118 = vector.broadcast %117 : vector<1x256xf32> to vector<16x256xf32>
    %119 = arith.addf %116, %118 : vector<16x256xf32>
    %cst_41 = arith.constant 0.000000e+00 : f32
    %120 = vector.broadcast %cst_41 : f32 to vector<16x256xf32>
    %c0_42 = arith.constant 0 : index
    %c0_43 = arith.constant 0 : index
    %c0_44 = arith.constant 0 : index
    %121 = vector.load %arg3[%c0_42, %c0_43, %c0_44] : memref<2x8x256xf32, #tpu.memory_space<vmem>>, vector<2x8x256xf32>
    %122 = vector.shape_cast %121 : vector<2x8x256xf32> to vector<16x256xf32>
    %123 = arith.truncf %122 : vector<16x256xf32> to vector<16x256xbf16>
    %c0_45 = arith.constant 0 : index
    %c0_46 = arith.constant 0 : index
    %124 = vector.load %arg4[%c0_45, %c0_46] : memref<2x8xf32, #tpu.memory_space<vmem>>, vector<2x8xf32>
    %125 = vector.shape_cast %124 : vector<2x8xf32> to vector<2x1x8xf32>
    %cst_47 = arith.constant 5.000000e-01 : f32
    %126 = vector.broadcast %cst_47 : f32 to vector<2x1x8xf32>
    %127 = arith.cmpf ogt, %125, %126 : vector<2x1x8xf32>
    %cst_48 = arith.constant -1.000000e+09 : f32
    %cst_49 = arith.constant 0.000000e+00 : f32
    %128 = vector.broadcast %cst_48 : f32 to vector<2x1x8xf32>
    %129 = vector.broadcast %cst_49 : f32 to vector<2x1x8xf32>
    %130 = arith.select %127, %128, %129 : vector<2x1x8xi1>, vector<2x1x8xf32>
    %c0_50 = arith.constant 0 : index
    %c0_51 = arith.constant 0 : index
    %c0_52 = arith.constant 0 : index
    %131 = vector.load %arg8[%c0_50, %c0_51, %c0_52] : memref<1x256x512xbf16, #tpu.memory_space<vmem>>, vector<1x256x512xbf16>
    %132 = vector.shape_cast %131 : vector<1x256x512xbf16> to vector<256x512xbf16>
    %cst_53 = arith.constant dense<0.000000e+00> : vector<16x512xf32>
    %133 = tpu.matmul %123, %132, %cst_53 {dimension_numbers = #tpu.dot_dimension_numbers<[1], [0], [0], [1], [0, 0, 1, 1], [], []>} : vector<16x256xbf16>, vector<256x512xbf16>, vector<16x512xf32> -> vector<16x512xf32>
    %c0_54 = arith.constant 0 : index
    %c0_55 = arith.constant 0 : index
    %c0_56 = arith.constant 0 : index
    %134 = vector.load %arg14[%c0_54, %c0_55, %c0_56] : memref<1x1x512xf32, #tpu.memory_space<vmem>>, vector<1x1x512xf32>
    %135 = vector.shape_cast %134 : vector<1x1x512xf32> to vector<1x512xf32>
    %136 = vector.broadcast %135 : vector<1x512xf32> to vector<16x512xf32>
    %137 = arith.addf %133, %136 : vector<16x512xf32>
    %138 = vector.extract_strided_slice %137 {offsets = [0, 0], sizes = [16, 256], strides = [1, 1]} : vector<16x512xf32> to vector<16x256xf32>
    %139 = vector.extract_strided_slice %137 {offsets = [0, 256], sizes = [16, 256], strides = [1, 1]} : vector<16x512xf32> to vector<16x256xf32>
    %140 = vector.shape_cast %119 : vector<16x256xf32> to vector<2x8x256xf32>
    %141 = arith.truncf %140 : vector<2x8x256xf32> to vector<2x8x256xbf16>
    %142 = vector.shape_cast %138 : vector<16x256xf32> to vector<2x8x256xf32>
    %143 = arith.truncf %142 : vector<2x8x256xf32> to vector<2x8x256xbf16>
    %144 = vector.shape_cast %139 : vector<16x256xf32> to vector<2x8x256xf32>
    %145 = arith.truncf %144 : vector<2x8x256xf32> to vector<2x8x256xbf16>
    %146 = vector.extract_strided_slice %141 {offsets = [0, 0, 0], sizes = [2, 8, 128], strides = [1, 1, 1]} : vector<2x8x256xbf16> to vector<2x8x128xbf16>
    %147 = vector.extract_strided_slice %143 {offsets = [0, 0, 0], sizes = [2, 8, 128], strides = [1, 1, 1]} : vector<2x8x256xbf16> to vector<2x8x128xbf16>
    "tpu.trace_start"() <{level = 10 : i32, message = "bqd,bkd->bqk"}> : () -> ()
    %cst_57 = arith.constant dense<0.000000e+00> : vector<2x8x8xf32>
    %148 = tpu.matmul %146, %147, %cst_57 {dimension_numbers = #tpu.dot_dimension_numbers<[2], [2], [1], [1], [0, 0, 0, 1, 1, 1], [0], [0]>} : vector<2x8x128xbf16>, vector<2x8x128xbf16>, vector<2x8x8xf32> -> vector<2x8x8xf32>
    "tpu.trace_stop"() : () -> ()
    %cst_58 = arith.constant 0.0883883461 : f32
    %149 = vector.broadcast %cst_58 : f32 to vector<2x8x8xf32>
    %150 = arith.mulf %148, %149 : vector<2x8x8xf32>
    %151 = vector.broadcast %130 : vector<2x1x8xf32> to vector<2x8x8xf32>
    %152 = arith.addf %150, %151 : vector<2x8x8xf32>
    %cst_59 = arith.constant dense<0xFF800000> : vector<2x8xf32>
    %153 = vector.multi_reduction <maximumf>, %152, %cst_59 [2] : vector<2x8x8xf32> to vector<2x8xf32>
    %154 = vector.shape_cast %153 : vector<2x8xf32> to vector<2x8x1xf32>
    %155 = vector.broadcast %154 : vector<2x8x1xf32> to vector<2x8x8xf32>
    %156 = arith.subf %152, %155 : vector<2x8x8xf32>
    %157 = math.exp %156 : vector<2x8x8xf32>
    %cst_60 = arith.constant dense<0.000000e+00> : vector<2x8xf32>
    %158 = vector.multi_reduction <add>, %157, %cst_60 [2] : vector<2x8x8xf32> to vector<2x8xf32>
    %159 = vector.shape_cast %158 : vector<2x8xf32> to vector<2x8x1xf32>
    %cst_61 = arith.constant 9.99999968E-21 : f32
    %160 = vector.broadcast %cst_61 : f32 to vector<2x8x1xf32>
    %161 = arith.maximumf %159, %160 : vector<2x8x1xf32>
    %162 = tpu.reciprocal %161 {approx = true} : vector<2x8x1xf32> -> vector<2x8x1xf32>
    %163 = vector.broadcast %162 : vector<2x8x1xf32> to vector<2x8x8xf32>
    %164 = arith.mulf %157, %163 : vector<2x8x8xf32>
    %165 = arith.truncf %164 : vector<2x8x8xf32> to vector<2x8x8xbf16>
    %166 = vector.extract_strided_slice %145 {offsets = [0, 0, 0], sizes = [2, 8, 128], strides = [1, 1, 1]} : vector<2x8x256xbf16> to vector<2x8x128xbf16>
    "tpu.trace_start"() <{level = 10 : i32, message = "bqk,bkd->bqd"}> : () -> ()
    %cst_62 = arith.constant dense<0.000000e+00> : vector<2x8x128xf32>
    %167 = tpu.matmul %165, %166, %cst_62 {dimension_numbers = #tpu.dot_dimension_numbers<[2], [1], [1], [2], [0, 0, 0, 1, 1, 2], [0], [0]>} : vector<2x8x8xbf16>, vector<2x8x128xbf16>, vector<2x8x128xf32> -> vector<2x8x128xf32>
    "tpu.trace_stop"() : () -> ()
    %168 = vector.extract_strided_slice %141 {offsets = [0, 0, 128], sizes = [2, 8, 128], strides = [1, 1, 1]} : vector<2x8x256xbf16> to vector<2x8x128xbf16>
    %169 = vector.extract_strided_slice %143 {offsets = [0, 0, 128], sizes = [2, 8, 128], strides = [1, 1, 1]} : vector<2x8x256xbf16> to vector<2x8x128xbf16>
    "tpu.trace_start"() <{level = 10 : i32, message = "bqd,bkd->bqk"}> : () -> ()
    %cst_63 = arith.constant dense<0.000000e+00> : vector<2x8x8xf32>
    %170 = tpu.matmul %168, %169, %cst_63 {dimension_numbers = #tpu.dot_dimension_numbers<[2], [2], [1], [1], [0, 0, 0, 1, 1, 1], [0], [0]>} : vector<2x8x128xbf16>, vector<2x8x128xbf16>, vector<2x8x8xf32> -> vector<2x8x8xf32>
    "tpu.trace_stop"() : () -> ()
    %cst_64 = arith.constant 0.0883883461 : f32
    %171 = vector.broadcast %cst_64 : f32 to vector<2x8x8xf32>
    %172 = arith.mulf %170, %171 : vector<2x8x8xf32>
    %173 = vector.broadcast %130 : vector<2x1x8xf32> to vector<2x8x8xf32>
    %174 = arith.addf %172, %173 : vector<2x8x8xf32>
    %cst_65 = arith.constant dense<0xFF800000> : vector<2x8xf32>
    %175 = vector.multi_reduction <maximumf>, %174, %cst_65 [2] : vector<2x8x8xf32> to vector<2x8xf32>
    %176 = vector.shape_cast %175 : vector<2x8xf32> to vector<2x8x1xf32>
    %177 = vector.broadcast %176 : vector<2x8x1xf32> to vector<2x8x8xf32>
    %178 = arith.subf %174, %177 : vector<2x8x8xf32>
    %179 = math.exp %178 : vector<2x8x8xf32>
    %cst_66 = arith.constant dense<0.000000e+00> : vector<2x8xf32>
    %180 = vector.multi_reduction <add>, %179, %cst_66 [2] : vector<2x8x8xf32> to vector<2x8xf32>
    %181 = vector.shape_cast %180 : vector<2x8xf32> to vector<2x8x1xf32>
    %cst_67 = arith.constant 9.99999968E-21 : f32
    %182 = vector.broadcast %cst_67 : f32 to vector<2x8x1xf32>
    %183 = arith.maximumf %181, %182 : vector<2x8x1xf32>
    %184 = tpu.reciprocal %183 {approx = true} : vector<2x8x1xf32> -> vector<2x8x1xf32>
    %185 = vector.broadcast %184 : vector<2x8x1xf32> to vector<2x8x8xf32>
    %186 = arith.mulf %179, %185 : vector<2x8x8xf32>
    %187 = arith.truncf %186 : vector<2x8x8xf32> to vector<2x8x8xbf16>
    %188 = vector.extract_strided_slice %145 {offsets = [0, 0, 128], sizes = [2, 8, 128], strides = [1, 1, 1]} : vector<2x8x256xbf16> to vector<2x8x128xbf16>
    "tpu.trace_start"() <{level = 10 : i32, message = "bqk,bkd->bqd"}> : () -> ()
    %cst_68 = arith.constant dense<0.000000e+00> : vector<2x8x128xf32>
    %189 = tpu.matmul %187, %188, %cst_68 {dimension_numbers = #tpu.dot_dimension_numbers<[2], [1], [1], [2], [0, 0, 0, 1, 1, 2], [0], [0]>} : vector<2x8x8xbf16>, vector<2x8x128xbf16>, vector<2x8x128xf32> -> vector<2x8x128xf32>
    "tpu.trace_stop"() : () -> ()
    %190 = tpu.concatenate %167, %189 in 2 : vector<2x8x128xf32>, vector<2x8x128xf32> -> vector<2x8x256xf32>
    %191 = vector.shape_cast %190 : vector<2x8x256xf32> to vector<16x256xf32>
    %192 = arith.truncf %191 : vector<16x256xf32> to vector<16x256xbf16>
    %c0_69 = arith.constant 0 : index
    %c0_70 = arith.constant 0 : index
    %c0_71 = arith.constant 0 : index
    %193 = vector.load %arg9[%c0_69, %c0_70, %c0_71] : memref<1x256x256xbf16, #tpu.memory_space<vmem>>, vector<1x256x256xbf16>
    %194 = vector.shape_cast %193 : vector<1x256x256xbf16> to vector<256x256xbf16>
    %cst_72 = arith.constant dense<0.000000e+00> : vector<16x256xf32>
    %195 = tpu.matmul %192, %194, %cst_72 {dimension_numbers = #tpu.dot_dimension_numbers<[1], [0], [0], [1], [0, 0, 1, 1], [], []>} : vector<16x256xbf16>, vector<256x256xbf16>, vector<16x256xf32> -> vector<16x256xf32>
    %196 = vector.extract_strided_slice %5 {offsets = [4, 0], sizes = [1, 256], strides = [1, 1]} : vector<10x256xf32> to vector<1x256xf32>
    %197 = vector.broadcast %196 : vector<1x256xf32> to vector<16x256xf32>
    %198 = arith.addf %195, %197 : vector<16x256xf32>
    %199 = arith.addf %120, %198 : vector<16x256xf32>
    %200 = arith.addf %112, %199 : vector<16x256xf32>
    %201 = vector.extract_strided_slice %5 {offsets = [5, 0], sizes = [1, 256], strides = [1, 1]} : vector<10x256xf32> to vector<1x256xf32>
    %202 = vector.extract_strided_slice %5 {offsets = [6, 0], sizes = [1, 256], strides = [1, 1]} : vector<10x256xf32> to vector<1x256xf32>
    %cst_73 = arith.constant dense<0.000000e+00> : vector<16xf32>
    %203 = vector.multi_reduction <add>, %200, %cst_73 [1] : vector<16x256xf32> to vector<16xf32>
    %204 = vector.shape_cast %203 : vector<16xf32> to vector<16x1xf32>
    %cst_74 = arith.constant 2.560000e+02 : f32
    %205 = vector.broadcast %cst_74 : f32 to vector<16x1xf32>
    %206 = arith.divf %204, %205 : vector<16x1xf32>
    %207 = vector.broadcast %206 : vector<16x1xf32> to vector<16x256xf32>
    %208 = arith.subf %200, %207 : vector<16x256xf32>
    %209 = arith.mulf %208, %208 : vector<16x256xf32>
    %cst_75 = arith.constant dense<0.000000e+00> : vector<16xf32>
    %210 = vector.multi_reduction <add>, %209, %cst_75 [1] : vector<16x256xf32> to vector<16xf32>
    %211 = vector.shape_cast %210 : vector<16xf32> to vector<16x1xf32>
    %cst_76 = arith.constant 2.560000e+02 : f32
    %212 = vector.broadcast %cst_76 : f32 to vector<16x1xf32>
    %213 = arith.divf %211, %212 : vector<16x1xf32>
    %214 = vector.broadcast %206 : vector<16x1xf32> to vector<16x256xf32>
    %215 = arith.subf %200, %214 : vector<16x256xf32>
    %cst_77 = arith.constant 9.99999974E-6 : f32
    %216 = vector.broadcast %cst_77 : f32 to vector<16x1xf32>
    %217 = arith.addf %213, %216 : vector<16x1xf32>
    %218 = math.rsqrt %217 : vector<16x1xf32>
    %219 = vector.broadcast %218 : vector<16x1xf32> to vector<16x256xf32>
    %220 = arith.mulf %215, %219 : vector<16x256xf32>
    %221 = vector.broadcast %201 : vector<1x256xf32> to vector<16x256xf32>
    %222 = arith.mulf %220, %221 : vector<16x256xf32>
    %223 = vector.broadcast %202 : vector<1x256xf32> to vector<16x256xf32>
    %224 = arith.addf %222, %223 : vector<16x256xf32>
    %225 = arith.truncf %224 : vector<16x256xf32> to vector<16x256xbf16>
    %c0_78 = arith.constant 0 : index
    %c0_79 = arith.constant 0 : index
    %c0_80 = arith.constant 0 : index
    %226 = vector.load %arg10[%c0_78, %c0_79, %c0_80] : memref<1x256x512xbf16, #tpu.memory_space<vmem>>, vector<1x256x512xbf16>
    %227 = vector.shape_cast %226 : vector<1x256x512xbf16> to vector<256x512xbf16>
    %cst_81 = arith.constant dense<0.000000e+00> : vector<16x512xf32>
    %228 = tpu.matmul %225, %227, %cst_81 {dimension_numbers = #tpu.dot_dimension_numbers<[1], [0], [0], [1], [0, 0, 1, 1], [], []>} : vector<16x256xbf16>, vector<256x512xbf16>, vector<16x512xf32> -> vector<16x512xf32>
    %c0_82 = arith.constant 0 : index
    %c0_83 = arith.constant 0 : index
    %c0_84 = arith.constant 0 : index
    %229 = vector.load %arg15[%c0_82, %c0_83, %c0_84] : memref<1x1x512xf32, #tpu.memory_space<vmem>>, vector<1x1x512xf32>
    %230 = vector.shape_cast %229 : vector<1x1x512xf32> to vector<1x512xf32>
    %231 = vector.broadcast %230 : vector<1x512xf32> to vector<16x512xf32>
    %232 = arith.addf %228, %231 : vector<16x512xf32>
    %233 = arith.mulf %232, %232 : vector<16x512xf32>
    %234 = arith.mulf %232, %233 : vector<16x512xf32>
    %cst_85 = arith.constant 4.471500e-02 : f32
    %235 = vector.broadcast %cst_85 : f32 to vector<16x512xf32>
    %236 = arith.mulf %235, %234 : vector<16x512xf32>
    %237 = arith.addf %232, %236 : vector<16x512xf32>
    %cst_86 = arith.constant 0.797884583 : f32
    %238 = vector.broadcast %cst_86 : f32 to vector<16x512xf32>
    %239 = arith.mulf %238, %237 : vector<16x512xf32>
    %240 = math.tanh %239 : vector<16x512xf32>
    %cst_87 = arith.constant 1.000000e+00 : f32
    %241 = vector.broadcast %cst_87 : f32 to vector<16x512xf32>
    %242 = arith.addf %241, %240 : vector<16x512xf32>
    %cst_88 = arith.constant 5.000000e-01 : f32
    %243 = vector.broadcast %cst_88 : f32 to vector<16x512xf32>
    %244 = arith.mulf %243, %242 : vector<16x512xf32>
    %245 = arith.mulf %232, %244 : vector<16x512xf32>
    %246 = arith.truncf %245 : vector<16x512xf32> to vector<16x512xbf16>
    %c0_89 = arith.constant 0 : index
    %c0_90 = arith.constant 0 : index
    %c0_91 = arith.constant 0 : index
    %247 = vector.load %arg11[%c0_89, %c0_90, %c0_91] : memref<1x512x256xbf16, #tpu.memory_space<vmem>>, vector<1x512x256xbf16>
    %248 = vector.shape_cast %247 : vector<1x512x256xbf16> to vector<512x256xbf16>
    %cst_92 = arith.constant dense<0.000000e+00> : vector<16x256xf32>
    %249 = tpu.matmul %246, %248, %cst_92 {dimension_numbers = #tpu.dot_dimension_numbers<[1], [0], [0], [1], [0, 0, 1, 1], [], []>} : vector<16x512xbf16>, vector<512x256xbf16>, vector<16x256xf32> -> vector<16x256xf32>
    %250 = vector.extract_strided_slice %5 {offsets = [7, 0], sizes = [1, 256], strides = [1, 1]} : vector<10x256xf32> to vector<1x256xf32>
    %251 = vector.broadcast %250 : vector<1x256xf32> to vector<16x256xf32>
    %252 = arith.addf %249, %251 : vector<16x256xf32>
    %253 = arith.addf %224, %252 : vector<16x256xf32>
    %254 = vector.extract_strided_slice %5 {offsets = [8, 0], sizes = [1, 256], strides = [1, 1]} : vector<10x256xf32> to vector<1x256xf32>
    %255 = vector.extract_strided_slice %5 {offsets = [9, 0], sizes = [1, 256], strides = [1, 1]} : vector<10x256xf32> to vector<1x256xf32>
    %cst_93 = arith.constant dense<0.000000e+00> : vector<16xf32>
    %256 = vector.multi_reduction <add>, %253, %cst_93 [1] : vector<16x256xf32> to vector<16xf32>
    %257 = vector.shape_cast %256 : vector<16xf32> to vector<16x1xf32>
    %cst_94 = arith.constant 2.560000e+02 : f32
    %258 = vector.broadcast %cst_94 : f32 to vector<16x1xf32>
    %259 = arith.divf %257, %258 : vector<16x1xf32>
    %260 = vector.broadcast %259 : vector<16x1xf32> to vector<16x256xf32>
    %261 = arith.subf %253, %260 : vector<16x256xf32>
    %262 = arith.mulf %261, %261 : vector<16x256xf32>
    %cst_95 = arith.constant dense<0.000000e+00> : vector<16xf32>
    %263 = vector.multi_reduction <add>, %262, %cst_95 [1] : vector<16x256xf32> to vector<16xf32>
    %264 = vector.shape_cast %263 : vector<16xf32> to vector<16x1xf32>
    %cst_96 = arith.constant 2.560000e+02 : f32
    %265 = vector.broadcast %cst_96 : f32 to vector<16x1xf32>
    %266 = arith.divf %264, %265 : vector<16x1xf32>
    %267 = vector.broadcast %259 : vector<16x1xf32> to vector<16x256xf32>
    %268 = arith.subf %253, %267 : vector<16x256xf32>
    %cst_97 = arith.constant 9.99999974E-6 : f32
    %269 = vector.broadcast %cst_97 : f32 to vector<16x1xf32>
    %270 = arith.addf %266, %269 : vector<16x1xf32>
    %271 = math.rsqrt %270 : vector<16x1xf32>
    %272 = vector.broadcast %271 : vector<16x1xf32> to vector<16x256xf32>
    %273 = arith.mulf %268, %272 : vector<16x256xf32>
    %274 = vector.broadcast %254 : vector<1x256xf32> to vector<16x256xf32>
    %275 = arith.mulf %273, %274 : vector<16x256xf32>
    %276 = vector.broadcast %255 : vector<1x256xf32> to vector<16x256xf32>
    %277 = arith.addf %275, %276 : vector<16x256xf32>
    %c0_98 = arith.constant 0 : index
    %c0_99 = arith.constant 0 : index
    %278 = vector.load %arg17[%c0_98, %c0_99] : memref<16x256xf32, #tpu.memory_space<vmem>>, vector<16x256xf32>
    tpu.vector_store %arg17[%c0_98, %c0_99], %277 {strides = array<i32>} : memref<16x256xf32, #tpu.memory_space<vmem>>, vector<16x256xf32>,
    %c1_i32 = arith.constant 1 : i32
    %279 = arith.cmpi eq, %arg0, %c1_i32 : i32
    %280 = arith.extui %279 : i1 to i32
    %c0_i32_100 = arith.constant 0 : i32
    %281 = arith.cmpi ne, %280, %c0_i32_100 : i32
    scf.if %281 {
      %282 = vector.shape_cast %277 : vector<16x256xf32> to vector<2x8x256xf32>
      %c0_101 = arith.constant 0 : index
      %c0_102 = arith.constant 0 : index
      %c0_103 = arith.constant 0 : index
      %283 = vector.load %arg16[%c0_101, %c0_102, %c0_103] : memref<2x8x256xf32, #tpu.memory_space<vmem>>, vector<2x8x256xf32>
      tpu.vector_store %arg16[%c0_101, %c0_102, %c0_103], %282 {strides = array<i32>} : memref<2x8x256xf32, #tpu.memory_space<vmem>>, vector<2x8x256xf32>,
    } else {
    }
    return
  }
  func.func @transform_0(%arg0: i32) -> (i32, i32, i32) {
    %c0_i32 = arith.constant 0 : i32
    %c0_i32_0 = arith.constant 0 : i32
    %c0_i32_1 = arith.constant 0 : i32
    %c0_i32_2 = arith.constant 0 : i32
    return %c0_i32, %c0_i32_0, %c0_i32_1 : i32, i32, i32
  }
  func.func @transform_1(%arg0: i32) -> (i32, i32) {
    %c0_i32 = arith.constant 0 : i32
    %c0_i32_0 = arith.constant 0 : i32
    %c0_i32_1 = arith.constant 0 : i32
    return %c0_i32, %c0_i32_0 : i32, i32
  }
  func.func @transform_2(%arg0: i32) -> (i32, i32, i32) {
    %c0_i32 = arith.constant 0 : i32
    %c0_i32_0 = arith.constant 0 : i32
    %c0_i32_1 = arith.constant 0 : i32
    %c0_i32_2 = arith.constant 0 : i32
    return %c0_i32, %c0_i32_0, %c0_i32_1 : i32, i32, i32
  }
  func.func @transform_3(%arg0: i32) -> (i32, i32) {
    %c0_i32 = arith.constant 0 : i32
    %c0_i32_0 = arith.constant 0 : i32
    %c0_i32_1 = arith.constant 0 : i32
    return %c0_i32, %c0_i32_0 : i32, i32
  }
  func.func @transform_4(%arg0: i32) -> (i32, i32, i32) {
    %c0_i32 = arith.constant 0 : i32
    %c0_i32_0 = arith.constant 0 : i32
    %c0_i32_1 = arith.constant 0 : i32
    return %arg0, %c0_i32, %c0_i32_0 : i32, i32, i32
  }
  func.func @transform_5(%arg0: i32) -> (i32, i32, i32) {
    %c0_i32 = arith.constant 0 : i32
    %c0_i32_0 = arith.constant 0 : i32
    %c0_i32_1 = arith.constant 0 : i32
    return %arg0, %c0_i32, %c0_i32_0 : i32, i32, i32
  }
  func.func @transform_6(%arg0: i32) -> (i32, i32, i32) {
    %c0_i32 = arith.constant 0 : i32
    %c0_i32_0 = arith.constant 0 : i32
    %c0_i32_1 = arith.constant 0 : i32
    return %arg0, %c0_i32, %c0_i32_0 : i32, i32, i32
  }
  func.func @transform_7(%arg0: i32) -> (i32, i32, i32) {
    %c0_i32 = arith.constant 0 : i32
    %c0_i32_0 = arith.constant 0 : i32
    %c0_i32_1 = arith.constant 0 : i32
    return %arg0, %c0_i32, %c0_i32_0 : i32, i32, i32
  }
  func.func @transform_8(%arg0: i32) -> (i32, i32, i32) {
    %c0_i32 = arith.constant 0 : i32
    %c0_i32_0 = arith.constant 0 : i32
    %c0_i32_1 = arith.constant 0 : i32
    return %arg0, %c0_i32, %c0_i32_0 : i32, i32, i32
  }
  func.func @transform_9(%arg0: i32) -> (i32, i32, i32) {
    %c0_i32 = arith.constant 0 : i32
    %c0_i32_0 = arith.constant 0 : i32
    %c0_i32_1 = arith.constant 0 : i32
    return %arg0, %c0_i32, %c0_i32_0 : i32, i32, i32
  }
  func.func @transform_10(%arg0: i32) -> (i32, i32, i32) {
    %c0_i32 = arith.constant 0 : i32
    %c0_i32_0 = arith.constant 0 : i32
    %c0_i32_1 = arith.constant 0 : i32
    return %arg0, %c0_i32, %c0_i32_0 : i32, i32, i32
  }
  func.func @transform_11(%arg0: i32) -> (i32, i32, i32) {
    %c0_i32 = arith.constant 0 : i32
    %c0_i32_0 = arith.constant 0 : i32
    %c0_i32_1 = arith.constant 0 : i32
    return %arg0, %c0_i32, %c0_i32_0 : i32, i32, i32
  }
  func.func @transform_12(%arg0: i32) -> (i32, i32, i32) {
    %c0_i32 = arith.constant 0 : i32
    %c0_i32_0 = arith.constant 0 : i32
    %c0_i32_1 = arith.constant 0 : i32
    return %arg0, %c0_i32, %c0_i32_0 : i32, i32, i32
  }
  func.func @transform_13(%arg0: i32) -> (i32, i32, i32) {
    %c0_i32 = arith.constant 0 : i32
    %c0_i32_0 = arith.constant 0 : i32
    %c0_i32_1 = arith.constant 0 : i32
    return %arg0, %c0_i32, %c0_i32_0 : i32, i32, i32
  }
  func.func @transform_14(%arg0: i32) -> (i32, i32, i32) {
    %c0_i32 = arith.constant 0 : i32
    %c0_i32_0 = arith.constant 0 : i32
    %c0_i32_1 = arith.constant 0 : i32
    return %arg0, %c0_i32, %c0_i32_0 : i32, i32, i32
  }
  func.func @transform_15(%arg0: i32) -> (i32, i32, i32) {
    %c0_i32 = arith.constant 0 : i32
    %c0_i32_0 = arith.constant 0 : i32
    %c0_i32_1 = arith.constant 0 : i32
    %c0_i32_2 = arith.constant 0 : i32
    return %c0_i32, %c0_i32_0, %c0_i32_1 : i32, i32, i32
  }
}

</mosaic_0001>

<bundles_post_ra>
// kernel: multi_input_forward.5
= control target key start
LH: loop header
LB: loop body
LE: loop exit
PB: predicated region body
PF: predicated region fallthrough
CT: control target
= control target key end

     0   :  { %7 = vsyncpa [#allocation4], 0  ;;  %s1163_s0 = inlined_call_operand.vmem [shape: f32[16,256], index: 0, kind: input, shape index: {}]   ;;  %s1164_s1 = inlined_call_operand.vmem [shape: bf16[256,256], index: 1, kind: input, shape index: {}]   ;;  %s1165_s2 = inlined_call_operand.hbm [shape: f32[16,256], index: 2, kind: output, shape index: {}]  }
   0x1   :  { %9 = vsyncpa [#allocation4 + $0x1], 0  ;;  %s907_s9 = smov 0   ;;  %s909_s10 = smov 0  }
   0x2   :  { %s911_s11 = smov 0   ;;  %s913_s12 = smov 0  }
   0x3   :  { %s915_s13 = smov 0   ;;  %s917_s14 = smov 0  }
   0x4   :  { %s919_s15 = smov 0   ;;  %s921_s16 = smov 0  }
   0x5   :  { %s923_s17 = smov 0   ;;  %s925_s18 = smov 0  }
   0x6 LB: > { %s623_s19 = sadd.s32 4294967295, %s889_s18   ;;  %s624_s20 = sadd.s32 4294967294, %s889_s18   ;;  %s889_s18 = sphi %s925_s18, %s15_s18   ;;  %s885_s17 = sphi %s923_s17, %s1177_s17   ;;  %s881_s16 = sphi %s921_s16, %s1176_s16   ;;  %s877_s15 = sphi %s919_s15, %s1175_s15   ;;  %s873_s14 = sphi %s917_s14, %s1174_s14   ;;  %s869_s13 = sphi %s915_s13, %s1173_s13   ;;  %s865_s12 = sphi %s913_s12, %s1172_s12   ;;  %s861_s11 = sphi %s911_s11, %s1171_s11   ;;  %s857_s10 = sphi %s909_s10, %s1170_s10   ;;  %s853_s9 = sphi %s907_s9, %s1169_s9  }
   0x7   : > { %s24_s21 = sadd.s32 1, %s881_s16  ;;  %s27_s22 = sadd.s32 1, %s885_s17 }
   0x8   : > { %p25_p0 = scmp.ge.s32.totalorder %s24_s21, 2  ;;  %s60_s23 = sadd.s32 1, %s869_s13 }
   0x9   : > { %p67_p1 = scmp.ne.s32.totalorder %s869_s13, %s865_s12  ;;  %p68_p2 = scmp.eq.s32.totalorder %s889_s18, 0 }
   0xa   : > { %s1179_s21 = smov (%p25_p0, %s24_s21), 0  ;;  %s1181_s22 = smov (!%p25_p0, %s27_s22), %s885_s17 }
   0xb   : > { %s57_s24 = ssub.s32 %s881_s16, %s1179_s21  ;;  %p970_p3 = por %p68_p2, %p67_p1 }
   0xc   : > { %p29_p4 = scmp.ge.s32.totalorder %s1181_s22, 2  ;;  %p58_p5 = scmp.eq.s32.totalorder %s57_s24, 0 }
   0xd   : > { %s88_s26 = sadd.s32 1, %s861_s11  ;;  %p98_p6 = scmp.ne.s32.totalorder %s861_s11, %s857_s10 }
   0xe   : > { %s1183_s22 = smov (%p29_p4, %s1181_s22), 0  ;;  %p99_p7 = scmp.eq.s32.totalorder %s623_s19, 3 }
   0xf   : > { %s980_s27 = scalar_select %p58_p5, %s869_s13, %s60_s23  }
  0x10   : > { %s83_s28 = ssub.s32 %s885_s17, %s1183_s22  ;;  %p104_p8 = scmp.ne.s32.totalorder %s857_s10, %s853_s9 }
  0x11   : > { %s85_s29 = sor.u32 %s83_s28, %s57_s24  ;;  %p986_p10 = por %p99_p7, %p98_p6 }
  0x12   : > { %p86_p9 = scmp.eq.s32.totalorder %s85_s29, 0  ;;  %p105_p11 = scmp.eq.s32.totalorder %s624_s20, 3 }
  0x13   : > { %p626_p13 = scmp.ge.s32.totalorder %s889_s18, 4 }
  0x14   : > { %s991_s3 = scalar_select %p86_p9, %s861_s11, %s88_s26  }
  0x15   : > { %p993_p12 = por %p105_p11, %p104_p8  ;;  %121 = sbr.rel (%p626_p13) target bundleno = 51 (0x33), region = 16 }
  0x1a   : > { %132 = sbr.rel (!%p970_p3) target bundleno = 51 (0x33), region = 24  ;;  %s134_s5 = sand.u32 (%p970_p3), 1, %s869_s13  }
  0x1b   : > { %s628_s6 = sshll.u32 (%p970_p3), %s881_s16, 2  ;;  %s627_s7 = sshll.u32 (%p970_p3), %s134_s5, 7 }
  0x1c   : > { %s1005_s20 = scalar_lea.vmem (%p970_p3), %s1164_s1, %s628_s6  ;;  %s1009_s23 = scalar_lea.vmem (%p970_p3), [#allocation2], %s627_s7 }
  0x1d   : > { %v155_v0 = vld [vmem:[%s1005_s20] sm:$0xf] (%p970_p3)  ;;  %v157_v1 = vld [vmem:[%s1005_s20 + $0x8] sm:$0xf] (%p970_p3)  ;;  %v159_v2 = vld [vmem:[%s1005_s20 + $0x10] sm:$0xf] (%p970_p3) }
  0x1e   : > { %156 = vst [vmem:[%s1009_s23] sm:$0xf] (%p970_p3), %v155_v0  ;;  %158 = vst [vmem:[%s1009_s23 + $0x4] sm:$0xf] (%p970_p3), %v157_v1  ;;  %v161_v3 = vld [vmem:[%s1005_s20 + $0x18] sm:$0xf] (%p970_p3) }
  0x1f   : > { %v163_v4 = vld [vmem:[%s1005_s20 + $0x20] sm:$0xf]  ;;  %160 = vst [vmem:[%s1009_s23 + $0x8] sm:$0xf] %v159_v2  ;;  %162 = vst [vmem:[%s1009_s23 + $0xc] sm:$0xf] %v161_v3 }
  0x20   : > { %164 = vst [vmem:[%s1009_s23 + $0x10] sm:$0xf] %v163_v4  ;;  %v165_v5 = vld [vmem:[%s1005_s20 + $0x28] sm:$0xf]  ;;  %v167_v6 = vld [vmem:[%s1005_s20 + $0x30] sm:$0xf] }
  0x21   : > { %v169_v7 = vld [vmem:[%s1005_s20 + $0x38] sm:$0xf]  ;;  %166 = vst [vmem:[%s1009_s23 + $0x14] sm:$0xf] %v165_v5  ;;  %168 = vst [vmem:[%s1009_s23 + $0x18] sm:$0xf] %v167_v6 }
  0x22   : > { %170 = vst [vmem:[%s1009_s23 + $0x1c] sm:$0xf] %v169_v7  ;;  %v171_v8 = vld [vmem:[%s1005_s20 + $0x40] sm:$0xf]  ;;  %v173_v9 = vld [vmem:[%s1005_s20 + $0x48] sm:$0xf] }
  0x23   : > { %v175_v10 = vld [vmem:[%s1005_s20 + $0x50] sm:$0xf]  ;;  %172 = vst [vmem:[%s1009_s23 + $0x20] sm:$0xf] %v171_v8  ;;  %174 = vst [vmem:[%s1009_s23 + $0x24] sm:$0xf] %v173_v9 }
  0x24   : > { %176 = vst [vmem:[%s1009_s23 + $0x28] sm:$0xf] %v175_v10  ;;  %v177_v11 = vld [vmem:[%s1005_s20 + $0x58] sm:$0xf]  ;;  %v179_v12 = vld [vmem:[%s1005_s20 + $0x60] sm:$0xf] }
  0x25   : > { %v181_v13 = vld [vmem:[%s1005_s20 + $0x68] sm:$0xf]  ;;  %178 = vst [vmem:[%s1009_s23 + $0x2c] sm:$0xf] %v177_v11  ;;  %180 = vst [vmem:[%s1009_s23 + $0x30] sm:$0xf] %v179_v12 }
  0x26   : > { %182 = vst [vmem:[%s1009_s23 + $0x34] sm:$0xf] %v181_v13  ;;  %v183_v14 = vld [vmem:[%s1005_s20 + $0x70] sm:$0xf]  ;;  %v185_v15 = vld [vmem:[%s1005_s20 + $0x78] sm:$0xf] }
  0x27   : > { %v187_v16 = vld [vmem:[%s1005_s20 + $0x80] sm:$0xf]  ;;  %184 = vst [vmem:[%s1009_s23 + $0x38] sm:$0xf] %v183_v14  ;;  %186 = vst [vmem:[%s1009_s23 + $0x3c] sm:$0xf] %v185_v15 }
  0x28   : > { %188 = vst [vmem:[%s1009_s23 + $0x40] sm:$0xf] %v187_v16  ;;  %v189_v17 = vld [vmem:[%s1005_s20 + $0x88] sm:$0xf]  ;;  %v191_v18 = vld [vmem:[%s1005_s20 + $0x90] sm:$0xf] }
  0x29   : > { %v193_v19 = vld [vmem:[%s1005_s20 + $0x98] sm:$0xf]  ;;  %190 = vst [vmem:[%s1009_s23 + $0x44] sm:$0xf] %v189_v17  ;;  %192 = vst [vmem:[%s1009_s23 + $0x48] sm:$0xf] %v191_v18 }
  0x2a   : > { %194 = vst [vmem:[%s1009_s23 + $0x4c] sm:$0xf] %v193_v19  ;;  %v195_v20 = vld [vmem:[%s1005_s20 + $0xa0] sm:$0xf]  ;;  %v197_v21 = vld [vmem:[%s1005_s20 + $0xa8] sm:$0xf] }
  0x2b   : > { %v199_v22 = vld [vmem:[%s1005_s20 + $0xb0] sm:$0xf]  ;;  %196 = vst [vmem:[%s1009_s23 + $0x50] sm:$0xf] %v195_v20  ;;  %198 = vst [vmem:[%s1009_s23 + $0x54] sm:$0xf] %v197_v21 }
  0x2c   : > { %200 = vst [vmem:[%s1009_s23 + $0x58] sm:$0xf] %v199_v22  ;;  %v201_v23 = vld [vmem:[%s1005_s20 + $0xb8] sm:$0xf]  ;;  %v203_v24 = vld [vmem:[%s1005_s20 + $0xc0] sm:$0xf] }
  0x2d   : > { %v205_v25 = vld [vmem:[%s1005_s20 + $0xc8] sm:$0xf]  ;;  %202 = vst [vmem:[%s1009_s23 + $0x5c] sm:$0xf] %v201_v23  ;;  %204 = vst [vmem:[%s1009_s23 + $0x60] sm:$0xf] %v203_v24 }
  0x2e   : > { %206 = vst [vmem:[%s1009_s23 + $0x64] sm:$0xf] %v205_v25  ;;  %v207_v26 = vld [vmem:[%s1005_s20 + $0xd0] sm:$0xf]  ;;  %v209_v27 = vld [vmem:[%s1005_s20 + $0xd8] sm:$0xf] }
  0x2f   : > { %v211_v28 = vld [vmem:[%s1005_s20 + $0xe0] sm:$0xf]  ;;  %208 = vst [vmem:[%s1009_s23 + $0x68] sm:$0xf] %v207_v26  ;;  %210 = vst [vmem:[%s1009_s23 + $0x6c] sm:$0xf] %v209_v27 }
  0x30   : > { %212 = vst [vmem:[%s1009_s23 + $0x70] sm:$0xf] %v211_v28  ;;  %v213_v29 = vld [vmem:[%s1005_s20 + $0xe8] sm:$0xf]  ;;  %v215_v30 = vld [vmem:[%s1005_s20 + $0xf0] sm:$0xf] }
  0x31   : > { %v217_v31 = vld [vmem:[%s1005_s20 + $0xf8] sm:$0xf]  ;;  %214 = vst [vmem:[%s1009_s23 + $0x74] sm:$0xf] %v213_v29  ;;  %216 = vst [vmem:[%s1009_s23 + $0x78] sm:$0xf] %v215_v30 }
  0x32   : > { %218 = vst [vmem:[%s1009_s23 + $0x7c] sm:$0xf] %v217_v31 }
  0x33 PF: > { %p629_p0 = scmp.ge.s32.totalorder %s889_s18, 1  ;;  %p305_p1 = scmp.lt.s32.totalorder %s889_s18, 5 }
  0x35   : > { %p306_p2 = pnand %p629_p0, %p305_p1 }
  0x36   : > { %s312_s24 = sand.u32 (!%p306_p2), 1, %s865_s12   ;;  %p338_p3 = scmp.lt.s32.totalorder (!%p306_p2), %s877_s15, 1 }
  0x37   : > { %309 = sbr.rel (%p306_p2) target bundleno = 304 (0x130), region = 65  ;;  %s630_s25 = sshll.u32 (!%p306_p2), %s312_s24, 7 }
  0x38   : > { %s1076_s26 = scalar_lea.vmem (!%p306_p2), [#allocation2], %s630_s25  ;;  %s335_s7 = sand.u32 (!%p306_p2), 1, %s857_s10  }
  0x39   : > { %s631_s8 = sshll.u32 (!%p306_p2), %s335_s7, 3  ;;  %s651_s19 = sshll.u32 (!%p306_p2), %s877_s15, 1 }
  0x3a   : > { %s529_s20 = sadd.s32 (!%p306_p2), %s873_s14, %s651_s19  ;;  %s337_s24 = scalar_lea.vmem (!%p306_p2), [#allocation3], %s631_s8 }
  0x3b   : > { %s652_s23 = sshll.u32 (!%p306_p2), %s529_s20, 7  ;;  %s533_s25 = sshll.u32 (!%p306_p2), %s337_s24, 4  ;;  %s1107_s25 = int_to_ptr.vmem [resolvable:$true] %s533_s25 }
  0x3c   : > { %v765_v32 = vld [vmem:[%s1076_s26 + $0x78] sm:$0xff]   ;;  %v767_v34 = vld [vmem:[%s1076_s26 + $0x70] sm:$0xff]   ;;  %v769_v36 = vld [vmem:[%s1076_s26 + $0x68] sm:$0xff]   ;;  %s339_s12 = scalar_select %p338_p3, %s877_s15, 1 }
  0x3d   : > { %v766_v33 = vld [vmem:[%s1076_s26 + $0x38] sm:$0xff]   ;;  %656 = vmatprep.subr.bf16.mxu0 %v765_v32  ;;  %v768_v35 = vld [vmem:[%s1076_s26 + $0x30] sm:$0xff]   ;;  %v770_v37 = vld [vmem:[%s1076_s26 + $0x28] sm:$0xff]   ;;  %s518_s14 = scalar_lea.sflag [#allocation4], %s335_s7  ;;  %s781_s15 = scalar_lea.vmem %s1107_s25, 128 }
  0x3e   : > { %657 = vmatpush3.bf16.msra.mxu0 %v766_v33  ;;  %v771_v38 = vld [vmem:[%s1076_s26 + $0x60] sm:$0xff]   ;;  %s655_s28 = sshll.u32 %s339_s12, 4  ;;  %v773_v40 = vld [vmem:[%s1076_s26 + $0x58] sm:$0xff]   ;;  %v775_v42 = vld [vmem:[%s1076_s26 + $0x50] sm:$0xff]   ;;  %p782_p4 = scmp.ne.s32.totalorder %s1107_s25, %s781_s15 }
  0x3f   : > { %658 = vmatprep.subr.bf16.mxu0 %v767_v34  ;;  %v772_v39 = vld [vmem:[%s1076_s26 + $0x20] sm:$0xff]   ;;  %s342_s6 = scalar_lea.vmem %s1163_s0, %s655_s28  ;;  %v774_v41 = vld [vmem:[%s1076_s26 + $0x18] sm:$0xff]   ;;  %v776_v45 = vld [vmem:[%s1076_s26 + $0x10] sm:$0xff]   ;;  %s891_s29 = smov [#allocation3]  }
  0x40   : > { %v345_v43 = vld [vmem:[%s342_s6 + $0x8] sm:$0xff]  ;;  %v779_v48 = vld [vmem:[%s1076_s26 + $0x40] sm:$0xff]   ;;  %p783_p5 = pnand %p782_p4, %p986_p10  ;;  %s785_s5 = sshll.u32 %s891_s29, 4  ;;  %s786_s5 = int_to_ptr.vmem [resolvable:$false] %s785_s5 }
  0x41   : > { %v347_v44 = vpack.c.bf16 %v345_v43, %v345_v43  ;;  %v777_v46 = vld [vmem:[%s1076_s26 + $0x48] sm:$0xff]   ;;  %v780_v49 = vld [vmem:[%s1076_s26] sm:$0xff]   ;;  %p788_p7 = scmp.lt.s32.totalorder %s1107_s25, %s786_s5 }
  0x42   : > { %659 = vmatpush3.bf16.msra.mxu0 %v768_v35  ;;  %v778_v47 = vld [vmem:[%s1076_s26 + $0x8] sm:$0xff]   ;;  %v344_v50 = vld [vmem:[%s342_s6] sm:$0xff]  ;;  %s1105_s26 = scalar_lea.hbm %s1165_s2, %s652_s23  ;;  %p784_p6 = pneg %p783_p5 }
  0x43   : > { %660 = vmatprep.subr.bf16.mxu0 %v769_v36  ;;  %508 = vmatprep.mubr.bf16.mxu0 %v347_v44  ;;  %v346_v51 = vpack.c.bf16 %v344_v50, %v344_v50  ;;  %s787_s6 = scalar_lea.vmem %s786_s5, 256 }
  0x44   : > { %p789_p8 = scmp.lt.s32.totalorder %s787_s6, %s781_s15 }
  0x46   : > { %661 = vmatpush3.bf16.msra.mxu0 %v770_v37  ;;  %p790_p9 = por %p789_p8, %p788_p7 }
  0x47   : > { %662 = vmatprep.subr.bf16.mxu0 %v771_v38 }
  0x48   : > { %p791_p11 = pnand %p790_p9, %p784_p6 }
  0x4a   : > { %663 = vmatpush3.bf16.msra.mxu0 %v772_v39 }
  0x4b   : > { %664 = vmatprep.subr.bf16.mxu0 %v773_v40 }
  0x4e   : > { %665 = vmatpush3.bf16.msra.mxu0 %v774_v41 }
  0x4f   : > { %666 = vmatprep.subr.bf16.mxu0 %v775_v42 }
  0x52   : > { %667 = vmatpush3.bf16.msra.mxu0 %v776_v45 }
  0x53   : > { %668 = vmatprep.subr.bf16.mxu0 %v777_v46 }
  0x56   : > { %669 = vmatpush3.bf16.msra.mxu0 %v778_v47 }
  0x57   : > { %670 = vmatprep.subr.bf16.mxu0 %v779_v48 }
  0x5a   : > { %671 = vmatpush3.bf16.msra.mxu0 %v780_v49 }
  0x5d   : > { %509 = vmatmul.mubr.bf16.vlgmr.msra.gmra.mxu0 %v346_v51 }
 0x11d   : > { %v672_v52 = vpop.f32.mrf.mxu0 }
 0x11f   : > { %v673_v53 = vpop.f32.mrf.mxu0 }
 0x120   : > { %v674_v54 = vadd.f32 %v673_v53, %v672_v52 }
 0x121   : > { %v675_v55 = vpop.f32.mrf.mxu0 }
 0x122   : > { %516 = vst [vmem:[%s337_s24] sm:$0xff] %v674_v54 }
 0x123   : > { %v676_v56 = vpop.f32.mrf.mxu0 }
 0x124   : > { %794 = shalt.err (!%p791_p11)
}
 0x125   : > { %s795_s8 = scalar_lea.hbm %s1105_s26, 128  ;;  %s799_s20 = scalar_lea.hbm %s1165_s2, 512 }
 0x126   : > { %p796_p13 = scmp.ne.s32.totalorder %s1105_s26, %s795_s8  ;;  %p800_p2 = scmp.lt.s32.totalorder %s1105_s26, %s1165_s2 }
 0x127   : > { %p801_p3 = scmp.lt.s32.totalorder %s799_s20, %s795_s8 }
 0x128   : > { %p797_p0 = pnand %p796_p13, %p986_p10 }
 0x129   : > { %p802_p4 = por %p801_p3, %p800_p2 }
 0x12a   : > { %p798_p1 = pneg %p797_p0 }
 0x12c   : > { %p803_p5 = pnand %p802_p4, %p798_p1 }
 0x12e   : > { %806 = shalt.err (!%p803_p5)
}
 0x12f   : > { %678 = dma.vmem_to_hbm [thread:$0]  (%p986_p10), %s1107_s25, 128, %s1105_s26, %s518_s14  }
 0x130 PF: > { %p684_p6 = scmp.ge.s32.totalorder %s889_s18, 2  ;;  %s545_s12 = sand.u32 1, %s853_s9  }
 0x131   : > { %s546_s28 = scalar_lea.sflag [#allocation4], %s545_s12 }
 0x132   : > { %p681_p7 = pnand %p684_p6, %p993_p12 }
 0x134   : > { %p682_p8 = pneg %p681_p7 }
 0x136   : > { %848 = dma.done.wait (%p682_p8), %s546_s28, 128  }
 0x137   : > { %850 = vsyncadd (%p682_p8), %s546_s28, 4294967168  ;;  %s15_s18 = sadd.s32 1, %s889_s18   ;;  %s1169_s9 = smov %s857_s10 }
 0x138   : > { %p12_p9 = scmp.ge.s32.totalorder %s15_s18, 6   ;;  %s1170_s10 = smov %s861_s11 }
 0x139   : > { %s1171_s11 = smov %s991_s3  ;;  %s1172_s12 = smov %s869_s13 }
 0x13a   : > { %s1173_s13 = smov %s980_s27  ;;  %s1174_s14 = smov %s881_s16 }
 0x13b   : > { %s1175_s15 = smov %s885_s17  ;;  %s1176_s16 = smov %s1179_s21 }
 0x13c   : > { %s1177_s17 = smov %s1183_s22  ;;  %14 = sbr.rel (!%p12_p9) target bundleno = 6 (0x6), region = 112 }
 0x141   :  { %551 = vsyncpa [#allocation4], 1 }
 0x142   :  { %553 = vsyncpa [#allocation4 + $0x1], 1 }

// kernel: multi_input_forward.3
= control target key start
LH: loop header
LB: loop body
LE: loop exit
PB: predicated region body
PF: predicated region fallthrough
CT: control target
= control target key end

     0   :  { %s5052_s0 = inlined_call_operand.vmem [shape: f32[2,8,256], index: 0, kind: input, shape index: {}]   ;;  %s5053_s1 = inlined_call_operand.vmem [shape: f32[2,8], index: 1, kind: input, shape index: {}]   ;;  %s5054_s2 = inlined_call_operand.hbm [shape: bf16[2,256,768], index: 2, kind: input, shape index: {}]   ;;  %s5055_s3 = inlined_call_operand.hbm [shape: bf16[2,256,256], index: 3, kind: input, shape index: {}]   ;;  %s5056_s4 = inlined_call_operand.vmem [shape: bf16[2,256,512], index: 4, kind: input, shape index: {}]   ;;  %s5057_s5 = inlined_call_operand.hbm [shape: bf16[2,512,256], index: 5, kind: input, shape index: {}]   ;;  %s5058_s6 = inlined_call_operand.vmem [shape: f32[2,10,256], index: 6, kind: input, shape index: {}]   ;;  %s5059_s7 = inlined_call_operand.vmem [shape: f32[2,1,768], index: 7, kind: input, shape index: {}]   ;;  %s5060_s8 = inlined_call_operand.vmem [shape: f32[2,1,512], index: 8, kind: input, shape index: {}]   ;;  %s5061_s9 = inlined_call_operand.vmem [shape: f32[2,8,256], index: 9, kind: output, shape index: {}]  }
   0x1   :  { %5068 = sst [smem:[#allocation13_spill]] %s5054_s2 }
   0x2   :  { %5069 = sst [smem:[#allocation14_spill]] %s5055_s3 }
   0x3   :  { %14 = vsyncpa [#allocation4], 0 }
   0x4   :  { %16 = vsyncpa [#allocation4 + $0x1], 0 }
   0x5   :  { %17 = vsyncpa [#allocation6], 0 }
   0x6   :  { %19 = vsyncpa [#allocation6 + $0x1], 0  ;;  %s4297_s30 = smov 0   ;;  %s4299_s10 = smov 0  }
   0x7   :  { %s4301_s11 = smov 0   ;;  %s4303_s12 = smov 0  }
   0x8 LB: > { %5070 = sst [smem:[#allocation10_spill]] %s4230_s11  ;;  %s4316_s13 = sadd.s32 4294967295, %s4234_s12   ;;  %s4234_s12 = sphi %s4303_s12, %s5083_s12   ;;  %s4230_s11 = sphi %s4301_s11, %s5085_s11   ;;  %s4226_s10 = sphi %s4299_s10, %s5087_s10   ;;  %s4222_s30 = sphi %s4297_s30, %s5086_s30  }
   0x9   : > { %s4319_s14 = sadd.s32 1, %s4234_s12   ;;  %s74_s16 = sadd.s32 1, %s4230_s11 }
   0xa   : > { %5071 = sst [smem:[#allocation11_spill]] %s4319_s14  ;;  %s71_s15 = ssub.s32 %s4234_s12, %s4319_s14 }
   0xb   : > { %p72_p0 = scmp.eq.s32.totalorder %s71_s15, 0  ;;  %p81_p1 = scmp.ne.s32.totalorder %s4230_s11, %s4226_s10 }
   0xc   : > { %p82_p2 = scmp.eq.s32.totalorder %s4234_s12, 0  ;;  %p87_p3 = scmp.ne.s32.totalorder %s4226_s10, %s4222_s30 }
   0xd   : > { %s4329_s17 = scalar_select %p72_p0, %s4230_s11, %s74_s16  }
   0xe   : > { %p83_p4 = por %p82_p2, %p81_p1  ;;  %p88_p5 = scmp.eq.s32.totalorder %s4316_s13, 0 }
   0xf   : > { %5072 = sst [smem:[#allocation12_spill]] %s4329_s17  ;;  %p3643_p6 = scmp.lt.s32.totalorder %s4234_s12, 2 }
  0x10   : > { %p4333_p7 = por %p88_p5, %p87_p3  ;;  %s4338_s19 = sand.u32 1, %s4230_s11  }
  0x11   : > { %p4340_p8 = pnand %p3643_p6, %p83_p4  ;;  %s315_s21 = sand.u32 1, %s4234_s12  }
  0x12   : > { %s5073_s18 = scalar_select %p4333_p7, 1, 0 }
  0x13   : > { %s3277_s22 = sshll.u32 %s4338_s19, 8  ;;  %s3555_s23 = sshll.u32 %s4234_s12, 12 }
  0x14   : > { %s319_s24 = scalar_lea.vmem [#allocation5], %s3277_s22  ;;  %s5075_s3 = sld [smem:[#allocation14_spill]] }
  0x15   : > { %s326_s25 = sshll.u32 %s319_s24, 4  ;;  %s4354_s29 = scalar_lea.sflag [#allocation6], %s315_s21  ;;  %s4352_s25 = int_to_ptr.vmem [resolvable:$true] %s326_s25 }
  0x16   : > { %p4360_p10 = pneg %p4340_p8 }
  0x1a   : > { %s4350_s28 = scalar_lea.hbm %s5075_s3, %s3555_s23  ;;  %s4117_s23 = scalar_lea.hbm %s5075_s3, 8192 }
  0x1b   : > { %s4112_s30 = scalar_lea.hbm %s4350_s28, 4096  ;;  %p4118_p13 = scmp.lt.s32.totalorder %s4350_s28, %s5075_s3 }
  0x1c   : > { %p4113_p9 = scmp.ne.s32.totalorder %s4350_s28, %s4112_s30  ;;  %p4119_p0 = scmp.lt.s32.totalorder %s4117_s23, %s4112_s30 }
  0x1e   : > { %p4115_p11 = pnand %p4360_p10, %p4113_p9  ;;  %p4120_p1 = por %p4119_p0, %p4118_p13 }
  0x20   : > { %p4116_p12 = pneg %p4115_p11 }
  0x22   : > { %p4121_p2 = pnand %p4120_p1, %p4116_p12 }
  0x24   : > { %4124 = shalt.err (!%p4121_p2)
}
  0x25   : > { %s4125_s21 = scalar_lea.vmem %s4352_s25, 4096  ;;  %s4236_s27 = smov [#allocation5]  }
  0x26   : > { %p4126_p3 = scmp.ne.s32.totalorder %s4352_s25, %s4125_s21  ;;  %s4130_s16 = sshll.u32 %s4236_s27, 4  ;;  %s4131_s16 = int_to_ptr.vmem [resolvable:$false] %s4130_s16 }
  0x27   : > { %s4132_s22 = scalar_lea.vmem %s4131_s16, 8192  ;;  %p4133_p6 = scmp.lt.s32.totalorder %s4352_s25, %s4131_s16 }
  0x28   : > { %p4128_p4 = pnand %p4126_p3, %p4360_p10  ;;  %p4134_p9 = scmp.lt.s32.totalorder %s4132_s22, %s4125_s21 }
  0x2a   : > { %p4129_p5 = pneg %p4128_p4  ;;  %p4135_p11 = por %p4134_p9, %p4133_p6 }
  0x2c   : > { %p4136_p7 = pnand %p4135_p11, %p4129_p5 }
  0x2e   : > { %4139 = shalt.err (!%p4136_p7)
}
  0x2f   : > { %s5063_s30 = smov 128   ;;  %s5064_s23 = smov 8  }
  0x30   : > { %3639 = dma.hbm_to_vmem [thread:$0]  (!%p4340_p8), %s4350_s28, 4096, %s4352_s25, %s4354_s29, %s5063_s30, %s5063_s30, %s5064_s23  }
  0x31   : > { %p3283_p12 = scmp.ge.s32.totalorder %s4234_s12, 1  ;;  %p385_p13 = scmp.lt.s32.totalorder %s4234_s12, 3 }
  0x32   : > { %s3623_s24 = smul.u32 768, %s4338_s19  ;;  %s5078_s2 = sld [smem:[#allocation13_spill]] }
  0x33   : > { %p4389_p7 = pnand %p3283_p12, %p385_p13  ;;  %s3624_s21 = smul.u32 12288, %s4234_s12 }
  0x34   : > { %s298_s3 = scalar_lea.vmem [#allocation3], %s3623_s24  ;;  %s295_s25 = scalar_lea.sflag [#allocation4], %s4338_s19 }
  0x35   : > { %s5077_s26 = scalar_select %p4389_p7, 1, 0 }
  0x36   : > { %s305_s17 = sshll.u32 %s298_s3, 4  ;;  %s4399_s17 = int_to_ptr.vmem [resolvable:$true] %s305_s17 }
  0x38   : > { %s4397_s22 = scalar_lea.hbm %s5078_s2, %s3624_s21  ;;  %s4145_s11 = scalar_lea.hbm %s5078_s2, 24576 }
  0x39   : > { %s4140_s28 = scalar_lea.hbm %s4397_s22, 12288  ;;  %p4146_p3 = scmp.lt.s32.totalorder %s4397_s22, %s5078_s2 }
  0x3a   : > { %p4141_p0 = scmp.ne.s32.totalorder %s4397_s22, %s4140_s28  ;;  %p4147_p4 = scmp.lt.s32.totalorder %s4145_s11, %s4140_s28 }
  0x3c   : > { %p4143_p1 = pnand %p4141_p0, %p4360_p10  ;;  %p4148_p5 = por %p4147_p4, %p4146_p3 }
  0x3e   : > { %p4144_p2 = pneg %p4143_p1 }
  0x40   : > { %p4149_p6 = pnand %p4148_p5, %p4144_p2 }
  0x42   : > { %4152 = shalt.err (!%p4149_p6)
}
  0x43   : > { %s4153_s3 = scalar_lea.vmem %s4399_s17, 12288  ;;  %s4239_s24 = smov [#allocation3]  }
  0x44   : > { %p4154_p9 = scmp.ne.s32.totalorder %s4399_s17, %s4153_s3  ;;  %s4158_s30 = sshll.u32 %s4239_s24, 4  ;;  %s4159_s30 = int_to_ptr.vmem [resolvable:$false] %s4158_s30 }
  0x45   : > { %s4160_s23 = scalar_lea.vmem %s4159_s30, 24576  ;;  %p4161_p13 = scmp.lt.s32.totalorder %s4399_s17, %s4159_s30 }
  0x46   : > { %p4156_p11 = pnand %p4154_p9, %p4360_p10  ;;  %p4162_p0 = scmp.lt.s32.totalorder %s4160_s23, %s4153_s3 }
  0x48   : > { %p4157_p12 = pneg %p4156_p11  ;;  %p4163_p1 = por %p4162_p0, %p4161_p13 }
  0x4a   : > { %p4164_p7 = pnand %p4163_p1, %p4157_p12 }
  0x4c   : > { %4167 = shalt.err (!%p4164_p7)
}
  0x4d   : > { %s4240_s11 = smov 384   ;;  %s4241_s16 = smov 24  }
  0x4e   : > { %3636 = dma.hbm_to_vmem [thread:$0]  (!%p4340_p8), %s4397_s22, 12288, %s4399_s17, %s295_s25, %s4240_s11, %s4240_s11, %s4241_s16  }
  0x4f   : > { %s3280_s28 = sshll.u32 %s4338_s19, 9  ;;  %s3556_s27 = sshll.u32 %s4234_s12, 13 }
  0x50   : > { %s4429_s3 = scalar_lea.hbm %s5057_s5, %s3556_s27  ;;  %s348_s30 = scalar_lea.vmem [#allocation7], %s3280_s28 }
  0x51   : > { %s355_s23 = sshll.u32 %s348_s30, 4  ;;  %s4168_s2 = scalar_lea.hbm %s4429_s3, 8192  ;;  %s356_s23 = int_to_ptr.vmem [resolvable:$true] %s355_s23 }
  0x52   : > { %p4169_p7 = scmp.ne.s32.totalorder %s4429_s3, %s4168_s2  ;;  %s4173_s12 = scalar_lea.hbm %s5057_s5, 16384 }
  0x53   : > { %p4174_p4 = scmp.lt.s32.totalorder %s4429_s3, %s5057_s5  ;;  %p4175_p5 = scmp.lt.s32.totalorder %s4173_s12, %s4168_s2 }
  0x54   : > { %p4171_p2 = pnand %p4169_p7, %p4360_p10 }
  0x55   : > { %p4176_p6 = por %p4175_p5, %p4174_p4 }
  0x56   : > { %p4172_p3 = pneg %p4171_p2 }
  0x58   : > { %p4177_p9 = pnand %p4176_p6, %p4172_p3 }
  0x5a   : > { %4180 = shalt.err (!%p4177_p9)
}
  0x5b   : > { %s4181_s25 = scalar_lea.vmem %s356_s23, 8192  ;;  %s4242_s11 = smov [#allocation7]  }
  0x5c   : > { %p4182_p11 = scmp.ne.s32.totalorder %s356_s23, %s4181_s25  ;;  %s4186_s16 = sshll.u32 %s4242_s11, 4  ;;  %s4187_s16 = int_to_ptr.vmem [resolvable:$false] %s4186_s16 }
  0x5d   : > { %s4188_s28 = scalar_lea.vmem %s4187_s16, 16384  ;;  %p4189_p0 = scmp.lt.s32.totalorder %s356_s23, %s4187_s16 }
  0x5e   : > { %p4184_p12 = pnand %p4182_p11, %p4360_p10  ;;  %p4190_p1 = scmp.lt.s32.totalorder %s4188_s28, %s4181_s25 }
  0x60   : > { %p4185_p13 = pneg %p4184_p12  ;;  %p4191_p7 = por %p4190_p1, %p4189_p0 }
  0x62   : > { %p4192_p2 = pnand %p4191_p7, %p4185_p13 }
  0x64   : > { %4195 = shalt.err (!%p4192_p2)
}
  0x65   : > { %s5079_s2 = smov 8   ;;  %s5080_s14 = smov 128  }
  0x66   : > { %3642 = dma.hbm_to_vmem [thread:$0]  (!%p4340_p8), %s4429_s3, 8192, %s356_s23, %s4354_s29, %s5080_s14, %s5080_s14, %s5079_s2  }
  0x67   : > { %p5081_p10 = scmp.ne.s32.totalorder %s5077_s26, 0 }
  0x68   : > { %s391_s15 = sand.u32 (!%p5081_p10), 1, %s4226_s10   ;;  %p5082_p3 = scmp.ne.s32.totalorder (!%p5081_p10), %s5073_s18, 0 }
  0x69   : > { %389 = sbr.rel (%p5081_p10) target bundleno = 2913 (0xb61), region = 56  ;;  %s392_s21 = scalar_lea.sflag (!%p5081_p10), [#allocation4], %s391_s15 }
  0x6a   : > { %s3625_s27 = smul.u32 (!%p5081_p10), 768, %s391_s15 }
  0x6c   : > { %s4454_s24 = scalar_lea.vmem (!%p5081_p10), [#allocation3], %s3625_s27 }
  0x6e   : > { %4213 = dma.done.wait (%p5082_p3), %s392_s21, 12288  }
  0x6f   : > { %4215 = vsyncadd (%p5082_p3), %s392_s21, 4294955008  ;;  %s400_s20 = sand.u32 1, %s4316_s13   ;;  %s3284_s30 = sshll.u32 %s391_s15, 8 }
  0x70   : > { %s401_s29 = scalar_lea.sflag [#allocation6], %s400_s20  ;;  %s4461_s3 = scalar_lea.vmem [#allocation5], %s3284_s30 }
  0x71   : > { %4217 = dma.done.wait (%p5082_p3), %s401_s29, 12288  }
  0x72   : > { %4219 = vsyncadd (%p5082_p3), %s401_s29, 4294955008  ;;  %s3285_s26 = sshll.u32 %s391_s15, 9  ;;  %p471_p8 = scmp.lt.s32.totalorder %s4316_s13, 1 }
  0x73   : > { %s4489_s29 = scalar_lea.vmem [#allocation7], %s3285_s26  ;;  %p3291_p4 = scmp.ne.s32.totalorder %s4316_s13, 0 }
  0x74   : > { %s472_s23 = scalar_select %p471_p8, %s4316_s13, 1 }
  0x76   : > { %s3557_s17 = sshll.u32 %s472_s23, 9  ;;  %s3558_s12 = sshll.u32 %s472_s23, 5 }
  0x77   : > { %s4472_s25 = scalar_lea.vmem %s5056_s4, %s3557_s17  ;;  %s4477_s28 = scalar_lea.vmem %s5058_s6, %s3558_s12 }
  0x78   : > { %s3626_s2 = smul.u32 6, %s472_s23  ;;  %s3290_s18 = sshll.u32 %s472_s23, 2 }
  0x79   : > { %s4482_s15 = scalar_lea.vmem %s5060_s8, %s3290_s18  ;;  %493 = sbr.rel (%p3291_p4) target bundleno = 129 (0x81), region = 72 }
  0x7a   : > { %s4487_s30 = scalar_lea.vmem %s5059_s7, %s3626_s2 }
  0x7e   : > { %v494_v0 = vld [vmem:[%s5052_s0] sm:$0xff]  ;;  %v495_v1 = vld [vmem:[%s5052_s0 + $0x8] sm:$0xff]  ;;  %v496_v2 = vld [vmem:[%s5052_s0 + $0x10] sm:$0xff] }
  0x7f   : > { %498 = vst [vmem:[#allocation2 + $0x10] sm:$0xff] %v494_v0  ;;  %499 = vst [vmem:[#allocation2] sm:$0xff] %v495_v1  ;;  %v497_v3 = vld [vmem:[%s5052_s0 + $0x18] sm:$0xff] }
  0x80   : > { %500 = vst [vmem:[#allocation2 + $0x18] sm:$0xff] %v496_v2  ;;  %501 = vst [vmem:[#allocation2 + $0x8] sm:$0xff] %v497_v3 }
  0x81 PF: > { %v3684_v4 = vld [vmem:[%s4454_s24 + $0x15c] ss:$24 sps:$4 sm:$0xff]   ;;  %v3686_v5 = vld [vmem:[%s4454_s24 + $0x158] ss:$24 sps:$4 sm:$0xff]   ;;  %v3690_v8 = vld [vmem:[%s4454_s24 + $0x12c] ss:$24 sps:$4 sm:$0xff]  }
  0x82   : > { %1213 = vmatprep.subr.bf16.mxu1 %v3684_v4  ;;  %v3687_v6 = vld [vmem:[%s4454_s24 + $0x154] ss:$24 sps:$4 sm:$0xff]   ;;  %v3689_v7 = vld [vmem:[%s4454_s24 + $0x150] ss:$24 sps:$4 sm:$0xff]   ;;  %v3693_v10 = vld [vmem:[%s4454_s24 + $0x124] ss:$24 sps:$4 sm:$0xff]  }
  0x83   : > { %1214 = vmatpush1.bf16.msra.mxu1 %v3686_v5  ;;  %v3692_v9 = vld [vmem:[%s4454_s24 + $0x128] ss:$24 sps:$4 sm:$0xff]   ;;  %1170 = vmatprep.subr.bf16.mxu0 %v3687_v6  ;;  %v3696_v12 = vld [vmem:[%s4454_s24 + $0xfc] ss:$24 sps:$4 sm:$0xff]   ;;  %v3698_v13 = vld [vmem:[%s4454_s24 + $0xf8] ss:$24 sps:$4 sm:$0xff]  }
  0x84   : > { %1171 = vmatpush1.bf16.msra.mxu0 %v3689_v7  ;;  %1215 = vmatprep.subr.bf16.mxu1 %v3690_v8  ;;  %v3695_v11 = vld [vmem:[%s4454_s24 + $0x120] ss:$24 sps:$4 sm:$0xff]   ;;  %v3699_v14 = vld [vmem:[%s4454_s24 + $0xf4] ss:$24 sps:$4 sm:$0xff]   ;;  %v3701_v16 = vld [vmem:[%s4454_s24 + $0xf0] ss:$24 sps:$4 sm:$0xff]  }
  0x85   : > { %1172 = vmatprep.subr.bf16.mxu0 %v3693_v10  ;;  %v3702_v15 = vld [vmem:[%s4454_s24 + $0xcc] ss:$24 sps:$4 sm:$0xff]   ;;  %v3704_v18 = vld [vmem:[%s4454_s24 + $0xc8] ss:$24 sps:$4 sm:$0xff]   ;;  %v3708_v19 = vld [vmem:[%s4454_s24 + $0x9c] ss:$24 sps:$4 sm:$0xff]  }
  0x86   : > { %v3705_v17 = vld [vmem:[%s4454_s24 + $0xc4] ss:$24 sps:$4 sm:$0xff]   ;;  %v3707_v20 = vld [vmem:[%s4454_s24 + $0xc0] ss:$24 sps:$4 sm:$0xff]   ;;  %v3711_v21 = vld [vmem:[%s4454_s24 + $0x94] ss:$24 sps:$4 sm:$0xff]  }
  0x87   : > { %1216 = vmatpush1.bf16.msra.mxu1 %v3692_v9  ;;  %v3710_v22 = vld [vmem:[%s4454_s24 + $0x98] ss:$24 sps:$4 sm:$0xff]   ;;  %v3714_v23 = vld [vmem:[%s4454_s24 + $0x6c] ss:$24 sps:$4 sm:$0xff]   ;;  %v3716_v26 = vld [vmem:[%s4454_s24 + $0x68] ss:$24 sps:$4 sm:$0xff]  }
  0x88   : > { %1217 = vmatprep.subr.bf16.mxu1 %v3696_v12  ;;  %1173 = vmatpush1.bf16.msra.mxu0 %v3695_v11  ;;  %v3713_v24 = vld [vmem:[%s4454_s24 + $0x90] ss:$24 sps:$4 sm:$0xff]   ;;  %v3717_v25 = vld [vmem:[%s4454_s24 + $0x64] ss:$24 sps:$4 sm:$0xff]   ;;  %v3719_v28 = vld [vmem:[%s4454_s24 + $0x60] ss:$24 sps:$4 sm:$0xff]   ;;  %v510_v11 = vlaneseq }
  0x89   : > { %1174 = vmatprep.subr.bf16.mxu0 %v3699_v14  ;;  %v3720_v27 = vld [vmem:[%s4454_s24 + $0x3c] ss:$24 sps:$4 sm:$0xff]   ;;  %v3722_v30 = vld [vmem:[%s4454_s24 + $0x38] ss:$24 sps:$4 sm:$0xff]   ;;  %v3726_v31 = vld [vmem:[%s4454_s24 + $0xc] ss:$24 sps:$4 sm:$0xff]  }
  0x8a   : > { %v3723_v29 = vld [vmem:[%s4454_s24 + $0x34] ss:$24 sps:$4 sm:$0xff]   ;;  %v3725_v32 = vld [vmem:[%s4454_s24 + $0x30] ss:$24 sps:$4 sm:$0xff]   ;;  %v3729_v33 = vld [vmem:[%s4454_s24 + $0x4] ss:$24 sps:$4 sm:$0xff]  }
  0x8b   : > { %1218 = vmatpush1.bf16.msra.mxu1 %v3698_v13  ;;  %v3728_v34 = vld [vmem:[%s4454_s24 + $0x8] ss:$24 sps:$4 sm:$0xff]   ;;  %v3732_v35 = vld [vmem:[%s4454_s24 + $0x2dc] ss:$24 sps:$4 sm:$0xff]   ;;  %v3734_v38 = vld [vmem:[%s4454_s24 + $0x2d8] ss:$24 sps:$4 sm:$0xff]  }
  0x8c   : > { %1219 = vmatprep.subr.bf16.mxu1 %v3702_v15  ;;  %1175 = vmatpush1.bf16.msra.mxu0 %v3701_v16  ;;  %v3731_v36 = vld [vmem:[%s4454_s24] ss:$24 sps:$4 sm:$0xff]   ;;  %v3735_v37 = vld [vmem:[%s4454_s24 + $0x2d4] ss:$24 sps:$4 sm:$0xff]   ;;  %v3737_v40 = vld [vmem:[%s4454_s24 + $0x2d0] ss:$24 sps:$4 sm:$0xff]  }
  0x8d   : > { %1176 = vmatprep.subr.bf16.mxu0 %v3705_v17  ;;  %v3738_v39 = vld [vmem:[%s4454_s24 + $0x2ac] ss:$24 sps:$4 sm:$0xff]   ;;  %v3740_v42 = vld [vmem:[%s4454_s24 + $0x2a8] ss:$24 sps:$4 sm:$0xff]   ;;  %v3744_v43 = vld [vmem:[%s4454_s24 + $0x27c] ss:$24 sps:$4 sm:$0xff]  }
  0x8e   : > { %v3741_v41 = vld [vmem:[%s4454_s24 + $0x2a4] ss:$24 sps:$4 sm:$0xff]   ;;  %v3743_v44 = vld [vmem:[%s4454_s24 + $0x2a0] ss:$24 sps:$4 sm:$0xff]   ;;  %v3747_v45 = vld [vmem:[%s4454_s24 + $0x274] ss:$24 sps:$4 sm:$0xff]  }
  0x8f   : > { %1220 = vmatpush1.bf16.msra.mxu1 %v3704_v18  ;;  %v3746_v46 = vld [vmem:[%s4454_s24 + $0x278] ss:$24 sps:$4 sm:$0xff]   ;;  %v3750_v47 = vld [vmem:[%s4454_s24 + $0x24c] ss:$24 sps:$4 sm:$0xff]   ;;  %v3752_v49 = vld [vmem:[%s4454_s24 + $0x248] ss:$24 sps:$4 sm:$0xff]  }
  0x90   : > { %1221 = vmatprep.subr.bf16.mxu1 %v3708_v19  ;;  %1177 = vmatpush1.bf16.msra.mxu0 %v3707_v20  ;;  %v3749_v48 = vld [vmem:[%s4454_s24 + $0x270] ss:$24 sps:$4 sm:$0xff]   ;;  %v3753_v50 = vld [vmem:[%s4454_s24 + $0x244] ss:$24 sps:$4 sm:$0xff]   ;;  %v3755_v52 = vld [vmem:[%s4454_s24 + $0x240] ss:$24 sps:$4 sm:$0xff]  }
  0x91   : > { %1178 = vmatprep.subr.bf16.mxu0 %v3711_v21  ;;  %v503_v51 = vld [vmem:[#allocation2] sm:$0xff]  ;;  %v3756_v53 = vld [vmem:[%s4454_s24 + $0x21c] ss:$24 sps:$4 sm:$0xff]   ;;  %v505_v54 = vld [vmem:[#allocation2 + $0x8] sm:$0xff]  ;;  %v4243_v10 = vmov 0.0   ;;  %vm4244_vm0 = vmmov 0  }
  0x92   : > { %v3759_v55 = vld [vmem:[%s4454_s24 + $0x214] ss:$24 sps:$4 sm:$0xff]   ;;  %v561_v56 = vpack.c.bf16 %v505_v54, %v503_v51  ;;  %v3758_v57 = vld [vmem:[%s4454_s24 + $0x218] ss:$24 sps:$4 sm:$0xff]   ;;  %v3765_v60 = vld [vmem:[%s4454_s24 + $0x1e4] ss:$24 sps:$4 sm:$0xff]  }
  0x93   : > { %1222 = vmatpush1.bf16.msra.mxu1 %v3710_v22  ;;  %v3762_v58 = vld [vmem:[%s4454_s24 + $0x1ec] ss:$24 sps:$4 sm:$0xff]   ;;  %v3761_v59 = vld [vmem:[%s4454_s24 + $0x210] ss:$24 sps:$4 sm:$0xff]   ;;  %v3768_v62 = vld [vmem:[%s4454_s24 + $0x1bc] ss:$24 sps:$4 sm:$0xff]  }
  0x94   : > { %1223 = vmatprep.subr.bf16.mxu1 %v3714_v23  ;;  %1179 = vmatpush1.bf16.msra.mxu0 %v3713_v24  ;;  %v3764_v61 = vld [vmem:[%s4454_s24 + $0x1e8] ss:$24 sps:$4 sm:$0xff]   ;;  %v3771_v0 = vld [vmem:[%s4454_s24 + $0x1b4] ss:$24 sps:$4 sm:$0xff]   ;;  %v3770_v1 = vld [vmem:[%s4454_s24 + $0x1b8] ss:$24 sps:$4 sm:$0xff]  }
  0x95   : > { %1180 = vmatprep.subr.bf16.mxu0 %v3717_v25  ;;  %1245 = vmatprep.mubr.bf16.mxu1 %v561_v56  ;;  %v3767_v63 = vld [vmem:[%s4454_s24 + $0x1e0] ss:$24 sps:$4 sm:$0xff]   ;;  %v3774_v2 = vld [vmem:[%s4454_s24 + $0x18c] ss:$24 sps:$4 sm:$0xff]   ;;  %v3773_v3 = vld [vmem:[%s4454_s24 + $0x1b0] ss:$24 sps:$4 sm:$0xff]  }
  0x96   : > { %1202 = vmatprep.mubr.bf16.mxu0 %v561_v56  ;;  %v3777_v4 = vld [vmem:[%s4454_s24 + $0x184] ss:$24 sps:$4 sm:$0xff]   ;;  %v3776_v5 = vld [vmem:[%s4454_s24 + $0x188] ss:$24 sps:$4 sm:$0xff]   ;;  %v502_v6 = vld [vmem:[#allocation2 + $0x10] sm:$0xff]  ;;  %v4576_v12 = vshrl.u32 %v510_v11, 7 }
  0x97   : > { %1224 = vmatpush1.bf16.msra.mxu1 %v3716_v26  ;;  %v504_v7 = vld [vmem:[#allocation2 + $0x18] sm:$0xff]  ;;  %v4582_v14 = vld [vmem:[%s4487_s30] sm:$0x3f]  ;;  %v3807_v51 = vld [vmem:[%s4454_s24 + $0x2b0] ss:$24 sps:$4 sm:$0xff]   ;;  %vm1395_vm7 = vcmask 64512  }
  0x98   : > { %1225 = vmatprep.subr.bf16.mxu1 %v3720_v27  ;;  %1181 = vmatpush1.bf16.msra.mxu0 %v3719_v28  ;;  %v3779_v8 = vld [vmem:[%s4454_s24 + $0x180] ss:$24 sps:$4 sm:$0xff]   ;;  %v4568_v9 = vpack.c.bf16 %v504_v7, %v502_v6  ;;  %v4579_v13 = vsub.s32 2, %v4576_v12  ;;  %v4585_v15 = vsub.s32 0, %v4576_v12  ;;  %v3815_v54 = vld [vmem:[%s4454_s24 + $0x254] ss:$24 sps:$4 sm:$0xff]  }
  0x99   : > { %1182 = vmatprep.subr.bf16.mxu0 %v3723_v29  ;;  %vm1425_vm10 = vcmask 1043456   ;;  %p3552_p5 = scmp.ne.s32.totalorder %s4316_s13, 1 }
  0x9a   : > { %v671_v16 = vrot.slane %v4582_v14, %v4579_v13  ;;  %v663_v18 = vrot.slane %v4582_v14, %v4585_v15 }
  0x9b   : > { %1226 = vmatpush1.bf16.msra.mxu1 %v3722_v30 }
  0x9c   : > { %1227 = vmatprep.subr.bf16.mxu1 %v3726_v31  ;;  %1183 = vmatpush1.bf16.msra.mxu0 %v3725_v32  ;;  %v3780_v32 = vld [vmem:[%s4454_s24 + $0x160] ss:$24 sps:$4 sm:$0xff]  }
  0x9d   : > { %1184 = vmatprep.subr.bf16.mxu0 %v3729_v33  ;;  %v3782_v33 = vld [vmem:[%s4454_s24 + $0x164] ss:$24 sps:$4 sm:$0xff]  }
  0x9f   : > { %1228 = vmatpush1.bf16.msra.mxu1 %v3728_v34  ;;  %v3785_v34 = vld [vmem:[%s4454_s24 + $0x134] ss:$24 sps:$4 sm:$0xff]  }
  0xa0   : > { %1229 = vmatprep.subr.bf16.mxu1 %v3732_v35  ;;  %1185 = vmatpush1.bf16.msra.mxu0 %v3731_v36  ;;  %v3783_v35 = vld [vmem:[%s4454_s24 + $0x130] ss:$24 sps:$4 sm:$0xff]   ;;  %v3788_v36 = vld [vmem:[%s4454_s24 + $0x104] ss:$24 sps:$4 sm:$0xff]  }
  0xa1   : > { %1186 = vmatprep.subr.bf16.mxu0 %v3735_v37  ;;  %v3786_v37 = vld [vmem:[%s4454_s24 + $0x100] ss:$24 sps:$4 sm:$0xff]  }
  0xa3   : > { %1230 = vmatpush2.bf16.msra.mxu1 %v3734_v38  ;;  %v3791_v38 = vld [vmem:[%s4454_s24 + $0xd4] ss:$24 sps:$4 sm:$0xff]  }
  0xa4   : > { %1231 = vmatprep.subr.bf16.mxu1 %v3738_v39  ;;  %1187 = vmatpush2.bf16.msra.mxu0 %v3737_v40  ;;  %v3789_v39 = vld [vmem:[%s4454_s24 + $0xd0] ss:$24 sps:$4 sm:$0xff]   ;;  %v3794_v40 = vld [vmem:[%s4454_s24 + $0xa4] ss:$24 sps:$4 sm:$0xff]  }
  0xa5   : > { %1188 = vmatprep.subr.bf16.mxu0 %v3741_v41  ;;  %v3792_v41 = vld [vmem:[%s4454_s24 + $0xa0] ss:$24 sps:$4 sm:$0xff]  }
  0xa7   : > { %1232 = vmatpush2.bf16.msra.mxu1 %v3740_v42  ;;  %v3797_v42 = vld [vmem:[%s4454_s24 + $0x74] ss:$24 sps:$4 sm:$0xff]  }
  0xa8   : > { %1233 = vmatprep.subr.bf16.mxu1 %v3744_v43  ;;  %1189 = vmatpush2.bf16.msra.mxu0 %v3743_v44  ;;  %v3795_v43 = vld [vmem:[%s4454_s24 + $0x70] ss:$24 sps:$4 sm:$0xff]   ;;  %v3800_v44 = vld [vmem:[%s4454_s24 + $0x44] ss:$24 sps:$4 sm:$0xff]  }
  0xa9   : > { %1190 = vmatprep.subr.bf16.mxu0 %v3747_v45  ;;  %v3798_v45 = vld [vmem:[%s4454_s24 + $0x40] ss:$24 sps:$4 sm:$0xff]  }
  0xab   : > { %1234 = vmatpush2.bf16.msra.mxu1 %v3746_v46  ;;  %v3803_v46 = vld [vmem:[%s4454_s24 + $0x14] ss:$24 sps:$4 sm:$0xff]  }
  0xac   : > { %1235 = vmatprep.subr.bf16.mxu1 %v3750_v47  ;;  %1191 = vmatpush2.bf16.msra.mxu0 %v3749_v48  ;;  %v3801_v47 = vld [vmem:[%s4454_s24 + $0x10] ss:$24 sps:$4 sm:$0xff]   ;;  %v3806_v48 = vld [vmem:[%s4454_s24 + $0x2e4] ss:$24 sps:$4 sm:$0xff]  }
  0xad   : > { %1192 = vmatprep.subr.bf16.mxu0 %v3753_v50  ;;  %v3809_v50 = vld [vmem:[%s4454_s24 + $0x2b4] ss:$24 sps:$4 sm:$0xff]  }
  0xaf   : > { %1236 = vmatpush2.bf16.msra.mxu1 %v3752_v49  ;;  %v3804_v49 = vld [vmem:[%s4454_s24 + $0x2e0] ss:$24 sps:$4 sm:$0xff]  }
  0xb0   : > { %1237 = vmatprep.subr.bf16.mxu1 %v3756_v53  ;;  %1193 = vmatpush2.bf16.msra.mxu0 %v3755_v52  ;;  %v3812_v52 = vld [vmem:[%s4454_s24 + $0x284] ss:$24 sps:$4 sm:$0xff]   ;;  %v3810_v53 = vld [vmem:[%s4454_s24 + $0x280] ss:$24 sps:$4 sm:$0xff]  }
  0xb1   : > { %1194 = vmatprep.subr.bf16.mxu0 %v3759_v55  ;;  %v3813_v55 = vld [vmem:[%s4454_s24 + $0x250] ss:$24 sps:$4 sm:$0xff]  }
  0xb3   : > { %1238 = vmatpush2.bf16.msra.mxu1 %v3758_v57  ;;  %v3816_v57 = vld [vmem:[%s4454_s24 + $0x220] ss:$24 sps:$4 sm:$0xff]  }
  0xb4   : > { %1239 = vmatprep.subr.bf16.mxu1 %v3762_v58  ;;  %1195 = vmatpush2.bf16.msra.mxu0 %v3761_v59  ;;  %v3821_v58 = vld [vmem:[%s4454_s24 + $0x1f4] ss:$24 sps:$4 sm:$0xff]   ;;  %v3819_v59 = vld [vmem:[%s4454_s24 + $0x1f0] ss:$24 sps:$4 sm:$0xff]  }
  0xb5   : > { %1196 = vmatprep.subr.bf16.mxu0 %v3765_v60  ;;  %v3824_v60 = vld [vmem:[%s4454_s24 + $0x1c4] ss:$24 sps:$4 sm:$0xff]  }
  0xb7   : > { %1240 = vmatpush2.bf16.msra.mxu1 %v3764_v61  ;;  %v3822_v61 = vld [vmem:[%s4454_s24 + $0x1c0] ss:$24 sps:$4 sm:$0xff]  }
  0xb8   : > { %1241 = vmatprep.subr.bf16.mxu1 %v3768_v62  ;;  %1197 = vmatpush2.bf16.msra.mxu0 %v3767_v63  ;;  %v3827_v62 = vld [vmem:[%s4454_s24 + $0x194] ss:$24 sps:$4 sm:$0xff]   ;;  %v3825_v63 = vld [vmem:[%s4454_s24 + $0x190] ss:$24 sps:$4 sm:$0xff]  }
  0xb9   : > { %1198 = vmatprep.subr.bf16.mxu0 %v3771_v0  ;;  %v4245_v0 = vmov 1966171168  }
  0xbb   : > { %1242 = vmatpush2.bf16.msra.mxu1 %v3770_v1  ;;  %v519_v1 = vunpack.c.l.s4 %v4245_v0 }
  0xbc   : > { %1243 = vmatprep.subr.bf16.mxu1 %v3774_v2  ;;  %1199 = vmatpush2.bf16.msra.mxu0 %v3773_v3  ;;  %v514_v2 = vld [vmem:[%s5053_s1] sm:$0x3] }
  0xbd   : > { %1200 = vmatprep.subr.bf16.mxu0 %v3777_v4  ;;  %v520_v3 = vunpack.c.0.s8 %v519_v1  ;;  %vm515_vm1 = vcmp.gt.f32.partialorder %v514_v2, 0.5 }
  0xbf   : > { %1244 = vmatpush2.bf16.msra.mxu1 %v3776_v5  ;;  %v523_v4 = vsub.s32 %v520_v3, %v4576_v12  ;;  %v4246_v5 = vmov 0  }
  0xc0   : > { %1201 = vmatpush2.bf16.msra.mxu0 %v3779_v8  ;;  %3575 = vmatprep.subr.bf16.mxu1 %v4243_v10  ;;  %v517_v6 = vsel %vm515_vm1, 1, %v4246_v5 }
  0xc1   : > { %1256 = vmatprep.subr.bf16.mxu0 %v3782_v33  ;;  %v524_v7 = vrot.slane %v517_v6, %v523_v4 }
  0xc2   : > { %1246 = vmatmul.mubr.bf16.vlgmr.msra.gmra.mxu1 %v4568_v9 }
  0xc3   : > { %1203 = vmatmul.mubr.bf16.vlgmr.msra.gmra.mxu0 %v4568_v9  ;;  %3577 = vmatprep.mubr.msk.bf16.mxu1 %vm4244_vm0, %v4243_v10  ;;  %v532_v8 = vrot.slane %v524_v7, %v523_v4 }
  0xc4   : > { %1288 = vmatprep.mubr.bf16.mxu0 %v561_v56  ;;  %1257 = vmatpush1.bf16.msra.mxu0 %v3780_v32  ;;  %v3818_v56 = vld [vmem:[%s4454_s24 + $0x224] ss:$24 sps:$4 sm:$0xff]  }
  0xc5   : > { %1258 = vmatprep.subr.bf16.mxu0 %v3785_v34  ;;  %vm540_vm2 = vcmp.ne.s32.totalorder %v532_v8, 0 }
  0xc8   : > { %1259 = vmatpush1.bf16.msra.mxu0 %v3783_v35 }
  0xc9   : > { %1260 = vmatprep.subr.bf16.mxu0 %v3788_v36 }
  0xcc   : > { %1261 = vmatpush1.bf16.msra.mxu0 %v3786_v37 }
  0xcd   : > { %1262 = vmatprep.subr.bf16.mxu0 %v3791_v38 }
  0xd0   : > { %1263 = vmatpush1.bf16.msra.mxu0 %v3789_v39 }
  0xd1   : > { %1264 = vmatprep.subr.bf16.mxu0 %v3794_v40 }
  0xd4   : > { %1265 = vmatpush1.bf16.msra.mxu0 %v3792_v41 }
  0xd5   : > { %1266 = vmatprep.subr.bf16.mxu0 %v3797_v42 }
  0xd8   : > { %1267 = vmatpush1.bf16.msra.mxu0 %v3795_v43 }
  0xd9   : > { %1268 = vmatprep.subr.bf16.mxu0 %v3800_v44 }
  0xdc   : > { %1269 = vmatpush1.bf16.msra.mxu0 %v3798_v45 }
  0xdd   : > { %1270 = vmatprep.subr.bf16.mxu0 %v3803_v46 }
  0xe0   : > { %1271 = vmatpush1.bf16.msra.mxu0 %v3801_v47 }
  0xe1   : > { %1272 = vmatprep.subr.bf16.mxu0 %v3806_v48 }
  0xe4   : > { %1273 = vmatpush2.bf16.msra.mxu0 %v3804_v49 }
  0xe5   : > { %1274 = vmatprep.subr.bf16.mxu0 %v3809_v50 }
  0xe8   : > { %1275 = vmatpush2.bf16.msra.mxu0 %v3807_v51  ;;  %v678_v51 = vsub.s32 4, %v4576_v12 }
  0xe9   : > { %1276 = vmatprep.subr.bf16.mxu0 %v3812_v52 }
  0xec   : > { %1277 = vmatpush2.bf16.msra.mxu0 %v3810_v53  ;;  %v682_v53 = vsub.s32 5, %v4576_v12 }
  0xed   : > { %1278 = vmatprep.subr.bf16.mxu0 %v3815_v54  ;;  %v679_v54 = vrot.slane %v4582_v14, %v678_v51 }
  0xf0   : > { %1279 = vmatpush2.bf16.msra.mxu0 %v3813_v55 }
  0xf1   : > { %1280 = vmatprep.subr.bf16.mxu0 %v3818_v56  ;;  %v683_v56 = vrot.slane %v4582_v14, %v682_v53 }
  0xf4   : > { %1281 = vmatpush2.bf16.msra.mxu0 %v3816_v57 }
  0xf5   : > { %1282 = vmatprep.subr.bf16.mxu0 %v3821_v58 }
  0xf8   : > { %1283 = vmatpush2.bf16.msra.mxu0 %v3819_v59 }
  0xf9   : > { %1284 = vmatprep.subr.bf16.mxu0 %v3824_v60 }
  0xfc   : > { %1285 = vmatpush2.bf16.msra.mxu0 %v3822_v61 }
  0xfd   : > { %1286 = vmatprep.subr.bf16.mxu0 %v3827_v62 }
 0x100   : > { %1287 = vmatpush2.bf16.msra.mxu0 %v3825_v63 }
 0x103   : > { %1289 = vmatmul.mubr.bf16.vlgmr.msra.gmra.mxu0 %v4568_v9  ;;  %v513_v9 = vand.u32 127, %v510_v11 }
 0x105   : > { %vm516_vm4 = vcmp.gt.s32.totalorder %v513_v9, %v4576_v12 }
 0x182   : > { %v1247_v17 = vpop.f32.mrf.mxu1 }
 0x183   : > { %v1248_v19 = vadd.f32 %v1247_v17, %v671_v16  ;;  %v1204_v22 = vpop.f32.mrf.mxu0  ;;  %v544_v17 = vsel %vm540_vm2, 1, %v4246_v5 }
 0x184   : > { %v4591_v20 = vpop.f32.mrf.mxu1  ;;  %v1205_v23 = vadd.f32 %v1204_v22, %v663_v18 }
 0x185   : > { %v1303_v21 = vpack.c.bf16 %v1248_v19, %v1248_v19  ;;  %v4594_v27 = vpop.f32.mrf.mxu0  ;;  %v549_v19 = vrot.slane %v544_v17, %v4585_v15 }
 0x186   : > { %v1251_v24 = vpop.f32.mrf.mxu1  ;;  %v1299_v26 = vpack.c.bf16 %v1205_v23, %v1205_v23 }
 0x187   : > { %3576 = vmatpush3.bf16.xpose.msra.mxu1 %v1303_v21  ;;  %v1252_v25 = vadd.f32 %v1251_v24, %v671_v16  ;;  %v1208_v29 = vpop.f32.mrf.mxu0  ;;  %v525_v16 = vcombine.high %v524_v7, %v524_v7  ;;  %vm554_vm5 = vcmp.eq.s32.totalorder %v549_v19, 1  ;;  %v4678_v19 = vsub.s32 1, %v4576_v12 }
 0x188   : > { %3581 = vmatprep.subr.bf16.mxu1 %v4243_v10  ;;  %v1209_v30 = vadd.f32 %v1208_v29, %v663_v18  ;;  %vm556_vm6 = vmor %vm516_vm4, %vm554_vm5  ;;  %v4643_v22 = vpop.f32.mrf.mxu1 }
 0x189   : > { %v1305_v28 = vpack.c.bf16 %v1252_v25, %v1252_v25  ;;  %v539_v18 = vrot.slane %v525_v16, %v523_v4  ;;  %v4647_v25 = vsel %vm556_vm6, -1e+09, %v4243_v10  ;;  %v1210_v50 = vpop.f32.mrf.mxu0  ;;  %v674_v16 = vsub.s32 3, %v4576_v12 }
 0x18a   : > { %v1301_v31 = vpack.c.bf16 %v1209_v30, %v1209_v30 }
 0x18b   : > { %vm541_vm3 = vcmp.ne.s32.totalorder %v539_v18, 0  ;;  %v675_v9 = vrot.slane %v4582_v14, %v674_v16 }
 0x18c   : > { %v545_v21 = vsel %vm541_vm3, 1, %v4246_v5 }
 0x18d   : > { %v553_v23 = vrot.slane %v545_v21, %v4585_v15 }
 0x18e   : > { %3578 = vmatmul.mubr.bf16.vlgmr.msra.gmra.mxu1 %v1299_v26 }
 0x18f   : > { %3582 = vmatpush3.bf16.xpose.msra.mxu1 %v1305_v28  ;;  %3583 = vmatprep.mubr.msk.bf16.mxu1 %vm4244_vm0, %v4243_v10  ;;  %vm555_vm8 = vcmp.eq.s32.totalorder %v553_v23, 1  ;;  %v1250_v23 = vadd.f32 %v4591_v20, %v675_v9 }
 0x190   : > { %3587 = vmatprep.subr.bf16.mxu1 %v4243_v10  ;;  %vm557_vm9 = vmor %vm516_vm4, %vm555_vm8 }
 0x191   : > { %v4654_v33 = vsel %vm557_vm9, -1e+09, %v4243_v10 }
 0x196   : > { %3584 = vmatmul.mubr.bf16.vlgmr.msra.gmra.mxu1 %v1301_v31 }
 0x197   : > { %3589 = vmatprep.mubr.msk.bf16.mxu1 %vm4244_vm0, %v4243_v10 }
 0x1c3   : > { %v1290_v52 = vpop.f32.mrf.mxu0 }
 0x1c4   : > { %v1291_v57 = vadd.f32 %v1290_v52, %v679_v54 }
 0x1c5   : > { %v1292_v55 = vpop.f32.mrf.mxu0 }
 0x1c6   : > { %v1307_v60 = vpack.c.bf16 %v1291_v57, %v1291_v57 }
 0x1c7   : > { %v1294_v58 = vpop.f32.mrf.mxu0 }
 0x1c8   : > { %v1295_v59 = vadd.f32 %v1294_v58, %v679_v54  ;;  %v1427_v0 = vsel %vm1425_vm10, %v1307_v60, 0 }
 0x1c9   : > { %v1296_v61 = vpop.f32.mrf.mxu0  ;;  %3588 = vmatpush3.bf16.msra.mxu1 %v1427_v0 }
 0x1ca   : > { %v1309_v62 = vpack.c.bf16 %v1295_v59, %v1295_v59  ;;  %v1297_v63 = vadd.f32 %v1296_v61, %v683_v56  ;;  %3593 = vmatprep.subr.bf16.mxu1 %v4243_v10 }
 0x1cc   : > { %v1473_v1 = vsel %vm1425_vm10, %v1309_v62, 0  ;;  %v1310_v2 = vpack.c.bf16 %v1297_v63, %v1297_v63 }
 0x1ce   : > { %v4668_v3 = vsel %vm1425_vm10, %v1310_v2, 0  ;;  %v3828_v2 = vld [vmem:[%s4461_s3 + $0x70] ss:$8 sps:$4 sm:$0xff]  }
 0x24e   : > { %v1345_v24 = vpop.f32.mrf.mxu1 }
 0x24f   : > { %v1391_v26 = vmul.f32 0.088388346, %v1345_v24 }
 0x250   : > { %v3579_v11 = vpop.f32.mrf.mxu1 }
 0x251   : > { %v1393_v28 = vadd.f32 %v1391_v26, %v4647_v25  ;;  %v667_v26 = vrot.slane %v4582_v14, %v4678_v19 }
 0x252   : > { %v1348_v29 = vpop.f32.mrf.mxu1 }
 0x253   : > { %v1396_v30 = vsel %vm1395_vm7, %v1393_v28, -inf  ;;  %v1207_v29 = vadd.f32 %v4594_v27, %v667_v26  ;;  %v1211_v14 = vadd.f32 %v1210_v50, %v667_v26  ;;  %v3848_v26 = vld [vmem:[%s4461_s3 + $0x14] ss:$8 sps:$4 sm:$0xff]  }
 0x254   : > { %1397 = vmax.xlane.f32.xlu0 %v1396_v30  ;;  %v3580_v31 = vpop.f32.mrf.mxu1  ;;  %v1254_v30 = vadd.f32 %v4643_v22, %v675_v9  ;;  %v3842_v9 = vld [vmem:[%s4461_s3 + $0x34] ss:$8 sps:$4 sm:$0xff]  }
 0x255   : > { %v1300_v31 = vpack.c.bf16 %v1207_v29, %v1207_v29  ;;  %v3849_v29 = vld [vmem:[%s4461_s3] ss:$8 sps:$4 sm:$0xff]  }
 0x256   : > { %v1385_v32 = vpop.f32.mrf.mxu1  ;;  %v1306_v20 = vpack.c.bf16 %v1254_v30, %v1254_v30  ;;  %v3854_v30 = vld [vmem:[%s4461_s3 + $0xf4] ss:$8 sps:$4 sm:$0xff]  }
 0x257   : > { %v1392_v34 = vmul.f32 0.088388346, %v1385_v32  ;;  %v1293_v32 = vadd.f32 %v1292_v55, %v683_v56 }
 0x258   : > { %v3585_v35 = vpop.f32.mrf.mxu1 }
 0x259   : > { %v1394_v36 = vadd.f32 %v1392_v34, %v4654_v33  ;;  %v1308_v34 = vpack.c.bf16 %v1293_v32, %v1293_v32  ;;  %v1302_v35 = vpack.c.bf16 %v1211_v14, %v1211_v14  ;;  %v3855_v32 = vld [vmem:[%s4461_s3 + $0xe0] ss:$8 sps:$4 sm:$0xff]   ;;  %v3860_v14 = vld [vmem:[%s4461_s3 + $0xd4] ss:$8 sps:$4 sm:$0xff]  }
 0x25a   : > { %v1388_v37 = vpop.f32.mrf.mxu1 }
 0x25b   : > { %v1399_v38 = vsel %vm1395_vm7, %v1394_v36, -inf }
 0x25c   : > { %1400 = vmax.xlane.f32.xlu0 %v1399_v38  ;;  %v3586_v39 = vpop.f32.mrf.mxu1 }
 0x2dd   : > { %v1398_v40 = vpop.xlane.xlu0 %1397 }
 0x2de   : > { %v1402_v41 = vsub.f32 %v1393_v28, %v1398_v40  ;;  %v1304_v28 = vpack.c.bf16 %v1250_v23, %v1250_v23  ;;  %v3845_v23 = vld [vmem:[%s4461_s3 + $0x24] ss:$8 sps:$4 sm:$0xff]  }
 0x2e0   : > { %v1404_v42 = vmul.f32 1.442695, %v1402_v41 }
 0x2e2   : > { %4068 = vpow2.f32 %v1404_v42 }
 0x2e5   : > { %v1401_v43 = vpop.xlane.xlu0 %1400 }
 0x2e6   : > { %v1403_v44 = vsub.f32 %v1394_v36, %v1401_v43  ;;  %v1629_v36 = vsel %vm1425_vm10, %v1308_v34, 0  ;;  %v3858_v34 = vld [vmem:[%s4461_s3 + $0xd0] ss:$8 sps:$4 sm:$0xff]  }
 0x2e8   : > { %v1406_v45 = vmul.f32 1.442695, %v1403_v44 }
 0x2ea   : > { %4070 = vpow2.f32 %v1406_v45 }
 0x2ef   : > { %v4069_v46 = vpop.eup %4068 }
 0x2f0   : > { %v1408_v47 = vsel %vm1395_vm7, %v4069_v46, 0.0 }
 0x2f1   : > { %1409 = vadd.xlane.f32.xlu1 %v1408_v47 }
 0x2f7   : > { %v4071_v48 = vpop.eup %4070 }
 0x2f8   : > { %v1411_v49 = vsel %vm1395_vm7, %v4071_v48, 0.0 }
 0x2f9   : > { %1412 = vadd.xlane.f32.xlu1 %v1411_v49 }
 0x37a   : > { %v1410_v4 = vpop.xlane.xlu1 %1409 }
 0x37b   : > { %v1414_v5 = vmax.f32 %v1410_v4, 1e-20  ;;  %v3830_v4 = vld [vmem:[%s4461_s3 + $0x74] ss:$8 sps:$4 sm:$0xff]  }
 0x37c   : > { %1919 = vmatprep.subr.bf16.mxu0 %v3830_v4 }
 0x37d   : > { %4072 = vrcp.f32 %v1414_v5  ;;  %v3833_v5 = vld [vmem:[%s4461_s3 + $0x64] ss:$8 sps:$4 sm:$0xff]   ;;  %1920 = vmatpush1.bf16.msra.mxu0 %v3828_v2 }
 0x37e   : > { %1921 = vmatprep.subr.bf16.mxu0 %v3833_v5 }
 0x382   : > { %v1413_v6 = vpop.xlane.xlu1 %1412 }
 0x383   : > { %v1415_v7 = vmax.f32 %v1413_v6, 1e-20  ;;  %v3831_v6 = vld [vmem:[%s4461_s3 + $0x60] ss:$8 sps:$4 sm:$0xff]  }
 0x384   : > { %1922 = vmatpush1.bf16.msra.mxu0 %v3831_v6 }
 0x385   : > { %4074 = vrcp.f32 %v1415_v7  ;;  %v3836_v7 = vld [vmem:[%s4461_s3 + $0x54] ss:$8 sps:$4 sm:$0xff]  }
 0x386   : > { %1923 = vmatprep.subr.bf16.mxu0 %v3836_v7  ;;  %v4108_v7 = vld [vmem:[#allocation2 + $0x10] sm:$0xff] }
 0x38a   : > { %v4073_v8 = vpop.eup %4072 }
 0x38b   : > { %v1418_v17 = vmul.f32 %v4073_v8, %v4069_v46  ;;  %v3834_v8 = vld [vmem:[%s4461_s3 + $0x50] ss:$8 sps:$4 sm:$0xff]  }
 0x38c   : > { %1924 = vmatpush1.bf16.msra.mxu0 %v3834_v8 }
 0x38d   : > { %v1420_v18 = vpack.c.bf16 %v1418_v17, %v1418_v17  ;;  %v3839_v17 = vld [vmem:[%s4461_s3 + $0x44] ss:$8 sps:$4 sm:$0xff]  }
 0x38e   : > { %1925 = vmatprep.subr.bf16.mxu0 %v3839_v17 }
 0x38f   : > { %3590 = vmatmul.mubr.msk.bf16.vlgmr.msra.gmra.mxu1 %vm1395_vm7, %v1420_v18  ;;  %v3837_v18 = vld [vmem:[%s4461_s3 + $0x40] ss:$8 sps:$4 sm:$0xff]  }
 0x390   : > { %3594 = vmatpush3.bf16.msra.mxu1 %v1473_v1  ;;  %3595 = vmatprep.mubr.msk.bf16.mxu1 %vm4244_vm0, %v4243_v10 }
 0x391   : > { %3599 = vmatprep.subr.bf16.mxu1 %v4243_v10  ;;  %1926 = vmatpush1.bf16.msra.mxu0 %v3837_v18 }
 0x392   : > { %v4075_v21 = vpop.eup %4074  ;;  %1927 = vmatprep.subr.bf16.mxu0 %v3842_v9 }
 0x393   : > { %v1419_v24 = vmul.f32 %v4075_v21, %v4071_v48  ;;  %v3840_v21 = vld [vmem:[%s4461_s3 + $0x30] ss:$8 sps:$4 sm:$0xff]  }
 0x395   : > { %v1421_v11 = vpack.c.bf16 %v1419_v24, %v1419_v24  ;;  %1928 = vmatpush1.bf16.msra.mxu0 %v3840_v21  ;;  %v3843_v24 = vld [vmem:[%s4461_s3 + $0x20] ss:$8 sps:$4 sm:$0xff]   ;;  %v4110_v21 = vld [vmem:[#allocation2 + $0x18] sm:$0xff] }
 0x396   : > { %1929 = vmatprep.subr.bf16.mxu0 %v3845_v23 }
 0x397   : > { %3596 = vmatmul.mubr.msk.bf16.vlgmr.msra.gmra.mxu1 %vm1395_vm7, %v1421_v11  ;;  %v3846_v11 = vld [vmem:[%s4461_s3 + $0x10] ss:$8 sps:$4 sm:$0xff]  }
 0x398   : > { %3600 = vmatpush3.bf16.xpose.msra.mxu1 %v1304_v28  ;;  %3601 = vmatprep.mubr.msk.bf16.mxu1 %vm4244_vm0, %v4243_v10  ;;  %v3851_v28 = vld [vmem:[%s4461_s3 + $0x4] ss:$8 sps:$4 sm:$0xff]  }
 0x399   : > { %3605 = vmatprep.subr.bf16.mxu1 %v4243_v10  ;;  %1930 = vmatpush1.bf16.msra.mxu0 %v3843_v24  ;;  %v4111_v24 = vld [vmem:[#allocation2 + $0x8] sm:$0xff] }
 0x39a   : > { %1931 = vmatprep.subr.bf16.mxu0 %v3848_v26 }
 0x39d   : > { %1932 = vmatpush1.bf16.msra.mxu0 %v3846_v11 }
 0x39e   : > { %1933 = vmatprep.subr.bf16.mxu0 %v3851_v28  ;;  %v3876_v28 = vld [vmem:[%s4472_s25 + $0xe0] ss:$16 sps:$4 sm:$0xff]  }
 0x39f   : > { %3602 = vmatmul.mubr.bf16.vlgmr.msra.gmra.mxu1 %v1300_v31  ;;  %v3852_v31 = vld [vmem:[%s4461_s3 + $0xf0] ss:$8 sps:$4 sm:$0xff]  }
 0x3a0   : > { %3606 = vmatpush3.bf16.xpose.msra.mxu1 %v1306_v20  ;;  %3607 = vmatprep.mubr.msk.bf16.mxu1 %vm4244_vm0, %v4243_v10  ;;  %v3857_v20 = vld [vmem:[%s4461_s3 + $0xe4] ss:$8 sps:$4 sm:$0xff]  }
 0x3a1   : > { %3611 = vmatprep.subr.bf16.mxu1 %v4243_v10  ;;  %1934 = vmatpush1.bf16.msra.mxu0 %v3849_v29  ;;  %v3878_v29 = vld [vmem:[%s4472_s25 + $0xe4] ss:$16 sps:$4 sm:$0xff]  }
 0x3a2   : > { %1935 = vmatprep.subr.bf16.mxu0 %v3854_v30  ;;  %v3879_v30 = vld [vmem:[%s4472_s25 + $0xe8] ss:$16 sps:$4 sm:$0xff]  }
 0x3a5   : > { %1936 = vmatpush2.bf16.msra.mxu0 %v3852_v31  ;;  %v3881_v31 = vld [vmem:[%s4472_s25 + $0xec] ss:$16 sps:$4 sm:$0xff]  }
 0x3a6   : > { %1937 = vmatprep.subr.bf16.mxu0 %v3857_v20  ;;  %v3884_v20 = vld [vmem:[%s4472_s25 + $0xc4] ss:$16 sps:$4 sm:$0xff]  }
 0x3a7   : > { %3608 = vmatmul.mubr.bf16.vlgmr.msra.gmra.mxu1 %v1302_v35  ;;  %v3863_v35 = vld [vmem:[%s4461_s3 + $0xc4] ss:$8 sps:$4 sm:$0xff]  }
 0x3a8   : > { %3612 = vmatpush3.bf16.msra.mxu1 %v1629_v36  ;;  %3613 = vmatprep.mubr.msk.bf16.mxu1 %vm4244_vm0, %v4243_v10  ;;  %v3861_v36 = vld [vmem:[%s4461_s3 + $0xc0] ss:$8 sps:$4 sm:$0xff]  }
 0x3a9   : > { %3617 = vmatprep.subr.bf16.mxu1 %v4243_v10  ;;  %1938 = vmatpush2.bf16.msra.mxu0 %v3855_v32  ;;  %v3887_v32 = vld [vmem:[%s4472_s25 + $0xcc] ss:$16 sps:$4 sm:$0xff]  }
 0x3aa   : > { %1939 = vmatprep.subr.bf16.mxu0 %v3860_v14  ;;  %v3882_v14 = vld [vmem:[%s4472_s25 + $0xc0] ss:$16 sps:$4 sm:$0xff]  }
 0x3ad   : > { %1940 = vmatpush2.bf16.msra.mxu0 %v3858_v34  ;;  %v3885_v34 = vld [vmem:[%s4472_s25 + $0xc8] ss:$16 sps:$4 sm:$0xff]  }
 0x3ae   : > { %1941 = vmatprep.subr.bf16.mxu0 %v3863_v35  ;;  %v3890_v35 = vld [vmem:[%s4472_s25 + $0xa4] ss:$16 sps:$4 sm:$0xff]  }
 0x3b1   : > { %1942 = vmatpush2.bf16.msra.mxu0 %v3861_v36  ;;  %v3893_v36 = vld [vmem:[%s4472_s25 + $0xac] ss:$16 sps:$4 sm:$0xff]  }
 0x44f   : > { %v4697_v27 = vpop.f32.mrf.mxu1 }
 0x451   : > { %v3591_v22 = vpop.f32.mrf.mxu1 }
 0x452   : > { %v3866_v22 = vld [vmem:[%s4461_s3 + $0xb4] ss:$8 sps:$4 sm:$0xff]  }
 0x453   : > { %v1466_v37 = vpop.f32.mrf.mxu1  ;;  %1943 = vmatprep.subr.bf16.mxu0 %v3866_v22  ;;  %v3888_v22 = vld [vmem:[%s4472_s25 + $0xa0] ss:$16 sps:$4 sm:$0xff]  }
 0x454   : > { %v3864_v37 = vld [vmem:[%s4461_s3 + $0xb0] ss:$8 sps:$4 sm:$0xff]  }
 0x455   : > { %v3592_v38 = vpop.f32.mrf.mxu1  ;;  %1944 = vmatpush2.bf16.msra.mxu0 %v3864_v37  ;;  %v3891_v37 = vld [vmem:[%s4472_s25 + $0xa8] ss:$16 sps:$4 sm:$0xff]  }
 0x457   : > { %v4699_v39 = vpop.f32.mrf.mxu1 }
 0x458   : > { %v1717_v40 = vpack.c.bf16 %v4699_v39, %v4697_v27  ;;  %v4109_v39 = vld [vmem:[#allocation2] sm:$0xff] }
 0x459   : > { %v3597_v41 = vpop.f32.mrf.mxu1 }
 0x45b   : > { %v1512_v42 = vpop.f32.mrf.mxu1 }
 0x45d   : > { %v3598_v43 = vpop.f32.mrf.mxu1 }
 0x45f   : > { %v1549_v44 = vpop.f32.mrf.mxu1 }
 0x460   : > { %v1595_v45 = vmul.f32 0.088388346, %v1549_v44 }
 0x461   : > { %v3603_v46 = vpop.f32.mrf.mxu1 }
 0x462   : > { %v1597_v47 = vadd.f32 %v1595_v45, %v4647_v25 }
 0x463   : > { %v1552_v48 = vpop.f32.mrf.mxu1 }
 0x464   : > { %v1599_v49 = vsel %vm1395_vm7, %v1597_v47, -inf }
 0x465   : > { %1600 = vmax.xlane.f32.xlu0 %v1599_v49  ;;  %v3604_v50 = vpop.f32.mrf.mxu1 }
 0x466   : > { %v3869_v50 = vld [vmem:[%s4461_s3 + $0xa4] ss:$8 sps:$4 sm:$0xff]  }
 0x467   : > { %v1589_v51 = vpop.f32.mrf.mxu1  ;;  %1945 = vmatprep.subr.bf16.mxu0 %v3869_v50  ;;  %v3906_v50 = vld [vmem:[%s4472_s25 + $0x40] ss:$16 sps:$4 sm:$0xff]  }
 0x468   : > { %v1596_v52 = vmul.f32 0.088388346, %v1589_v51  ;;  %v3867_v51 = vld [vmem:[%s4461_s3 + $0xa0] ss:$8 sps:$4 sm:$0xff]  }
 0x469   : > { %v3609_v53 = vpop.f32.mrf.mxu1  ;;  %1946 = vmatpush2.bf16.msra.mxu0 %v3867_v51  ;;  %v3909_v51 = vld [vmem:[%s4472_s25 + $0x48] ss:$16 sps:$4 sm:$0xff]  }
 0x46a   : > { %v1598_v54 = vadd.f32 %v1596_v52, %v4654_v33  ;;  %v3872_v52 = vld [vmem:[%s4461_s3 + $0x94] ss:$8 sps:$4 sm:$0xff]   ;;  %v3870_v53 = vld [vmem:[%s4461_s3 + $0x90] ss:$8 sps:$4 sm:$0xff]  }
 0x46b   : > { %v1592_v55 = vpop.f32.mrf.mxu1  ;;  %1947 = vmatprep.subr.bf16.mxu0 %v3872_v52  ;;  %v3914_v52 = vld [vmem:[%s4472_s25 + $0x24] ss:$16 sps:$4 sm:$0xff]  }
 0x46c   : > { %v1602_v56 = vsel %vm1395_vm7, %v1598_v54, -inf }
 0x46d   : > { %1603 = vmax.xlane.f32.xlu1 %v1602_v56  ;;  %v3610_v57 = vpop.f32.mrf.mxu1  ;;  %1948 = vmatpush2.bf16.msra.mxu0 %v3870_v53  ;;  %v3917_v53 = vld [vmem:[%s4472_s25 + $0x2c] ss:$16 sps:$4 sm:$0xff]  }
 0x4ee   : > { %v1601_v58 = vpop.xlane.xlu0 %1600 }
 0x4ef   : > { %v1605_v25 = vsub.f32 %v1597_v47, %v1601_v58 }
 0x4f1   : > { %v1607_v59 = vmul.f32 1.442695, %v1605_v25 }
 0x4f3   : > { %4076 = vpow2.f32 %v1607_v59 }
 0x4f6   : > { %v1604_v60 = vpop.xlane.xlu1 %1603 }
 0x4f7   : > { %v1606_v61 = vsub.f32 %v1598_v54, %v1604_v60  ;;  %v3875_v54 = vld [vmem:[%s4461_s3 + $0x84] ss:$8 sps:$4 sm:$0xff]  }
 0x4f8   : > { %1949 = vmatprep.subr.bf16.mxu0 %v3875_v54  ;;  %v3912_v54 = vld [vmem:[%s4472_s25 + $0x20] ss:$16 sps:$4 sm:$0xff]  }
 0x4f9   : > { %v1609_v62 = vmul.f32 1.442695, %v1606_v61 }
 0x4fb   : > { %4078 = vpow2.f32 %v1609_v62  ;;  %v4758_v62 = vld [vmem:[%s4477_s28] sm:$0xff] }
 0x500   : > { %v4707_v33 = vpop.eup %4076 }
 0x501   : > { %v1611_v63 = vsel %vm1395_vm7, %v4707_v33, 0.0 }
 0x502   : > { %1612 = vadd.xlane.f32.xlu0 %v1611_v63  ;;  %v1754_v63 = vrot.slane %v4758_v62, %v4585_v15 }
 0x508   : > { %v4711_v0 = vpop.eup %4078 }
 0x509   : > { %v1614_v1 = vsel %vm1395_vm7, %v4711_v0, 0.0 }
 0x50a   : > { %1615 = vadd.xlane.f32.xlu1 %v1614_v1 }
 0x58b   : > { %v1613_v38 = vpop.xlane.xlu0 %1612 }
 0x58c   : > { %v1617_v41 = vmax.f32 %v1613_v38, 1e-20  ;;  %v3896_v38 = vld [vmem:[%s4472_s25 + $0x84] ss:$16 sps:$4 sm:$0xff]  }
 0x58e   : > { %4080 = vrcp.f32 %v1617_v41  ;;  %v3899_v41 = vld [vmem:[%s4472_s25 + $0x8c] ss:$16 sps:$4 sm:$0xff]  }
 0x593   : > { %v1616_v42 = vpop.xlane.xlu1 %1615 }
 0x594   : > { %v1618_v43 = vmax.f32 %v1616_v42, 1e-20  ;;  %v3894_v42 = vld [vmem:[%s4472_s25 + $0x80] ss:$16 sps:$4 sm:$0xff]  }
 0x596   : > { %4082 = vrcp.f32 %v1618_v43  ;;  %v3897_v43 = vld [vmem:[%s4472_s25 + $0x88] ss:$16 sps:$4 sm:$0xff]  }
 0x59b   : > { %v4081_v44 = vpop.eup %4080 }
 0x59c   : > { %v1621_v45 = vmul.f32 %v4081_v44, %v4707_v33  ;;  %v4761_v33 = vld [vmem:[%s4477_s28 + $0x8] sm:$0xff]  ;;  %v3902_v44 = vld [vmem:[%s4472_s25 + $0x64] ss:$16 sps:$4 sm:$0xff]  }
 0x59e   : > { %v1623_v46 = vpack.c.bf16 %v1621_v45, %v1621_v45  ;;  %v3905_v45 = vld [vmem:[%s4472_s25 + $0x6c] ss:$16 sps:$4 sm:$0xff]  }
 0x5a0   : > { %3614 = vmatmul.mubr.msk.bf16.vlgmr.msra.gmra.mxu1 %vm1395_vm7, %v1623_v46  ;;  %v3900_v46 = vld [vmem:[%s4472_s25 + $0x60] ss:$16 sps:$4 sm:$0xff]  }
 0x5a1   : > { %3618 = vmatpush3.bf16.msra.mxu1 %v4668_v3  ;;  %3619 = vmatprep.mubr.msk.bf16.mxu1 %vm4244_vm0, %v4243_v10  ;;  %v3873_v3 = vld [vmem:[%s4461_s3 + $0x80] ss:$8 sps:$4 sm:$0xff]  }
 0x5a2   : > { %1950 = vmatpush2.bf16.msra.mxu0 %v3873_v3  ;;  %2431 = vmatprep.subr.bf16.mxu1 %v3878_v29  ;;  %v3915_v3 = vld [vmem:[%s4472_s25 + $0x28] ss:$16 sps:$4 sm:$0xff]   ;;  %v3944_v29 = vld [vmem:[%s4472_s25 + $0x184] ss:$16 sps:$4 sm:$0xff]  }
 0x5a3   : > { %v4083_v47 = vpop.eup %4082  ;;  %2474 = vmatprep.subr.bf16.mxu0 %v3881_v31  ;;  %v3945_v31 = vld [vmem:[%s4472_s25 + $0x188] ss:$16 sps:$4 sm:$0xff]  }
 0x5a4   : > { %v1622_v48 = vmul.f32 %v4083_v47, %v4711_v0  ;;  %v1758_v0 = vrot.slane %v4761_v33, %v4585_v15  ;;  %v3903_v47 = vld [vmem:[%s4472_s25 + $0x68] ss:$16 sps:$4 sm:$0xff]  }
 0x5a6   : > { %v1624_v49 = vpack.c.bf16 %v1622_v48, %v1622_v48  ;;  %v3908_v48 = vld [vmem:[%s4472_s25 + $0x44] ss:$16 sps:$4 sm:$0xff]  }
 0x5a8   : > { %3620 = vmatmul.mubr.msk.bf16.vlgmr.msra.gmra.mxu1 %vm1395_vm7, %v1624_v49  ;;  %v3911_v49 = vld [vmem:[%s4472_s25 + $0x4c] ss:$16 sps:$4 sm:$0xff]  }
 0x5a9   : > { %2432 = vmatpush1.bf16.msra.mxu1 %v3876_v28  ;;  %v3939_v28 = vld [vmem:[%s4472_s25 + $0x1a8] ss:$16 sps:$4 sm:$0xff]  }
 0x5aa   : > { %2433 = vmatprep.subr.bf16.mxu1 %v3884_v20  ;;  %v3947_v20 = vld [vmem:[%s4472_s25 + $0x18c] ss:$16 sps:$4 sm:$0xff]  }
 0x5ad   : > { %2434 = vmatpush1.bf16.msra.mxu1 %v3882_v14  ;;  %v3953_v14 = vld [vmem:[%s4472_s25 + $0x16c] ss:$16 sps:$4 sm:$0xff]  }
 0x5ae   : > { %2435 = vmatprep.subr.bf16.mxu1 %v3890_v35  ;;  %v3951_v35 = vld [vmem:[%s4472_s25 + $0x168] ss:$16 sps:$4 sm:$0xff]  }
 0x5b1   : > { %2436 = vmatpush1.bf16.msra.mxu1 %v3888_v22  ;;  %v3959_v22 = vld [vmem:[%s4472_s25 + $0x14c] ss:$16 sps:$4 sm:$0xff]  }
 0x5b2   : > { %2437 = vmatprep.subr.bf16.mxu1 %v3896_v38  ;;  %v3957_v38 = vld [vmem:[%s4472_s25 + $0x148] ss:$16 sps:$4 sm:$0xff]  }
 0x5b5   : > { %2438 = vmatpush1.bf16.msra.mxu1 %v3894_v42  ;;  %v3965_v42 = vld [vmem:[%s4472_s25 + $0x12c] ss:$16 sps:$4 sm:$0xff]  }
 0x5b6   : > { %2439 = vmatprep.subr.bf16.mxu1 %v3902_v44  ;;  %v3963_v44 = vld [vmem:[%s4472_s25 + $0x128] ss:$16 sps:$4 sm:$0xff]  }
 0x5b9   : > { %2440 = vmatpush1.bf16.msra.mxu1 %v3900_v46  ;;  %v3971_v46 = vld [vmem:[%s4472_s25 + $0x10c] ss:$16 sps:$4 sm:$0xff]  }
 0x5ba   : > { %2441 = vmatprep.subr.bf16.mxu1 %v3908_v48  ;;  %v3969_v48 = vld [vmem:[%s4472_s25 + $0x108] ss:$16 sps:$4 sm:$0xff]  }
 0x5bd   : > { %2442 = vmatpush1.bf16.msra.mxu1 %v3906_v50  ;;  %v3977_v50 = vld [vmem:[%s4489_s29 + $0x174] ss:$8 sps:$4 sm:$0xff]  }
 0x5be   : > { %2443 = vmatprep.subr.bf16.mxu1 %v3914_v52 }
 0x5c1   : > { %2444 = vmatpush1.bf16.msra.mxu1 %v3912_v54 }
 0x660   : > { %v1665_v10 = vpop.f32.mrf.mxu1 }
 0x662   : > { %v3615_v55 = vpop.f32.mrf.mxu1 }
 0x663   : > { %v3923_v55 = vld [vmem:[%s4472_s25 + $0xc] ss:$16 sps:$4 sm:$0xff]  }
 0x664   : > { %v1668_v56 = vpop.f32.mrf.mxu1 }
 0x665   : > { %v3918_v56 = vld [vmem:[%s4472_s25] ss:$16 sps:$4 sm:$0xff]  }
 0x666   : > { %v3616_v57 = vpop.f32.mrf.mxu1 }
 0x667   : > { %v3921_v57 = vld [vmem:[%s4472_s25 + $0x8] ss:$16 sps:$4 sm:$0xff]  }
 0x668   : > { %v1711_v58 = vpop.f32.mrf.mxu1 }
 0x669   : > { %v1718_v25 = vpack.c.bf16 %v1711_v58, %v1665_v10  ;;  %v3920_v10 = vld [vmem:[%s4472_s25 + $0x4] ss:$16 sps:$4 sm:$0xff]  }
 0x66a   : > { %v3621_v59 = vpop.f32.mrf.mxu1  ;;  %2445 = vmatprep.subr.bf16.mxu1 %v3920_v10  ;;  %v3926_v58 = vld [vmem:[%s4472_s25 + $0x1e4] ss:$16 sps:$4 sm:$0xff]  }
 0x66b   : > { %1951 = vmatprep.mubr.bf16.mxu0 %v1718_v25  ;;  %v3929_v25 = vld [vmem:[%s4472_s25 + $0x1ec] ss:$16 sps:$4 sm:$0xff]   ;;  %2446 = vmatpush1.bf16.msra.mxu1 %v3918_v56  ;;  %v3924_v59 = vld [vmem:[%s4472_s25 + $0x1e0] ss:$16 sps:$4 sm:$0xff]   ;;  %v2002_v56 = vrot.slane %v4758_v62, %v4678_v19 }
 0x66c   : > { %v1714_v60 = vpop.f32.mrf.mxu1  ;;  %1952 = vmatmul.mubr.bf16.vlgmr.msra.gmra.mxu0 %v1717_v40  ;;  %2447 = vmatprep.subr.bf16.mxu1 %v3926_v58  ;;  %v2006_v58 = vrot.slane %v4761_v33, %v4678_v19 }
 0x66d   : > { %2475 = vmatpush1.bf16.msra.mxu0 %v3879_v30  ;;  %v3927_v60 = vld [vmem:[%s4472_s25 + $0x1e8] ss:$16 sps:$4 sm:$0xff]   ;;  %v3942_v30 = vld [vmem:[%s4472_s25 + $0x180] ss:$16 sps:$4 sm:$0xff]  }
 0x66e   : > { %v3622_v61 = vpop.f32.mrf.mxu1  ;;  %2476 = vmatprep.subr.bf16.mxu0 %v3887_v32  ;;  %v3950_v32 = vld [vmem:[%s4472_s25 + $0x164] ss:$16 sps:$4 sm:$0xff]  }
 0x66f   : > { %2448 = vmatpush2.bf16.msra.mxu1 %v3924_v59 }
 0x671   : > { %2477 = vmatpush1.bf16.msra.mxu0 %v3885_v34  ;;  %v3948_v34 = vld [vmem:[%s4472_s25 + $0x160] ss:$16 sps:$4 sm:$0xff]  }
 0x672   : > { %2478 = vmatprep.subr.bf16.mxu0 %v3893_v36  ;;  %v3956_v36 = vld [vmem:[%s4472_s25 + $0x144] ss:$16 sps:$4 sm:$0xff]  }
 0x675   : > { %2479 = vmatpush1.bf16.msra.mxu0 %v3891_v37  ;;  %v3954_v37 = vld [vmem:[%s4472_s25 + $0x140] ss:$16 sps:$4 sm:$0xff]  }
 0x676   : > { %2480 = vmatprep.subr.bf16.mxu0 %v3899_v41  ;;  %v3962_v41 = vld [vmem:[%s4472_s25 + $0x124] ss:$16 sps:$4 sm:$0xff]  }
 0x679   : > { %2481 = vmatpush1.bf16.msra.mxu0 %v3897_v43  ;;  %v3960_v43 = vld [vmem:[%s4472_s25 + $0x120] ss:$16 sps:$4 sm:$0xff]  }
 0x67a   : > { %2482 = vmatprep.subr.bf16.mxu0 %v3905_v45  ;;  %v3968_v45 = vld [vmem:[%s4472_s25 + $0x104] ss:$16 sps:$4 sm:$0xff]  }
 0x67d   : > { %2483 = vmatpush1.bf16.msra.mxu0 %v3903_v47  ;;  %v3966_v47 = vld [vmem:[%s4472_s25 + $0x100] ss:$16 sps:$4 sm:$0xff]  }
 0x67e   : > { %2484 = vmatprep.subr.bf16.mxu0 %v3911_v49  ;;  %v3974_v49 = vld [vmem:[%s4489_s29 + $0x74] ss:$8 sps:$4 sm:$0xff]  }
 0x681   : > { %2485 = vmatpush1.bf16.msra.mxu0 %v3909_v51 }
 0x682   : > { %2486 = vmatprep.subr.bf16.mxu0 %v3917_v53 }
 0x685   : > { %2487 = vmatpush1.bf16.msra.mxu0 %v3915_v3 }
 0x686   : > { %2488 = vmatprep.subr.bf16.mxu0 %v3923_v55 }
 0x689   : > { %2489 = vmatpush1.bf16.msra.mxu0 %v3921_v57 }
 0x68a   : > { %2490 = vmatprep.subr.bf16.mxu0 %v3929_v25 }
 0x68d   : > { %2491 = vmatpush2.bf16.msra.mxu0 %v3927_v60  ;;  %v2014_v60 = vrot.slane %v4758_v62, %v4579_v13 }
 0x72c   : > { %v1953_v1 = vpop.f32.mrf.mxu0 }
 0x72d   : > { %v1954_v2 = vadd.f32 %v1953_v1, %v1754_v63 }
 0x72e   : > { %v1955_v4 = vpop.f32.mrf.mxu0 }
 0x72f   : > { %v1956_v5 = vadd.f32 %v1955_v4, %v1758_v0  ;;  %v4767_v27 = vadd.f32 %v4108_v7, %v1954_v2 }
 0x730   : > { %v1957_v6 = vpop.f32.mrf.mxu0 }
 0x731   : > { %v4769_v40 = vadd.f32 %v4109_v39, %v1956_v5  ;;  %v1958_v8 = vadd.f32 %v1957_v6, %v1754_v63 }
 0x732   : > { %v1959_v17 = vpop.f32.mrf.mxu0 }
 0x733   : > { %v1960_v18 = vadd.f32 %v1959_v17, %v1758_v0  ;;  %v1966_v9 = vadd.f32 %v4769_v40, %v4767_v27  ;;  %v4773_v23 = vadd.f32 %v4110_v21, %v1958_v8  ;;  %v3930_v21 = vld [vmem:[%s4472_s25 + $0x1c0] ss:$16 sps:$4 sm:$0xff]  }
 0x735   : > { %v4775_v26 = vadd.f32 %v4111_v24, %v1960_v18  ;;  %1967 = vadd.xlane.f32.xlu0 %v1966_v9  ;;  %v3932_v18 = vld [vmem:[%s4472_s25 + $0x1c4] ss:$16 sps:$4 sm:$0xff]   ;;  %v3935_v9 = vld [vmem:[%s4472_s25 + $0x1cc] ss:$16 sps:$4 sm:$0xff]  }
 0x736   : > { %2449 = vmatprep.subr.bf16.mxu1 %v3932_v18  ;;  %2492 = vmatprep.subr.bf16.mxu0 %v3935_v9  ;;  %v3938_v24 = vld [vmem:[%s4472_s25 + $0x1a4] ss:$16 sps:$4 sm:$0xff]   ;;  %v3975_v18 = vld [vmem:[%s4489_s29 + $0x170] ss:$8 sps:$4 sm:$0xff]  }
 0x737   : > { %v1969_v11 = vadd.f32 %v4775_v26, %v4773_v23  ;;  %2450 = vmatpush2.bf16.msra.mxu1 %v3930_v21  ;;  %v3980_v9 = vld [vmem:[%s4489_s29 + $0x64] ss:$8 sps:$4 sm:$0xff]  }
 0x738   : > { %2451 = vmatprep.subr.bf16.mxu1 %v3938_v24  ;;  %v3983_v21 = vld [vmem:[%s4489_s29 + $0x164] ss:$8 sps:$4 sm:$0xff]   ;;  %v3981_v24 = vld [vmem:[%s4489_s29 + $0x160] ss:$8 sps:$4 sm:$0xff]  }
 0x739   : > { %1970 = vadd.xlane.f32.xlu1 %v1969_v11  ;;  %v3936_v11 = vld [vmem:[%s4472_s25 + $0x1a0] ss:$16 sps:$4 sm:$0xff]  }
 0x73b   : > { %2452 = vmatpush2.bf16.msra.mxu1 %v3936_v11  ;;  %v3989_v11 = vld [vmem:[%s4489_s29 + $0x154] ss:$8 sps:$4 sm:$0xff]  }
 0x73c   : > { %2453 = vmatprep.subr.bf16.mxu1 %v3944_v29  ;;  %v3987_v29 = vld [vmem:[%s4489_s29 + $0x150] ss:$8 sps:$4 sm:$0xff]  }
 0x73f   : > { %2454 = vmatpush2.bf16.msra.mxu1 %v3942_v30  ;;  %v3992_v30 = vld [vmem:[%s4489_s29 + $0x44] ss:$8 sps:$4 sm:$0xff]  }
 0x740   : > { %2455 = vmatprep.subr.bf16.mxu1 %v3950_v32  ;;  %v3993_v32 = vld [vmem:[%s4489_s29 + $0x140] ss:$8 sps:$4 sm:$0xff]  }
 0x743   : > { %2456 = vmatpush2.bf16.msra.mxu1 %v3948_v34  ;;  %v4001_v34 = vld [vmem:[%s4489_s29 + $0x134] ss:$8 sps:$4 sm:$0xff]  }
 0x744   : > { %2457 = vmatprep.subr.bf16.mxu1 %v3956_v36  ;;  %v3999_v36 = vld [vmem:[%s4489_s29 + $0x130] ss:$8 sps:$4 sm:$0xff]  }
 0x747   : > { %2458 = vmatpush2.bf16.msra.mxu1 %v3954_v37  ;;  %v4007_v37 = vld [vmem:[%s4489_s29 + $0x124] ss:$8 sps:$4 sm:$0xff]  }
 0x748   : > { %2459 = vmatprep.subr.bf16.mxu1 %v3962_v41  ;;  %v4005_v41 = vld [vmem:[%s4489_s29 + $0x120] ss:$8 sps:$4 sm:$0xff]  }
 0x74b   : > { %2460 = vmatpush2.bf16.msra.mxu1 %v3960_v43  ;;  %v4013_v43 = vld [vmem:[%s4489_s29 + $0x114] ss:$8 sps:$4 sm:$0xff]  }
 0x74c   : > { %2461 = vmatprep.subr.bf16.mxu1 %v3968_v45  ;;  %v4011_v45 = vld [vmem:[%s4489_s29 + $0x110] ss:$8 sps:$4 sm:$0xff]  }
 0x74f   : > { %2462 = vmatpush2.bf16.msra.mxu1 %v3966_v47  ;;  %v4019_v47 = vld [vmem:[%s4489_s29 + $0x104] ss:$8 sps:$4 sm:$0xff]  }
 0x750   : > { %2985 = vmatprep.subr.bf16.mxu1 %v3974_v49  ;;  %v4017_v49 = vld [vmem:[%s4489_s29 + $0x100] ss:$8 sps:$4 sm:$0xff]  }
 0x7be   : > { %v1968_v61 = vpop.xlane.xlu0 %1967 }
 0x7bf   : > { %v1973_v63 = vmul.f32 0.00390625, %v1968_v61  ;;  %v2018_v61 = vrot.slane %v4761_v33, %v4579_v13 }
 0x7c1   : > { %v4816_v0 = vsub.f32 %v4767_v27, %v1973_v63  ;;  %v4819_v1 = vsub.f32 %v4769_v40, %v1973_v63 }
 0x7c2   : > { %v1971_v2 = vpop.xlane.xlu1 %1970 }
 0x7c3   : > { %v1974_v4 = vmul.f32 0.00390625, %v1971_v2  ;;  %v1979_v5 = vmul.f32 %v4816_v0, %v4816_v0  ;;  %v1980_v6 = vmul.f32 %v4819_v1, %v4819_v1 }
 0x7c5   : > { %v4826_v7 = vsub.f32 %v4773_v23, %v1974_v4  ;;  %v4829_v27 = vsub.f32 %v4775_v26, %v1974_v4  ;;  %v1983_v39 = vadd.f32 %v1980_v6, %v1979_v5  ;;  %v3933_v23 = vld [vmem:[%s4472_s25 + $0x1c8] ss:$16 sps:$4 sm:$0xff]   ;;  %v3941_v26 = vld [vmem:[%s4472_s25 + $0x1ac] ss:$16 sps:$4 sm:$0xff]  }
 0x7c6   : > { %2493 = vmatpush2.bf16.msra.mxu0 %v3933_v23  ;;  %v3978_v23 = vld [vmem:[%s4489_s29 + $0x60] ss:$8 sps:$4 sm:$0xff]  }
 0x7c7   : > { %1984 = vadd.xlane.f32.xlu0 %v1983_v39  ;;  %v1981_v40 = vmul.f32 %v4826_v7, %v4826_v7  ;;  %v1982_v8 = vmul.f32 %v4829_v27, %v4829_v27  ;;  %2494 = vmatprep.subr.bf16.mxu0 %v3941_v26  ;;  %v3986_v26 = vld [vmem:[%s4489_s29 + $0x54] ss:$8 sps:$4 sm:$0xff]  }
 0x7c9   : > { %v1986_v17 = vadd.f32 %v1982_v8, %v1981_v40 }
 0x7ca   : > { %2495 = vmatpush2.bf16.msra.mxu0 %v3939_v28  ;;  %v3984_v28 = vld [vmem:[%s4489_s29 + $0x50] ss:$8 sps:$4 sm:$0xff]  }
 0x7cb   : > { %1987 = vadd.xlane.f32.xlu1 %v1986_v17  ;;  %2496 = vmatprep.subr.bf16.mxu0 %v3947_v20  ;;  %v3990_v20 = vld [vmem:[%s4489_s29 + $0x40] ss:$8 sps:$4 sm:$0xff]  }
 0x7ce   : > { %2497 = vmatpush2.bf16.msra.mxu0 %v3945_v31  ;;  %v3995_v31 = vld [vmem:[%s4489_s29 + $0x144] ss:$8 sps:$4 sm:$0xff]  }
 0x7cf   : > { %2498 = vmatprep.subr.bf16.mxu0 %v3953_v14  ;;  %v3998_v14 = vld [vmem:[%s4489_s29 + $0x34] ss:$8 sps:$4 sm:$0xff]  }
 0x7d2   : > { %2499 = vmatpush2.bf16.msra.mxu0 %v3951_v35  ;;  %v3996_v35 = vld [vmem:[%s4489_s29 + $0x30] ss:$8 sps:$4 sm:$0xff]  }
 0x7d3   : > { %2500 = vmatprep.subr.bf16.mxu0 %v3959_v22  ;;  %v4004_v22 = vld [vmem:[%s4489_s29 + $0x24] ss:$8 sps:$4 sm:$0xff]  }
 0x7d6   : > { %2501 = vmatpush2.bf16.msra.mxu0 %v3957_v38  ;;  %v4002_v38 = vld [vmem:[%s4489_s29 + $0x20] ss:$8 sps:$4 sm:$0xff]  }
 0x7d7   : > { %2502 = vmatprep.subr.bf16.mxu0 %v3965_v42  ;;  %v4010_v42 = vld [vmem:[%s4489_s29 + $0x14] ss:$8 sps:$4 sm:$0xff]  }
 0x7da   : > { %2503 = vmatpush2.bf16.msra.mxu0 %v3963_v44  ;;  %v4008_v44 = vld [vmem:[%s4489_s29 + $0x10] ss:$8 sps:$4 sm:$0xff]  }
 0x7db   : > { %2504 = vmatprep.subr.bf16.mxu0 %v3971_v46  ;;  %v4016_v46 = vld [vmem:[%s4489_s29 + $0x4] ss:$8 sps:$4 sm:$0xff]  }
 0x7de   : > { %2505 = vmatpush2.bf16.msra.mxu0 %v3969_v48  ;;  %v4014_v48 = vld [vmem:[%s4489_s29] ss:$8 sps:$4 sm:$0xff]  }
 0x7df   : > { %3028 = vmatprep.subr.bf16.mxu0 %v3977_v50  ;;  %v4022_v50 = vld [vmem:[%s4489_s29 + $0xf4] ss:$8 sps:$4 sm:$0xff]  }
 0x850   : > { %v1985_v51 = vpop.xlane.xlu0 %1984 }
 0x851   : > { %v1989_v52 = vmul.f32 0.00390625, %v1985_v51  ;;  %v4025_v51 = vld [vmem:[%s4489_s29 + $0x1f4] ss:$8 sps:$4 sm:$0xff]  }
 0x853   : > { %v1991_v53 = vadd.f32 1e-05, %v1989_v52  ;;  %v4020_v52 = vld [vmem:[%s4489_s29 + $0xf0] ss:$8 sps:$4 sm:$0xff]  }
 0x854   : > { %v1988_v54 = vpop.xlane.xlu1 %1987 }
 0x855   : > { %4084 = vrsqrt.f32 %v1991_v53  ;;  %v1990_v3 = vmul.f32 0.00390625, %v1988_v54  ;;  %v4023_v53 = vld [vmem:[%s4489_s29 + $0x1f0] ss:$8 sps:$4 sm:$0xff]   ;;  %v4028_v54 = vld [vmem:[%s4489_s29 + $0xe4] ss:$8 sps:$4 sm:$0xff]  }
 0x857   : > { %v1992_v10 = vadd.f32 1e-05, %v1990_v3  ;;  %v4031_v3 = vld [vmem:[%s4489_s29 + $0x1e4] ss:$8 sps:$4 sm:$0xff]  }
 0x859   : > { %4086 = vrsqrt.f32 %v1992_v10  ;;  %v4026_v10 = vld [vmem:[%s4489_s29 + $0xe0] ss:$8 sps:$4 sm:$0xff]  }
 0x862   : > { %v4085_v55 = vpop.eup %4084 }
 0x863   : > { %v1996_v57 = vmul.f32 %v4085_v55, %v4819_v1  ;;  %v1995_v25 = vmul.f32 %v4085_v55, %v4816_v0  ;;  %v4029_v55 = vld [vmem:[%s4489_s29 + $0x1e0] ss:$8 sps:$4 sm:$0xff]  }
 0x865   : > { %v2008_v2 = vmul.f32 %v2006_v58, %v1996_v57  ;;  %v2007_v4 = vmul.f32 %v2002_v56, %v1995_v25  ;;  %v4037_v57 = vld [vmem:[%s4489_s29 + $0x1d4] ss:$8 sps:$4 sm:$0xff]   ;;  %v4035_v25 = vld [vmem:[%s4489_s29 + $0x1d0] ss:$8 sps:$4 sm:$0xff]  }
 0x866   : > { %v4087_v59 = vpop.eup %4086 }
 0x867   : > { %v1998_v63 = vmul.f32 %v4087_v59, %v4829_v27  ;;  %v1997_v1 = vmul.f32 %v4087_v59, %v4826_v7  ;;  %v4877_v0 = vadd.f32 %v2018_v61, %v2008_v2  ;;  %v4881_v40 = vadd.f32 %v2014_v60, %v2007_v4  ;;  %v3972_v27 = vld [vmem:[%s4489_s29 + $0x70] ss:$8 sps:$4 sm:$0xff]   ;;  %v4040_v59 = vld [vmem:[%s4489_s29 + $0xc4] ss:$8 sps:$4 sm:$0xff]   ;;  %v4046_v2 = vld [vmem:[%s4489_s29 + $0xb4] ss:$8 sps:$4 sm:$0xff]  }
 0x868   : > { %v4044_v4 = vld [vmem:[%s4489_s29 + $0xb0] ss:$8 sps:$4 sm:$0xff]  }
 0x869   : > { %v2010_v5 = vmul.f32 %v2006_v58, %v1998_v63  ;;  %v2009_v6 = vmul.f32 %v2002_v56, %v1997_v1  ;;  %v4034_v56 = vld [vmem:[%s4489_s29 + $0xd4] ss:$8 sps:$4 sm:$0xff]   ;;  %v4032_v58 = vld [vmem:[%s4489_s29 + $0xd0] ss:$8 sps:$4 sm:$0xff]   ;;  %v4041_v63 = vld [vmem:[%s4489_s29 + $0x1c0] ss:$8 sps:$4 sm:$0xff]  }
 0x86a   : > { %v4049_v1 = vld [vmem:[%s4489_s29 + $0x1b4] ss:$8 sps:$4 sm:$0xff]  }
 0x86b   : > { %v4879_v39 = vadd.f32 %v2018_v61, %v2010_v5  ;;  %v4883_v8 = vadd.f32 %v2014_v60, %v2009_v6  ;;  %v4043_v60 = vld [vmem:[%s4489_s29 + $0x1c4] ss:$8 sps:$4 sm:$0xff]   ;;  %v4038_v61 = vld [vmem:[%s4489_s29 + $0xc0] ss:$8 sps:$4 sm:$0xff]   ;;  %v4047_v5 = vld [vmem:[%s4489_s29 + $0x1b0] ss:$8 sps:$4 sm:$0xff]  }
 0x86c   : > { %v4052_v6 = vld [vmem:[%s4489_s29 + $0xa4] ss:$8 sps:$4 sm:$0xff]  }
 0x86d   : > { %v2024_v17 = vpack.c.bf16 %v4879_v39, %v4877_v0  ;;  %v2023_v7 = vpack.c.bf16 %v4883_v8, %v4881_v40 }
 0x86f   : > { %2463 = vmatprep.mubr.bf16.mxu1 %v2024_v17  ;;  %2506 = vmatprep.mubr.bf16.mxu0 %v2024_v17  ;;  %v4055_v17 = vld [vmem:[%s4489_s29 + $0x1a4] ss:$8 sps:$4 sm:$0xff]  }
 0x870   : > { %2464 = vmatmul.mubr.bf16.vlgmr.msra.gmra.mxu1 %v2023_v7  ;;  %2507 = vmatmul.mubr.bf16.vlgmr.msra.gmra.mxu0 %v2023_v7  ;;  %v4050_v7 = vld [vmem:[%s4489_s29 + $0xa0] ss:$8 sps:$4 sm:$0xff]  }
 0x871   : > { %2986 = vmatpush1.bf16.msra.mxu1 %v3972_v27  ;;  %3029 = vmatpush1.bf16.msra.mxu0 %v3975_v18  ;;  %v4053_v27 = vld [vmem:[%s4489_s29 + $0x1a0] ss:$8 sps:$4 sm:$0xff]   ;;  %v4058_v18 = vld [vmem:[%s4489_s29 + $0x94] ss:$8 sps:$4 sm:$0xff]  }
 0x872   : > { %2987 = vmatprep.subr.bf16.mxu1 %v3980_v9  ;;  %3030 = vmatprep.subr.bf16.mxu0 %v3983_v21  ;;  %v4061_v9 = vld [vmem:[%s4489_s29 + $0x194] ss:$8 sps:$4 sm:$0xff]   ;;  %v4056_v21 = vld [vmem:[%s4489_s29 + $0x90] ss:$8 sps:$4 sm:$0xff]  }
 0x875   : > { %2988 = vmatpush1.bf16.msra.mxu1 %v3978_v23  ;;  %3031 = vmatpush1.bf16.msra.mxu0 %v3981_v24  ;;  %v4059_v23 = vld [vmem:[%s4489_s29 + $0x190] ss:$8 sps:$4 sm:$0xff]   ;;  %v4062_v24 = vld [vmem:[%s4489_s29 + $0x80] ss:$8 sps:$4 sm:$0xff]  }
 0x876   : > { %2989 = vmatprep.subr.bf16.mxu1 %v3986_v26  ;;  %3032 = vmatprep.subr.bf16.mxu0 %v3989_v11  ;;  %v4064_v26 = vld [vmem:[%s4489_s29 + $0x84] ss:$8 sps:$4 sm:$0xff]   ;;  %v4065_v11 = vld [vmem:[%s4489_s29 + $0x180] ss:$8 sps:$4 sm:$0xff]  }
 0x879   : > { %2990 = vmatpush1.bf16.msra.mxu1 %v3984_v28  ;;  %3033 = vmatpush1.bf16.msra.mxu0 %v3987_v29  ;;  %v4067_v28 = vld [vmem:[%s4489_s29 + $0x184] ss:$8 sps:$4 sm:$0xff]   ;;  %v2089_v29 = vld [vmem:[%s4482_s15] sm:$0xf] }
 0x87a   : > { %2991 = vmatprep.subr.bf16.mxu1 %v3992_v30  ;;  %3034 = vmatprep.subr.bf16.mxu0 %v3995_v31  ;;  %v2094_v30 = vrot.slane %v2089_v29, %v4585_v15  ;;  %v2102_v31 = vrot.slane %v2089_v29, %v4579_v13 }
 0x87d   : > { %2992 = vmatpush1.bf16.msra.mxu1 %v3990_v20  ;;  %3035 = vmatpush1.bf16.msra.mxu0 %v3993_v32  ;;  %v2098_v20 = vrot.slane %v2089_v29, %v4678_v19  ;;  %v2106_v32 = vrot.slane %v2089_v29, %v674_v16 }
 0x87e   : > { %2993 = vmatprep.subr.bf16.mxu1 %v3998_v14  ;;  %3036 = vmatprep.subr.bf16.mxu0 %v4001_v34 }
 0x881   : > { %2994 = vmatpush1.bf16.msra.mxu1 %v3996_v35  ;;  %3037 = vmatpush1.bf16.msra.mxu0 %v3999_v36 }
 0x882   : > { %2995 = vmatprep.subr.bf16.mxu1 %v4004_v22  ;;  %3038 = vmatprep.subr.bf16.mxu0 %v4007_v37 }
 0x885   : > { %2996 = vmatpush1.bf16.msra.mxu1 %v4002_v38  ;;  %3039 = vmatpush1.bf16.msra.mxu0 %v4005_v41 }
 0x886   : > { %2997 = vmatprep.subr.bf16.mxu1 %v4010_v42  ;;  %3040 = vmatprep.subr.bf16.mxu0 %v4013_v43 }
 0x889   : > { %2998 = vmatpush1.bf16.msra.mxu1 %v4008_v44  ;;  %3041 = vmatpush1.bf16.msra.mxu0 %v4011_v45 }
 0x88a   : > { %2999 = vmatprep.subr.bf16.mxu1 %v4016_v46  ;;  %3042 = vmatprep.subr.bf16.mxu0 %v4019_v47 }
 0x88d   : > { %3000 = vmatpush1.bf16.msra.mxu1 %v4014_v48  ;;  %3043 = vmatpush1.bf16.msra.mxu0 %v4017_v49 }
 0x88e   : > { %3001 = vmatprep.subr.bf16.mxu1 %v4022_v50  ;;  %3044 = vmatprep.subr.bf16.mxu0 %v4025_v51 }
 0x891   : > { %3002 = vmatpush2.bf16.msra.mxu1 %v4020_v52  ;;  %3045 = vmatpush2.bf16.msra.mxu0 %v4023_v53 }
 0x892   : > { %3003 = vmatprep.subr.bf16.mxu1 %v4028_v54  ;;  %3046 = vmatprep.subr.bf16.mxu0 %v4031_v3 }
 0x895   : > { %3004 = vmatpush2.bf16.msra.mxu1 %v4026_v10  ;;  %3047 = vmatpush2.bf16.msra.mxu0 %v4029_v55 }
 0x896   : > { %3005 = vmatprep.subr.bf16.mxu1 %v4034_v56  ;;  %3048 = vmatprep.subr.bf16.mxu0 %v4037_v57 }
 0x899   : > { %3006 = vmatpush2.bf16.msra.mxu1 %v4032_v58  ;;  %3049 = vmatpush2.bf16.msra.mxu0 %v4035_v25 }
 0x89a   : > { %3007 = vmatprep.subr.bf16.mxu1 %v4040_v59  ;;  %3050 = vmatprep.subr.bf16.mxu0 %v4043_v60 }
 0x89d   : > { %3008 = vmatpush2.bf16.msra.mxu1 %v4038_v61  ;;  %3051 = vmatpush2.bf16.msra.mxu0 %v4041_v63 }
 0x89e   : > { %3009 = vmatprep.subr.bf16.mxu1 %v4046_v2  ;;  %3052 = vmatprep.subr.bf16.mxu0 %v4049_v1 }
 0x8a1   : > { %3010 = vmatpush2.bf16.msra.mxu1 %v4044_v4  ;;  %3053 = vmatpush2.bf16.msra.mxu0 %v4047_v5 }
 0x8a2   : > { %3011 = vmatprep.subr.bf16.mxu1 %v4052_v6  ;;  %3054 = vmatprep.subr.bf16.mxu0 %v4055_v17 }
 0x8a5   : > { %3012 = vmatpush2.bf16.msra.mxu1 %v4050_v7  ;;  %3055 = vmatpush2.bf16.msra.mxu0 %v4053_v27 }
 0x8a6   : > { %3013 = vmatprep.subr.bf16.mxu1 %v4058_v18  ;;  %3056 = vmatprep.subr.bf16.mxu0 %v4061_v9 }
 0x8a9   : > { %3014 = vmatpush2.bf16.msra.mxu1 %v4056_v21  ;;  %3057 = vmatpush2.bf16.msra.mxu0 %v4059_v23 }
 0x8aa   : > { %3015 = vmatprep.subr.bf16.mxu1 %v4064_v26  ;;  %3058 = vmatprep.subr.bf16.mxu0 %v4067_v28 }
 0x8ad   : > { %3016 = vmatpush2.bf16.msra.mxu1 %v4062_v24  ;;  %3059 = vmatpush2.bf16.msra.mxu0 %v4065_v11 }
 0x930   : > { %v2465_v14 = vpop.f32.mrf.mxu1  ;;  %v2508_v34 = vpop.f32.mrf.mxu0 }
 0x931   : > { %v4957_v35 = vadd.f32 %v2465_v14, %v2094_v30  ;;  %v4959_v36 = vadd.f32 %v2508_v34, %v2102_v31 }
 0x932   : > { %v2467_v22 = vpop.f32.mrf.mxu1  ;;  %v2510_v37 = vpop.f32.mrf.mxu0 }
 0x933   : > { %v2517_v38 = vmul.f32 %v4957_v35, %v4957_v35  ;;  %v2519_v41 = vmul.f32 %v4959_v36, %v4959_v36  ;;  %v4965_v13 = vadd.f32 %v2467_v22, %v2098_v20  ;;  %v4967_v42 = vadd.f32 %v2510_v37, %v2106_v32 }
 0x934   : > { %v2469_v43 = vpop.f32.mrf.mxu1  ;;  %v2512_v16 = vpop.f32.mrf.mxu0 }
 0x935   : > { %v2525_v44 = vmul.f32 %v2517_v38, %v4957_v35  ;;  %v2527_v45 = vmul.f32 %v2519_v41, %v4959_v36  ;;  %v2518_v46 = vmul.f32 %v4965_v13, %v4965_v13  ;;  %v2520_v47 = vmul.f32 %v4967_v42, %v4967_v42 }
 0x936   : > { %v4975_v48 = vadd.f32 %v2469_v43, %v2094_v30  ;;  %v4977_v49 = vadd.f32 %v2512_v16, %v2102_v31  ;;  %v2471_v50 = vpop.f32.mrf.mxu1  ;;  %v2514_v51 = vpop.f32.mrf.mxu0 }
 0x937   : > { %v2533_v52 = vmul.f32 0.044715, %v2525_v44  ;;  %v2535_v53 = vmul.f32 0.044715, %v2527_v45  ;;  %v2526_v54 = vmul.f32 %v2518_v46, %v4965_v13  ;;  %v2528_v3 = vmul.f32 %v2520_v47, %v4967_v42 }
 0x938   : > { %v2521_v10 = vmul.f32 %v4975_v48, %v4975_v48  ;;  %v2523_v55 = vmul.f32 %v4977_v49, %v4977_v49  ;;  %v4985_v56 = vadd.f32 %v2471_v50, %v2098_v20  ;;  %v4987_v57 = vadd.f32 %v2514_v51, %v2106_v32 }
 0x939   : > { %v2541_v58 = vadd.f32 %v2533_v52, %v4957_v35  ;;  %v2543_v25 = vadd.f32 %v2535_v53, %v4959_v36  ;;  %v2534_v59 = vmul.f32 0.044715, %v2526_v54  ;;  %v2536_v60 = vmul.f32 0.044715, %v2528_v3 }
 0x93a   : > { %v2529_v61 = vmul.f32 %v2521_v10, %v4975_v48  ;;  %v2531_v63 = vmul.f32 %v2523_v55, %v4977_v49  ;;  %v2522_v2 = vmul.f32 %v4985_v56, %v4985_v56  ;;  %v2524_v1 = vmul.f32 %v4987_v57, %v4987_v57 }
 0x93b   : > { %v2549_v4 = vmul.f32 0.7978846, %v2541_v58  ;;  %v2551_v5 = vmul.f32 0.7978846, %v2543_v25  ;;  %v2542_v6 = vadd.f32 %v2534_v59, %v4965_v13  ;;  %v2544_v17 = vadd.f32 %v2536_v60, %v4967_v42 }
 0x93c   : > { %v2537_v7 = vmul.f32 0.044715, %v2529_v61  ;;  %v2539_v27 = vmul.f32 0.044715, %v2531_v63  ;;  %v2530_v18 = vmul.f32 %v2522_v2, %v4985_v56  ;;  %v2532_v9 = vmul.f32 %v2524_v1, %v4987_v57 }
 0x93d   : > { %4088 = vtanh.f32 %v2549_v4  ;;  %v2550_v21 = vmul.f32 0.7978846, %v2542_v6  ;;  %v2552_v23 = vmul.f32 0.7978846, %v2544_v17 }
 0x93e   : > { %4090 = vtanh.f32 %v2551_v5  ;;  %v2545_v24 = vadd.f32 %v2537_v7, %v4975_v48  ;;  %v2547_v26 = vadd.f32 %v2539_v27, %v4977_v49  ;;  %v2538_v11 = vmul.f32 0.044715, %v2530_v18 }
 0x93f   : > { %4092 = vtanh.f32 %v2550_v21  ;;  %v2540_v28 = vmul.f32 0.044715, %v2532_v9 }
 0x940   : > { %4094 = vtanh.f32 %v2552_v23  ;;  %v2553_v29 = vmul.f32 0.7978846, %v2545_v24  ;;  %v2555_v30 = vmul.f32 0.7978846, %v2547_v26  ;;  %v2546_v31 = vadd.f32 %v2538_v11, %v4985_v56 }
 0x941   : > { %v2548_v20 = vadd.f32 %v2540_v28, %v4987_v57 }
 0x942   : > { %4096 = vtanh.f32 %v2553_v29  ;;  %v2554_v32 = vmul.f32 0.7978846, %v2546_v31 }
 0x943   : > { %4098 = vtanh.f32 %v2555_v30  ;;  %v2556_v14 = vmul.f32 0.7978846, %v2548_v20 }
 0x944   : > { %4100 = vtanh.f32 %v2554_v32 }
 0x945   : > { %4102 = vtanh.f32 %v2556_v14 }
 0x94a   : > { %v4089_v34 = vpop.eup %4088 }
 0x94b   : > { %v4091_v22 = vpop.eup %4090  ;;  %v2565_v16 = vadd.f32 1.0, %v4089_v34 }
 0x94c   : > { %v4093_v37 = vpop.eup %4092  ;;  %v2567_v46 = vadd.f32 1.0, %v4091_v22 }
 0x94d   : > { %v4095_v38 = vpop.eup %4094  ;;  %v2566_v41 = vadd.f32 1.0, %v4093_v37  ;;  %v2573_v10 = vmul.f32 0.5, %v2565_v16 }
 0x94e   : > { %v2568_v44 = vadd.f32 1.0, %v4095_v38  ;;  %v2575_v59 = vmul.f32 0.5, %v2567_v46 }
 0x94f   : > { %v4097_v43 = vpop.eup %4096  ;;  %v2574_v3 = vmul.f32 0.5, %v2566_v41  ;;  %v2581_v5 = vmul.f32 %v2573_v10, %v4957_v35 }
 0x950   : > { %v4099_v45 = vpop.eup %4098  ;;  %v2569_v47 = vadd.f32 1.0, %v4097_v43  ;;  %v2576_v25 = vmul.f32 0.5, %v2568_v44  ;;  %v2583_v7 = vmul.f32 %v2575_v59, %v4959_v36 }
 0x951   : > { %v4101_v50 = vpop.eup %4100  ;;  %v2571_v51 = vadd.f32 1.0, %v4099_v45  ;;  %v2582_v1 = vmul.f32 %v2574_v3, %v4965_v13  ;;  %v2659_v13 = vsub.s32 7, %v4576_v12 }
 0x952   : > { %v4103_v52 = vpop.eup %4102  ;;  %v2577_v53 = vmul.f32 0.5, %v2569_v47  ;;  %v2570_v54 = vadd.f32 1.0, %v4101_v50  ;;  %v2584_v6 = vmul.f32 %v2576_v25, %v4967_v42  ;;  %v509_v25 = vld [vmem:[%s4477_s28 + $0x18] sm:$0x3] }
 0x953   : > { %v2579_v55 = vmul.f32 0.5, %v2571_v51  ;;  %v2572_v58 = vadd.f32 1.0, %v4103_v52  ;;  %v2664_v35 = vrot.slane %v4761_v33, %v2659_v13 }
 0x954   : > { %v2578_v60 = vmul.f32 0.5, %v2570_v54  ;;  %v2585_v61 = vmul.f32 %v2577_v53, %v4975_v48 }
 0x955   : > { %v2580_v63 = vmul.f32 0.5, %v2572_v58  ;;  %v2587_v2 = vmul.f32 %v2579_v55, %v4977_v49  ;;  %v2660_v49 = vrot.slane %v4758_v62, %v2659_v13  ;;  %v508_v58 = vld [vmem:[%s4477_s28 + $0x10] sm:$0x3] }
 0x956   : > { %v2586_v4 = vmul.f32 %v2578_v60, %v4985_v56  ;;  %v2589_v9 = vpack.c.bf16 %v2585_v61, %v2581_v5  ;;  %v3110_v59 = vrot.slane %v508_v58, %v4585_v15  ;;  %v3114_v60 = vrot.slane %v509_v25, %v4585_v15 }
 0x957   : > { %v2588_v17 = vmul.f32 %v2580_v63, %v4987_v57  ;;  %v2591_v48 = vpack.c.bf16 %v2587_v2, %v2583_v7  ;;  %v3122_v63 = vrot.slane %v508_v58, %v4678_v19  ;;  %v3126_v2 = vrot.slane %v509_v25, %v4678_v19 }
 0x958   : > { %v2590_v27 = vpack.c.bf16 %v2586_v4, %v2582_v1 }
 0x959   : > { %v2592_v18 = vpack.c.bf16 %v2588_v17, %v2584_v6 }
 0x95a   : > { %3017 = vmatprep.mubr.bf16.mxu1 %v2590_v27 }
 0x95b   : > { %3060 = vmatprep.mubr.bf16.mxu0 %v2592_v18  ;;  %3018 = vmatmul.mubr.bf16.vlgmr.msra.gmra.mxu1 %v2589_v9 }
 0x95c   : > { %3061 = vmatmul.mubr.bf16.vlgmr.msra.gmra.mxu0 %v2591_v48 }
 0xa1b   : > { %v3019_v56 = vpop.f32.mrf.mxu1 }
 0xa1c   : > { %v3020_v42 = vadd.f32 %v3019_v56, %v2660_v49  ;;  %v3062_v21 = vpop.f32.mrf.mxu0 }
 0xa1d   : > { %v3021_v57 = vpop.f32.mrf.mxu1 }
 0xa1e   : > { %v3063_v23 = vadd.f32 %v3062_v21, %v3020_v42  ;;  %v3022_v36 = vadd.f32 %v3021_v57, %v2664_v35  ;;  %v3064_v24 = vpop.f32.mrf.mxu0 }
 0xa1f   : > { %v3023_v26 = vpop.f32.mrf.mxu1 }
 0xa20   : > { %v3065_v11 = vadd.f32 %v3064_v24, %v3022_v36  ;;  %v3024_v28 = vadd.f32 %v3023_v26, %v2660_v49  ;;  %v3066_v29 = vpop.f32.mrf.mxu0  ;;  %v3071_v31 = vadd.f32 %v3063_v23, %v4881_v40 }
 0xa21   : > { %v3025_v30 = vpop.f32.mrf.mxu1 }
 0xa22   : > { %v3072_v12 = vadd.f32 %v3065_v11, %v4877_v0  ;;  %v3067_v20 = vadd.f32 %v3066_v29, %v3024_v28  ;;  %v3026_v62 = vadd.f32 %v3025_v30, %v2664_v35  ;;  %v3068_v32 = vpop.f32.mrf.mxu0 }
 0xa24   : > { %v3069_v33 = vadd.f32 %v3068_v32, %v3026_v62  ;;  %v3075_v14 = vadd.f32 %v3072_v12, %v3071_v31  ;;  %v3073_v34 = vadd.f32 %v3067_v20, %v4883_v8 }
 0xa26   : > { %v3074_v22 = vadd.f32 %v3069_v33, %v4879_v39  ;;  %3076 = vadd.xlane.f32.xlu0 %v3075_v14 }
 0xa28   : > { %v3078_v37 = vadd.f32 %v3074_v22, %v3073_v34 }
 0xa2a   : > { %3079 = vadd.xlane.f32.xlu1 %v3078_v37 }
 0xaaf   : > { %v3077_v38 = vpop.xlane.xlu0 %3076 }
 0xab0   : > { %v3081_v41 = vmul.f32 0.00390625, %v3077_v38 }
 0xab2   : > { %v3083_v43 = vsub.f32 %v3071_v31, %v3081_v41  ;;  %v3084_v16 = vsub.f32 %v3072_v12, %v3081_v41 }
 0xab3   : > { %v3080_v44 = vpop.xlane.xlu1 %3079 }
 0xab4   : > { %v3082_v40 = vmul.f32 0.00390625, %v3080_v44  ;;  %v3087_v45 = vmul.f32 %v3083_v43, %v3083_v43  ;;  %v3088_v0 = vmul.f32 %v3084_v16, %v3084_v16 }
 0xab6   : > { %v3085_v46 = vsub.f32 %v3073_v34, %v3082_v40  ;;  %v3086_v47 = vsub.f32 %v3074_v22, %v3082_v40  ;;  %v3091_v50 = vadd.f32 %v3088_v0, %v3087_v45 }
 0xab8   : > { %3092 = vadd.xlane.f32.xlu0 %v3091_v50  ;;  %v3089_v8 = vmul.f32 %v3085_v46, %v3085_v46  ;;  %v3090_v51 = vmul.f32 %v3086_v47, %v3086_v47 }
 0xaba   : > { %v3094_v39 = vadd.f32 %v3090_v51, %v3089_v8 }
 0xabc   : > { %3095 = vadd.xlane.f32.xlu1 %v3094_v39 }
 0xb41   : > { %v3093_v52 = vpop.xlane.xlu0 %3092 }
 0xb42   : > { %v3097_v53 = vmul.f32 0.00390625, %v3093_v52 }
 0xb44   : > { %v3099_v54 = vadd.f32 1e-05, %v3097_v53 }
 0xb45   : > { %v3096_v3 = vpop.xlane.xlu1 %3095 }
 0xb46   : > { %4104 = vrsqrt.f32 %v3099_v54  ;;  %v3098_v10 = vmul.f32 0.00390625, %v3096_v3 }
 0xb48   : > { %v3100_v55 = vadd.f32 1e-05, %v3098_v10 }
 0xb4a   : > { %4106 = vrsqrt.f32 %v3100_v55 }
 0xb53   : > { %v4105_v61 = vpop.eup %4104 }
 0xb54   : > { %v3103_v1 = vmul.f32 %v4105_v61, %v3083_v43  ;;  %v3104_v4 = vmul.f32 %v4105_v61, %v3084_v16 }
 0xb56   : > { %v3115_v5 = vmul.f32 %v3110_v59, %v3103_v1  ;;  %v3116_v6 = vmul.f32 %v3114_v60, %v3104_v4 }
 0xb57   : > { %v4107_v17 = vpop.eup %4106 }
 0xb58   : > { %v3127_v7 = vadd.f32 %v3122_v63, %v3115_v5  ;;  %v3128_v27 = vadd.f32 %v3126_v2, %v3116_v6  ;;  %v3105_v18 = vmul.f32 %v4107_v17, %v3085_v46  ;;  %v3106_v9 = vmul.f32 %v4107_v17, %v3086_v47 }
 0xb5a   : > { %3131 = vst [vmem:[#allocation2 + $0x10] sm:$0xff] %v3127_v7  ;;  %3132 = vst [vmem:[#allocation2] sm:$0xff] %v3128_v27  ;;  %v3117_v48 = vmul.f32 %v3110_v59, %v3105_v18  ;;  %v3118_v13 = vmul.f32 %v3114_v60, %v3106_v9  ;;  %3138 = sbr.rel (%p3552_p5) target bundleno = 2913 (0xb61), region = 76 }
 0xb5c   : > { %v3129_v49 = vadd.f32 %v3122_v63, %v3117_v48  ;;  %v3130_v15 = vadd.f32 %v3126_v2, %v3118_v13 }
 0xb5e   : > { %3133 = vst [vmem:[#allocation2 + $0x18] sm:$0xff] %v3129_v49  ;;  %3134 = vst [vmem:[#allocation2 + $0x8] sm:$0xff] %v3130_v15 }
 0xb5f   : > { %3139 = vst [vmem:[%s5061_s9] sm:$0xff] %v3127_v7  ;;  %3140 = vst [vmem:[%s5061_s9 + $0x8] sm:$0xff] %v3128_v27 }
 0xb60   : > { %3141 = vst [vmem:[%s5061_s9 + $0x10] sm:$0xff] %v3129_v49  ;;  %3142 = vst [vmem:[%s5061_s9 + $0x18] sm:$0xff] %v3130_v15 }
 0xb61 PF: > { %s5083_s12 = sld [smem:[#allocation11_spill]]  ;;  %s5086_s30 = smov %s4226_s10 }
 0xb62   : > { %s5084_s13 = sld [smem:[#allocation10_spill]] }
 0xb63   : > { %s5085_s11 = sld [smem:[#allocation12_spill]] }
 0xb67   : > { %p22_p6 = scmp.ge.s32.totalorder %s5083_s12, 4  }
 0xb68   : > { %s5087_s10 = smov %s5084_s13 }
 0xb69   :  { %24 = sbr.rel (!%p22_p6) target bundleno = 8 (0x8), region = 136 }
 0xb6e   :  { %3154 = vsyncpa [#allocation4], 1 }
 0xb6f   :  { %3156 = vsyncpa [#allocation4 + $0x1], 1 }
 0xb70   :  { %3157 = vsyncpa [#allocation6], 1 }
 0xb71   :  { %3159 = vsyncpa [#allocation6 + $0x1], 1 }

// kernel: multi_input_forward.4
= control target key start
LH: loop header
LB: loop body
LE: loop exit
PB: predicated region body
PF: predicated region fallthrough
CT: control target
= control target key end

     0   :  { %s7571_s0 = inlined_call_operand.vmem [shape: f32[2,8,256], index: 0, kind: input, shape index: {}]   ;;  %s7572_s1 = inlined_call_operand.vmem [shape: f32[2,8], index: 1, kind: input, shape index: {}]   ;;  %s7573_s2 = inlined_call_operand.vmem [shape: f32[2,8,256], index: 2, kind: input, shape index: {}]   ;;  %s7574_s3 = inlined_call_operand.vmem [shape: f32[2,8], index: 3, kind: input, shape index: {}]   ;;  %s7575_s4 = inlined_call_operand.vmem [shape: bf16[2,256,768], index: 4, kind: input, shape index: {}]   ;;  %s7576_s5 = inlined_call_operand.vmem [shape: bf16[2,256,256], index: 5, kind: input, shape index: {}]   ;;  %s7577_s6 = inlined_call_operand.hbm [shape: bf16[2,256,256], index: 6, kind: input, shape index: {}]   ;;  %s7578_s7 = inlined_call_operand.vmem [shape: bf16[2,256,512], index: 7, kind: input, shape index: {}]   ;;  %s7579_s8 = inlined_call_operand.hbm [shape: bf16[2,256,256], index: 8, kind: input, shape index: {}]   ;;  %s7580_s9 = inlined_call_operand.vmem [shape: bf16[2,256,512], index: 9, kind: input, shape index: {}]   ;;  %s7581_s10 = inlined_call_operand.vmem [shape: bf16[2,512,256], index: 10, kind: input, shape index: {}]   ;;  %s7582_s11 = inlined_call_operand.vmem [shape: f32[2,10,256], index: 11, kind: input, shape index: {}]   ;;  %s7583_s12 = inlined_call_operand.vmem [shape: f32[2,1,768], index: 12, kind: input, shape index: {}]   ;;  %s7584_s13 = inlined_call_operand.vmem [shape: f32[2,1,512], index: 13, kind: input, shape index: {}]   ;;  %s7585_s14 = inlined_call_operand.vmem [shape: f32[2,1,512], index: 14, kind: input, shape index: {}]   ;;  %s7586_s15 = inlined_call_operand.vmem [shape: f32[2,8,256], index: 15, kind: output, shape index: {}]  }
   0x1   :  { %7596 = sst [smem:[#allocation13_spill]] %s7573_s2 }
   0x2   :  { %7597 = sst [smem:[#allocation14_spill]] %s7574_s3 }
   0x3   :  { %7598 = sst [smem:[#allocation15_spill]] %s7575_s4 }
   0x4   :  { %7599 = sst [smem:[#allocation16_spill]] %s7576_s5 }
   0x5   :  { %7600 = sst [smem:[#allocation17_spill]] %s7577_s6 }
   0x6   :  { %7601 = sst [smem:[#allocation18_spill]] %s7578_s7 }
   0x7   :  { %7602 = sst [smem:[#allocation19_spill]] %s7579_s8 }
   0x8   :  { %7603 = sst [smem:[#allocation20_spill]] %s7580_s9 }
   0x9   :  { %7604 = sst [smem:[#allocation21_spill]] %s7586_s15 }
   0xa   :  { %20 = vsyncpa [#allocation4], 0 }
   0xb   :  { %22 = vsyncpa [#allocation4 + $0x1], 0 }
   0xc   :  { %23 = vsyncpa [#allocation6], 0 }
   0xd   :  { %25 = vsyncpa [#allocation6 + $0x1], 0  ;;  %s6480_s18 = smov 0   ;;  %s6482_s19 = smov 0  }
   0xe   :  { %s6484_s20 = smov 0   ;;  %s6486_s21 = smov 0  }
   0xf LB: > { %7605 = sst [smem:[#allocation9_spill]] %s6382_s19  ;;  %s6499_s22 = sadd.s32 4294967295, %s6390_s21   ;;  %s6390_s21 = sphi %s6486_s21, %s7626_s21   ;;  %s6386_s20 = sphi %s6484_s20, %s7629_s20   ;;  %s6382_s19 = sphi %s6482_s19, %s7628_s19   ;;  %s6378_s18 = sphi %s6480_s18, %s7627_s18  }
  0x10   : > { %7606 = sst [smem:[#allocation10_spill]] %s6386_s20  ;;  %s6502_s23 = sadd.s32 1, %s6390_s21  }
  0x11   : > { %7607 = sst [smem:[#allocation11_spill]] %s6502_s23  ;;  %s171_s24 = ssub.s32 %s6390_s21, %s6502_s23 }
  0x12   : > { %s174_s25 = sadd.s32 1, %s6386_s20  ;;  %p172_p0 = scmp.eq.s32.totalorder %s171_s24, 0 }
  0x13   : > { %p181_p1 = scmp.ne.s32.totalorder %s6386_s20, %s6382_s19  ;;  %p182_p2 = scmp.eq.s32.totalorder %s6390_s21, 0 }
  0x14   : > { %p187_p3 = scmp.ne.s32.totalorder %s6382_s19, %s6378_s18  ;;  %p188_p5 = scmp.eq.s32.totalorder %s6499_s22, 0 }
  0x15   : > { %s6512_s26 = scalar_select %p172_p0, %s6386_s20, %s174_s25  }
  0x16   : > { %p183_p4 = por %p182_p2, %p181_p1  ;;  %p5615_p6 = scmp.lt.s32.totalorder %s6390_s21, 2 }
  0x17   : > { %7608 = sst [smem:[#allocation12_spill]] %s6512_s26  ;;  %p6516_p7 = por %p188_p5, %p187_p3 }
  0x18   : > { %s6521_s28 = sand.u32 1, %s6386_s20   ;;  %s7591_s30 = sshll.u32 %s6390_s21, 12 }
  0x19   : > { %s7609_s27 = scalar_select %p6516_p7, 1, 0 }
  0x1a   : > { %s7590_s29 = sshll.u32 %s6521_s28, 8  ;;  %s7610_s6 = sld [smem:[#allocation17_spill]] }
  0x1b   : > { %s472_s24 = scalar_lea.vmem [#allocation3], %s7590_s29  ;;  %p6536_p8 = pnand %p5615_p6, %p183_p4 }
  0x1c   : > { %s479_s25 = sshll.u32 %s472_s24, 4  ;;  %s6534_s25 = int_to_ptr.vmem [resolvable:$true] %s479_s25 }
  0x1d   : > { %p6298_p11 = pneg %p6536_p8 }
  0x20   : > { %s6530_s18 = scalar_lea.hbm %s7610_s6, %s7591_s30  ;;  %s6301_s24 = scalar_lea.hbm %s7610_s6, 8192 }
  0x21   : > { %s6296_s23 = scalar_lea.hbm %s6530_s18, 4096  ;;  %p6302_p0 = scmp.lt.s32.totalorder %s6530_s18, %s7610_s6 }
  0x22   : > { %p6297_p10 = scmp.ne.s32.totalorder %s6530_s18, %s6296_s23  ;;  %p6303_p1 = scmp.lt.s32.totalorder %s6301_s24, %s6296_s23 }
  0x24   : > { %p6299_p12 = pnand %p6298_p11, %p6297_p10  ;;  %p6304_p2 = por %p6303_p1, %p6302_p0 }
  0x26   : > { %p6300_p13 = pneg %p6299_p12 }
  0x28   : > { %p6305_p3 = pnand %p6304_p2, %p6300_p13 }
  0x2a   : > { %6308 = shalt.err (!%p6305_p3)
}
  0x2b   : > { %s6309_s20 = scalar_lea.vmem %s6534_s25, 4096  ;;  %s6392_s16 = smov [#allocation3]  }
  0x2c   : > { %p6310_p4 = scmp.ne.s32.totalorder %s6534_s25, %s6309_s20  ;;  %s6314_s17 = sshll.u32 %s6392_s16, 4  ;;  %s6315_s17 = int_to_ptr.vmem [resolvable:$false] %s6314_s17 }
  0x2d   : > { %s6316_s15 = scalar_lea.vmem %s6315_s17, 8192  ;;  %p6317_p10 = scmp.lt.s32.totalorder %s6534_s25, %s6315_s17 }
  0x2e   : > { %p6312_p5 = pnand %p6310_p4, %p6298_p11  ;;  %p6318_p12 = scmp.lt.s32.totalorder %s6316_s15, %s6309_s20 }
  0x30   : > { %p6313_p6 = pneg %p6312_p5  ;;  %p6319_p9 = por %p6318_p12, %p6317_p10 }
  0x32   : > { %p6320_p0 = pnand %p6319_p9, %p6313_p6 }
  0x34   : > { %6323 = shalt.err (!%p6320_p0)
}
  0x35   : > { %s6393_s23 = smov 128   ;;  %s6394_s29 = smov 8  }
  0x36   : > { %s7612_s15 = scalar_lea.sflag [#allocation4], %s6521_s28  ;;  %p561_p9 = scmp.lt.s32.totalorder %s6390_s21, 3 }
  0x37   : > { %5611 = dma.hbm_to_vmem [thread:$0]  (!%p6536_p8), %s6530_s18, 4096, %s6534_s25, %s7612_s15, %s6393_s23, %s6393_s23, %s6394_s29  }
  0x38   : > { %s7613_s20 = sshll.u32 %s6390_s21, 12  ;;  %s7614_s8 = sld [smem:[#allocation19_spill]] }
  0x39   : > { %p7615_p13 = scmp.ge.s32.totalorder %s6390_s21, 1  ;;  %s7617_s6 = sshll.u32 %s6521_s28, 8 }
  0x3a   : > { %s501_s3 = scalar_lea.vmem [#allocation5], %s7617_s6  ;;  %s498_s18 = scalar_lea.sflag [#allocation6], %s6521_s28 }
  0x3b   : > { %p6581_p1 = pnand %p7615_p13, %p561_p9  ;;  %s508_s2 = sshll.u32 %s501_s3, 4  ;;  %s6587_s2 = int_to_ptr.vmem [resolvable:$true] %s508_s2 }
  0x3e   : > { %s6577_s16 = scalar_lea.hbm %s7614_s8, %s7613_s20  ;;  %s6329_s20 = scalar_lea.hbm %s7614_s8, 8192 }
  0x3f   : > { %s6324_s25 = scalar_lea.hbm %s6577_s16, 4096  ;;  %p6330_p5 = scmp.lt.s32.totalorder %s6577_s16, %s7614_s8 }
  0x40   : > { %p6325_p2 = scmp.ne.s32.totalorder %s6577_s16, %s6324_s25  ;;  %p6331_p6 = scmp.lt.s32.totalorder %s6329_s20, %s6324_s25 }
  0x42   : > { %p6327_p3 = pnand %p6325_p2, %p6298_p11  ;;  %p6332_p10 = por %p6331_p6, %p6330_p5 }
  0x44   : > { %p6328_p4 = pneg %p6327_p3 }
  0x46   : > { %p6333_p12 = pnand %p6332_p10, %p6328_p4 }
  0x48   : > { %6336 = shalt.err (!%p6333_p12)
}
  0x49   : > { %s6337_s3 = scalar_lea.vmem %s6587_s2, 4096  ;;  %s6395_s6 = smov [#allocation5]  }
  0x4a   : > { %p6338_p0 = scmp.ne.s32.totalorder %s6587_s2, %s6337_s3  ;;  %s6342_s28 = sshll.u32 %s6395_s6, 4  ;;  %s6343_s28 = int_to_ptr.vmem [resolvable:$false] %s6342_s28 }
  0x4b   : > { %s6344_s21 = scalar_lea.vmem %s6343_s28, 8192  ;;  %p6345_p2 = scmp.lt.s32.totalorder %s6587_s2, %s6343_s28 }
  0x4c   : > { %p6340_p9 = pnand %p6338_p0, %p6298_p11  ;;  %p6346_p3 = scmp.lt.s32.totalorder %s6344_s21, %s6337_s3 }
  0x4e   : > { %p6341_p13 = pneg %p6340_p9  ;;  %p6347_p7 = por %p6346_p3, %p6345_p2 }
  0x50   : > { %p6348_p5 = pnand %p6347_p7, %p6341_p13 }
  0x52   : > { %6351 = shalt.err (!%p6348_p5)
}
  0x53   : > { %5614 = dma.hbm_to_vmem [thread:$0]  (!%p6536_p8), %s6577_s16, 4096, %s6587_s2, %s498_s18, %s6393_s23, %s6393_s23, %s6394_s29  }
  0x54   : > { %565 = sbr.rel (%p6581_p1) target bundleno = 4855 (0x12f7), region = 80  ;;  %s567_s25 = sand.u32 (!%p6581_p1), 1, %s6382_s19  }
  0x55   : > { %s5055_s15 = sshll.u32 (!%p6581_p1), %s567_s25, 8  ;;  %s568_s20 = scalar_lea.sflag (!%p6581_p1), [#allocation4], %s567_s25 }
  0x56   : > { %s6618_s30 = scalar_lea.vmem (!%p6581_p1), [#allocation3], %s5055_s15  ;;  %p7618_p7 = scmp.ne.s32.totalorder (!%p6581_p1), %s7609_s27, 0 }
  0x59   : > { %6369 = dma.done.wait (%p7618_p7), %s568_s20, 4096  }
  0x5a   : > { %6371 = vsyncadd (%p7618_p7), %s568_s20, 4294963200  ;;  %s577_s26 = scalar_lea.sflag [#allocation6], %s567_s25  ;;  %s6624_s24 = scalar_lea.vmem [#allocation5], %s5055_s15 }
  0x5b   : > { %6373 = dma.done.wait (%p7618_p7), %s577_s26, 4096  }
  0x5c   : > { %6375 = vsyncadd (%p7618_p7), %s577_s26, 4294963200  ;;  %p669_p8 = scmp.lt.s32.totalorder %s6499_s22, 1  ;;  %s7619_s5 = sld [smem:[#allocation16_spill]] }
  0x5d   : > { %s7620_s4 = sld [smem:[#allocation15_spill]]  ;;  %p5070_p11 = scmp.ne.s32.totalorder %s6499_s22, 0 }
  0x5e   : > { %s670_s2 = scalar_select %p669_p8, %s6499_s22, 1 }
  0x5f   : > { %s7621_s7 = sld [smem:[#allocation18_spill]] }
  0x60   : > { %s5602_s23 = smul.u32 768, %s670_s2  ;;  %s5469_s29 = sshll.u32 %s670_s2, 8 }
  0x61   : > { %s5470_s3 = sshll.u32 %s670_s2, 9  ;;  %s7622_s9 = sld [smem:[#allocation20_spill]] }
  0x62   : > { %s6635_s18 = scalar_lea.vmem %s7619_s5, %s5469_s29  ;;  %s6655_s29 = scalar_lea.vmem %s7581_s10, %s5470_s3 }
  0x63   : > { %s6640_s21 = scalar_lea.vmem %s7620_s4, %s5602_s23  ;;  %s5473_s17 = sshll.u32 %s670_s2, 5 }
  0x64   : > { %s5603_s5 = smul.u32 6, %s670_s2  ;;  %s6660_s28 = scalar_lea.vmem %s7582_s11, %s5473_s17 }
  0x65   : > { %s6645_s15 = scalar_lea.vmem %s7621_s7, %s5470_s3  ;;  %s5068_s25 = sshll.u32 %s670_s2, 2 }
  0x66   : > { %s6665_s7 = scalar_lea.vmem %s7583_s12, %s5603_s5  ;;  %s6675_s16 = scalar_lea.vmem %s7585_s14, %s5068_s25 }
  0x67   : > { %s6650_s8 = scalar_lea.vmem %s7622_s9, %s5470_s3  ;;  %s6670_s9 = scalar_lea.vmem %s7584_s13, %s5068_s25 }
  0x68   : > { %715 = sbr.rel (%p5070_p11) target bundleno = 112 (0x70), region = 92 }
  0x6d   : > { %v716_v0 = vld [vmem:[%s7571_s0] sm:$0xff]  ;;  %v717_v1 = vld [vmem:[%s7571_s0 + $0x8] sm:$0xff]  ;;  %v718_v2 = vld [vmem:[%s7571_s0 + $0x10] sm:$0xff] }
  0x6e   : > { %720 = vst [vmem:[#allocation2 + $0x10] sm:$0xff] %v716_v0  ;;  %721 = vst [vmem:[#allocation2] sm:$0xff] %v717_v1  ;;  %v719_v3 = vld [vmem:[%s7571_s0 + $0x18] sm:$0xff] }
  0x6f   : > { %722 = vst [vmem:[#allocation2 + $0x18] sm:$0xff] %v718_v2  ;;  %723 = vst [vmem:[#allocation2 + $0x8] sm:$0xff] %v719_v3 }
  0x70 PF: > { %v5654_v4 = vld [vmem:[%s6640_s21 + $0x15c] ss:$24 sps:$4 sm:$0xff]   ;;  %v5656_v5 = vld [vmem:[%s6640_s21 + $0x158] ss:$24 sps:$4 sm:$0xff]   ;;  %v5660_v8 = vld [vmem:[%s6640_s21 + $0x12c] ss:$24 sps:$4 sm:$0xff]  }
  0x71   : > { %1435 = vmatprep.subr.bf16.mxu1 %v5654_v4  ;;  %v5657_v6 = vld [vmem:[%s6640_s21 + $0x154] ss:$24 sps:$4 sm:$0xff]   ;;  %v5659_v7 = vld [vmem:[%s6640_s21 + $0x150] ss:$24 sps:$4 sm:$0xff]   ;;  %v5663_v10 = vld [vmem:[%s6640_s21 + $0x124] ss:$24 sps:$4 sm:$0xff]  }
  0x72   : > { %1436 = vmatpush1.bf16.msra.mxu1 %v5656_v5  ;;  %v5662_v9 = vld [vmem:[%s6640_s21 + $0x128] ss:$24 sps:$4 sm:$0xff]   ;;  %1392 = vmatprep.subr.bf16.mxu0 %v5657_v6  ;;  %v5666_v12 = vld [vmem:[%s6640_s21 + $0xfc] ss:$24 sps:$4 sm:$0xff]   ;;  %v5668_v13 = vld [vmem:[%s6640_s21 + $0xf8] ss:$24 sps:$4 sm:$0xff]  }
  0x73   : > { %1393 = vmatpush1.bf16.msra.mxu0 %v5659_v7  ;;  %1437 = vmatprep.subr.bf16.mxu1 %v5660_v8  ;;  %v5665_v11 = vld [vmem:[%s6640_s21 + $0x120] ss:$24 sps:$4 sm:$0xff]   ;;  %v5669_v14 = vld [vmem:[%s6640_s21 + $0xf4] ss:$24 sps:$4 sm:$0xff]   ;;  %v5671_v16 = vld [vmem:[%s6640_s21 + $0xf0] ss:$24 sps:$4 sm:$0xff]  }
  0x74   : > { %1394 = vmatprep.subr.bf16.mxu0 %v5663_v10  ;;  %v5672_v15 = vld [vmem:[%s6640_s21 + $0xcc] ss:$24 sps:$4 sm:$0xff]   ;;  %v5674_v18 = vld [vmem:[%s6640_s21 + $0xc8] ss:$24 sps:$4 sm:$0xff]   ;;  %v5678_v19 = vld [vmem:[%s6640_s21 + $0x9c] ss:$24 sps:$4 sm:$0xff]  }
  0x75   : > { %v5675_v17 = vld [vmem:[%s6640_s21 + $0xc4] ss:$24 sps:$4 sm:$0xff]   ;;  %v5677_v20 = vld [vmem:[%s6640_s21 + $0xc0] ss:$24 sps:$4 sm:$0xff]   ;;  %v5681_v21 = vld [vmem:[%s6640_s21 + $0x94] ss:$24 sps:$4 sm:$0xff]  }
  0x76   : > { %1438 = vmatpush1.bf16.msra.mxu1 %v5662_v9  ;;  %v5680_v22 = vld [vmem:[%s6640_s21 + $0x98] ss:$24 sps:$4 sm:$0xff]   ;;  %v5684_v23 = vld [vmem:[%s6640_s21 + $0x6c] ss:$24 sps:$4 sm:$0xff]   ;;  %v5686_v26 = vld [vmem:[%s6640_s21 + $0x68] ss:$24 sps:$4 sm:$0xff]  }
  0x77   : > { %1439 = vmatprep.subr.bf16.mxu1 %v5666_v12  ;;  %1395 = vmatpush1.bf16.msra.mxu0 %v5665_v11  ;;  %v5683_v24 = vld [vmem:[%s6640_s21 + $0x90] ss:$24 sps:$4 sm:$0xff]   ;;  %v5687_v25 = vld [vmem:[%s6640_s21 + $0x64] ss:$24 sps:$4 sm:$0xff]   ;;  %v5689_v28 = vld [vmem:[%s6640_s21 + $0x60] ss:$24 sps:$4 sm:$0xff]   ;;  %v732_v11 = vlaneseq }
  0x78   : > { %1396 = vmatprep.subr.bf16.mxu0 %v5669_v14  ;;  %v5690_v27 = vld [vmem:[%s6640_s21 + $0x3c] ss:$24 sps:$4 sm:$0xff]   ;;  %v5692_v30 = vld [vmem:[%s6640_s21 + $0x38] ss:$24 sps:$4 sm:$0xff]   ;;  %v5696_v31 = vld [vmem:[%s6640_s21 + $0xc] ss:$24 sps:$4 sm:$0xff]  }
  0x79   : > { %v5693_v29 = vld [vmem:[%s6640_s21 + $0x34] ss:$24 sps:$4 sm:$0xff]   ;;  %v5695_v32 = vld [vmem:[%s6640_s21 + $0x30] ss:$24 sps:$4 sm:$0xff]   ;;  %v5699_v33 = vld [vmem:[%s6640_s21 + $0x4] ss:$24 sps:$4 sm:$0xff]  }
  0x7a   : > { %1440 = vmatpush1.bf16.msra.mxu1 %v5668_v13  ;;  %v5698_v34 = vld [vmem:[%s6640_s21 + $0x8] ss:$24 sps:$4 sm:$0xff]   ;;  %v5702_v35 = vld [vmem:[%s6640_s21 + $0x2dc] ss:$24 sps:$4 sm:$0xff]   ;;  %v5704_v38 = vld [vmem:[%s6640_s21 + $0x2d8] ss:$24 sps:$4 sm:$0xff]  }
  0x7b   : > { %1441 = vmatprep.subr.bf16.mxu1 %v5672_v15  ;;  %1397 = vmatpush1.bf16.msra.mxu0 %v5671_v16  ;;  %v5701_v36 = vld [vmem:[%s6640_s21] ss:$24 sps:$4 sm:$0xff]   ;;  %v5705_v37 = vld [vmem:[%s6640_s21 + $0x2d4] ss:$24 sps:$4 sm:$0xff]   ;;  %v5707_v40 = vld [vmem:[%s6640_s21 + $0x2d0] ss:$24 sps:$4 sm:$0xff]  }
  0x7c   : > { %1398 = vmatprep.subr.bf16.mxu0 %v5675_v17  ;;  %v5708_v39 = vld [vmem:[%s6640_s21 + $0x2ac] ss:$24 sps:$4 sm:$0xff]   ;;  %v5710_v42 = vld [vmem:[%s6640_s21 + $0x2a8] ss:$24 sps:$4 sm:$0xff]   ;;  %v5714_v43 = vld [vmem:[%s6640_s21 + $0x27c] ss:$24 sps:$4 sm:$0xff]  }
  0x7d   : > { %v5711_v41 = vld [vmem:[%s6640_s21 + $0x2a4] ss:$24 sps:$4 sm:$0xff]   ;;  %v5713_v44 = vld [vmem:[%s6640_s21 + $0x2a0] ss:$24 sps:$4 sm:$0xff]   ;;  %v5717_v45 = vld [vmem:[%s6640_s21 + $0x274] ss:$24 sps:$4 sm:$0xff]  }
  0x7e   : > { %1442 = vmatpush1.bf16.msra.mxu1 %v5674_v18  ;;  %v5716_v46 = vld [vmem:[%s6640_s21 + $0x278] ss:$24 sps:$4 sm:$0xff]   ;;  %v5720_v47 = vld [vmem:[%s6640_s21 + $0x24c] ss:$24 sps:$4 sm:$0xff]   ;;  %v5722_v49 = vld [vmem:[%s6640_s21 + $0x248] ss:$24 sps:$4 sm:$0xff]  }
  0x7f   : > { %1443 = vmatprep.subr.bf16.mxu1 %v5678_v19  ;;  %1399 = vmatpush1.bf16.msra.mxu0 %v5677_v20  ;;  %v5719_v48 = vld [vmem:[%s6640_s21 + $0x270] ss:$24 sps:$4 sm:$0xff]   ;;  %v5723_v50 = vld [vmem:[%s6640_s21 + $0x244] ss:$24 sps:$4 sm:$0xff]   ;;  %v5725_v52 = vld [vmem:[%s6640_s21 + $0x240] ss:$24 sps:$4 sm:$0xff]  }
  0x80   : > { %1400 = vmatprep.subr.bf16.mxu0 %v5681_v21  ;;  %v725_v51 = vld [vmem:[#allocation2] sm:$0xff]  ;;  %v5726_v53 = vld [vmem:[%s6640_s21 + $0x21c] ss:$24 sps:$4 sm:$0xff]   ;;  %v727_v54 = vld [vmem:[#allocation2 + $0x8] sm:$0xff]  ;;  %v6396_v10 = vmov 0.0   ;;  %vm6397_vm0 = vmmov 0  }
  0x81   : > { %v5729_v55 = vld [vmem:[%s6640_s21 + $0x214] ss:$24 sps:$4 sm:$0xff]   ;;  %v783_v56 = vpack.c.bf16 %v727_v54, %v725_v51  ;;  %v5728_v57 = vld [vmem:[%s6640_s21 + $0x218] ss:$24 sps:$4 sm:$0xff]   ;;  %v5735_v60 = vld [vmem:[%s6640_s21 + $0x1e4] ss:$24 sps:$4 sm:$0xff]  }
  0x82   : > { %1444 = vmatpush1.bf16.msra.mxu1 %v5680_v22  ;;  %v5732_v58 = vld [vmem:[%s6640_s21 + $0x1ec] ss:$24 sps:$4 sm:$0xff]   ;;  %v5731_v59 = vld [vmem:[%s6640_s21 + $0x210] ss:$24 sps:$4 sm:$0xff]   ;;  %v5738_v62 = vld [vmem:[%s6640_s21 + $0x1bc] ss:$24 sps:$4 sm:$0xff]  }
  0x83   : > { %1445 = vmatprep.subr.bf16.mxu1 %v5684_v23  ;;  %1401 = vmatpush1.bf16.msra.mxu0 %v5683_v24  ;;  %v5734_v61 = vld [vmem:[%s6640_s21 + $0x1e8] ss:$24 sps:$4 sm:$0xff]   ;;  %v5741_v0 = vld [vmem:[%s6640_s21 + $0x1b4] ss:$24 sps:$4 sm:$0xff]   ;;  %v5740_v1 = vld [vmem:[%s6640_s21 + $0x1b8] ss:$24 sps:$4 sm:$0xff]  }
  0x84   : > { %1402 = vmatprep.subr.bf16.mxu0 %v5687_v25  ;;  %1467 = vmatprep.mubr.bf16.mxu1 %v783_v56  ;;  %v5737_v63 = vld [vmem:[%s6640_s21 + $0x1e0] ss:$24 sps:$4 sm:$0xff]   ;;  %v5744_v2 = vld [vmem:[%s6640_s21 + $0x18c] ss:$24 sps:$4 sm:$0xff]   ;;  %v5743_v3 = vld [vmem:[%s6640_s21 + $0x1b0] ss:$24 sps:$4 sm:$0xff]  }
  0x85   : > { %1424 = vmatprep.mubr.bf16.mxu0 %v783_v56  ;;  %v5747_v4 = vld [vmem:[%s6640_s21 + $0x184] ss:$24 sps:$4 sm:$0xff]   ;;  %v5746_v5 = vld [vmem:[%s6640_s21 + $0x188] ss:$24 sps:$4 sm:$0xff]   ;;  %v724_v6 = vld [vmem:[#allocation2 + $0x10] sm:$0xff]  ;;  %v6762_v12 = vshrl.u32 %v732_v11, 7 }
  0x86   : > { %1446 = vmatpush1.bf16.msra.mxu1 %v5686_v26  ;;  %v726_v7 = vld [vmem:[#allocation2 + $0x18] sm:$0xff]  ;;  %v6768_v14 = vld [vmem:[%s6665_s7] sm:$0x3f]  ;;  %v5777_v51 = vld [vmem:[%s6640_s21 + $0x2b0] ss:$24 sps:$4 sm:$0xff]   ;;  %vm1617_vm7 = vcmask 64512  }
  0x87   : > { %1447 = vmatprep.subr.bf16.mxu1 %v5690_v27  ;;  %1403 = vmatpush1.bf16.msra.mxu0 %v5689_v28  ;;  %v5749_v8 = vld [vmem:[%s6640_s21 + $0x180] ss:$24 sps:$4 sm:$0xff]   ;;  %v6754_v9 = vpack.c.bf16 %v726_v7, %v724_v6  ;;  %v6765_v13 = vsub.s32 2, %v6762_v12  ;;  %v6771_v15 = vsub.s32 0, %v6762_v12  ;;  %v5785_v54 = vld [vmem:[%s6640_s21 + $0x254] ss:$24 sps:$4 sm:$0xff]  }
  0x88   : > { %1404 = vmatprep.subr.bf16.mxu0 %v5693_v29  ;;  %vm1647_vm10 = vcmask 1043456   ;;  %s7623_s26 = sld [smem:[#allocation13_spill]]  ;;  %p5464_p1 = scmp.ne.s32.totalorder %s6499_s22, 1 }
  0x89   : > { %v893_v16 = vrot.slane %v6768_v14, %v6765_v13  ;;  %v885_v18 = vrot.slane %v6768_v14, %v6771_v15 }
  0x8a   : > { %1448 = vmatpush1.bf16.msra.mxu1 %v5692_v30 }
  0x8b   : > { %1449 = vmatprep.subr.bf16.mxu1 %v5696_v31  ;;  %1405 = vmatpush1.bf16.msra.mxu0 %v5695_v32  ;;  %v5750_v32 = vld [vmem:[%s6640_s21 + $0x160] ss:$24 sps:$4 sm:$0xff]  }
  0x8c   : > { %1406 = vmatprep.subr.bf16.mxu0 %v5699_v33  ;;  %v5752_v33 = vld [vmem:[%s6640_s21 + $0x164] ss:$24 sps:$4 sm:$0xff]  }
  0x8e   : > { %1450 = vmatpush1.bf16.msra.mxu1 %v5698_v34  ;;  %v5755_v34 = vld [vmem:[%s6640_s21 + $0x134] ss:$24 sps:$4 sm:$0xff]  }
  0x8f   : > { %1451 = vmatprep.subr.bf16.mxu1 %v5702_v35  ;;  %1407 = vmatpush1.bf16.msra.mxu0 %v5701_v36  ;;  %v5753_v35 = vld [vmem:[%s6640_s21 + $0x130] ss:$24 sps:$4 sm:$0xff]   ;;  %v5758_v36 = vld [vmem:[%s6640_s21 + $0x104] ss:$24 sps:$4 sm:$0xff]  }
  0x90   : > { %1408 = vmatprep.subr.bf16.mxu0 %v5705_v37  ;;  %v5756_v37 = vld [vmem:[%s6640_s21 + $0x100] ss:$24 sps:$4 sm:$0xff]  }
  0x92   : > { %1452 = vmatpush2.bf16.msra.mxu1 %v5704_v38  ;;  %v5761_v38 = vld [vmem:[%s6640_s21 + $0xd4] ss:$24 sps:$4 sm:$0xff]  }
  0x93   : > { %1453 = vmatprep.subr.bf16.mxu1 %v5708_v39  ;;  %1409 = vmatpush2.bf16.msra.mxu0 %v5707_v40  ;;  %v5759_v39 = vld [vmem:[%s6640_s21 + $0xd0] ss:$24 sps:$4 sm:$0xff]   ;;  %v5764_v40 = vld [vmem:[%s6640_s21 + $0xa4] ss:$24 sps:$4 sm:$0xff]  }
  0x94   : > { %1410 = vmatprep.subr.bf16.mxu0 %v5711_v41  ;;  %v5762_v41 = vld [vmem:[%s6640_s21 + $0xa0] ss:$24 sps:$4 sm:$0xff]  }
  0x96   : > { %1454 = vmatpush2.bf16.msra.mxu1 %v5710_v42  ;;  %v5767_v42 = vld [vmem:[%s6640_s21 + $0x74] ss:$24 sps:$4 sm:$0xff]  }
  0x97   : > { %1455 = vmatprep.subr.bf16.mxu1 %v5714_v43  ;;  %1411 = vmatpush2.bf16.msra.mxu0 %v5713_v44  ;;  %v5765_v43 = vld [vmem:[%s6640_s21 + $0x70] ss:$24 sps:$4 sm:$0xff]   ;;  %v5770_v44 = vld [vmem:[%s6640_s21 + $0x44] ss:$24 sps:$4 sm:$0xff]  }
  0x98   : > { %1412 = vmatprep.subr.bf16.mxu0 %v5717_v45  ;;  %v5768_v45 = vld [vmem:[%s6640_s21 + $0x40] ss:$24 sps:$4 sm:$0xff]  }
  0x9a   : > { %1456 = vmatpush2.bf16.msra.mxu1 %v5716_v46  ;;  %v5773_v46 = vld [vmem:[%s6640_s21 + $0x14] ss:$24 sps:$4 sm:$0xff]  }
  0x9b   : > { %1457 = vmatprep.subr.bf16.mxu1 %v5720_v47  ;;  %1413 = vmatpush2.bf16.msra.mxu0 %v5719_v48  ;;  %v5771_v47 = vld [vmem:[%s6640_s21 + $0x10] ss:$24 sps:$4 sm:$0xff]   ;;  %v5776_v48 = vld [vmem:[%s6640_s21 + $0x2e4] ss:$24 sps:$4 sm:$0xff]  }
  0x9c   : > { %1414 = vmatprep.subr.bf16.mxu0 %v5723_v50  ;;  %v5779_v50 = vld [vmem:[%s6640_s21 + $0x2b4] ss:$24 sps:$4 sm:$0xff]  }
  0x9e   : > { %1458 = vmatpush2.bf16.msra.mxu1 %v5722_v49  ;;  %v5774_v49 = vld [vmem:[%s6640_s21 + $0x2e0] ss:$24 sps:$4 sm:$0xff]  }
  0x9f   : > { %1459 = vmatprep.subr.bf16.mxu1 %v5726_v53  ;;  %1415 = vmatpush2.bf16.msra.mxu0 %v5725_v52  ;;  %v5782_v52 = vld [vmem:[%s6640_s21 + $0x284] ss:$24 sps:$4 sm:$0xff]   ;;  %v5780_v53 = vld [vmem:[%s6640_s21 + $0x280] ss:$24 sps:$4 sm:$0xff]  }
  0xa0   : > { %1416 = vmatprep.subr.bf16.mxu0 %v5729_v55  ;;  %v5783_v55 = vld [vmem:[%s6640_s21 + $0x250] ss:$24 sps:$4 sm:$0xff]  }
  0xa2   : > { %1460 = vmatpush2.bf16.msra.mxu1 %v5728_v57  ;;  %v5786_v57 = vld [vmem:[%s6640_s21 + $0x220] ss:$24 sps:$4 sm:$0xff]  }
  0xa3   : > { %1461 = vmatprep.subr.bf16.mxu1 %v5732_v58  ;;  %1417 = vmatpush2.bf16.msra.mxu0 %v5731_v59  ;;  %v5791_v58 = vld [vmem:[%s6640_s21 + $0x1f4] ss:$24 sps:$4 sm:$0xff]   ;;  %v5789_v59 = vld [vmem:[%s6640_s21 + $0x1f0] ss:$24 sps:$4 sm:$0xff]  }
  0xa4   : > { %1418 = vmatprep.subr.bf16.mxu0 %v5735_v60  ;;  %v5794_v60 = vld [vmem:[%s6640_s21 + $0x1c4] ss:$24 sps:$4 sm:$0xff]  }
  0xa6   : > { %1462 = vmatpush2.bf16.msra.mxu1 %v5734_v61  ;;  %v5792_v61 = vld [vmem:[%s6640_s21 + $0x1c0] ss:$24 sps:$4 sm:$0xff]  }
  0xa7   : > { %1463 = vmatprep.subr.bf16.mxu1 %v5738_v62  ;;  %1419 = vmatpush2.bf16.msra.mxu0 %v5737_v63  ;;  %v5797_v62 = vld [vmem:[%s6640_s21 + $0x194] ss:$24 sps:$4 sm:$0xff]   ;;  %v5795_v63 = vld [vmem:[%s6640_s21 + $0x190] ss:$24 sps:$4 sm:$0xff]  }
  0xa8   : > { %1420 = vmatprep.subr.bf16.mxu0 %v5741_v0  ;;  %v6398_v0 = vmov 1966171168  }
  0xaa   : > { %1464 = vmatpush2.bf16.msra.mxu1 %v5740_v1  ;;  %v741_v1 = vunpack.c.l.s4 %v6398_v0 }
  0xab   : > { %1465 = vmatprep.subr.bf16.mxu1 %v5744_v2  ;;  %1421 = vmatpush2.bf16.msra.mxu0 %v5743_v3  ;;  %v736_v2 = vld [vmem:[%s7572_s1] sm:$0x3] }
  0xac   : > { %1422 = vmatprep.subr.bf16.mxu0 %v5747_v4  ;;  %v742_v3 = vunpack.c.0.s8 %v741_v1  ;;  %vm737_vm1 = vcmp.gt.f32.partialorder %v736_v2, 0.5  ;;  %v6859_v1 = vsub.s32 3, %v6762_v12 }
  0xae   : > { %1466 = vmatpush2.bf16.msra.mxu1 %v5746_v5  ;;  %v6824_v4 = vsub.s32 %v742_v3, %v6762_v12  ;;  %v6399_v5 = vmov 0  }
  0xaf   : > { %1423 = vmatpush2.bf16.msra.mxu0 %v5749_v8  ;;  %5506 = vmatprep.subr.bf16.mxu1 %v6396_v10  ;;  %v739_v6 = vsel %vm737_vm1, 1, %v6399_v5 }
  0xb0   : > { %1478 = vmatprep.subr.bf16.mxu0 %v5752_v33  ;;  %v746_v7 = vrot.slane %v739_v6, %v6824_v4  ;;  %v897_v6 = vrot.slane %v6768_v14, %v6859_v1 }
  0xb1   : > { %1468 = vmatmul.mubr.bf16.vlgmr.msra.gmra.mxu1 %v6754_v9 }
  0xb2   : > { %1425 = vmatmul.mubr.bf16.vlgmr.msra.gmra.mxu0 %v6754_v9  ;;  %5508 = vmatprep.mubr.msk.bf16.mxu1 %vm6397_vm0, %v6396_v10  ;;  %v754_v8 = vrot.slane %v746_v7, %v6824_v4 }
  0xb3   : > { %1510 = vmatprep.mubr.bf16.mxu0 %v783_v56  ;;  %1479 = vmatpush1.bf16.msra.mxu0 %v5750_v32  ;;  %v5788_v56 = vld [vmem:[%s6640_s21 + $0x224] ss:$24 sps:$4 sm:$0xff]  }
  0xb4   : > { %1480 = vmatprep.subr.bf16.mxu0 %v5755_v34  ;;  %vm762_vm2 = vcmp.ne.s32.totalorder %v754_v8, 0  ;;  %v6868_v8 = vsub.s32 1, %v6762_v12 }
  0xb7   : > { %1481 = vmatpush1.bf16.msra.mxu0 %v5753_v35 }
  0xb8   : > { %1482 = vmatprep.subr.bf16.mxu0 %v5758_v36 }
  0xbb   : > { %1483 = vmatpush1.bf16.msra.mxu0 %v5756_v37 }
  0xbc   : > { %1484 = vmatprep.subr.bf16.mxu0 %v5761_v38 }
  0xbf   : > { %1485 = vmatpush1.bf16.msra.mxu0 %v5759_v39 }
  0xc0   : > { %1486 = vmatprep.subr.bf16.mxu0 %v5764_v40 }
  0xc3   : > { %1487 = vmatpush1.bf16.msra.mxu0 %v5762_v41 }
  0xc4   : > { %1488 = vmatprep.subr.bf16.mxu0 %v5767_v42 }
  0xc7   : > { %1489 = vmatpush1.bf16.msra.mxu0 %v5765_v43 }
  0xc8   : > { %1490 = vmatprep.subr.bf16.mxu0 %v5770_v44 }
  0xcb   : > { %1491 = vmatpush1.bf16.msra.mxu0 %v5768_v45 }
  0xcc   : > { %1492 = vmatprep.subr.bf16.mxu0 %v5773_v46 }
  0xcf   : > { %1493 = vmatpush1.bf16.msra.mxu0 %v5771_v47 }
  0xd0   : > { %1494 = vmatprep.subr.bf16.mxu0 %v5776_v48 }
  0xd3   : > { %1495 = vmatpush2.bf16.msra.mxu0 %v5774_v49 }
  0xd4   : > { %1496 = vmatprep.subr.bf16.mxu0 %v5779_v50  ;;  %v6852_v50 = vsub.s32 4, %v6762_v12 }
  0xd7   : > { %1497 = vmatpush2.bf16.msra.mxu0 %v5777_v51 }
  0xd8   : > { %1498 = vmatprep.subr.bf16.mxu0 %v5782_v52  ;;  %v901_v52 = vrot.slane %v6768_v14, %v6852_v50 }
  0xdb   : > { %1499 = vmatpush2.bf16.msra.mxu0 %v5780_v53 }
  0xdc   : > { %1500 = vmatprep.subr.bf16.mxu0 %v5785_v54 }
  0xdf   : > { %1501 = vmatpush2.bf16.msra.mxu0 %v5783_v55 }
  0xe0   : > { %1502 = vmatprep.subr.bf16.mxu0 %v5788_v56 }
  0xe3   : > { %1503 = vmatpush2.bf16.msra.mxu0 %v5786_v57 }
  0xe4   : > { %1504 = vmatprep.subr.bf16.mxu0 %v5791_v58 }
  0xe7   : > { %1505 = vmatpush2.bf16.msra.mxu0 %v5789_v59 }
  0xe8   : > { %1506 = vmatprep.subr.bf16.mxu0 %v5794_v60 }
  0xeb   : > { %1507 = vmatpush2.bf16.msra.mxu0 %v5792_v61 }
  0xec   : > { %1508 = vmatprep.subr.bf16.mxu0 %v5797_v62 }
  0xef   : > { %1509 = vmatpush2.bf16.msra.mxu0 %v5795_v63 }
  0xf2   : > { %1511 = vmatmul.mubr.bf16.vlgmr.msra.gmra.mxu0 %v6754_v9  ;;  %v766_v9 = vsel %vm762_vm2, 1, %v6399_v5 }
 0x171   : > { %v1469_v17 = vpop.f32.mrf.mxu1 }
 0x172   : > { %v1470_v19 = vadd.f32 %v1469_v17, %v893_v16  ;;  %v1426_v22 = vpop.f32.mrf.mxu0 }
 0x173   : > { %v6777_v20 = vpop.f32.mrf.mxu1  ;;  %v1427_v23 = vadd.f32 %v1426_v22, %v885_v18 }
 0x174   : > { %v1525_v21 = vpack.c.bf16 %v1470_v19, %v1470_v19  ;;  %v6780_v27 = vpop.f32.mrf.mxu0  ;;  %v771_v19 = vrot.slane %v766_v9, %v6771_v15  ;;  %v1472_v9 = vadd.f32 %v6777_v20, %v897_v6 }
 0x175   : > { %v1473_v24 = vpop.f32.mrf.mxu1  ;;  %v1521_v26 = vpack.c.bf16 %v1427_v23, %v1427_v23 }
 0x176   : > { %5507 = vmatpush3.bf16.xpose.msra.mxu1 %v1525_v21  ;;  %v1474_v25 = vadd.f32 %v1473_v24, %v893_v16  ;;  %v1430_v29 = vpop.f32.mrf.mxu0  ;;  %v747_v16 = vcombine.high %v746_v7, %v746_v7  ;;  %vm776_vm5 = vcmp.eq.s32.totalorder %v771_v19, 1 }
 0x177   : > { %5512 = vmatprep.subr.bf16.mxu1 %v6396_v10  ;;  %v1431_v30 = vadd.f32 %v1430_v29, %v885_v18  ;;  %v735_v18 = vand.u32 127, %v732_v11  ;;  %v6834_v22 = vpop.f32.mrf.mxu1 }
 0x178   : > { %v1527_v28 = vpack.c.bf16 %v1474_v25, %v1474_v25  ;;  %v761_v17 = vrot.slane %v747_v16, %v6824_v4  ;;  %v1432_v51 = vpop.f32.mrf.mxu0  ;;  %v1476_v20 = vadd.f32 %v6834_v22, %v897_v6  ;;  %v5806_v6 = vld [vmem:[%s6635_s18 + $0x54] ss:$8 sps:$4 sm:$0xff]  }
 0x179   : > { %v1523_v31 = vpack.c.bf16 %v1431_v30, %v1431_v30  ;;  %vm738_vm4 = vcmp.gt.s32.totalorder %v735_v18, %v6762_v12  ;;  %v889_v18 = vrot.slane %v6768_v14, %v6868_v8 }
 0x17a   : > { %vm763_vm3 = vcmp.ne.s32.totalorder %v761_v17, 0  ;;  %vm778_vm6 = vmor %vm738_vm4, %vm776_vm5 }
 0x17b   : > { %v767_v21 = vsel %vm763_vm3, 1, %v6399_v5  ;;  %v6838_v25 = vsel %vm778_vm6, -1e+09, %v6396_v10 }
 0x17c   : > { %v775_v23 = vrot.slane %v767_v21, %v6771_v15  ;;  %v1526_v21 = vpack.c.bf16 %v1472_v9, %v1472_v9  ;;  %v5807_v9 = vld [vmem:[%s6635_s18 + $0x40] ss:$8 sps:$4 sm:$0xff]  }
 0x17d   : > { %5509 = vmatmul.mubr.bf16.vlgmr.msra.gmra.mxu1 %v1521_v26 }
 0x17e   : > { %5513 = vmatpush3.bf16.xpose.msra.mxu1 %v1527_v28  ;;  %5514 = vmatprep.mubr.msk.bf16.mxu1 %vm6397_vm0, %v6396_v10  ;;  %vm777_vm8 = vcmp.eq.s32.totalorder %v775_v23, 1  ;;  %v6875_v23 = vsub.s32 5, %v6762_v12 }
 0x17f   : > { %5518 = vmatprep.subr.bf16.mxu1 %v6396_v10  ;;  %vm779_vm9 = vmor %vm738_vm4, %vm777_vm8 }
 0x180   : > { %v6845_v33 = vsel %vm779_vm9, -1e+09, %v6396_v10 }
 0x185   : > { %5515 = vmatmul.mubr.bf16.vlgmr.msra.gmra.mxu1 %v1523_v31 }
 0x186   : > { %5520 = vmatprep.mubr.msk.bf16.mxu1 %vm6397_vm0, %v6396_v10 }
 0x1b2   : > { %v1512_v53 = vpop.f32.mrf.mxu0 }
 0x1b3   : > { %v1513_v54 = vadd.f32 %v1512_v53, %v901_v52 }
 0x1b4   : > { %v1514_v59 = vpop.f32.mrf.mxu0 }
 0x1b5   : > { %v1529_v55 = vpack.c.bf16 %v1513_v54, %v1513_v54 }
 0x1b6   : > { %v1516_v62 = vpop.f32.mrf.mxu0 }
 0x1b7   : > { %v1649_v56 = vsel %vm1647_vm10, %v1529_v55, 0  ;;  %v1517_v63 = vadd.f32 %v1516_v62, %v901_v52 }
 0x1b8   : > { %5519 = vmatpush3.bf16.msra.mxu1 %v1649_v56 }
 0x1b9   : > { %5524 = vmatprep.subr.bf16.mxu1 %v6396_v10  ;;  %v1531_v2 = vpack.c.bf16 %v1517_v63, %v1517_v63 }
 0x1bb   : > { %v1695_v7 = vsel %vm1647_vm10, %v1531_v2, 0  ;;  %v5800_v2 = vld [vmem:[%s6635_s18 + $0x74] ss:$8 sps:$4 sm:$0xff]  }
 0x1bc   : > { %2141 = vmatprep.subr.bf16.mxu0 %v5800_v2 }
 0x23d   : > { %v1567_v24 = vpop.f32.mrf.mxu1 }
 0x23e   : > { %v1613_v26 = vmul.f32 0.088388346, %v1567_v24  ;;  %v1429_v24 = vadd.f32 %v6780_v27, %v889_v18 }
 0x23f   : > { %v5510_v11 = vpop.f32.mrf.mxu1 }
 0x240   : > { %v1615_v28 = vadd.f32 %v1613_v26, %v6838_v25  ;;  %v6885_v26 = vrot.slane %v6768_v14, %v6875_v23  ;;  %v1522_v11 = vpack.c.bf16 %v1429_v24, %v1429_v24  ;;  %v5818_v24 = vld [vmem:[%s6635_s18 + $0x14] ss:$8 sps:$4 sm:$0xff]  }
 0x241   : > { %v1570_v29 = vpop.f32.mrf.mxu1 }
 0x242   : > { %v1618_v30 = vsel %vm1617_vm7, %v1615_v28, -inf  ;;  %v1515_v29 = vadd.f32 %v1514_v59, %v6885_v26 }
 0x243   : > { %1619 = vmax.xlane.f32.xlu0 %v1618_v30  ;;  %v5511_v31 = vpop.f32.mrf.mxu1  ;;  %v1433_v30 = vadd.f32 %v1432_v51, %v889_v18  ;;  %v5810_v18 = vld [vmem:[%s6635_s18 + $0x30] ss:$8 sps:$4 sm:$0xff]  }
 0x244   : > { %v1530_v27 = vpack.c.bf16 %v1515_v29, %v1515_v29  ;;  %v5824_v29 = vld [vmem:[%s6635_s18 + $0xf4] ss:$8 sps:$4 sm:$0xff]  }
 0x245   : > { %v1607_v32 = vpop.f32.mrf.mxu1  ;;  %v1524_v31 = vpack.c.bf16 %v1433_v30, %v1433_v30  ;;  %v5822_v30 = vld [vmem:[%s6635_s18 + $0xf0] ss:$8 sps:$4 sm:$0xff]  }
 0x246   : > { %v1614_v34 = vmul.f32 0.088388346, %v1607_v32  ;;  %v1851_v22 = vsel %vm1647_vm10, %v1530_v27, 0  ;;  %v5827_v27 = vld [vmem:[%s6635_s18 + $0xe4] ss:$8 sps:$4 sm:$0xff]  }
 0x247   : > { %v5516_v35 = vpop.f32.mrf.mxu1 }
 0x248   : > { %v1616_v36 = vadd.f32 %v1614_v34, %v6845_v33 }
 0x249   : > { %v1610_v37 = vpop.f32.mrf.mxu1 }
 0x24a   : > { %v1621_v38 = vsel %vm1617_vm7, %v1616_v36, -inf }
 0x24b   : > { %1622 = vmax.xlane.f32.xlu0 %v1621_v38  ;;  %v5517_v39 = vpop.f32.mrf.mxu1 }
 0x2cc   : > { %v1620_v40 = vpop.xlane.xlu0 %1619 }
 0x2cd   : > { %v1624_v41 = vsub.f32 %v1615_v28, %v1620_v40  ;;  %v1528_v28 = vpack.c.bf16 %v1476_v20, %v1476_v20  ;;  %v5816_v20 = vld [vmem:[%s6635_s18 + $0x10] ss:$8 sps:$4 sm:$0xff]  }
 0x2cf   : > { %v1626_v42 = vmul.f32 1.442695, %v1624_v41 }
 0x2d1   : > { %6230 = vpow2.f32 %v1626_v42 }
 0x2d4   : > { %v1623_v43 = vpop.xlane.xlu0 %1622 }
 0x2d5   : > { %v1625_v44 = vsub.f32 %v1616_v36, %v1623_v43 }
 0x2d7   : > { %v1628_v45 = vmul.f32 1.442695, %v1625_v44 }
 0x2d9   : > { %6232 = vpow2.f32 %v1628_v45 }
 0x2de   : > { %v6231_v46 = vpop.eup %6230 }
 0x2df   : > { %v1630_v47 = vsel %vm1617_vm7, %v6231_v46, 0.0 }
 0x2e0   : > { %1631 = vadd.xlane.f32.xlu1 %v1630_v47 }
 0x2e6   : > { %v6233_v48 = vpop.eup %6232 }
 0x2e7   : > { %v1633_v49 = vsel %vm1617_vm7, %v6233_v48, 0.0 }
 0x2e8   : > { %1634 = vadd.xlane.f32.xlu1 %v1633_v49 }
 0x369   : > { %v1632_v57 = vpop.xlane.xlu1 %1631 }
 0x36a   : > { %v1636_v58 = vmax.f32 %v1632_v57, 1e-20 }
 0x36c   : > { %6234 = vrcp.f32 %v1636_v58 }
 0x371   : > { %v1635_v60 = vpop.xlane.xlu1 %1634 }
 0x372   : > { %v1637_v61 = vmax.f32 %v1635_v60, 1e-20 }
 0x374   : > { %6236 = vrcp.f32 %v1637_v61 }
 0x379   : > { %v6235_v0 = vpop.eup %6234 }
 0x37a   : > { %v1640_v3 = vmul.f32 %v6235_v0, %v6231_v46  ;;  %v5798_v0 = vld [vmem:[%s6635_s18 + $0x70] ss:$8 sps:$4 sm:$0xff]  }
 0x37b   : > { %2142 = vmatpush1.bf16.msra.mxu0 %v5798_v0 }
 0x37c   : > { %v1642_v5 = vpack.c.bf16 %v1640_v3, %v1640_v3  ;;  %v5803_v3 = vld [vmem:[%s6635_s18 + $0x64] ss:$8 sps:$4 sm:$0xff]  }
 0x37d   : > { %2143 = vmatprep.subr.bf16.mxu0 %v5803_v3 }
 0x37e   : > { %5521 = vmatmul.mubr.msk.bf16.vlgmr.msra.gmra.mxu1 %vm1617_vm7, %v1642_v5  ;;  %v5801_v5 = vld [vmem:[%s6635_s18 + $0x60] ss:$8 sps:$4 sm:$0xff]  }
 0x37f   : > { %5525 = vmatpush3.bf16.msra.mxu1 %v1695_v7  ;;  %5526 = vmatprep.mubr.msk.bf16.mxu1 %vm6397_vm0, %v6396_v10  ;;  %v5804_v7 = vld [vmem:[%s6635_s18 + $0x50] ss:$8 sps:$4 sm:$0xff]  }
 0x380   : > { %5530 = vmatprep.subr.bf16.mxu1 %v6396_v10  ;;  %2144 = vmatpush1.bf16.msra.mxu0 %v5801_v5  ;;  %v6957_v5 = vld [vmem:[%s6660_s28] sm:$0xff] }
 0x381   : > { %v6237_v16 = vpop.eup %6236  ;;  %2145 = vmatprep.subr.bf16.mxu0 %v5806_v6  ;;  %v6960_v6 = vld [vmem:[%s6660_s28 + $0x8] sm:$0xff] }
 0x382   : > { %v1641_v17 = vmul.f32 %v6237_v16, %v6233_v48  ;;  %v5809_v16 = vld [vmem:[%s6635_s18 + $0x44] ss:$8 sps:$4 sm:$0xff]  }
 0x384   : > { %v1643_v19 = vpack.c.bf16 %v1641_v17, %v1641_v17  ;;  %2146 = vmatpush1.bf16.msra.mxu0 %v5804_v7  ;;  %v5812_v17 = vld [vmem:[%s6635_s18 + $0x34] ss:$8 sps:$4 sm:$0xff]   ;;  %v1976_v7 = vrot.slane %v6957_v5, %v6771_v15 }
 0x385   : > { %2147 = vmatprep.subr.bf16.mxu0 %v5809_v16  ;;  %v1980_v16 = vrot.slane %v6960_v6, %v6771_v15 }
 0x386   : > { %5527 = vmatmul.mubr.msk.bf16.vlgmr.msra.gmra.mxu1 %vm1617_vm7, %v1643_v19  ;;  %v5815_v19 = vld [vmem:[%s6635_s18 + $0x24] ss:$8 sps:$4 sm:$0xff]  }
 0x387   : > { %5531 = vmatpush3.bf16.xpose.msra.mxu1 %v1526_v21  ;;  %5532 = vmatprep.mubr.msk.bf16.mxu1 %vm6397_vm0, %v6396_v10  ;;  %v5813_v21 = vld [vmem:[%s6635_s18 + $0x20] ss:$8 sps:$4 sm:$0xff]  }
 0x388   : > { %5536 = vmatprep.subr.bf16.mxu1 %v6396_v10  ;;  %2148 = vmatpush1.bf16.msra.mxu0 %v5807_v9 }
 0x389   : > { %2149 = vmatprep.subr.bf16.mxu0 %v5812_v17 }
 0x38c   : > { %2150 = vmatpush1.bf16.msra.mxu0 %v5810_v18 }
 0x38d   : > { %2151 = vmatprep.subr.bf16.mxu0 %v5815_v19 }
 0x38e   : > { %5533 = vmatmul.mubr.bf16.vlgmr.msra.gmra.mxu1 %v1522_v11  ;;  %v5821_v11 = vld [vmem:[%s6635_s18 + $0x4] ss:$8 sps:$4 sm:$0xff]  }
 0x38f   : > { %5537 = vmatpush3.bf16.xpose.msra.mxu1 %v1528_v28  ;;  %5538 = vmatprep.mubr.msk.bf16.mxu1 %vm6397_vm0, %v6396_v10  ;;  %v5819_v28 = vld [vmem:[%s6635_s18] ss:$8 sps:$4 sm:$0xff]  }
 0x390   : > { %5542 = vmatprep.subr.bf16.mxu1 %v6396_v10  ;;  %2152 = vmatpush1.bf16.msra.mxu0 %v5813_v21 }
 0x391   : > { %2153 = vmatprep.subr.bf16.mxu0 %v5818_v24  ;;  %v6290_v24 = vld [vmem:[#allocation2 + $0x10] sm:$0xff] }
 0x394   : > { %2154 = vmatpush1.bf16.msra.mxu0 %v5816_v20 }
 0x395   : > { %2155 = vmatprep.subr.bf16.mxu0 %v5821_v11 }
 0x396   : > { %5539 = vmatmul.mubr.bf16.vlgmr.msra.gmra.mxu1 %v1524_v31  ;;  %v5825_v31 = vld [vmem:[%s6635_s18 + $0xe0] ss:$8 sps:$4 sm:$0xff]  }
 0x397   : > { %5543 = vmatpush3.bf16.msra.mxu1 %v1851_v22  ;;  %5544 = vmatprep.mubr.msk.bf16.mxu1 %vm6397_vm0, %v6396_v10  ;;  %v5830_v22 = vld [vmem:[%s6635_s18 + $0xd4] ss:$8 sps:$4 sm:$0xff]  }
 0x398   : > { %5548 = vmatprep.subr.bf16.mxu1 %v6396_v10  ;;  %2156 = vmatpush1.bf16.msra.mxu0 %v5819_v28 }
 0x399   : > { %2157 = vmatprep.subr.bf16.mxu0 %v5824_v29 }
 0x39c   : > { %2158 = vmatpush2.bf16.msra.mxu0 %v5822_v30  ;;  %v6292_v30 = vld [vmem:[#allocation2 + $0x18] sm:$0xff] }
 0x39d   : > { %2159 = vmatprep.subr.bf16.mxu0 %v5827_v27 }
 0x3a0   : > { %2160 = vmatpush2.bf16.msra.mxu0 %v5825_v31  ;;  %v6293_v31 = vld [vmem:[#allocation2 + $0x8] sm:$0xff] }
 0x3a1   : > { %2161 = vmatprep.subr.bf16.mxu0 %v5830_v22 }
 0x43e   : > { %v6895_v14 = vpop.f32.mrf.mxu1 }
 0x440   : > { %v5522_v32 = vpop.f32.mrf.mxu1 }
 0x441   : > { %v5828_v32 = vld [vmem:[%s6635_s18 + $0xd0] ss:$8 sps:$4 sm:$0xff]  }
 0x442   : > { %v1688_v34 = vpop.f32.mrf.mxu1  ;;  %2162 = vmatpush2.bf16.msra.mxu0 %v5828_v32 }
 0x443   : > { %v5833_v34 = vld [vmem:[%s6635_s18 + $0xc4] ss:$8 sps:$4 sm:$0xff]  }
 0x444   : > { %v5523_v35 = vpop.f32.mrf.mxu1  ;;  %2163 = vmatprep.subr.bf16.mxu0 %v5833_v34  ;;  %v5846_v34 = vld [vmem:[%s6645_s15 + $0xe0] ss:$16 sps:$4 sm:$0xff]  }
 0x445   : > { %v5831_v35 = vld [vmem:[%s6635_s18 + $0xc0] ss:$8 sps:$4 sm:$0xff]  }
 0x446   : > { %v6897_v36 = vpop.f32.mrf.mxu1  ;;  %2164 = vmatpush2.bf16.msra.mxu0 %v5831_v35  ;;  %v5848_v35 = vld [vmem:[%s6645_s15 + $0xe4] ss:$16 sps:$4 sm:$0xff]  }
 0x447   : > { %v1939_v37 = vpack.c.bf16 %v6897_v36, %v6895_v14  ;;  %v6291_v36 = vld [vmem:[#allocation2] sm:$0xff] }
 0x448   : > { %v5528_v38 = vpop.f32.mrf.mxu1 }
 0x449   : > { %v5836_v38 = vld [vmem:[%s6635_s18 + $0xb4] ss:$8 sps:$4 sm:$0xff]  }
 0x44a   : > { %v1734_v39 = vpop.f32.mrf.mxu1  ;;  %2165 = vmatprep.subr.bf16.mxu0 %v5836_v38  ;;  %v5851_v38 = vld [vmem:[%s6645_s15 + $0xc4] ss:$16 sps:$4 sm:$0xff]  }
 0x44b   : > { %v5834_v39 = vld [vmem:[%s6635_s18 + $0xb0] ss:$8 sps:$4 sm:$0xff]  }
 0x44c   : > { %v5529_v40 = vpop.f32.mrf.mxu1  ;;  %2166 = vmatpush2.bf16.msra.mxu0 %v5834_v39  ;;  %v5858_v39 = vld [vmem:[%s6618_s30 + $0x70] ss:$8 sps:$4 sm:$0xff]  }
 0x44e   : > { %v1771_v41 = vpop.f32.mrf.mxu1 }
 0x44f   : > { %v1817_v42 = vmul.f32 0.088388346, %v1771_v41 }
 0x450   : > { %v5534_v43 = vpop.f32.mrf.mxu1 }
 0x451   : > { %v1819_v44 = vadd.f32 %v1817_v42, %v6838_v25 }
 0x452   : > { %v1774_v45 = vpop.f32.mrf.mxu1 }
 0x453   : > { %v1821_v46 = vsel %vm1617_vm7, %v1819_v44, -inf }
 0x454   : > { %1822 = vmax.xlane.f32.xlu0 %v1821_v46  ;;  %v5535_v47 = vpop.f32.mrf.mxu1 }
 0x456   : > { %v1811_v48 = vpop.f32.mrf.mxu1 }
 0x457   : > { %v1818_v49 = vmul.f32 0.088388346, %v1811_v48 }
 0x458   : > { %v5540_v51 = vpop.f32.mrf.mxu1 }
 0x459   : > { %v1820_v52 = vadd.f32 %v1818_v49, %v6845_v33 }
 0x45a   : > { %v1814_v53 = vpop.f32.mrf.mxu1 }
 0x45b   : > { %v1824_v54 = vsel %vm1617_vm7, %v1820_v52, -inf }
 0x45c   : > { %1825 = vmax.xlane.f32.xlu1 %v1824_v54  ;;  %v5541_v55 = vpop.f32.mrf.mxu1  ;;  %v5839_v54 = vld [vmem:[%s6635_s18 + $0xa4] ss:$8 sps:$4 sm:$0xff]  }
 0x45d   : > { %v5837_v55 = vld [vmem:[%s6635_s18 + $0xa0] ss:$8 sps:$4 sm:$0xff]   ;;  %2167 = vmatprep.subr.bf16.mxu0 %v5839_v54  ;;  %v5884_v54 = vld [vmem:[%s6618_s30 + $0x34] ss:$8 sps:$4 sm:$0xff]  }
 0x45e   : > { %2168 = vmatpush2.bf16.msra.mxu0 %v5837_v55  ;;  %v5869_v55 = vld [vmem:[%s6645_s15 + $0x44] ss:$16 sps:$4 sm:$0xff]  }
 0x4dd   : > { %v1823_v56 = vpop.xlane.xlu0 %1822 }
 0x4de   : > { %v1827_v25 = vsub.f32 %v1819_v44, %v1823_v56  ;;  %v1518_v44 = vpop.f32.mrf.mxu0  ;;  %v5842_v56 = vld [vmem:[%s6635_s18 + $0x94] ss:$8 sps:$4 sm:$0xff]  }
 0x4df   : > { %v1519_v45 = vadd.f32 %v1518_v44, %v6885_v26  ;;  %2169 = vmatprep.subr.bf16.mxu0 %v5842_v56  ;;  %v5864_v44 = vld [vmem:[%s6618_s30 + $0x60] ss:$8 sps:$4 sm:$0xff]   ;;  %v5882_v56 = vld [vmem:[%s6618_s30 + $0x30] ss:$8 sps:$4 sm:$0xff]  }
 0x4e0   : > { %v1829_v57 = vmul.f32 1.442695, %v1827_v25  ;;  %v5840_v25 = vld [vmem:[%s6635_s18 + $0x90] ss:$8 sps:$4 sm:$0xff]  }
 0x4e1   : > { %v1532_v47 = vpack.c.bf16 %v1519_v45, %v1519_v45  ;;  %2170 = vmatpush2.bf16.msra.mxu0 %v5840_v25  ;;  %v5852_v45 = vld [vmem:[%s6645_s15 + $0xa0] ss:$16 sps:$4 sm:$0xff]  }
 0x4e2   : > { %6238 = vpow2.f32 %v1829_v57  ;;  %v5845_v57 = vld [vmem:[%s6635_s18 + $0x84] ss:$8 sps:$4 sm:$0xff]   ;;  %v5867_v25 = vld [vmem:[%s6645_s15 + $0x40] ss:$16 sps:$4 sm:$0xff]  }
 0x4e3   : > { %v1897_v51 = vsel %vm1647_vm10, %v1532_v47, 0  ;;  %2171 = vmatprep.subr.bf16.mxu0 %v5845_v57  ;;  %v5857_v47 = vld [vmem:[%s6645_s15 + $0x84] ss:$16 sps:$4 sm:$0xff]  }
 0x4e4   : > { %v5890_v57 = vld [vmem:[%s6618_s30 + $0x24] ss:$8 sps:$4 sm:$0xff]  }
 0x4e5   : > { %v1826_v58 = vpop.xlane.xlu1 %1825 }
 0x4e6   : > { %v1828_v59 = vsub.f32 %v1820_v52, %v1826_v58  ;;  %v5843_v58 = vld [vmem:[%s6635_s18 + $0x80] ss:$8 sps:$4 sm:$0xff]  }
 0x4e7   : > { %2172 = vmatpush2.bf16.msra.mxu0 %v5843_v58  ;;  %v5875_v58 = vld [vmem:[%s6645_s15 + $0x24] ss:$16 sps:$4 sm:$0xff]  }
 0x4e8   : > { %v1831_v60 = vmul.f32 1.442695, %v1828_v59  ;;  %2932 = vmatprep.subr.bf16.mxu0 %v5848_v35 }
 0x4ea   : > { %6240 = vpow2.f32 %v1831_v60 }
 0x4ef   : > { %v6905_v33 = vpop.eup %6238 }
 0x4f0   : > { %v1833_v61 = vsel %vm1617_vm7, %v6905_v33, 0.0 }
 0x4f1   : > { %1834 = vadd.xlane.f32.xlu0 %v1833_v61 }
 0x4f7   : > { %v6909_v62 = vpop.eup %6240 }
 0x4f8   : > { %v1836_v63 = vsel %vm1617_vm7, %v6909_v62, 0.0 }
 0x4f9   : > { %1837 = vadd.xlane.f32.xlu1 %v1836_v63 }
 0x57a   : > { %v1835_v40 = vpop.xlane.xlu0 %1834 }
 0x57b   : > { %v1839_v41 = vmax.f32 %v1835_v40, 1e-20  ;;  %v5849_v40 = vld [vmem:[%s6645_s15 + $0xc0] ss:$16 sps:$4 sm:$0xff]  }
 0x57d   : > { %6242 = vrcp.f32 %v1839_v41  ;;  %v5860_v41 = vld [vmem:[%s6618_s30 + $0x74] ss:$8 sps:$4 sm:$0xff]  }
 0x582   : > { %v1838_v42 = vpop.xlane.xlu1 %1837 }
 0x583   : > { %v1840_v43 = vmax.f32 %v1838_v42, 1e-20  ;;  %v5854_v42 = vld [vmem:[%s6645_s15 + $0xa4] ss:$16 sps:$4 sm:$0xff]  }
 0x585   : > { %6244 = vrcp.f32 %v1840_v43  ;;  %v5866_v43 = vld [vmem:[%s6618_s30 + $0x64] ss:$8 sps:$4 sm:$0xff]  }
 0x58a   : > { %v6243_v46 = vpop.eup %6242 }
 0x58b   : > { %v1843_v48 = vmul.f32 %v6243_v46, %v6905_v33  ;;  %v5872_v46 = vld [vmem:[%s6618_s30 + $0x54] ss:$8 sps:$4 sm:$0xff]  }
 0x58d   : > { %v1845_v49 = vpack.c.bf16 %v1843_v48, %v1843_v48  ;;  %v5870_v48 = vld [vmem:[%s6618_s30 + $0x50] ss:$8 sps:$4 sm:$0xff]  }
 0x58f   : > { %5545 = vmatmul.mubr.msk.bf16.vlgmr.msra.gmra.mxu1 %vm1617_vm7, %v1845_v49  ;;  %v5855_v49 = vld [vmem:[%s6645_s15 + $0x80] ss:$16 sps:$4 sm:$0xff]  }
 0x590   : > { %5549 = vmatpush3.bf16.msra.mxu1 %v1897_v51  ;;  %5550 = vmatprep.mubr.msk.bf16.mxu1 %vm6397_vm0, %v6396_v10  ;;  %v5878_v51 = vld [vmem:[%s6618_s30 + $0x44] ss:$8 sps:$4 sm:$0xff]  }
 0x591   : > { %2447 = vmatprep.subr.bf16.mxu1 %v5860_v41  ;;  %v5909_v41 = vld [vmem:[%s6645_s15 + $0x160] ss:$16 sps:$4 sm:$0xff]  }
 0x592   : > { %v6245_v52 = vpop.eup %6244 }
 0x593   : > { %v1844_v26 = vmul.f32 %v6245_v52, %v6909_v62  ;;  %v5863_v52 = vld [vmem:[%s6645_s15 + $0x64] ss:$16 sps:$4 sm:$0xff]  }
 0x595   : > { %v1846_v53 = vpack.c.bf16 %v1844_v26, %v1844_v26  ;;  %v5876_v26 = vld [vmem:[%s6618_s30 + $0x40] ss:$8 sps:$4 sm:$0xff]  }
 0x597   : > { %5551 = vmatmul.mubr.msk.bf16.vlgmr.msra.gmra.mxu1 %vm1617_vm7, %v1846_v53  ;;  %v5861_v53 = vld [vmem:[%s6645_s15 + $0x60] ss:$16 sps:$4 sm:$0xff]  }
 0x598   : > { %2448 = vmatpush1.bf16.msra.mxu1 %v5858_v39 }
 0x599   : > { %2449 = vmatprep.subr.bf16.mxu1 %v5866_v43  ;;  %v5917_v43 = vld [vmem:[%s6645_s15 + $0x144] ss:$16 sps:$4 sm:$0xff]  }
 0x59c   : > { %2450 = vmatpush1.bf16.msra.mxu1 %v5864_v44  ;;  %v5915_v44 = vld [vmem:[%s6645_s15 + $0x140] ss:$16 sps:$4 sm:$0xff]  }
 0x59d   : > { %2451 = vmatprep.subr.bf16.mxu1 %v5872_v46  ;;  %v5918_v46 = vld [vmem:[%s6618_s30 + $0xd0] ss:$8 sps:$4 sm:$0xff]  }
 0x5a0   : > { %2452 = vmatpush1.bf16.msra.mxu1 %v5870_v48  ;;  %v5923_v48 = vld [vmem:[%s6645_s15 + $0x124] ss:$16 sps:$4 sm:$0xff]  }
 0x5a1   : > { %2453 = vmatprep.subr.bf16.mxu1 %v5878_v51  ;;  %v5926_v51 = vld [vmem:[%s6618_s30 + $0xc4] ss:$8 sps:$4 sm:$0xff]  }
 0x5a4   : > { %2454 = vmatpush1.bf16.msra.mxu1 %v5876_v26  ;;  %v5932_v26 = vld [vmem:[%s6618_s30 + $0xb4] ss:$8 sps:$4 sm:$0xff]  }
 0x5a5   : > { %2455 = vmatprep.subr.bf16.mxu1 %v5884_v54  ;;  %v2493_v54 = vld [vmem:[%s7623_s26 + $0x18] sm:$0xff] }
 0x5a8   : > { %2456 = vmatpush1.bf16.msra.mxu1 %v5882_v56 }
 0x5a9   : > { %2457 = vmatprep.subr.bf16.mxu1 %v5890_v57  ;;  %v2492_v57 = vld [vmem:[%s7623_s26 + $0x10] sm:$0xff] }
 0x64f   : > { %v1887_v59 = vpop.f32.mrf.mxu1 }
 0x651   : > { %v5546_v60 = vpop.f32.mrf.mxu1 }
 0x652   : > { %v5873_v60 = vld [vmem:[%s6645_s15 + $0x20] ss:$16 sps:$4 sm:$0xff]  }
 0x653   : > { %v1890_v33 = vpop.f32.mrf.mxu1 }
 0x654   : > { %v5896_v33 = vld [vmem:[%s6618_s30 + $0x14] ss:$8 sps:$4 sm:$0xff]  }
 0x655   : > { %v5547_v61 = vpop.f32.mrf.mxu1 }
 0x656   : > { %v5881_v61 = vld [vmem:[%s6645_s15 + $0x4] ss:$16 sps:$4 sm:$0xff]  }
 0x657   : > { %v1933_v62 = vpop.f32.mrf.mxu1 }
 0x658   : > { %v1940_v63 = vpack.c.bf16 %v1933_v62, %v1887_v59  ;;  %v5888_v59 = vld [vmem:[%s6618_s30 + $0x20] ss:$8 sps:$4 sm:$0xff]   ;;  %v5894_v62 = vld [vmem:[%s6618_s30 + $0x10] ss:$8 sps:$4 sm:$0xff]  }
 0x659   : > { %v5552_v0 = vpop.f32.mrf.mxu1  ;;  %2458 = vmatpush1.bf16.msra.mxu1 %v5888_v59  ;;  %v5935_v59 = vld [vmem:[%s6618_s30 + $0xa4] ss:$8 sps:$4 sm:$0xff]  }
 0x65a   : > { %2173 = vmatprep.mubr.bf16.mxu0 %v1940_v63  ;;  %v5879_v63 = vld [vmem:[%s6645_s15] ss:$16 sps:$4 sm:$0xff]   ;;  %2459 = vmatprep.subr.bf16.mxu1 %v5896_v33  ;;  %v5902_v0 = vld [vmem:[%s6618_s30 + $0x4] ss:$8 sps:$4 sm:$0xff]  }
 0x65b   : > { %v1936_v2 = vpop.f32.mrf.mxu1  ;;  %2174 = vmatmul.mubr.bf16.vlgmr.msra.gmra.mxu0 %v1939_v37  ;;  %v5933_v33 = vld [vmem:[%s6618_s30 + $0xa0] ss:$8 sps:$4 sm:$0xff]  }
 0x65c   : > { %2933 = vmatpush1.bf16.msra.mxu0 %v5846_v34  ;;  %v5887_v2 = vld [vmem:[%s6645_s15 + $0x1e4] ss:$16 sps:$4 sm:$0xff]  }
 0x65d   : > { %v5553_v3 = vpop.f32.mrf.mxu1  ;;  %2934 = vmatprep.subr.bf16.mxu0 %v5851_v38  ;;  %2460 = vmatpush1.bf16.msra.mxu1 %v5894_v62  ;;  %v5936_v62 = vld [vmem:[%s6618_s30 + $0x90] ss:$8 sps:$4 sm:$0xff]  }
 0x65e   : > { %v5900_v3 = vld [vmem:[%s6618_s30] ss:$8 sps:$4 sm:$0xff]   ;;  %2461 = vmatprep.subr.bf16.mxu1 %v5902_v0 }
 0x65f   : > { %v5939_v0 = vld [vmem:[%s6618_s30 + $0x80] ss:$8 sps:$4 sm:$0xff]  }
 0x660   : > { %2935 = vmatpush1.bf16.msra.mxu0 %v5849_v40 }
 0x661   : > { %2936 = vmatprep.subr.bf16.mxu0 %v5854_v42  ;;  %2462 = vmatpush1.bf16.msra.mxu1 %v5900_v3  ;;  %v5914_v42 = vld [vmem:[%s6618_s30 + $0xe4] ss:$8 sps:$4 sm:$0xff]  }
 0x664   : > { %2937 = vmatpush1.bf16.msra.mxu0 %v5852_v45  ;;  %v5920_v45 = vld [vmem:[%s6618_s30 + $0xd4] ss:$8 sps:$4 sm:$0xff]  }
 0x665   : > { %2938 = vmatprep.subr.bf16.mxu0 %v5857_v47  ;;  %v5921_v47 = vld [vmem:[%s6645_s15 + $0x120] ss:$16 sps:$4 sm:$0xff]  }
 0x668   : > { %2939 = vmatpush1.bf16.msra.mxu0 %v5855_v49  ;;  %v5924_v49 = vld [vmem:[%s6618_s30 + $0xc0] ss:$8 sps:$4 sm:$0xff]  }
 0x669   : > { %2940 = vmatprep.subr.bf16.mxu0 %v5863_v52  ;;  %v5929_v52 = vld [vmem:[%s6645_s15 + $0x104] ss:$16 sps:$4 sm:$0xff]  }
 0x66c   : > { %2941 = vmatpush1.bf16.msra.mxu0 %v5861_v53  ;;  %v2491_v53 = vld [vmem:[%s7623_s26 + $0x8] sm:$0xff] }
 0x66d   : > { %2942 = vmatprep.subr.bf16.mxu0 %v5869_v55  ;;  %v5927_v55 = vld [vmem:[%s6645_s15 + $0x100] ss:$16 sps:$4 sm:$0xff]   ;;  %v2495_v56 = vpack.c.bf16 %v2493_v54, %v2491_v53  ;;  %v5960_v53 = vld [vmem:[%s6645_s15 + $0x28] ss:$16 sps:$4 sm:$0xff]   ;;  %v5965_v54 = vld [vmem:[%s6645_s15 + $0xc] ss:$16 sps:$4 sm:$0xff]  }
 0x66f   : > { %2964 = vmatprep.mubr.bf16.mxu0 %v2495_v56 }
 0x670   : > { %2943 = vmatpush1.bf16.msra.mxu0 %v5867_v25  ;;  %v2490_v25 = vld [vmem:[%s7623_s26] sm:$0xff] }
 0x671   : > { %2944 = vmatprep.subr.bf16.mxu0 %v5875_v58  ;;  %v5930_v58 = vld [vmem:[%s6618_s30 + $0xb0] ss:$8 sps:$4 sm:$0xff]  }
 0x674   : > { %2945 = vmatpush1.bf16.msra.mxu0 %v5873_v60  ;;  %v7069_v60 = vpack.c.bf16 %v2492_v57, %v2490_v25  ;;  %v5966_v25 = vld [vmem:[%s6645_s15 + $0x1e8] ss:$16 sps:$4 sm:$0xff]   ;;  %v5971_v57 = vld [vmem:[%s6645_s15 + $0x1cc] ss:$16 sps:$4 sm:$0xff]  }
 0x675   : > { %2946 = vmatprep.subr.bf16.mxu0 %v5881_v61  ;;  %v5938_v61 = vld [vmem:[%s6618_s30 + $0x94] ss:$8 sps:$4 sm:$0xff]  }
 0x678   : > { %2947 = vmatpush1.bf16.msra.mxu0 %v5879_v63  ;;  %v5941_v63 = vld [vmem:[%s6618_s30 + $0x84] ss:$8 sps:$4 sm:$0xff]  }
 0x679   : > { %2948 = vmatprep.subr.bf16.mxu0 %v5887_v2  ;;  %v5944_v2 = vld [vmem:[%s6645_s15 + $0xec] ss:$16 sps:$4 sm:$0xff]  }
 0x71b   : > { %v2175_v9 = vpop.f32.mrf.mxu0 }
 0x71c   : > { %v2176_v17 = vadd.f32 %v2175_v9, %v1976_v7  ;;  %v5893_v9 = vld [vmem:[%s6645_s15 + $0x1c4] ss:$16 sps:$4 sm:$0xff]  }
 0x71d   : > { %v2177_v18 = vpop.f32.mrf.mxu0 }
 0x71e   : > { %v2178_v19 = vadd.f32 %v2177_v18, %v1980_v16  ;;  %v6966_v14 = vadd.f32 %v6290_v24, %v2176_v17  ;;  %v5906_v17 = vld [vmem:[%s6618_s30 + $0xf0] ss:$8 sps:$4 sm:$0xff]   ;;  %v5905_v24 = vld [vmem:[%s6645_s15 + $0x184] ss:$16 sps:$4 sm:$0xff]  }
 0x71f   : > { %v2179_v21 = vpop.f32.mrf.mxu0  ;;  %v5891_v18 = vld [vmem:[%s6645_s15 + $0x1c0] ss:$16 sps:$4 sm:$0xff]  }
 0x720   : > { %v6968_v37 = vadd.f32 %v6291_v36, %v2178_v19  ;;  %v2180_v20 = vadd.f32 %v2179_v21, %v1976_v7  ;;  %v5885_v7 = vld [vmem:[%s6645_s15 + $0x1e0] ss:$16 sps:$4 sm:$0xff]   ;;  %v5899_v19 = vld [vmem:[%s6645_s15 + $0x1a4] ss:$16 sps:$4 sm:$0xff]  }
 0x721   : > { %v2181_v11 = vpop.f32.mrf.mxu0  ;;  %2949 = vmatpush2.bf16.msra.mxu0 %v5885_v7  ;;  %v5897_v21 = vld [vmem:[%s6645_s15 + $0x1a0] ss:$16 sps:$4 sm:$0xff]  }
 0x722   : > { %v2182_v28 = vadd.f32 %v2181_v11, %v1980_v16  ;;  %v2188_v29 = vadd.f32 %v6968_v37, %v6966_v14  ;;  %v6972_v27 = vadd.f32 %v6292_v30, %v2180_v20  ;;  %v5908_v16 = vld [vmem:[%s6618_s30 + $0xf4] ss:$8 sps:$4 sm:$0xff]   ;;  %2950 = vmatprep.subr.bf16.mxu0 %v5893_v9  ;;  %v5903_v36 = vld [vmem:[%s6645_s15 + $0x180] ss:$16 sps:$4 sm:$0xff]  }
 0x723   : > { %2463 = vmatprep.subr.bf16.mxu1 %v5908_v16 }
 0x724   : > { %v6974_v22 = vadd.f32 %v6293_v31, %v2182_v28  ;;  %2189 = vadd.xlane.f32.xlu0 %v2188_v29  ;;  %2464 = vmatpush2.bf16.msra.mxu1 %v5906_v17 }
 0x725   : > { %2951 = vmatpush2.bf16.msra.mxu0 %v5891_v18  ;;  %2465 = vmatprep.subr.bf16.mxu1 %v5914_v42  ;;  %v5942_v42 = vld [vmem:[%s6645_s15 + $0xe8] ss:$16 sps:$4 sm:$0xff]  }
 0x726   : > { %v2191_v32 = vadd.f32 %v6974_v22, %v6972_v27  ;;  %2952 = vmatprep.subr.bf16.mxu0 %v5899_v19 }
 0x728   : > { %2192 = vadd.xlane.f32.xlu1 %v2191_v32 }
 0x729   : > { %2953 = vmatpush2.bf16.msra.mxu0 %v5897_v21 }
 0x72a   : > { %2954 = vmatprep.subr.bf16.mxu0 %v5905_v24  ;;  %v2228_v24 = vrot.slane %v6960_v6, %v6868_v8 }
 0x72d   : > { %2955 = vmatpush2.bf16.msra.mxu0 %v5903_v36 }
 0x7ad   : > { %v2190_v20 = vpop.xlane.xlu0 %2189 }
 0x7ae   : > { %v2195_v11 = vmul.f32 0.00390625, %v2190_v20  ;;  %v2224_v20 = vrot.slane %v6957_v5, %v6868_v8 }
 0x7b0   : > { %v7021_v28 = vsub.f32 %v6966_v14, %v2195_v11  ;;  %v7024_v29 = vsub.f32 %v6968_v37, %v2195_v11 }
 0x7b1   : > { %v2193_v30 = vpop.xlane.xlu1 %2192 }
 0x7b2   : > { %v2196_v31 = vmul.f32 0.00390625, %v2193_v30  ;;  %v2201_v32 = vmul.f32 %v7021_v28, %v7021_v28  ;;  %v2202_v34 = vmul.f32 %v7024_v29, %v7024_v29  ;;  %v2240_v30 = vrot.slane %v6960_v6, %v6765_v13 }
 0x7b4   : > { %v7031_v35 = vsub.f32 %v6972_v27, %v2196_v31  ;;  %v7034_v14 = vsub.f32 %v6974_v22, %v2196_v31  ;;  %v2205_v38 = vadd.f32 %v2202_v34, %v2201_v32  ;;  %v5911_v27 = vld [vmem:[%s6645_s15 + $0x164] ss:$16 sps:$4 sm:$0xff]   ;;  %v5912_v22 = vld [vmem:[%s6618_s30 + $0xe0] ss:$8 sps:$4 sm:$0xff]   ;;  %v2236_v31 = vrot.slane %v6957_v5, %v6765_v13 }
 0x7b5   : > { %2956 = vmatprep.subr.bf16.mxu0 %v5911_v27  ;;  %2466 = vmatpush2.bf16.msra.mxu1 %v5912_v22  ;;  %v5947_v22 = vld [vmem:[%s6645_s15 + $0xcc] ss:$16 sps:$4 sm:$0xff]  }
 0x7b6   : > { %2206 = vadd.xlane.f32.xlu0 %v2205_v38  ;;  %v2203_v37 = vmul.f32 %v7031_v35, %v7031_v35  ;;  %v2204_v39 = vmul.f32 %v7034_v14, %v7034_v14  ;;  %2957 = vmatpush2.bf16.msra.mxu0 %v5909_v41 }
 0x7b7   : > { %2958 = vmatprep.subr.bf16.mxu0 %v5917_v43  ;;  %2467 = vmatprep.subr.bf16.mxu1 %v5920_v45  ;;  %v5945_v43 = vld [vmem:[%s6645_s15 + $0xc8] ss:$16 sps:$4 sm:$0xff]  }
 0x7b8   : > { %v2208_v40 = vadd.f32 %v2204_v39, %v2203_v37  ;;  %v5948_v45 = vld [vmem:[%s6645_s15 + $0xa8] ss:$16 sps:$4 sm:$0xff]  }
 0x7b9   : > { %2468 = vmatpush2.bf16.msra.mxu1 %v5918_v46  ;;  %v5953_v46 = vld [vmem:[%s6645_s15 + $0x8c] ss:$16 sps:$4 sm:$0xff]  }
 0x7ba   : > { %2209 = vadd.xlane.f32.xlu1 %v2208_v40  ;;  %2959 = vmatpush2.bf16.msra.mxu0 %v5915_v44  ;;  %v5950_v44 = vld [vmem:[%s6645_s15 + $0xac] ss:$16 sps:$4 sm:$0xff]  }
 0x7bb   : > { %2960 = vmatprep.subr.bf16.mxu0 %v5923_v48  ;;  %2469 = vmatprep.subr.bf16.mxu1 %v5926_v51  ;;  %v5956_v48 = vld [vmem:[%s6645_s15 + $0x6c] ss:$16 sps:$4 sm:$0xff]  }
 0x7bc   : > { %v5959_v51 = vld [vmem:[%s6645_s15 + $0x4c] ss:$16 sps:$4 sm:$0xff]  }
 0x7bd   : > { %2470 = vmatpush2.bf16.msra.mxu1 %v5924_v49  ;;  %v5954_v49 = vld [vmem:[%s6645_s15 + $0x68] ss:$16 sps:$4 sm:$0xff]  }
 0x7be   : > { %2961 = vmatpush2.bf16.msra.mxu0 %v5921_v47  ;;  %2471 = vmatprep.subr.bf16.mxu1 %v5932_v26  ;;  %v5951_v47 = vld [vmem:[%s6645_s15 + $0x88] ss:$16 sps:$4 sm:$0xff]   ;;  %v5962_v26 = vld [vmem:[%s6645_s15 + $0x2c] ss:$16 sps:$4 sm:$0xff]  }
 0x7bf   : > { %2962 = vmatprep.subr.bf16.mxu0 %v5929_v52  ;;  %v5957_v52 = vld [vmem:[%s6645_s15 + $0x48] ss:$16 sps:$4 sm:$0xff]  }
 0x7c1   : > { %2472 = vmatpush2.bf16.msra.mxu1 %v5930_v58  ;;  %v5969_v58 = vld [vmem:[%s6645_s15 + $0x1c8] ss:$16 sps:$4 sm:$0xff]  }
 0x7c2   : > { %2963 = vmatpush2.bf16.msra.mxu0 %v5927_v55  ;;  %2473 = vmatprep.subr.bf16.mxu1 %v5935_v59  ;;  %v5963_v55 = vld [vmem:[%s6645_s15 + $0x8] ss:$16 sps:$4 sm:$0xff]   ;;  %v5974_v59 = vld [vmem:[%s6645_s15 + $0x1ac] ss:$16 sps:$4 sm:$0xff]  }
 0x7c5   : > { %2965 = vmatmul.mubr.bf16.vlgmr.msra.gmra.mxu0 %v7069_v60  ;;  %2474 = vmatpush2.bf16.msra.mxu1 %v5933_v33  ;;  %v5972_v33 = vld [vmem:[%s6645_s15 + $0x1a8] ss:$16 sps:$4 sm:$0xff]  }
 0x7c6   : > { %2475 = vmatprep.subr.bf16.mxu1 %v5938_v61  ;;  %v5977_v61 = vld [vmem:[%s6645_s15 + $0x18c] ss:$16 sps:$4 sm:$0xff]  }
 0x7c9   : > { %2476 = vmatpush2.bf16.msra.mxu1 %v5936_v62  ;;  %v5975_v62 = vld [vmem:[%s6645_s15 + $0x188] ss:$16 sps:$4 sm:$0xff]  }
 0x7ca   : > { %2477 = vmatprep.subr.bf16.mxu1 %v5941_v63  ;;  %v5980_v63 = vld [vmem:[%s6645_s15 + $0x16c] ss:$16 sps:$4 sm:$0xff]  }
 0x7cd   : > { %2478 = vmatpush2.bf16.msra.mxu1 %v5939_v0  ;;  %v5978_v0 = vld [vmem:[%s6645_s15 + $0x168] ss:$16 sps:$4 sm:$0xff]  }
 0x7ce   : > { %2975 = vmatprep.subr.bf16.mxu1 %v5944_v2  ;;  %v5983_v2 = vld [vmem:[%s6645_s15 + $0x14c] ss:$16 sps:$4 sm:$0xff]  }
 0x83f   : > { %v2207_v3 = vpop.xlane.xlu0 %2206 }
 0x840   : > { %v2211_v7 = vmul.f32 0.00390625, %v2207_v3  ;;  %v5981_v3 = vld [vmem:[%s6645_s15 + $0x148] ss:$16 sps:$4 sm:$0xff]  }
 0x842   : > { %v2213_v16 = vadd.f32 1e-05, %v2211_v7  ;;  %v5986_v7 = vld [vmem:[%s6645_s15 + $0x12c] ss:$16 sps:$4 sm:$0xff]  }
 0x843   : > { %v2210_v9 = vpop.xlane.xlu1 %2209 }
 0x844   : > { %6246 = vrsqrt.f32 %v2213_v16  ;;  %v2212_v17 = vmul.f32 0.00390625, %v2210_v9  ;;  %v7131_v16 = vld [vmem:[%s6670_s9] sm:$0xf]  ;;  %v5984_v9 = vld [vmem:[%s6645_s15 + $0x128] ss:$16 sps:$4 sm:$0xff]  }
 0x846   : > { %v2214_v18 = vadd.f32 1e-05, %v2212_v17  ;;  %v2595_v17 = vrot.slane %v7131_v16, %v6771_v15 }
 0x848   : > { %6248 = vrsqrt.f32 %v2214_v18  ;;  %v5989_v18 = vld [vmem:[%s6645_s15 + $0x10c] ss:$16 sps:$4 sm:$0xff]  }
 0x851   : > { %v6247_v19 = vpop.eup %6246 }
 0x852   : > { %v2218_v21 = vmul.f32 %v6247_v19, %v7024_v29  ;;  %v2217_v36 = vmul.f32 %v6247_v19, %v7021_v28 }
 0x854   : > { %v2230_v29 = vmul.f32 %v2228_v24, %v2218_v21  ;;  %v2229_v38 = vmul.f32 %v2224_v20, %v2217_v36 }
 0x855   : > { %v6249_v11 = vpop.eup %6248 }
 0x856   : > { %v2220_v32 = vmul.f32 %v6249_v11, %v7034_v14  ;;  %v2219_v34 = vmul.f32 %v6249_v11, %v7031_v35  ;;  %v7090_v39 = vadd.f32 %v2240_v30, %v2230_v29  ;;  %v7094_v27 = vadd.f32 %v2236_v31, %v2229_v38 }
 0x857   : > { %v2282_v11 = vrot.slane %v6957_v5, %v6859_v1  ;;  %v2603_v5 = vrot.slane %v7131_v16, %v6765_v13 }
 0x858   : > { %v2232_v28 = vmul.f32 %v2228_v24, %v2220_v32  ;;  %v2231_v37 = vmul.f32 %v2224_v20, %v2219_v34  ;;  %v5987_v24 = vld [vmem:[%s6645_s15 + $0x108] ss:$16 sps:$4 sm:$0xff]  }
 0x85a   : > { %v7092_v40 = vadd.f32 %v2240_v30, %v2232_v28  ;;  %v7096_v41 = vadd.f32 %v2236_v31, %v2231_v37 }
 0x85c   : > { %v2246_v14 = vpack.c.bf16 %v7092_v40, %v7090_v39  ;;  %v2245_v35 = vpack.c.bf16 %v7096_v41, %v7094_v27 }
 0x85e   : > { %2479 = vmatprep.mubr.bf16.mxu1 %v2246_v14 }
 0x85f   : > { %2480 = vmatmul.mubr.bf16.vlgmr.msra.gmra.mxu1 %v2245_v35 }
 0x860   : > { %2976 = vmatpush1.bf16.msra.mxu1 %v5942_v42  ;;  %3007 = vmatprep.mubr.bf16.mxu1 %v2495_v56  ;;  %v5968_v56 = vld [vmem:[%s6645_s15 + $0x1ec] ss:$16 sps:$4 sm:$0xff]   ;;  %s7624_s15 = sld [smem:[#allocation14_spill]] }
 0x861   : > { %2977 = vmatprep.subr.bf16.mxu1 %v5947_v22 }
 0x864   : > { %2978 = vmatpush1.bf16.msra.mxu1 %v5945_v43 }
 0x865   : > { %2979 = vmatprep.subr.bf16.mxu1 %v5950_v44 }
 0x868   : > { %2980 = vmatpush1.bf16.msra.mxu1 %v5948_v45 }
 0x869   : > { %2981 = vmatprep.subr.bf16.mxu1 %v5953_v46 }
 0x86c   : > { %2982 = vmatpush1.bf16.msra.mxu1 %v5951_v47 }
 0x86d   : > { %2983 = vmatprep.subr.bf16.mxu1 %v5956_v48  ;;  %v5235_v48 = vld.sshfl [vmem:[%s7624_s15] sm:$0x11 pattern:$0x75316420] }
 0x870   : > { %2984 = vmatpush1.bf16.msra.mxu1 %v5954_v49  ;;  %v2512_v49 = vrot.slane %v5235_v48, %v6824_v4 }
 0x871   : > { %2985 = vmatprep.subr.bf16.mxu1 %v5959_v51  ;;  %v2505_v51 = vcombine.high %v5235_v48, %v5235_v48 }
 0x872   : > { %vm2522_vm11 = vcmp.gt.f32.partialorder %v2512_v49, 0.5 }
 0x874   : > { %2986 = vmatpush1.bf16.msra.mxu1 %v5957_v52  ;;  %v2524_v52 = vsel %vm2522_vm11, -1e+09, %v6396_v10 }
 0x875   : > { %2987 = vmatprep.subr.bf16.mxu1 %v5962_v26  ;;  %v2519_v26 = vrot.slane %v2505_v51, %v6824_v4 }
 0x877   : > { %vm2523_vm12 = vcmp.gt.f32.partialorder %v2519_v26, 0.5 }
 0x878   : > { %2988 = vmatpush1.bf16.msra.mxu1 %v5960_v53 }
 0x879   : > { %2989 = vmatprep.subr.bf16.mxu1 %v5965_v54  ;;  %v7171_v54 = vrot.slane %v2524_v52, %v6771_v15 }
 0x87c   : > { %2990 = vmatpush1.bf16.msra.mxu1 %v5963_v55 }
 0x87d   : > { %2991 = vmatprep.subr.bf16.mxu1 %v5968_v56 }
 0x880   : > { %2992 = vmatpush2.bf16.msra.mxu1 %v5966_v25 }
 0x881   : > { %2993 = vmatprep.subr.bf16.mxu1 %v5971_v57 }
 0x884   : > { %2994 = vmatpush2.bf16.msra.mxu1 %v5969_v58 }
 0x885   : > { %2995 = vmatprep.subr.bf16.mxu1 %v5974_v59  ;;  %v2966_v19 = vpop.f32.mrf.mxu0  ;;  %v2525_v59 = vsel %vm2523_vm12, -1e+09, %v6396_v10 }
 0x886   : > { %v2967_v21 = vadd.f32 %v2966_v19, %v2595_v17  ;;  %v7177_v4 = vrot.slane %v2525_v59, %v6771_v15 }
 0x887   : > { %v7143_v20 = vpop.f32.mrf.mxu0 }
 0x888   : > { %2996 = vmatpush2.bf16.msra.mxu1 %v5972_v33  ;;  %v3022_v36 = vpack.c.bf16 %v2967_v21, %v2967_v21 }
 0x889   : > { %2997 = vmatprep.subr.bf16.mxu1 %v5977_v61  ;;  %v2970_v30 = vpop.f32.mrf.mxu0 }
 0x88a   : > { %v2971_v31 = vadd.f32 %v2970_v30, %v2595_v17 }
 0x88b   : > { %v2972_v52 = vpop.f32.mrf.mxu0 }
 0x88c   : > { %2998 = vmatpush2.bf16.msra.mxu1 %v5975_v62  ;;  %v3024_v28 = vpack.c.bf16 %v2971_v31, %v2971_v31 }
 0x88d   : > { %2999 = vmatprep.subr.bf16.mxu1 %v5980_v63 }
 0x890   : > { %3000 = vmatpush2.bf16.msra.mxu1 %v5978_v0 }
 0x891   : > { %3001 = vmatprep.subr.bf16.mxu1 %v5983_v2 }
 0x894   : > { %3002 = vmatpush2.bf16.msra.mxu1 %v5981_v3 }
 0x895   : > { %3003 = vmatprep.subr.bf16.mxu1 %v5986_v7 }
 0x898   : > { %3004 = vmatpush2.bf16.msra.mxu1 %v5984_v9 }
 0x899   : > { %3005 = vmatprep.subr.bf16.mxu1 %v5989_v18 }
 0x89c   : > { %3006 = vmatpush2.bf16.msra.mxu1 %v5987_v24 }
 0x89d   : > { %5554 = vmatprep.subr.bf16.mxu1 %v6396_v10 }
 0x89f   : > { %3008 = vmatmul.mubr.bf16.vlgmr.msra.gmra.mxu1 %v7069_v60 }
 0x8a0   : > { %5555 = vmatpush3.bf16.xpose.msra.mxu1 %v3022_v36  ;;  %5556 = vmatprep.mubr.msk.bf16.mxu1 %vm6397_vm0, %v6396_v10 }
 0x8a1   : > { %5560 = vmatprep.subr.bf16.mxu1 %v6396_v10 }
 0x91f   : > { %v2481_v32 = vpop.f32.mrf.mxu1 }
 0x920   : > { %v2482_v29 = vadd.f32 %v2481_v32, %v2282_v11 }
 0x921   : > { %v7147_v34 = vpop.f32.mrf.mxu1 }
 0x922   : > { %v3018_v38 = vpack.c.bf16 %v2482_v29, %v2482_v29 }
 0x923   : > { %v2485_v60 = vpop.f32.mrf.mxu1 }
 0x924   : > { %5557 = vmatmul.mubr.bf16.vlgmr.msra.gmra.mxu1 %v3018_v38  ;;  %v2486_v37 = vadd.f32 %v2485_v60, %v2282_v11 }
 0x925   : > { %5561 = vmatpush3.bf16.xpose.msra.mxu1 %v3024_v28  ;;  %5562 = vmatprep.mubr.msk.bf16.mxu1 %vm6397_vm0, %v6396_v10  ;;  %v7156_v35 = vpop.f32.mrf.mxu1 }
 0x926   : > { %5566 = vmatprep.subr.bf16.mxu1 %v6396_v10  ;;  %v3020_v14 = vpack.c.bf16 %v2486_v37, %v2486_v37 }
 0x92c   : > { %5563 = vmatmul.mubr.bf16.vlgmr.msra.gmra.mxu1 %v3020_v14 }
 0x92d   : > { %5568 = vmatprep.mubr.msk.bf16.mxu1 %vm6397_vm0, %v6396_v10 }
 0x95f   : > { %v3009_v42 = vpop.f32.mrf.mxu1 }
 0x960   : > { %v3010_v22 = vadd.f32 %v3009_v42, %v2603_v5 }
 0x961   : > { %v7158_v43 = vpop.f32.mrf.mxu1 }
 0x962   : > { %v3026_v44 = vpack.c.bf16 %v3010_v22, %v3010_v22  ;;  %v2599_v22 = vrot.slane %v7131_v16, %v6868_v8 }
 0x963   : > { %v3013_v45 = vpop.f32.mrf.mxu1 }
 0x964   : > { %v3156_v46 = vsel %vm1647_vm10, %v3026_v44, 0  ;;  %v3014_v47 = vadd.f32 %v3013_v45, %v2603_v5 }
 0x965   : > { %5567 = vmatpush3.bf16.msra.mxu1 %v3156_v46  ;;  %v7168_v53 = vpop.f32.mrf.mxu1  ;;  %v2969_v46 = vadd.f32 %v7143_v20, %v2599_v22  ;;  %v7200_v20 = vrot.slane %v7131_v16, %v6859_v1 }
 0x966   : > { %5572 = vmatprep.subr.bf16.mxu1 %v6396_v10  ;;  %v3028_v14 = vpack.c.bf16 %v3014_v47, %v3014_v47  ;;  %v2286_v47 = vrot.slane %v6960_v6, %v6859_v1 }
 0x967   : > { %v3023_v51 = vpack.c.bf16 %v2969_v46, %v2969_v46  ;;  %v5995_v46 = vld [vmem:[%s6624_s24 + $0x64] ss:$8 sps:$4 sm:$0xff]  }
 0x968   : > { %v3202_v44 = vsel %vm1647_vm10, %v3028_v14, 0  ;;  %v2484_v26 = vadd.f32 %v7147_v34, %v2286_v47 }
 0x9e4   : > { %v3064_v55 = vpop.f32.mrf.mxu1 }
 0x9e5   : > { %v3110_v56 = vmul.f32 0.088388346, %v3064_v55  ;;  %v2973_v55 = vadd.f32 %v2972_v52, %v2599_v22  ;;  %v5999_v52 = vld [vmem:[%s6624_s24 + $0x40] ss:$8 sps:$4 sm:$0xff]  }
 0x9e6   : > { %v5558_v25 = vpop.f32.mrf.mxu1 }
 0x9e7   : > { %v3124_v57 = vadd.f32 %v7171_v54, %v3110_v56  ;;  %v3019_v56 = vpack.c.bf16 %v2484_v26, %v2484_v26  ;;  %v3025_v6 = vpack.c.bf16 %v2973_v55, %v2973_v55  ;;  %v3012_v25 = vadd.f32 %v7158_v43, %v7200_v20  ;;  %v6004_v26 = vld [vmem:[%s6624_s24 + $0x34] ss:$8 sps:$4 sm:$0xff]   ;;  %v6002_v55 = vld [vmem:[%s6624_s24 + $0x30] ss:$8 sps:$4 sm:$0xff]  }
 0x9e8   : > { %v3067_v58 = vpop.f32.mrf.mxu1 }
 0x9e9   : > { %v3126_v33 = vsel %vm1617_vm7, %v3124_v57, -inf  ;;  %v3027_v34 = vpack.c.bf16 %v3012_v25, %v3012_v25  ;;  %v6010_v25 = vld [vmem:[%s6624_s24 + $0x14] ss:$8 sps:$4 sm:$0xff]  }
 0x9ea   : > { %3127 = vmax.xlane.f32.xlu0 %v3126_v33  ;;  %v5559_v61 = vpop.f32.mrf.mxu1 }
 0x9eb   : > { %v3358_v59 = vsel %vm1647_vm10, %v3027_v34, 0  ;;  %v6013_v34 = vld [vmem:[%s6624_s24 + $0x4] ss:$8 sps:$4 sm:$0xff]  }
 0x9ec   : > { %v3104_v62 = vpop.f32.mrf.mxu1 }
 0x9ed   : > { %v3111_v63 = vmul.f32 0.088388346, %v3104_v62 }
 0x9ee   : > { %v5564_v0 = vpop.f32.mrf.mxu1 }
 0x9ef   : > { %v3125_v2 = vadd.f32 %v7177_v4, %v3111_v63 }
 0x9f0   : > { %v3107_v3 = vpop.f32.mrf.mxu1 }
 0x9f1   : > { %v3129_v7 = vsel %vm1617_vm7, %v3125_v2, -inf }
 0x9f2   : > { %3130 = vmax.xlane.f32.xlu1 %v3129_v7  ;;  %v5565_v9 = vpop.f32.mrf.mxu1 }
 0xa73   : > { %v3128_v17 = vpop.xlane.xlu0 %3127 }
 0xa74   : > { %v3132_v18 = vsub.f32 %v3124_v57, %v3128_v17  ;;  %v2488_v57 = vadd.f32 %v7156_v35, %v2286_v47  ;;  %v5998_v47 = vld [vmem:[%s6624_s24 + $0x54] ss:$8 sps:$4 sm:$0xff]  }
 0xa76   : > { %v3134_v19 = vmul.f32 1.442695, %v3132_v18  ;;  %v3021_v58 = vpack.c.bf16 %v2488_v57, %v2488_v57  ;;  %v6008_v57 = vld [vmem:[%s6624_s24 + $0x10] ss:$8 sps:$4 sm:$0xff]  }
 0xa78   : > { %6250 = vpow2.f32 %v3134_v19 }
 0xa7b   : > { %v3131_v21 = vpop.xlane.xlu1 %3130 }
 0xa7c   : > { %v3133_v24 = vsub.f32 %v3125_v2, %v3131_v21 }
 0xa7e   : > { %v3136_v36 = vmul.f32 1.442695, %v3133_v24 }
 0xa80   : > { %6252 = vpow2.f32 %v3136_v36 }
 0xa85   : > { %v6251_v11 = vpop.eup %6250 }
 0xa86   : > { %v3138_v30 = vsel %vm1617_vm7, %v6251_v11, 0.0 }
 0xa87   : > { %3139 = vadd.xlane.f32.xlu0 %v3138_v30 }
 0xa8d   : > { %v6253_v31 = vpop.eup %6252 }
 0xa8e   : > { %v3141_v32 = vsel %vm1617_vm7, %v6253_v31, 0.0 }
 0xa8f   : > { %3142 = vadd.xlane.f32.xlu1 %v3141_v32 }
 0xb10   : > { %v3140_v29 = vpop.xlane.xlu0 %3139 }
 0xb11   : > { %v3144_v38 = vmax.f32 %v3140_v29, 1e-20 }
 0xb13   : > { %6254 = vrcp.f32 %v3144_v38 }
 0xb18   : > { %v3143_v28 = vpop.xlane.xlu1 %3142 }
 0xb19   : > { %v3145_v60 = vmax.f32 %v3143_v28, 1e-20 }
 0xb1b   : > { %6256 = vrcp.f32 %v3145_v60 }
 0xb20   : > { %v6255_v37 = vpop.eup %6254 }
 0xb21   : > { %v3148_v5 = vmul.f32 %v6255_v37, %v6251_v11 }
 0xb23   : > { %v3150_v42 = vpack.c.bf16 %v3148_v5, %v3148_v5 }
 0xb25   : > { %5569 = vmatmul.mubr.msk.bf16.vlgmr.msra.gmra.mxu1 %vm1617_vm7, %v3150_v42 }
 0xb26   : > { %5573 = vmatpush3.bf16.msra.mxu1 %v3202_v44  ;;  %5574 = vmatprep.mubr.msk.bf16.mxu1 %vm6397_vm0, %v6396_v10  ;;  %v5990_v44 = vld [vmem:[%s6624_s24 + $0x70] ss:$8 sps:$4 sm:$0xff]  }
 0xb27   : > { %5578 = vmatprep.subr.bf16.mxu1 %v6396_v10 }
 0xb28   : > { %v6257_v45 = vpop.eup %6256 }
 0xb29   : > { %v3149_v48 = vmul.f32 %v6257_v45, %v6253_v31  ;;  %v5992_v45 = vld [vmem:[%s6624_s24 + $0x74] ss:$8 sps:$4 sm:$0xff]  }
 0xb2a   : > { %3648 = vmatprep.subr.bf16.mxu0 %v5992_v45 }
 0xb2b   : > { %v3151_v49 = vpack.c.bf16 %v3149_v48, %v3149_v48  ;;  %3649 = vmatpush1.bf16.msra.mxu0 %v5990_v44  ;;  %v5993_v48 = vld [vmem:[%s6624_s24 + $0x60] ss:$8 sps:$4 sm:$0xff]  }
 0xb2c   : > { %3650 = vmatprep.subr.bf16.mxu0 %v5995_v46 }
 0xb2d   : > { %5575 = vmatmul.mubr.msk.bf16.vlgmr.msra.gmra.mxu1 %vm1617_vm7, %v3151_v49  ;;  %v5996_v49 = vld [vmem:[%s6624_s24 + $0x50] ss:$8 sps:$4 sm:$0xff]  }
 0xb2e   : > { %5579 = vmatpush3.bf16.xpose.msra.mxu1 %v3023_v51  ;;  %5580 = vmatprep.mubr.msk.bf16.mxu1 %vm6397_vm0, %v6396_v10  ;;  %v6001_v51 = vld [vmem:[%s6624_s24 + $0x44] ss:$8 sps:$4 sm:$0xff]  }
 0xb2f   : > { %5584 = vmatprep.subr.bf16.mxu1 %v6396_v10  ;;  %3651 = vmatpush1.bf16.msra.mxu0 %v5993_v48 }
 0xb30   : > { %3652 = vmatprep.subr.bf16.mxu0 %v5998_v47  ;;  %v7275_v47 = vld [vmem:[%s6660_s28] sm:$0xff] }
 0xb33   : > { %3653 = vmatpush1.bf16.msra.mxu0 %v5996_v49  ;;  %v3483_v49 = vrot.slane %v7275_v47, %v6852_v50 }
 0xb34   : > { %3654 = vmatprep.subr.bf16.mxu0 %v6001_v51  ;;  %v7280_v51 = vld [vmem:[%s6660_s28 + $0x8] sm:$0xff] }
 0xb35   : > { %5581 = vmatmul.mubr.bf16.vlgmr.msra.gmra.mxu1 %v3019_v56  ;;  %v6007_v56 = vld [vmem:[%s6624_s24 + $0x24] ss:$8 sps:$4 sm:$0xff]  }
 0xb36   : > { %5585 = vmatpush3.bf16.xpose.msra.mxu1 %v3025_v6  ;;  %5586 = vmatprep.mubr.msk.bf16.mxu1 %vm6397_vm0, %v6396_v10  ;;  %v6005_v6 = vld [vmem:[%s6624_s24 + $0x20] ss:$8 sps:$4 sm:$0xff]  }
 0xb37   : > { %5590 = vmatprep.subr.bf16.mxu1 %v6396_v10  ;;  %3655 = vmatpush1.bf16.msra.mxu0 %v5999_v52  ;;  %v3487_v52 = vrot.slane %v7280_v51, %v6852_v50 }
 0xb38   : > { %3656 = vmatprep.subr.bf16.mxu0 %v6004_v26 }
 0xb3b   : > { %3657 = vmatpush1.bf16.msra.mxu0 %v6002_v55 }
 0xb3c   : > { %3658 = vmatprep.subr.bf16.mxu0 %v6007_v56 }
 0xb3d   : > { %5587 = vmatmul.mubr.bf16.vlgmr.msra.gmra.mxu1 %v3021_v58  ;;  %v6011_v58 = vld [vmem:[%s6624_s24] ss:$8 sps:$4 sm:$0xff]  }
 0xb3e   : > { %5591 = vmatpush3.bf16.msra.mxu1 %v3358_v59  ;;  %5592 = vmatprep.mubr.msk.bf16.mxu1 %vm6397_vm0, %v6396_v10  ;;  %v6016_v59 = vld [vmem:[%s6624_s24 + $0xf4] ss:$8 sps:$4 sm:$0xff]  }
 0xb3f   : > { %5596 = vmatprep.subr.bf16.mxu1 %v6396_v10  ;;  %3659 = vmatpush1.bf16.msra.mxu0 %v6005_v6 }
 0xb40   : > { %3660 = vmatprep.subr.bf16.mxu0 %v6010_v25 }
 0xb43   : > { %3661 = vmatpush1.bf16.msra.mxu0 %v6008_v57 }
 0xb44   : > { %3662 = vmatprep.subr.bf16.mxu0 %v6013_v34 }
 0xb47   : > { %3663 = vmatpush1.bf16.msra.mxu0 %v6011_v58 }
 0xb48   : > { %3664 = vmatprep.subr.bf16.mxu0 %v6016_v59 }
 0xbe5   : > { %v7212_v16 = vpop.f32.mrf.mxu1 }
 0xbe7   : > { %v5570_v43 = vpop.f32.mrf.mxu1 }
 0xbe8   : > { %v6014_v43 = vld [vmem:[%s6624_s24 + $0xf0] ss:$8 sps:$4 sm:$0xff]  }
 0xbe9   : > { %v3195_v33 = vpop.f32.mrf.mxu1  ;;  %3665 = vmatpush2.bf16.msra.mxu0 %v6014_v43  ;;  %v6040_v43 = vld [vmem:[%s6650_s8 + $0xe4] ss:$16 sps:$4 sm:$0xff]  }
 0xbea   : > { %v6019_v33 = vld [vmem:[%s6624_s24 + $0xe4] ss:$8 sps:$4 sm:$0xff]  }
 0xbeb   : > { %v5571_v61 = vpop.f32.mrf.mxu1  ;;  %3666 = vmatprep.subr.bf16.mxu0 %v6019_v33  ;;  %v6041_v33 = vld [vmem:[%s6650_s8 + $0xe8] ss:$16 sps:$4 sm:$0xff]  }
 0xbec   : > { %v6017_v61 = vld [vmem:[%s6624_s24 + $0xe0] ss:$8 sps:$4 sm:$0xff]  }
 0xbed   : > { %v7214_v62 = vpop.f32.mrf.mxu1  ;;  %3667 = vmatpush2.bf16.msra.mxu0 %v6017_v61  ;;  %v6043_v61 = vld [vmem:[%s6650_s8 + $0xec] ss:$16 sps:$4 sm:$0xff]  }
 0xbee   : > { %v3446_v35 = vpack.c.bf16 %v7214_v62, %v7212_v16 }
 0xbef   : > { %v5576_v63 = vpop.f32.mrf.mxu1 }
 0xbf0   : > { %v6022_v63 = vld [vmem:[%s6624_s24 + $0xd4] ss:$8 sps:$4 sm:$0xff]  }
 0xbf1   : > { %v3241_v0 = vpop.f32.mrf.mxu1  ;;  %3668 = vmatprep.subr.bf16.mxu0 %v6022_v63  ;;  %v6046_v63 = vld [vmem:[%s6650_s8 + $0xc4] ss:$16 sps:$4 sm:$0xff]  }
 0xbf2   : > { %v6020_v0 = vld [vmem:[%s6624_s24 + $0xd0] ss:$8 sps:$4 sm:$0xff]  }
 0xbf3   : > { %v5577_v2 = vpop.f32.mrf.mxu1  ;;  %3669 = vmatpush2.bf16.msra.mxu0 %v6020_v0  ;;  %v6047_v0 = vld [vmem:[%s6650_s8 + $0xc8] ss:$16 sps:$4 sm:$0xff]  }
 0xbf4   : > { %v6025_v2 = vld [vmem:[%s6624_s24 + $0xc4] ss:$8 sps:$4 sm:$0xff]  }
 0xbf5   : > { %v3278_v3 = vpop.f32.mrf.mxu1  ;;  %3670 = vmatprep.subr.bf16.mxu0 %v6025_v2  ;;  %v6052_v2 = vld [vmem:[%s6650_s8 + $0xa4] ss:$16 sps:$4 sm:$0xff]  }
 0xbf6   : > { %v3324_v7 = vmul.f32 0.088388346, %v3278_v3  ;;  %v6023_v3 = vld [vmem:[%s6624_s24 + $0xc0] ss:$8 sps:$4 sm:$0xff]  }
 0xbf7   : > { %v5582_v9 = vpop.f32.mrf.mxu1  ;;  %3671 = vmatpush2.bf16.msra.mxu0 %v6023_v3  ;;  %v6055_v3 = vld [vmem:[%s6650_s8 + $0xac] ss:$16 sps:$4 sm:$0xff]  }
 0xbf8   : > { %v3326_v17 = vadd.f32 %v3324_v7, %v7171_v54  ;;  %v6028_v7 = vld [vmem:[%s6624_s24 + $0xb4] ss:$8 sps:$4 sm:$0xff]   ;;  %v6026_v9 = vld [vmem:[%s6624_s24 + $0xb0] ss:$8 sps:$4 sm:$0xff]  }
 0xbf9   : > { %v3281_v18 = vpop.f32.mrf.mxu1  ;;  %3672 = vmatprep.subr.bf16.mxu0 %v6028_v7  ;;  %v6050_v7 = vld [vmem:[%s6650_s8 + $0xa0] ss:$16 sps:$4 sm:$0xff]  }
 0xbfa   : > { %v3328_v19 = vsel %vm1617_vm7, %v3326_v17, -inf }
 0xbfb   : > { %3329 = vmax.xlane.f32.xlu0 %v3328_v19  ;;  %v5583_v21 = vpop.f32.mrf.mxu1  ;;  %3673 = vmatpush2.bf16.msra.mxu0 %v6026_v9  ;;  %v6053_v9 = vld [vmem:[%s6650_s8 + $0xa8] ss:$16 sps:$4 sm:$0xff]  }
 0xbfd   : > { %v3318_v24 = vpop.f32.mrf.mxu1 }
 0xbfe   : > { %v3325_v36 = vmul.f32 0.088388346, %v3318_v24  ;;  %v3016_v24 = vadd.f32 %v7168_v53, %v7200_v20 }
 0xbff   : > { %v5588_v11 = vpop.f32.mrf.mxu1 }
 0xc00   : > { %v3327_v30 = vadd.f32 %v3325_v36, %v7177_v4  ;;  %v3029_v11 = vpack.c.bf16 %v3016_v24, %v3016_v24  ;;  %v6064_v24 = vld [vmem:[%s6650_s8 + $0x64] ss:$16 sps:$4 sm:$0xff]  }
 0xc01   : > { %v3321_v31 = vpop.f32.mrf.mxu1 }
 0xc02   : > { %v3331_v32 = vsel %vm1617_vm7, %v3327_v30, -inf }
 0xc03   : > { %3332 = vmax.xlane.f32.xlu1 %v3331_v32  ;;  %v5589_v29 = vpop.f32.mrf.mxu1  ;;  %v3404_v32 = vsel %vm1647_vm10, %v3029_v11, 0  ;;  %v6062_v11 = vld [vmem:[%s6650_s8 + $0x60] ss:$16 sps:$4 sm:$0xff]  }
 0xc84   : > { %v3330_v38 = vpop.xlane.xlu0 %3329 }
 0xc85   : > { %v3334_v54 = vsub.f32 %v3326_v17, %v3330_v38  ;;  %v6031_v38 = vld [vmem:[%s6624_s24 + $0xa4] ss:$8 sps:$4 sm:$0xff]  }
 0xc86   : > { %3674 = vmatprep.subr.bf16.mxu0 %v6031_v38  ;;  %v6079_v38 = vld [vmem:[%s6650_s8 + $0x2c] ss:$16 sps:$4 sm:$0xff]  }
 0xc87   : > { %v3336_v28 = vmul.f32 1.442695, %v3334_v54  ;;  %v6029_v54 = vld [vmem:[%s6624_s24 + $0xa0] ss:$8 sps:$4 sm:$0xff]  }
 0xc88   : > { %3675 = vmatpush2.bf16.msra.mxu0 %v6029_v54  ;;  %v6074_v54 = vld [vmem:[%s6650_s8 + $0x20] ss:$16 sps:$4 sm:$0xff]  }
 0xc89   : > { %6258 = vpow2.f32 %v3336_v28  ;;  %v6034_v28 = vld [vmem:[%s6624_s24 + $0x94] ss:$8 sps:$4 sm:$0xff]  }
 0xc8a   : > { %3676 = vmatprep.subr.bf16.mxu0 %v6034_v28  ;;  %v6077_v28 = vld [vmem:[%s6650_s8 + $0x28] ss:$16 sps:$4 sm:$0xff]  }
 0xc8c   : > { %v3333_v60 = vpop.xlane.xlu1 %3332 }
 0xc8d   : > { %v3335_v37 = vsub.f32 %v3327_v30, %v3333_v60  ;;  %v6032_v60 = vld [vmem:[%s6624_s24 + $0x90] ss:$8 sps:$4 sm:$0xff]  }
 0xc8e   : > { %3677 = vmatpush2.bf16.msra.mxu0 %v6032_v60  ;;  %v6082_v60 = vld [vmem:[%s6650_s8 + $0x4] ss:$16 sps:$4 sm:$0xff]  }
 0xc8f   : > { %v3338_v14 = vmul.f32 1.442695, %v3335_v37  ;;  %v6037_v37 = vld [vmem:[%s6624_s24 + $0x84] ss:$8 sps:$4 sm:$0xff]  }
 0xc90   : > { %3678 = vmatprep.subr.bf16.mxu0 %v6037_v37  ;;  %v6085_v37 = vld [vmem:[%s6650_s8 + $0xc] ss:$16 sps:$4 sm:$0xff]  }
 0xc91   : > { %6260 = vpow2.f32 %v3338_v14  ;;  %v6035_v14 = vld [vmem:[%s6624_s24 + $0x80] ss:$8 sps:$4 sm:$0xff]  }
 0xc92   : > { %3679 = vmatpush2.bf16.msra.mxu0 %v6035_v14  ;;  %v6080_v14 = vld [vmem:[%s6650_s8] ss:$16 sps:$4 sm:$0xff]  }
 0xc93   : > { %4206 = vmatprep.subr.bf16.mxu0 %v6043_v61  ;;  %v6104_v61 = vld [vmem:[%s6650_s8 + $0x180] ss:$16 sps:$4 sm:$0xff]  }
 0xc96   : > { %v7222_v4 = vpop.eup %6258 }
 0xc97   : > { %v3340_v5 = vsel %vm1617_vm7, %v7222_v4, 0.0 }
 0xc98   : > { %3341 = vadd.xlane.f32.xlu0 %v3340_v5 }
 0xc9e   : > { %v7226_v42 = vpop.eup %6260 }
 0xc9f   : > { %v3343_v22 = vsel %vm1617_vm7, %v7226_v42, 0.0 }
 0xca0   : > { %3344 = vadd.xlane.f32.xlu1 %v3343_v22 }
 0xd21   : > { %v3342_v17 = vpop.xlane.xlu0 %3341 }
 0xd22   : > { %v3346_v18 = vmax.f32 %v3342_v17, 1e-20  ;;  %v6058_v17 = vld [vmem:[%s6650_s8 + $0x84] ss:$16 sps:$4 sm:$0xff]  }
 0xd24   : > { %6262 = vrcp.f32 %v3346_v18  ;;  %v6061_v18 = vld [vmem:[%s6650_s8 + $0x8c] ss:$16 sps:$4 sm:$0xff]  }
 0xd29   : > { %v3345_v19 = vpop.xlane.xlu1 %3344 }
 0xd2a   : > { %v3347_v21 = vmax.f32 %v3345_v19, 1e-20  ;;  %v6056_v19 = vld [vmem:[%s6650_s8 + $0x80] ss:$16 sps:$4 sm:$0xff]  }
 0xd2c   : > { %6264 = vrcp.f32 %v3347_v21  ;;  %v6059_v21 = vld [vmem:[%s6650_s8 + $0x88] ss:$16 sps:$4 sm:$0xff]  }
 0xd31   : > { %v6263_v36 = vpop.eup %6262 }
 0xd32   : > { %v3350_v30 = vmul.f32 %v6263_v36, %v7222_v4  ;;  %v6067_v36 = vld [vmem:[%s6650_s8 + $0x6c] ss:$16 sps:$4 sm:$0xff]  }
 0xd34   : > { %v3352_v31 = vpack.c.bf16 %v3350_v30, %v3350_v30  ;;  %v6065_v30 = vld [vmem:[%s6650_s8 + $0x68] ss:$16 sps:$4 sm:$0xff]  }
 0xd36   : > { %5593 = vmatmul.mubr.msk.bf16.vlgmr.msra.gmra.mxu1 %vm1617_vm7, %v3352_v31  ;;  %v6070_v31 = vld [vmem:[%s6650_s8 + $0x44] ss:$16 sps:$4 sm:$0xff]  }
 0xd37   : > { %5597 = vmatpush3.bf16.msra.mxu1 %v3404_v32  ;;  %5598 = vmatprep.mubr.msk.bf16.mxu1 %vm6397_vm0, %v6396_v10  ;;  %v6073_v32 = vld [vmem:[%s6650_s8 + $0x4c] ss:$16 sps:$4 sm:$0xff]  }
 0xd38   : > { %4163 = vmatprep.subr.bf16.mxu1 %v6040_v43  ;;  %v6101_v43 = vld [vmem:[%s6650_s8 + $0x1a8] ss:$16 sps:$4 sm:$0xff]  }
 0xd39   : > { %v6265_v29 = vpop.eup %6264 }
 0xd3a   : > { %v3351_v53 = vmul.f32 %v6265_v29, %v7226_v42  ;;  %v6068_v29 = vld [vmem:[%s6650_s8 + $0x40] ss:$16 sps:$4 sm:$0xff]  }
 0xd3c   : > { %v3353_v20 = vpack.c.bf16 %v3351_v53, %v3351_v53  ;;  %v6071_v53 = vld [vmem:[%s6650_s8 + $0x48] ss:$16 sps:$4 sm:$0xff]  }
 0xd3e   : > { %5599 = vmatmul.mubr.msk.bf16.vlgmr.msra.gmra.mxu1 %vm1617_vm7, %v3353_v20  ;;  %v6076_v20 = vld [vmem:[%s6650_s8 + $0x24] ss:$16 sps:$4 sm:$0xff]  }
 0xdf6   : > { %v3394_v10 = vpop.f32.mrf.mxu1 }
 0xdf8   : > { %v5594_v4 = vpop.f32.mrf.mxu1 }
 0xdf9   : > { %v6088_v4 = vld [vmem:[%s6650_s8 + $0x1e4] ss:$16 sps:$4 sm:$0xff]  }
 0xdfa   : > { %v3397_v5 = vpop.f32.mrf.mxu1 }
 0xdfb   : > { %v6091_v5 = vld [vmem:[%s6650_s8 + $0x1ec] ss:$16 sps:$4 sm:$0xff]  }
 0xdfc   : > { %v5595_v42 = vpop.f32.mrf.mxu1 }
 0xdfd   : > { %v6086_v42 = vld [vmem:[%s6650_s8 + $0x1e0] ss:$16 sps:$4 sm:$0xff]  }
 0xdfe   : > { %v3440_v22 = vpop.f32.mrf.mxu1 }
 0xdff   : > { %v3447_v44 = vpack.c.bf16 %v3440_v22, %v3394_v10  ;;  %v6083_v10 = vld [vmem:[%s6650_s8 + $0x8] ss:$16 sps:$4 sm:$0xff]  }
 0xe00   : > { %v5600_v45 = vpop.f32.mrf.mxu1  ;;  %v6089_v22 = vld [vmem:[%s6650_s8 + $0x1e8] ss:$16 sps:$4 sm:$0xff]  }
 0xe01   : > { %3680 = vmatprep.mubr.bf16.mxu0 %v3447_v44 }
 0xe02   : > { %v3443_v46 = vpop.f32.mrf.mxu1  ;;  %3681 = vmatmul.mubr.bf16.vlgmr.msra.gmra.mxu0 %v3446_v35 }
 0xe03   : > { %4207 = vmatpush1.bf16.msra.mxu0 %v6041_v33  ;;  %v6106_v33 = vld [vmem:[%s6650_s8 + $0x184] ss:$16 sps:$4 sm:$0xff]  }
 0xe04   : > { %v5601_v48 = vpop.f32.mrf.mxu1 }
 0xec2   : > { %v3682_v26 = vpop.f32.mrf.mxu0 }
 0xec3   : > { %v3683_v55 = vadd.f32 %v3682_v26, %v3483_v49 }
 0xec4   : > { %v3684_v56 = vpop.f32.mrf.mxu0 }
 0xec5   : > { %v3685_v6 = vadd.f32 %v3684_v56, %v3487_v52  ;;  %v7285_v62 = vadd.f32 %v3683_v55, %v7094_v27  ;;  %v6038_v27 = vld [vmem:[%s6650_s8 + $0xe0] ss:$16 sps:$4 sm:$0xff]  }
 0xec6   : > { %v3686_v16 = vpop.f32.mrf.mxu0  ;;  %4164 = vmatpush1.bf16.msra.mxu1 %v6038_v27  ;;  %v6098_v27 = vld [vmem:[%s6650_s8 + $0x1a0] ss:$16 sps:$4 sm:$0xff]  }
 0xec7   : > { %v7288_v35 = vadd.f32 %v3685_v6, %v7090_v39  ;;  %v3687_v25 = vadd.f32 %v3686_v16, %v3483_v49  ;;  %4165 = vmatprep.subr.bf16.mxu1 %v6046_v63  ;;  %v6107_v63 = vld [vmem:[%s6650_s8 + $0x188] ss:$16 sps:$4 sm:$0xff]  }
 0xec8   : > { %v3688_v57 = vpop.f32.mrf.mxu0 }
 0xec9   : > { %v3689_v50 = vadd.f32 %v3688_v57, %v3487_v52  ;;  %v3699_v34 = vadd.f32 %v7288_v35, %v7285_v62  ;;  %v7293_v58 = vadd.f32 %v3687_v25, %v7096_v41  ;;  %v6049_v41 = vld [vmem:[%s6650_s8 + $0xcc] ss:$16 sps:$4 sm:$0xff]   ;;  %v6094_v57 = vld [vmem:[%s6650_s8 + $0x1c4] ss:$16 sps:$4 sm:$0xff]  }
 0xeca   : > { %4208 = vmatprep.subr.bf16.mxu0 %v6049_v41  ;;  %v6109_v41 = vld [vmem:[%s6650_s8 + $0x18c] ss:$16 sps:$4 sm:$0xff]  }
 0xecb   : > { %v7296_v59 = vadd.f32 %v3689_v50, %v7092_v40  ;;  %3700 = vadd.xlane.f32.xlu0 %v3699_v34  ;;  %v6044_v40 = vld [vmem:[%s6650_s8 + $0xc0] ss:$16 sps:$4 sm:$0xff]   ;;  %4209 = vmatpush1.bf16.msra.mxu0 %v6047_v0  ;;  %v6097_v50 = vld [vmem:[%s6650_s8 + $0x1cc] ss:$16 sps:$4 sm:$0xff]  }
 0xecc   : > { %4166 = vmatpush1.bf16.msra.mxu1 %v6044_v40  ;;  %4210 = vmatprep.subr.bf16.mxu0 %v6055_v3  ;;  %v6092_v34 = vld [vmem:[%s6650_s8 + $0x1c0] ss:$16 sps:$4 sm:$0xff]   ;;  %v6112_v40 = vld [vmem:[%s6650_s8 + $0x164] ss:$16 sps:$4 sm:$0xff]   ;;  %v6115_v0 = vld [vmem:[%s6650_s8 + $0x16c] ss:$16 sps:$4 sm:$0xff]  }
 0xecd   : > { %v3702_v39 = vadd.f32 %v7296_v59, %v7293_v58  ;;  %4167 = vmatprep.subr.bf16.mxu1 %v6052_v2  ;;  %v6110_v2 = vld [vmem:[%s6650_s8 + $0x160] ss:$16 sps:$4 sm:$0xff]   ;;  %v6113_v3 = vld [vmem:[%s6650_s8 + $0x168] ss:$16 sps:$4 sm:$0xff]  }
 0xecf   : > { %3703 = vadd.xlane.f32.xlu1 %v3702_v39  ;;  %4211 = vmatpush1.bf16.msra.mxu0 %v6053_v9  ;;  %v6103_v39 = vld [vmem:[%s6650_s8 + $0x1ac] ss:$16 sps:$4 sm:$0xff]  }
 0xed0   : > { %4168 = vmatpush1.bf16.msra.mxu1 %v6050_v7  ;;  %4212 = vmatprep.subr.bf16.mxu0 %v6061_v18  ;;  %v6118_v7 = vld [vmem:[%s6650_s8 + $0x144] ss:$16 sps:$4 sm:$0xff]   ;;  %v6121_v9 = vld [vmem:[%s6650_s8 + $0x14c] ss:$16 sps:$4 sm:$0xff]   ;;  %v6119_v18 = vld [vmem:[%s6650_s8 + $0x148] ss:$16 sps:$4 sm:$0xff]  }
 0xed1   : > { %4169 = vmatprep.subr.bf16.mxu1 %v6058_v17  ;;  %v6116_v17 = vld [vmem:[%s6650_s8 + $0x140] ss:$16 sps:$4 sm:$0xff]  }
 0xed3   : > { %4213 = vmatpush1.bf16.msra.mxu0 %v6059_v21  ;;  %v6127_v21 = vld [vmem:[%s6650_s8 + $0x12c] ss:$16 sps:$4 sm:$0xff]  }
 0xed4   : > { %4170 = vmatpush1.bf16.msra.mxu1 %v6056_v19  ;;  %4214 = vmatprep.subr.bf16.mxu0 %v6067_v36  ;;  %v6124_v19 = vld [vmem:[%s6650_s8 + $0x124] ss:$16 sps:$4 sm:$0xff]   ;;  %v6125_v36 = vld [vmem:[%s6650_s8 + $0x128] ss:$16 sps:$4 sm:$0xff]  }
 0xed5   : > { %4171 = vmatprep.subr.bf16.mxu1 %v6064_v24  ;;  %v6122_v24 = vld [vmem:[%s6650_s8 + $0x120] ss:$16 sps:$4 sm:$0xff]  }
 0xed7   : > { %4215 = vmatpush1.bf16.msra.mxu0 %v6065_v30  ;;  %v6133_v30 = vld [vmem:[%s6650_s8 + $0x10c] ss:$16 sps:$4 sm:$0xff]  }
 0xed8   : > { %4172 = vmatpush1.bf16.msra.mxu1 %v6062_v11  ;;  %4216 = vmatprep.subr.bf16.mxu0 %v6073_v32  ;;  %v6130_v11 = vld [vmem:[%s6650_s8 + $0x104] ss:$16 sps:$4 sm:$0xff]   ;;  %v6131_v32 = vld [vmem:[%s6650_s8 + $0x108] ss:$16 sps:$4 sm:$0xff]  }
 0xed9   : > { %4173 = vmatprep.subr.bf16.mxu1 %v6070_v31  ;;  %v6128_v31 = vld [vmem:[%s6650_s8 + $0x100] ss:$16 sps:$4 sm:$0xff]  }
 0xedb   : > { %4217 = vmatpush1.bf16.msra.mxu0 %v6071_v53  ;;  %v6139_v53 = vld [vmem:[%s6655_s29 + $0x174] ss:$8 sps:$4 sm:$0xff]  }
 0xedc   : > { %4174 = vmatpush1.bf16.msra.mxu1 %v6068_v29  ;;  %4218 = vmatprep.subr.bf16.mxu0 %v6079_v38  ;;  %v6136_v29 = vld [vmem:[%s6655_s29 + $0x74] ss:$8 sps:$4 sm:$0xff]  }
 0xedd   : > { %4175 = vmatprep.subr.bf16.mxu1 %v6076_v20 }
 0xedf   : > { %4219 = vmatpush1.bf16.msra.mxu0 %v6077_v28 }
 0xee0   : > { %4176 = vmatpush1.bf16.msra.mxu1 %v6074_v54  ;;  %4220 = vmatprep.subr.bf16.mxu0 %v6085_v37 }
 0xee1   : > { %4177 = vmatprep.subr.bf16.mxu1 %v6082_v60 }
 0xee3   : > { %4221 = vmatpush1.bf16.msra.mxu0 %v6083_v10  ;;  %v3745_v10 = vsub.s32 6, %v6762_v12 }
 0xee4   : > { %4178 = vmatpush1.bf16.msra.mxu1 %v6080_v14  ;;  %4222 = vmatprep.subr.bf16.mxu0 %v6091_v5 }
 0xee5   : > { %4179 = vmatprep.subr.bf16.mxu1 %v6088_v4  ;;  %v3734_v4 = vrot.slane %v7275_v47, %v6875_v23 }
 0xee7   : > { %4223 = vmatpush2.bf16.msra.mxu0 %v6089_v22 }
 0xee8   : > { %4180 = vmatpush2.bf16.msra.mxu1 %v6086_v42  ;;  %4224 = vmatprep.subr.bf16.mxu0 %v6097_v50  ;;  %v3738_v42 = vrot.slane %v7280_v51, %v6875_v23  ;;  %v6137_v50 = vld [vmem:[%s6655_s29 + $0x170] ss:$8 sps:$4 sm:$0xff]  }
 0xee9   : > { %4181 = vmatprep.subr.bf16.mxu1 %v6094_v57 }
 0xeec   : > { %4182 = vmatpush2.bf16.msra.mxu1 %v6092_v34  ;;  %v6142_v34 = vld [vmem:[%s6655_s29 + $0x64] ss:$8 sps:$4 sm:$0xff]  }
 0xf54   : > { %v3701_v44 = vpop.xlane.xlu0 %3700 }
 0xf55   : > { %v3705_v45 = vmul.f32 0.00390625, %v3701_v44 }
 0xf57   : > { %v7337_v46 = vsub.f32 %v7285_v62, %v3705_v45  ;;  %v7340_v48 = vsub.f32 %v7288_v35, %v3705_v45  ;;  %v3750_v45 = vrot.slane %v7280_v51, %v3745_v10 }
 0xf58   : > { %v3704_v49 = vpop.xlane.xlu1 %3703 }
 0xf59   : > { %v3706_v52 = vmul.f32 0.00390625, %v3704_v49  ;;  %v3711_v26 = vmul.f32 %v7337_v46, %v7337_v46  ;;  %v3712_v55 = vmul.f32 %v7340_v48, %v7340_v48  ;;  %v3746_v49 = vrot.slane %v7275_v47, %v3745_v10  ;;  %v6191_v10 = vld [vmem:[%s6655_s29 + $0x1e0] ss:$8 sps:$4 sm:$0xff]  }
 0xf5b   : > { %v7347_v56 = vsub.f32 %v7293_v58, %v3706_v52  ;;  %v7350_v6 = vsub.f32 %v7296_v59, %v3706_v52  ;;  %v3715_v16 = vadd.f32 %v3712_v55, %v3711_v26  ;;  %v6095_v58 = vld [vmem:[%s6650_s8 + $0x1c8] ss:$16 sps:$4 sm:$0xff]   ;;  %v6100_v59 = vld [vmem:[%s6650_s8 + $0x1a4] ss:$16 sps:$4 sm:$0xff]  }
 0xf5c   : > { %4225 = vmatpush2.bf16.msra.mxu0 %v6095_v58  ;;  %4183 = vmatprep.subr.bf16.mxu1 %v6100_v59  ;;  %v6145_v58 = vld [vmem:[%s6655_s29 + $0x164] ss:$8 sps:$4 sm:$0xff]   ;;  %v6140_v59 = vld [vmem:[%s6655_s29 + $0x60] ss:$8 sps:$4 sm:$0xff]  }
 0xf5d   : > { %3716 = vadd.xlane.f32.xlu0 %v3715_v16  ;;  %v3713_v62 = vmul.f32 %v7347_v56, %v7347_v56  ;;  %v3714_v35 = vmul.f32 %v7350_v6, %v7350_v6  ;;  %4226 = vmatprep.subr.bf16.mxu0 %v6103_v39  ;;  %v6143_v39 = vld [vmem:[%s6655_s29 + $0x160] ss:$8 sps:$4 sm:$0xff]  }
 0xf5e   : > { %4184 = vmatpush2.bf16.msra.mxu1 %v6098_v27  ;;  %v6148_v27 = vld [vmem:[%s6655_s29 + $0x54] ss:$8 sps:$4 sm:$0xff]  }
 0xf5f   : > { %v3718_v25 = vadd.f32 %v3714_v35, %v3713_v62  ;;  %4185 = vmatprep.subr.bf16.mxu1 %v6106_v33  ;;  %v6146_v33 = vld [vmem:[%s6655_s29 + $0x50] ss:$8 sps:$4 sm:$0xff]  }
 0xf60   : > { %4227 = vmatpush2.bf16.msra.mxu0 %v6101_v43  ;;  %v6151_v43 = vld [vmem:[%s6655_s29 + $0x154] ss:$8 sps:$4 sm:$0xff]  }
 0xf61   : > { %3719 = vadd.xlane.f32.xlu1 %v3718_v25  ;;  %4228 = vmatprep.subr.bf16.mxu0 %v6109_v41  ;;  %v6157_v41 = vld [vmem:[%s6655_s29 + $0x144] ss:$8 sps:$4 sm:$0xff]  }
 0xf62   : > { %4186 = vmatpush2.bf16.msra.mxu1 %v6104_v61  ;;  %v6149_v61 = vld [vmem:[%s6655_s29 + $0x150] ss:$8 sps:$4 sm:$0xff]  }
 0xf63   : > { %4187 = vmatprep.subr.bf16.mxu1 %v6112_v40  ;;  %v6152_v40 = vld [vmem:[%s6655_s29 + $0x40] ss:$8 sps:$4 sm:$0xff]  }
 0xf64   : > { %4229 = vmatpush2.bf16.msra.mxu0 %v6107_v63  ;;  %v6154_v63 = vld [vmem:[%s6655_s29 + $0x44] ss:$8 sps:$4 sm:$0xff]  }
 0xf65   : > { %4230 = vmatprep.subr.bf16.mxu0 %v6115_v0  ;;  %v6155_v0 = vld [vmem:[%s6655_s29 + $0x140] ss:$8 sps:$4 sm:$0xff]  }
 0xf66   : > { %4188 = vmatpush2.bf16.msra.mxu1 %v6110_v2  ;;  %v6160_v2 = vld [vmem:[%s6655_s29 + $0x34] ss:$8 sps:$4 sm:$0xff]  }
 0xf67   : > { %4189 = vmatprep.subr.bf16.mxu1 %v6118_v7  ;;  %v6158_v7 = vld [vmem:[%s6655_s29 + $0x30] ss:$8 sps:$4 sm:$0xff]  }
 0xf68   : > { %4231 = vmatpush2.bf16.msra.mxu0 %v6113_v3  ;;  %v6163_v3 = vld [vmem:[%s6655_s29 + $0x134] ss:$8 sps:$4 sm:$0xff]  }
 0xf69   : > { %4232 = vmatprep.subr.bf16.mxu0 %v6121_v9  ;;  %v6161_v9 = vld [vmem:[%s6655_s29 + $0x130] ss:$8 sps:$4 sm:$0xff]  }
 0xf6a   : > { %4190 = vmatpush2.bf16.msra.mxu1 %v6116_v17  ;;  %v6166_v17 = vld [vmem:[%s6655_s29 + $0x24] ss:$8 sps:$4 sm:$0xff]  }
 0xf6b   : > { %4191 = vmatprep.subr.bf16.mxu1 %v6124_v19  ;;  %v6164_v19 = vld [vmem:[%s6655_s29 + $0x20] ss:$8 sps:$4 sm:$0xff]  }
 0xf6c   : > { %4233 = vmatpush2.bf16.msra.mxu0 %v6119_v18  ;;  %v6169_v18 = vld [vmem:[%s6655_s29 + $0x124] ss:$8 sps:$4 sm:$0xff]  }
 0xf6d   : > { %4234 = vmatprep.subr.bf16.mxu0 %v6127_v21  ;;  %v6167_v21 = vld [vmem:[%s6655_s29 + $0x120] ss:$8 sps:$4 sm:$0xff]  }
 0xf6e   : > { %4192 = vmatpush2.bf16.msra.mxu1 %v6122_v24  ;;  %v6172_v24 = vld [vmem:[%s6655_s29 + $0x14] ss:$8 sps:$4 sm:$0xff]  }
 0xf6f   : > { %4193 = vmatprep.subr.bf16.mxu1 %v6130_v11  ;;  %v6170_v11 = vld [vmem:[%s6655_s29 + $0x10] ss:$8 sps:$4 sm:$0xff]  }
 0xf70   : > { %4235 = vmatpush2.bf16.msra.mxu0 %v6125_v36  ;;  %v6175_v36 = vld [vmem:[%s6655_s29 + $0x114] ss:$8 sps:$4 sm:$0xff]  }
 0xf71   : > { %4236 = vmatprep.subr.bf16.mxu0 %v6133_v30  ;;  %v6173_v30 = vld [vmem:[%s6655_s29 + $0x110] ss:$8 sps:$4 sm:$0xff]  }
 0xf72   : > { %4194 = vmatpush2.bf16.msra.mxu1 %v6128_v31  ;;  %v6178_v31 = vld [vmem:[%s6655_s29 + $0x4] ss:$8 sps:$4 sm:$0xff]  }
 0xf73   : > { %4717 = vmatprep.subr.bf16.mxu1 %v6136_v29  ;;  %v6176_v29 = vld [vmem:[%s6655_s29] ss:$8 sps:$4 sm:$0xff]  }
 0xf74   : > { %4237 = vmatpush2.bf16.msra.mxu0 %v6131_v32  ;;  %v6181_v32 = vld [vmem:[%s6655_s29 + $0x104] ss:$8 sps:$4 sm:$0xff]  }
 0xf75   : > { %4760 = vmatprep.subr.bf16.mxu0 %v6139_v53  ;;  %v6179_v53 = vld [vmem:[%s6655_s29 + $0x100] ss:$8 sps:$4 sm:$0xff]  }
 0xfe6   : > { %v3717_v20 = vpop.xlane.xlu0 %3716 }
 0xfe7   : > { %v3721_v38 = vmul.f32 0.00390625, %v3717_v20  ;;  %v6184_v20 = vld [vmem:[%s6655_s29 + $0xf4] ss:$8 sps:$4 sm:$0xff]  }
 0xfe9   : > { %v3723_v54 = vadd.f32 1e-05, %v3721_v38  ;;  %v6187_v38 = vld [vmem:[%s6655_s29 + $0x1f4] ss:$8 sps:$4 sm:$0xff]  }
 0xfea   : > { %v3720_v28 = vpop.xlane.xlu1 %3719 }
 0xfeb   : > { %6266 = vrsqrt.f32 %v3723_v54  ;;  %v3722_v60 = vmul.f32 0.00390625, %v3720_v28  ;;  %v6182_v54 = vld [vmem:[%s6655_s29 + $0xf0] ss:$8 sps:$4 sm:$0xff]  }
 0xfec   : > { %v6185_v28 = vld [vmem:[%s6655_s29 + $0x1f0] ss:$8 sps:$4 sm:$0xff]  }
 0xfed   : > { %v3724_v37 = vadd.f32 1e-05, %v3722_v60  ;;  %v6190_v60 = vld [vmem:[%s6655_s29 + $0xe4] ss:$8 sps:$4 sm:$0xff]  }
 0xfef   : > { %6268 = vrsqrt.f32 %v3724_v37  ;;  %v6193_v37 = vld [vmem:[%s6655_s29 + $0x1e4] ss:$8 sps:$4 sm:$0xff]  }
 0xff8   : > { %v6267_v14 = vpop.eup %6266 }
 0xff9   : > { %v3728_v5 = vmul.f32 %v6267_v14, %v7340_v48  ;;  %v3727_v22 = vmul.f32 %v6267_v14, %v7337_v46  ;;  %v6188_v14 = vld [vmem:[%s6655_s29 + $0xe0] ss:$8 sps:$4 sm:$0xff]  }
 0xffb   : > { %v3740_v26 = vmul.f32 %v3738_v42, %v3728_v5  ;;  %v3739_v48 = vmul.f32 %v3734_v4, %v3727_v22  ;;  %v6199_v5 = vld [vmem:[%s6655_s29 + $0x1d4] ss:$8 sps:$4 sm:$0xff]   ;;  %v6197_v22 = vld [vmem:[%s6655_s29 + $0x1d0] ss:$8 sps:$4 sm:$0xff]  }
 0xffc   : > { %v6269_v44 = vpop.eup %6268 }
 0xffd   : > { %v3730_v52 = vmul.f32 %v6269_v44, %v7350_v6  ;;  %v3729_v55 = vmul.f32 %v6269_v44, %v7347_v56  ;;  %v7397_v23 = vadd.f32 %v3750_v45, %v3740_v26  ;;  %v7401_v35 = vadd.f32 %v3746_v49, %v3739_v48  ;;  %v6134_v6 = vld [vmem:[%s6655_s29 + $0x70] ss:$8 sps:$4 sm:$0xff]   ;;  %v6202_v44 = vld [vmem:[%s6655_s29 + $0xc4] ss:$8 sps:$4 sm:$0xff]   ;;  %v6208_v26 = vld [vmem:[%s6655_s29 + $0xb4] ss:$8 sps:$4 sm:$0xff]  }
 0xffe   : > { %v6206_v48 = vld [vmem:[%s6655_s29 + $0xb0] ss:$8 sps:$4 sm:$0xff]  }
 0xfff   : > { %v3742_v16 = vmul.f32 %v3738_v42, %v3730_v52  ;;  %v3741_v62 = vmul.f32 %v3734_v4, %v3729_v55  ;;  %v6196_v4 = vld [vmem:[%s6655_s29 + $0xd4] ss:$8 sps:$4 sm:$0xff]   ;;  %v6194_v42 = vld [vmem:[%s6655_s29 + $0xd0] ss:$8 sps:$4 sm:$0xff]   ;;  %v6203_v52 = vld [vmem:[%s6655_s29 + $0x1c0] ss:$8 sps:$4 sm:$0xff]  }
0x1000   : > { %v6211_v55 = vld [vmem:[%s6655_s29 + $0x1b4] ss:$8 sps:$4 sm:$0xff]  }
0x1001   : > { %v7399_v46 = vadd.f32 %v3750_v45, %v3742_v16  ;;  %v7403_v25 = vadd.f32 %v3746_v49, %v3741_v62  ;;  %v6205_v45 = vld [vmem:[%s6655_s29 + $0x1c4] ss:$8 sps:$4 sm:$0xff]   ;;  %v6200_v49 = vld [vmem:[%s6655_s29 + $0xc0] ss:$8 sps:$4 sm:$0xff]   ;;  %v6209_v16 = vld [vmem:[%s6655_s29 + $0x1b0] ss:$8 sps:$4 sm:$0xff]  }
0x1002   : > { %v6214_v62 = vld [vmem:[%s6655_s29 + $0xa4] ss:$8 sps:$4 sm:$0xff]  }
0x1003   : > { %v3756_v57 = vpack.c.bf16 %v7399_v46, %v7397_v23  ;;  %v3755_v56 = vpack.c.bf16 %v7403_v25, %v7401_v35 }
0x1005   : > { %4195 = vmatprep.mubr.bf16.mxu1 %v3756_v57  ;;  %4238 = vmatprep.mubr.bf16.mxu0 %v3756_v57  ;;  %v6217_v57 = vld [vmem:[%s6655_s29 + $0x1a4] ss:$8 sps:$4 sm:$0xff]  }
0x1006   : > { %4196 = vmatmul.mubr.bf16.vlgmr.msra.gmra.mxu1 %v3755_v56  ;;  %4239 = vmatmul.mubr.bf16.vlgmr.msra.gmra.mxu0 %v3755_v56  ;;  %v6212_v56 = vld [vmem:[%s6655_s29 + $0xa0] ss:$8 sps:$4 sm:$0xff]  }
0x1007   : > { %4718 = vmatpush1.bf16.msra.mxu1 %v6134_v6  ;;  %4761 = vmatpush1.bf16.msra.mxu0 %v6137_v50  ;;  %v6215_v6 = vld [vmem:[%s6655_s29 + $0x1a0] ss:$8 sps:$4 sm:$0xff]   ;;  %v6220_v50 = vld [vmem:[%s6655_s29 + $0x94] ss:$8 sps:$4 sm:$0xff]  }
0x1008   : > { %4719 = vmatprep.subr.bf16.mxu1 %v6142_v34  ;;  %4762 = vmatprep.subr.bf16.mxu0 %v6145_v58  ;;  %v6223_v34 = vld [vmem:[%s6655_s29 + $0x194] ss:$8 sps:$4 sm:$0xff]   ;;  %v6218_v58 = vld [vmem:[%s6655_s29 + $0x90] ss:$8 sps:$4 sm:$0xff]  }
0x100b   : > { %4720 = vmatpush1.bf16.msra.mxu1 %v6140_v59  ;;  %4763 = vmatpush1.bf16.msra.mxu0 %v6143_v39  ;;  %v6221_v59 = vld [vmem:[%s6655_s29 + $0x190] ss:$8 sps:$4 sm:$0xff]   ;;  %v6224_v39 = vld [vmem:[%s6655_s29 + $0x80] ss:$8 sps:$4 sm:$0xff]  }
0x100c   : > { %4721 = vmatprep.subr.bf16.mxu1 %v6148_v27  ;;  %4764 = vmatprep.subr.bf16.mxu0 %v6151_v43  ;;  %v6226_v27 = vld [vmem:[%s6655_s29 + $0x84] ss:$8 sps:$4 sm:$0xff]   ;;  %v6227_v43 = vld [vmem:[%s6655_s29 + $0x180] ss:$8 sps:$4 sm:$0xff]  }
0x100f   : > { %4722 = vmatpush1.bf16.msra.mxu1 %v6146_v33  ;;  %4765 = vmatpush1.bf16.msra.mxu0 %v6149_v61  ;;  %v6229_v33 = vld [vmem:[%s6655_s29 + $0x184] ss:$8 sps:$4 sm:$0xff]   ;;  %v3821_v61 = vld [vmem:[%s6675_s16] sm:$0xf]  ;;  %s7625_s29 = sld [smem:[#allocation21_spill]] (!%p5464_p1) }
0x1010   : > { %4723 = vmatprep.subr.bf16.mxu1 %v6154_v63  ;;  %4766 = vmatprep.subr.bf16.mxu0 %v6157_v41  ;;  %v3826_v63 = vrot.slane %v3821_v61, %v6771_v15  ;;  %v3834_v41 = vrot.slane %v3821_v61, %v6765_v13 }
0x1013   : > { %4724 = vmatpush1.bf16.msra.mxu1 %v6152_v40  ;;  %4767 = vmatpush1.bf16.msra.mxu0 %v6155_v0  ;;  %v3830_v40 = vrot.slane %v3821_v61, %v6868_v8  ;;  %v3838_v0 = vrot.slane %v3821_v61, %v6859_v1 }
0x1014   : > { %4725 = vmatprep.subr.bf16.mxu1 %v6160_v2  ;;  %4768 = vmatprep.subr.bf16.mxu0 %v6163_v3 }
0x1017   : > { %4726 = vmatpush1.bf16.msra.mxu1 %v6158_v7  ;;  %4769 = vmatpush1.bf16.msra.mxu0 %v6161_v9 }
0x1018   : > { %4727 = vmatprep.subr.bf16.mxu1 %v6166_v17  ;;  %4770 = vmatprep.subr.bf16.mxu0 %v6169_v18 }
0x101b   : > { %4728 = vmatpush1.bf16.msra.mxu1 %v6164_v19  ;;  %4771 = vmatpush1.bf16.msra.mxu0 %v6167_v21 }
0x101c   : > { %4729 = vmatprep.subr.bf16.mxu1 %v6172_v24  ;;  %4772 = vmatprep.subr.bf16.mxu0 %v6175_v36 }
0x101f   : > { %4730 = vmatpush1.bf16.msra.mxu1 %v6170_v11  ;;  %4773 = vmatpush1.bf16.msra.mxu0 %v6173_v30 }
0x1020   : > { %4731 = vmatprep.subr.bf16.mxu1 %v6178_v31  ;;  %4774 = vmatprep.subr.bf16.mxu0 %v6181_v32 }
0x1023   : > { %4732 = vmatpush1.bf16.msra.mxu1 %v6176_v29  ;;  %4775 = vmatpush1.bf16.msra.mxu0 %v6179_v53 }
0x1024   : > { %4733 = vmatprep.subr.bf16.mxu1 %v6184_v20  ;;  %4776 = vmatprep.subr.bf16.mxu0 %v6187_v38 }
0x1027   : > { %4734 = vmatpush2.bf16.msra.mxu1 %v6182_v54  ;;  %4777 = vmatpush2.bf16.msra.mxu0 %v6185_v28 }
0x1028   : > { %4735 = vmatprep.subr.bf16.mxu1 %v6190_v60  ;;  %4778 = vmatprep.subr.bf16.mxu0 %v6193_v37 }
0x102b   : > { %4736 = vmatpush2.bf16.msra.mxu1 %v6188_v14  ;;  %4779 = vmatpush2.bf16.msra.mxu0 %v6191_v10 }
0x102c   : > { %4737 = vmatprep.subr.bf16.mxu1 %v6196_v4  ;;  %4780 = vmatprep.subr.bf16.mxu0 %v6199_v5 }
0x102f   : > { %4738 = vmatpush2.bf16.msra.mxu1 %v6194_v42  ;;  %4781 = vmatpush2.bf16.msra.mxu0 %v6197_v22 }
0x1030   : > { %4739 = vmatprep.subr.bf16.mxu1 %v6202_v44  ;;  %4782 = vmatprep.subr.bf16.mxu0 %v6205_v45 }
0x1033   : > { %4740 = vmatpush2.bf16.msra.mxu1 %v6200_v49  ;;  %4783 = vmatpush2.bf16.msra.mxu0 %v6203_v52 }
0x1034   : > { %4741 = vmatprep.subr.bf16.mxu1 %v6208_v26  ;;  %4784 = vmatprep.subr.bf16.mxu0 %v6211_v55 }
0x1037   : > { %4742 = vmatpush2.bf16.msra.mxu1 %v6206_v48  ;;  %4785 = vmatpush2.bf16.msra.mxu0 %v6209_v16 }
0x1038   : > { %4743 = vmatprep.subr.bf16.mxu1 %v6214_v62  ;;  %4786 = vmatprep.subr.bf16.mxu0 %v6217_v57 }
0x103b   : > { %4744 = vmatpush2.bf16.msra.mxu1 %v6212_v56  ;;  %4787 = vmatpush2.bf16.msra.mxu0 %v6215_v6 }
0x103c   : > { %4745 = vmatprep.subr.bf16.mxu1 %v6220_v50  ;;  %4788 = vmatprep.subr.bf16.mxu0 %v6223_v34 }
0x103f   : > { %4746 = vmatpush2.bf16.msra.mxu1 %v6218_v58  ;;  %4789 = vmatpush2.bf16.msra.mxu0 %v6221_v59 }
0x1040   : > { %4747 = vmatprep.subr.bf16.mxu1 %v6226_v27  ;;  %4790 = vmatprep.subr.bf16.mxu0 %v6229_v33 }
0x1043   : > { %4748 = vmatpush2.bf16.msra.mxu1 %v6224_v39  ;;  %4791 = vmatpush2.bf16.msra.mxu0 %v6227_v43 }
0x10c6   : > { %v4197_v2 = vpop.f32.mrf.mxu1  ;;  %v4240_v3 = vpop.f32.mrf.mxu0 }
0x10c7   : > { %v7476_v7 = vadd.f32 %v4197_v2, %v3826_v63  ;;  %v7478_v9 = vadd.f32 %v4240_v3, %v3834_v41 }
0x10c8   : > { %v4199_v17 = vpop.f32.mrf.mxu1  ;;  %v4242_v18 = vpop.f32.mrf.mxu0 }
0x10c9   : > { %v4249_v19 = vmul.f32 %v7476_v7, %v7476_v7  ;;  %v4251_v21 = vmul.f32 %v7478_v9, %v7478_v9  ;;  %v7484_v24 = vadd.f32 %v4199_v17, %v3830_v40  ;;  %v7486_v13 = vadd.f32 %v4242_v18, %v3838_v0 }
0x10ca   : > { %v4201_v36 = vpop.f32.mrf.mxu1  ;;  %v4244_v1 = vpop.f32.mrf.mxu0 }
0x10cb   : > { %v4257_v11 = vmul.f32 %v4249_v19, %v7476_v7  ;;  %v4259_v30 = vmul.f32 %v4251_v21, %v7478_v9  ;;  %v4250_v31 = vmul.f32 %v7484_v24, %v7484_v24  ;;  %v4252_v32 = vmul.f32 %v7486_v13, %v7486_v13 }
0x10cc   : > { %v7494_v29 = vadd.f32 %v4201_v36, %v3826_v63  ;;  %v7496_v53 = vadd.f32 %v4244_v1, %v3834_v41  ;;  %v4203_v20 = vpop.f32.mrf.mxu1  ;;  %v4246_v38 = vpop.f32.mrf.mxu0 }
0x10cd   : > { %v4265_v54 = vmul.f32 0.044715, %v4257_v11  ;;  %v4267_v28 = vmul.f32 0.044715, %v4259_v30  ;;  %v4258_v60 = vmul.f32 %v4250_v31, %v7484_v24  ;;  %v4260_v37 = vmul.f32 %v4252_v32, %v7486_v13 }
0x10ce   : > { %v4253_v14 = vmul.f32 %v7494_v29, %v7494_v29  ;;  %v4255_v10 = vmul.f32 %v7496_v53, %v7496_v53  ;;  %v7504_v4 = vadd.f32 %v4203_v20, %v3830_v40  ;;  %v7506_v5 = vadd.f32 %v4246_v38, %v3838_v0 }
0x10cf   : > { %v4273_v42 = vadd.f32 %v4265_v54, %v7476_v7  ;;  %v4275_v22 = vadd.f32 %v4267_v28, %v7478_v9  ;;  %v4266_v44 = vmul.f32 0.044715, %v4258_v60  ;;  %v4268_v45 = vmul.f32 0.044715, %v4260_v37 }
0x10d0   : > { %v4261_v49 = vmul.f32 %v4253_v14, %v7494_v29  ;;  %v4263_v52 = vmul.f32 %v4255_v10, %v7496_v53  ;;  %v4254_v26 = vmul.f32 %v7504_v4, %v7504_v4  ;;  %v4256_v55 = vmul.f32 %v7506_v5, %v7506_v5 }
0x10d1   : > { %v4281_v48 = vmul.f32 0.7978846, %v4273_v42  ;;  %v4283_v16 = vmul.f32 0.7978846, %v4275_v22  ;;  %v4274_v62 = vadd.f32 %v4266_v44, %v7484_v24  ;;  %v4276_v57 = vadd.f32 %v4268_v45, %v7486_v13 }
0x10d2   : > { %v4269_v56 = vmul.f32 0.044715, %v4261_v49  ;;  %v4271_v6 = vmul.f32 0.044715, %v4263_v52  ;;  %v4262_v50 = vmul.f32 %v4254_v26, %v7504_v4  ;;  %v4264_v34 = vmul.f32 %v4256_v55, %v7506_v5 }
0x10d3   : > { %6270 = vtanh.f32 %v4281_v48  ;;  %v4282_v58 = vmul.f32 0.7978846, %v4274_v62  ;;  %v4284_v59 = vmul.f32 0.7978846, %v4276_v57 }
0x10d4   : > { %6272 = vtanh.f32 %v4283_v16  ;;  %v4277_v39 = vadd.f32 %v4269_v56, %v7494_v29  ;;  %v4279_v27 = vadd.f32 %v4271_v6, %v7496_v53  ;;  %v4270_v43 = vmul.f32 0.044715, %v4262_v50 }
0x10d5   : > { %6274 = vtanh.f32 %v4282_v58  ;;  %v4272_v33 = vmul.f32 0.044715, %v4264_v34 }
0x10d6   : > { %6276 = vtanh.f32 %v4284_v59  ;;  %v4285_v61 = vmul.f32 0.7978846, %v4277_v39  ;;  %v4287_v63 = vmul.f32 0.7978846, %v4279_v27  ;;  %v4278_v41 = vadd.f32 %v4270_v43, %v7504_v4 }
0x10d7   : > { %v4280_v40 = vadd.f32 %v4272_v33, %v7506_v5 }
0x10d8   : > { %6278 = vtanh.f32 %v4285_v61  ;;  %v4286_v0 = vmul.f32 0.7978846, %v4278_v41 }
0x10d9   : > { %6280 = vtanh.f32 %v4287_v63  ;;  %v4288_v2 = vmul.f32 0.7978846, %v4280_v40 }
0x10da   : > { %6282 = vtanh.f32 %v4286_v0 }
0x10db   : > { %6284 = vtanh.f32 %v4288_v2 }
0x10e0   : > { %v6271_v3 = vpop.eup %6270 }
0x10e1   : > { %v6273_v17 = vpop.eup %6272  ;;  %v4297_v1 = vadd.f32 1.0, %v6271_v3 }
0x10e2   : > { %v6275_v18 = vpop.eup %6274  ;;  %v4299_v31 = vadd.f32 1.0, %v6273_v17 }
0x10e3   : > { %v6277_v19 = vpop.eup %6276  ;;  %v4298_v21 = vadd.f32 1.0, %v6275_v18  ;;  %v4305_v14 = vmul.f32 0.5, %v4297_v1 }
0x10e4   : > { %v4300_v11 = vadd.f32 1.0, %v6277_v19  ;;  %v4307_v44 = vmul.f32 0.5, %v4299_v31 }
0x10e5   : > { %v6279_v36 = vpop.eup %6278  ;;  %v4306_v37 = vmul.f32 0.5, %v4298_v21  ;;  %v4313_v16 = vmul.f32 %v4305_v14, %v7476_v7 }
0x10e6   : > { %v6281_v30 = vpop.eup %6280  ;;  %v4301_v32 = vadd.f32 1.0, %v6279_v36  ;;  %v4308_v22 = vmul.f32 0.5, %v4300_v11  ;;  %v4315_v56 = vmul.f32 %v4307_v44, %v7478_v9 }
0x10e7   : > { %v6283_v20 = vpop.eup %6282  ;;  %v4303_v38 = vadd.f32 1.0, %v6281_v30  ;;  %v4314_v55 = vmul.f32 %v4306_v37, %v7484_v24  ;;  %v4391_v24 = vsub.s32 7, %v6762_v12 }
0x10e8   : > { %v6285_v54 = vpop.eup %6284  ;;  %v4309_v28 = vmul.f32 0.5, %v4301_v32  ;;  %v4302_v60 = vadd.f32 1.0, %v6283_v20  ;;  %v4316_v62 = vmul.f32 %v4308_v22, %v7486_v13  ;;  %v731_v22 = vld [vmem:[%s6660_s28 + $0x18] sm:$0x3] }
0x10e9   : > { %v4311_v10 = vmul.f32 0.5, %v4303_v38  ;;  %v4304_v42 = vadd.f32 1.0, %v6285_v54  ;;  %v4396_v7 = vrot.slane %v7280_v51, %v4391_v24 }
0x10ea   : > { %v4310_v45 = vmul.f32 0.5, %v4302_v60  ;;  %v4317_v49 = vmul.f32 %v4309_v28, %v7494_v29 }
0x10eb   : > { %v4312_v52 = vmul.f32 0.5, %v4304_v42  ;;  %v4319_v26 = vmul.f32 %v4311_v10, %v7496_v53  ;;  %v4392_v53 = vrot.slane %v7275_v47, %v4391_v24  ;;  %v730_v42 = vld [vmem:[%s6660_s28 + $0x10] sm:$0x3] }
0x10ec   : > { %v4318_v48 = vmul.f32 %v4310_v45, %v7504_v4  ;;  %v4321_v34 = vpack.c.bf16 %v4317_v49, %v4313_v16  ;;  %v4842_v44 = vrot.slane %v730_v42, %v6771_v15  ;;  %v4846_v45 = vrot.slane %v731_v22, %v6771_v15 }
0x10ed   : > { %v4320_v57 = vmul.f32 %v4312_v52, %v7506_v5  ;;  %v4323_v29 = vpack.c.bf16 %v4319_v26, %v4315_v56  ;;  %v4854_v52 = vrot.slane %v730_v42, %v6868_v8  ;;  %v4858_v26 = vrot.slane %v731_v22, %v6868_v8 }
0x10ee   : > { %v4322_v6 = vpack.c.bf16 %v4318_v48, %v4314_v55 }
0x10ef   : > { %v4324_v50 = vpack.c.bf16 %v4320_v57, %v4316_v62 }
0x10f0   : > { %4749 = vmatprep.mubr.bf16.mxu1 %v4322_v6 }
0x10f1   : > { %4792 = vmatprep.mubr.bf16.mxu0 %v4324_v50  ;;  %4750 = vmatmul.mubr.bf16.vlgmr.msra.gmra.mxu1 %v4321_v34 }
0x10f2   : > { %4793 = vmatmul.mubr.bf16.vlgmr.msra.gmra.mxu0 %v4323_v29 }
0x11b1   : > { %v4751_v4 = vpop.f32.mrf.mxu1 }
0x11b2   : > { %v4752_v13 = vadd.f32 %v4751_v4, %v4392_v53  ;;  %v4794_v58 = vpop.f32.mrf.mxu0 }
0x11b3   : > { %v4753_v5 = vpop.f32.mrf.mxu1 }
0x11b4   : > { %v4795_v59 = vadd.f32 %v4794_v58, %v4752_v13  ;;  %v4754_v9 = vadd.f32 %v4753_v5, %v4396_v7  ;;  %v4796_v39 = vpop.f32.mrf.mxu0 }
0x11b5   : > { %v4755_v27 = vpop.f32.mrf.mxu1 }
0x11b6   : > { %v4797_v43 = vadd.f32 %v4796_v39, %v4754_v9  ;;  %v4756_v33 = vadd.f32 %v4755_v27, %v4392_v53  ;;  %v4798_v61 = vpop.f32.mrf.mxu0  ;;  %v4803_v41 = vadd.f32 %v4795_v59, %v7401_v35 }
0x11b7   : > { %v4757_v63 = vpop.f32.mrf.mxu1 }
0x11b8   : > { %v4804_v12 = vadd.f32 %v4797_v43, %v7397_v23  ;;  %v4799_v40 = vadd.f32 %v4798_v61, %v4756_v33  ;;  %v4758_v47 = vadd.f32 %v4757_v63, %v4396_v7  ;;  %v4800_v0 = vpop.f32.mrf.mxu0 }
0x11ba   : > { %v4801_v51 = vadd.f32 %v4800_v0, %v4758_v47  ;;  %v4807_v2 = vadd.f32 %v4804_v12, %v4803_v41  ;;  %v4805_v3 = vadd.f32 %v4799_v40, %v7403_v25 }
0x11bc   : > { %v4806_v17 = vadd.f32 %v4801_v51, %v7399_v46  ;;  %4808 = vadd.xlane.f32.xlu0 %v4807_v2 }
0x11be   : > { %v4810_v18 = vadd.f32 %v4806_v17, %v4805_v3 }
0x11c0   : > { %4811 = vadd.xlane.f32.xlu1 %v4810_v18 }
0x1245   : > { %v4809_v19 = vpop.xlane.xlu0 %4808 }
0x1246   : > { %v4813_v21 = vmul.f32 0.00390625, %v4809_v19 }
0x1248   : > { %v4815_v36 = vsub.f32 %v4803_v41, %v4813_v21  ;;  %v4816_v1 = vsub.f32 %v4804_v12, %v4813_v21 }
0x1249   : > { %v4812_v11 = vpop.xlane.xlu1 %4811 }
0x124a   : > { %v4814_v35 = vmul.f32 0.00390625, %v4812_v11  ;;  %v4819_v30 = vmul.f32 %v4815_v36, %v4815_v36  ;;  %v4820_v23 = vmul.f32 %v4816_v1, %v4816_v1 }
0x124c   : > { %v4817_v31 = vsub.f32 %v4805_v3, %v4814_v35  ;;  %v4818_v32 = vsub.f32 %v4806_v17, %v4814_v35  ;;  %v4823_v20 = vadd.f32 %v4820_v23, %v4819_v30 }
0x124e   : > { %4824 = vadd.xlane.f32.xlu0 %v4823_v20  ;;  %v4821_v25 = vmul.f32 %v4817_v31, %v4817_v31  ;;  %v4822_v38 = vmul.f32 %v4818_v32, %v4818_v32 }
0x1250   : > { %v4826_v46 = vadd.f32 %v4822_v38, %v4821_v25 }
0x1252   : > { %4827 = vadd.xlane.f32.xlu1 %v4826_v46 }
0x12d7   : > { %v4825_v54 = vpop.xlane.xlu0 %4824 }
0x12d8   : > { %v4829_v28 = vmul.f32 0.00390625, %v4825_v54 }
0x12da   : > { %v4831_v60 = vadd.f32 1e-05, %v4829_v28 }
0x12db   : > { %v4828_v37 = vpop.xlane.xlu1 %4827 }
0x12dc   : > { %6286 = vrsqrt.f32 %v4831_v60  ;;  %v4830_v14 = vmul.f32 0.00390625, %v4828_v37 }
0x12de   : > { %v4832_v10 = vadd.f32 1e-05, %v4830_v14 }
0x12e0   : > { %6288 = vrsqrt.f32 %v4832_v10 }
0x12e9   : > { %v6287_v49 = vpop.eup %6286 }
0x12ea   : > { %v4835_v55 = vmul.f32 %v6287_v49, %v4815_v36  ;;  %v4836_v48 = vmul.f32 %v6287_v49, %v4816_v1 }
0x12ec   : > { %v4847_v16 = vmul.f32 %v4842_v44, %v4835_v55  ;;  %v4848_v62 = vmul.f32 %v4846_v45, %v4836_v48 }
0x12ed   : > { %v6289_v57 = vpop.eup %6288 }
0x12ee   : > { %v4859_v56 = vadd.f32 %v4854_v52, %v4847_v16  ;;  %v4860_v6 = vadd.f32 %v4858_v26, %v4848_v62  ;;  %v4837_v50 = vmul.f32 %v6289_v57, %v4817_v31  ;;  %v4838_v34 = vmul.f32 %v6289_v57, %v4818_v32 }
0x12f0   : > { %4863 = vst [vmem:[#allocation2 + $0x10] sm:$0xff] %v4859_v56  ;;  %4864 = vst [vmem:[#allocation2] sm:$0xff] %v4860_v6  ;;  %v4849_v29 = vmul.f32 %v4842_v44, %v4837_v50  ;;  %v4850_v24 = vmul.f32 %v4846_v45, %v4838_v34  ;;  %4870 = sbr.rel (%p5464_p1) target bundleno = 4855 (0x12f7), region = 96 }
0x12f2   : > { %v4861_v53 = vadd.f32 %v4854_v52, %v4849_v29  ;;  %v4862_v15 = vadd.f32 %v4858_v26, %v4850_v24 }
0x12f4   : > { %4865 = vst [vmem:[#allocation2 + $0x18] sm:$0xff] %v4861_v53  ;;  %4866 = vst [vmem:[#allocation2 + $0x8] sm:$0xff] %v4862_v15 }
0x12f5   : > { %4871 = vst [vmem:[%s7625_s29] sm:$0xff] %v4859_v56  ;;  %4872 = vst [vmem:[%s7625_s29 + $0x8] sm:$0xff] %v4860_v6 }
0x12f6   : > { %4873 = vst [vmem:[%s7625_s29 + $0x10] sm:$0xff] %v4861_v53  ;;  %4874 = vst [vmem:[%s7625_s29 + $0x18] sm:$0xff] %v4862_v15 }
0x12f7 PF: > { %s7626_s21 = sld [smem:[#allocation11_spill]] }
0x12f8   : > { %s7627_s18 = sld [smem:[#allocation9_spill]] }
0x12f9   : > { %s7628_s19 = sld [smem:[#allocation10_spill]] }
0x12fa   : > { %s7629_s20 = sld [smem:[#allocation12_spill]] }
0x12fd   : > { %p28_p4 = scmp.ge.s32.totalorder %s7626_s21, 4  }
0x12ff   :  { %30 = sbr.rel (!%p28_p4) target bundleno = 15 (0xf), region = 164 }
0x1304   :  { %4886 = vsyncpa [#allocation4], 1 }
0x1305   :  { %4888 = vsyncpa [#allocation4 + $0x1], 1 }
0x1306   :  { %4889 = vsyncpa [#allocation6], 1 }
0x1307   :  { %4891 = vsyncpa [#allocation6 + $0x1], 1 }

</bundles_post_ra>
